<compile_context>
chip_gen: v5e
topology: v5e:2x2
jax: 0.10.0
libtpu: 0.0.40
codegen_flags: <defaults>
</compile_context>

<pallas_src>
import math

import jax
import jax.numpy as jnp
from jax.experimental import pallas as pl


# ---------------------------------------------------------------------------
# Fused forward kernel: all refs are whole arrays resident in VMEM.
# ---------------------------------------------------------------------------
def _fused_forward_kernel(p1_ref, w1_ref, b1_ref,
                          w2_ref, b2_ref, s_ref,
                          w3_ref, b3_ref, u_ref,
                          w4_ref, b4_ref, o_ref):
    n, h, w, _ = o_ref.shape                 # (N, 16, 16, 2)
    ho, wo = h // 2, w // 2

    def conv_fold(x, w_r, b, relu):
        # x: (N, Hx, Wx, Cin) value, w_r: (KH, KW*Cin, Cout) packed weight ref
        nn, hh, ww, cin = x.shape
        kh, kwcin, cout = w_r.shape
        kw = kwcin // cin
        ph, pw = kh // 2, kw // 2

        # pad H only (leading-dim concat -> cheap)
        zrow = jnp.zeros((nn, ph, ww, cin), jnp.float32)
        xh = jnp.concatenate([zrow, x, zrow], axis=1)        # (nn, hh+2ph, ww, cin)

        # KW lane-fold: one W-shifted copy per kernel column, concatenated
        # along the channel (lane) axis.  dj = j - pw.
        pieces = []
        for j in range(kw):
            dj = j - pw
            if dj == 0:
                pieces.append(xh)
            elif dj < 0:
                zc = jnp.zeros((nn, hh + 2 * ph, -dj, cin), jnp.float32)
                pieces.append(jnp.concatenate([zc, xh[:, :, :ww + dj, :]], axis=2))
            else:
                zc = jnp.zeros((nn, hh + 2 * ph, dj, cin), jnp.float32)
                pieces.append(jnp.concatenate([xh[:, :, dj:, :], zc], axis=2))
        xw = jnp.concatenate(pieces, axis=3)                 # (nn, hh+2ph, ww, kw*cin)

        m = nn * hh * ww
        acc = jnp.zeros((m, cout), jnp.float32)
        for i in range(kh):                                  # free leading-dim H slices
            patch = xw[:, i:i + hh, :, :].reshape(m, kwcin)
            acc = acc + jnp.dot(patch, w_r[i],
                                preferred_element_type=jnp.float32)
        acc = acc + b
        if relu:
            acc = jnp.maximum(acc, 0.0)
        return acc.reshape(nn, hh, ww, cout)

    # ---- conv1 + relu: one im2col matmul (patches prebuilt wrapper-side) ---
    x1 = jnp.dot(p1_ref[...], w1_ref[...], preferred_element_type=jnp.float32)
    x1 = jnp.maximum(x1 + b1_ref[...], 0.0).reshape(n, h, w, w1_ref.shape[1])

    # ---- conv2 + relu -------------------------------------------------------
    x2 = conv_fold(x1, w2_ref, b2_ref[...], relu=True)       # (N, 16, 16, 32)
    c2 = x2.shape[3]

    # ---- 2x2 / stride-2 max pool -------------------------------------------
    # H direction: leading-dim split + max.
    t = x2.reshape(n, ho, 2, w, c2)
    hp = jnp.maximum(t[:, :, 0], t[:, :, 1])                 # (N, 8, 16, 32)
    # W direction: adjacent-column max (one sublane shift), then stride-2 row
    # selection via a constant 0/1 matrix on the MXU.
    hpf = hp.reshape(n * ho * w, c2)                         # (N*8*16, 32)
    sh = jnp.concatenate([hpf[1:, :], jnp.zeros((1, c2), jnp.float32)], axis=0)
    mx = jnp.maximum(hpf, sh)
    pooled = jnp.dot(s_ref[...], mx, preferred_element_type=jnp.float32)
    xp2 = pooled.reshape(n, ho, wo, c2)                      # (N, 8, 8, 32)

    # ---- conv3 + relu -------------------------------------------------------
    x3 = conv_fold(xp2, w3_ref, b3_ref[...], relu=True)      # (N, 8, 8, 16)
    c3 = x3.shape[3]

    # ---- bilinear x2 upsample (align_corners=False) as one constant matmul -
    x3f = x3.reshape(n * ho * wo, c3)                        # (N*64, 16)
    upf = jnp.dot(u_ref[...], x3f, preferred_element_type=jnp.float32)
    up = upf.reshape(n, h, w, c3)                            # (N, 16, 16, 16)

    # ---- conv4 (5x5, pad 2, no relu) ----------------------------------------
    o_ref[...] = conv_fold(up, w4_ref, b4_ref[...], relu=False)


# ---------------------------------------------------------------------------
# Wrapper-side constant operators and packing (all constant-folded under jit).
# ---------------------------------------------------------------------------
def _bilinear_matrix_1d(n_in):
    """(2*n_in, n_in) scale-2 bilinear matrix, align_corners=False (PyTorch)."""
    n_out = 2 * n_in
    o = jnp.arange(n_out, dtype=jnp.float32)
    src = jnp.maximum((o + 0.5) / 2.0 - 0.5, 0.0)
    i0 = jnp.floor(src)
    frac = src - i0
    i0 = i0.astype(jnp.int32)
    i1 = jnp.minimum(i0 + 1, n_in - 1)
    cols = jnp.arange(n_in, dtype=jnp.int32)[None, :]
    return ((cols == i0[:, None]).astype(jnp.float32) * (1.0 - frac)[:, None]
            + (cols == i1[:, None]).astype(jnp.float32) * frac[:, None])


def _maxpool_select_matrix(ho, wo, w_full):
    """(ho*wo, ho*w_full) stride-2 row-selection matrix for one sample."""
    r = jnp.arange(ho * wo, dtype=jnp.int32)
    src = (r // wo) * w_full + 2 * (r % wo)
    cols = jnp.arange(ho * w_full, dtype=jnp.int32)[None, :]
    return (cols == src[:, None]).astype(jnp.float32)


def _conv1_im2col_patches(x_nchw):
    """(N*H*W, 9*Cin) conv1 patches built from NCHW input (wrapper/XLA side)."""
    n, c, hh, ww = x_nchw.shape
    x = jnp.transpose(x_nchw, (0, 2, 3, 1))
    xp = jnp.pad(x, ((0, 0), (1, 1), (1, 1), (0, 0)))
    cols = [xp[:, i:i + hh, j:j + ww, :].reshape(n * hh * ww, c)
            for i in range(3) for j in range(3)]
    return jnp.concatenate(cols, axis=1)


def model_forward(x_nchw, p):
    x_nchw = x_nchw.astype(jnp.float32)
    n, _, hh, ww = x_nchw.shape
    ho, wo = hh // 2, ww // 2

    p1 = _conv1_im2col_patches(x_nchw)                         # (N*H*W, 27)

    # pre-packed weights: conv1 as (27, 16); others as (KH, KW*Cin, Cout)
    w1p = p["w1"].reshape(3 * 3 * 3, 16)
    w2p = p["w2"].reshape(3, 3 * 16, 32)
    w3p = p["w3"].reshape(3, 3 * 32, 16)
    w4p = p["w4"].reshape(5, 5 * 16, 2)

    # constant linear operators (block-diagonal over the batch)
    eye_n = jnp.eye(n, dtype=jnp.float32)
    s_pool = jnp.kron(eye_n, _maxpool_select_matrix(ho, wo, ww))        # (N*64, N*128)
    u_up = jnp.kron(eye_n, jnp.kron(_bilinear_matrix_1d(ho),
                                    _bilinear_matrix_1d(wo)))           # (N*256, N*64)

    out_nhwc = pl.pallas_call(
        _fused_forward_kernel,
        out_shape=jax.ShapeDtypeStruct((n, hh, ww, 2), jnp.float32),
    )(p1, w1p, p["b1"].reshape(1, -1),
      w2p, p["b2"].reshape(1, -1), s_pool,
      w3p, p["b3"].reshape(1, -1), u_up,
      w4p, p["b4"].reshape(1, -1))

    # NHWC -> NCHW (tiny; kept wrapper-side, see header comment)
    return jnp.transpose(out_nhwc, (0, 3, 1, 2))


# ---------------------------------------------------------------------------
# Parameters (deterministic, PyTorch-style uniform(-1/sqrt(fan_in), ...)).
# Weights stored as (KH, KW, Cin, Cout).
# ---------------------------------------------------------------------------
def init_params(key):
    ks = jax.random.split(key, 8)

    def conv_init(kw_key, kb_key, kh, kw, cin, cout):
        fan_in = cin * kh * kw
        bound = 1.0 / math.sqrt(fan_in)
        w = jax.random.uniform(kw_key, (kh, kw, cin, cout), jnp.float32,
                               -bound, bound)
        b = jax.random.uniform(kb_key, (cout,), jnp.float32, -bound, bound)
        return w, b

    w1, b1 = conv_init(ks[0], ks[1], 3, 3, 3, 16)
    w2, b2 = conv_init(ks[2], ks[3], 3, 3, 16, 32)
    w3, b3 = conv_init(ks[4], ks[5], 3, 3, 32, 16)
    w4, b4 = conv_init(ks[6], ks[7], 5, 5, 16, 2)
    return dict(w1=w1, b1=b1, w2=w2, b2=b2, w3=w3, b3=b3, w4=w4, b4=b4)


if __name__ == "__main__":
    key = jax.random.PRNGKey(0)
    pkey, xkey = jax.random.split(key)
    params = init_params(pkey)

    # small deterministic input, NCHW like the PyTorch module expects
    x = jax.random.normal(xkey, (2, 3, 16, 16), dtype=jnp.float32)

    fwd = jax.jit(lambda xx: model_forward(xx, params))
    out = jax.block_until_ready(fwd(x))

    assert out.shape == (2, 2, 16, 16), out.shape
    assert out.dtype == jnp.float32
    assert bool(jnp.all(jnp.isfinite(out)))
    print("KERNEL_OK")
</pallas_src>

<mosaic_0001>
module attributes {stable_mosaic.version = 11 : i64} {
  func.func @_fused_forward_kernel(%arg0: memref<512x27xf32, #tpu.memory_space<vmem>>, %arg1: memref<27x16xf32, #tpu.memory_space<vmem>>, %arg2: memref<1x16xf32, #tpu.memory_space<vmem>>, %arg3: memref<3x48x32xf32, #tpu.memory_space<vmem>>, %arg4: memref<1x32xf32, #tpu.memory_space<vmem>>, %arg5: memref<128x256xf32, #tpu.memory_space<vmem>>, %arg6: memref<3x96x16xf32, #tpu.memory_space<vmem>>, %arg7: memref<1x16xf32, #tpu.memory_space<vmem>>, %arg8: memref<512x128xf32, #tpu.memory_space<vmem>>, %arg9: memref<5x80x2xf32, #tpu.memory_space<vmem>>, %arg10: memref<1x2xf32, #tpu.memory_space<vmem>>, %arg11: memref<2x16x16x2xf32, #tpu.memory_space<vmem>>) attributes {dimension_semantics = [], scalar_prefetch = 0 : i64, scratch_operands = 0 : i64, tpu.core_type = #tpu.core_type<tc>} {
    %c0 = arith.constant 0 : index
    %c0_0 = arith.constant 0 : index
    %0 = vector.load %arg0[%c0, %c0_0] : memref<512x27xf32, #tpu.memory_space<vmem>>, vector<512x27xf32>
    %c0_1 = arith.constant 0 : index
    %c0_2 = arith.constant 0 : index
    %1 = vector.load %arg1[%c0_1, %c0_2] : memref<27x16xf32, #tpu.memory_space<vmem>>, vector<27x16xf32>
    %cst = arith.constant dense<0.000000e+00> : vector<512x16xf32>
    %2 = tpu.matmul %0, %1, %cst {dimension_numbers = #tpu.dot_dimension_numbers<[1], [0], [0], [1], [0, 0, 1, 1], [], []>} : vector<512x27xf32>, vector<27x16xf32>, vector<512x16xf32> -> vector<512x16xf32>
    %c0_3 = arith.constant 0 : index
    %c0_4 = arith.constant 0 : index
    %3 = vector.load %arg2[%c0_3, %c0_4] : memref<1x16xf32, #tpu.memory_space<vmem>>, vector<1x16xf32>
    %4 = vector.broadcast %3 : vector<1x16xf32> to vector<512x16xf32>
    %5 = arith.addf %2, %4 : vector<512x16xf32>
    %cst_5 = arith.constant 0.000000e+00 : f32
    %6 = vector.broadcast %cst_5 : f32 to vector<512x16xf32>
    %7 = arith.maximumf %5, %6 : vector<512x16xf32>
    %8 = vector.shape_cast %7 : vector<512x16xf32> to vector<2x16x16x16xf32>
    %c0_6 = arith.constant 0 : index
    %c0_7 = arith.constant 0 : index
    %9 = vector.load %arg4[%c0_6, %c0_7] : memref<1x32xf32, #tpu.memory_space<vmem>>, vector<1x32xf32>
    %cst_8 = arith.constant 0.000000e+00 : f32
    %10 = vector.broadcast %cst_8 : f32 to vector<2x1x16x16xf32>
    %11 = tpu.concatenate %10, %8, %10 in 1 : vector<2x1x16x16xf32>, vector<2x16x16x16xf32>, vector<2x1x16x16xf32> -> vector<2x18x16x16xf32>
    %cst_9 = arith.constant 0.000000e+00 : f32
    %12 = vector.broadcast %cst_9 : f32 to vector<2x18x1x16xf32>
    %13 = vector.extract_strided_slice %11 {offsets = [0, 0, 0, 0], sizes = [2, 18, 15, 16], strides = [1, 1, 1, 1]} : vector<2x18x16x16xf32> to vector<2x18x15x16xf32>
    %14 = tpu.concatenate %12, %13 in 2 : vector<2x18x1x16xf32>, vector<2x18x15x16xf32> -> vector<2x18x16x16xf32>
    %cst_10 = arith.constant 0.000000e+00 : f32
    %15 = vector.broadcast %cst_10 : f32 to vector<2x18x1x16xf32>
    %16 = vector.extract_strided_slice %11 {offsets = [0, 0, 1, 0], sizes = [2, 18, 15, 16], strides = [1, 1, 1, 1]} : vector<2x18x16x16xf32> to vector<2x18x15x16xf32>
    %17 = tpu.concatenate %16, %15 in 2 : vector<2x18x15x16xf32>, vector<2x18x1x16xf32> -> vector<2x18x16x16xf32>
    %18 = tpu.concatenate %14, %11, %17 in 3 : vector<2x18x16x16xf32>, vector<2x18x16x16xf32>, vector<2x18x16x16xf32> -> vector<2x18x16x48xf32>
    %cst_11 = arith.constant 0.000000e+00 : f32
    %19 = vector.broadcast %cst_11 : f32 to vector<512x32xf32>
    %20 = vector.extract_strided_slice %18 {offsets = [0, 0, 0, 0], sizes = [2, 16, 16, 48], strides = [1, 1, 1, 1]} : vector<2x18x16x48xf32> to vector<2x16x16x48xf32>
    %21 = vector.shape_cast %20 : vector<2x16x16x48xf32> to vector<512x48xf32>
    %c0_12 = arith.constant 0 : index
    %c0_13 = arith.constant 0 : index
    %c0_14 = arith.constant 0 : index
    %22 = vector.load %arg3[%c0_12, %c0_13, %c0_14] : memref<3x48x32xf32, #tpu.memory_space<vmem>>, vector<1x48x32xf32>
    %23 = vector.shape_cast %22 : vector<1x48x32xf32> to vector<48x32xf32>
    %cst_15 = arith.constant dense<0.000000e+00> : vector<512x32xf32>
    %24 = tpu.matmul %21, %23, %cst_15 {dimension_numbers = #tpu.dot_dimension_numbers<[1], [0], [0], [1], [0, 0, 1, 1], [], []>} : vector<512x48xf32>, vector<48x32xf32>, vector<512x32xf32> -> vector<512x32xf32>
    %25 = arith.addf %19, %24 : vector<512x32xf32>
    %26 = vector.extract_strided_slice %18 {offsets = [0, 1, 0, 0], sizes = [2, 16, 16, 48], strides = [1, 1, 1, 1]} : vector<2x18x16x48xf32> to vector<2x16x16x48xf32>
    %27 = vector.shape_cast %26 : vector<2x16x16x48xf32> to vector<512x48xf32>
    %c1 = arith.constant 1 : index
    %c0_16 = arith.constant 0 : index
    %c0_17 = arith.constant 0 : index
    %28 = vector.load %arg3[%c1, %c0_16, %c0_17] : memref<3x48x32xf32, #tpu.memory_space<vmem>>, vector<1x48x32xf32>
    %29 = vector.shape_cast %28 : vector<1x48x32xf32> to vector<48x32xf32>
    %cst_18 = arith.constant dense<0.000000e+00> : vector<512x32xf32>
    %30 = tpu.matmul %27, %29, %cst_18 {dimension_numbers = #tpu.dot_dimension_numbers<[1], [0], [0], [1], [0, 0, 1, 1], [], []>} : vector<512x48xf32>, vector<48x32xf32>, vector<512x32xf32> -> vector<512x32xf32>
    %31 = arith.addf %25, %30 : vector<512x32xf32>
    %32 = vector.extract_strided_slice %18 {offsets = [0, 2, 0, 0], sizes = [2, 16, 16, 48], strides = [1, 1, 1, 1]} : vector<2x18x16x48xf32> to vector<2x16x16x48xf32>
    %33 = vector.shape_cast %32 : vector<2x16x16x48xf32> to vector<512x48xf32>
    %c2 = arith.constant 2 : index
    %c0_19 = arith.constant 0 : index
    %c0_20 = arith.constant 0 : index
    %34 = vector.load %arg3[%c2, %c0_19, %c0_20] : memref<3x48x32xf32, #tpu.memory_space<vmem>>, vector<1x48x32xf32>
    %35 = vector.shape_cast %34 : vector<1x48x32xf32> to vector<48x32xf32>
    %cst_21 = arith.constant dense<0.000000e+00> : vector<512x32xf32>
    %36 = tpu.matmul %33, %35, %cst_21 {dimension_numbers = #tpu.dot_dimension_numbers<[1], [0], [0], [1], [0, 0, 1, 1], [], []>} : vector<512x48xf32>, vector<48x32xf32>, vector<512x32xf32> -> vector<512x32xf32>
    %37 = arith.addf %31, %36 : vector<512x32xf32>
    %38 = vector.broadcast %9 : vector<1x32xf32> to vector<512x32xf32>
    %39 = arith.addf %37, %38 : vector<512x32xf32>
    %cst_22 = arith.constant 0.000000e+00 : f32
    %40 = vector.broadcast %cst_22 : f32 to vector<512x32xf32>
    %41 = arith.maximumf %39, %40 : vector<512x32xf32>
    %42 = vector.shape_cast %41 : vector<512x32xf32> to vector<2x16x16x32xf32>
    %43 = vector.shape_cast %42 : vector<2x16x16x32xf32> to vector<2x8x2x16x32xf32>
    %44 = vector.extract_strided_slice %43 {offsets = [0, 0, 0, 0, 0], sizes = [2, 8, 1, 16, 32], strides = [1, 1, 1, 1, 1]} : vector<2x8x2x16x32xf32> to vector<2x8x1x16x32xf32>
    %45 = vector.shape_cast %44 : vector<2x8x1x16x32xf32> to vector<2x8x16x32xf32>
    %46 = vector.extract_strided_slice %43 {offsets = [0, 0, 1, 0, 0], sizes = [2, 8, 1, 16, 32], strides = [1, 1, 1, 1, 1]} : vector<2x8x2x16x32xf32> to vector<2x8x1x16x32xf32>
    %47 = vector.shape_cast %46 : vector<2x8x1x16x32xf32> to vector<2x8x16x32xf32>
    %48 = arith.maximumf %45, %47 : vector<2x8x16x32xf32>
    %49 = vector.shape_cast %48 : vector<2x8x16x32xf32> to vector<256x32xf32>
    %50 = vector.extract_strided_slice %49 {offsets = [1, 0], sizes = [255, 32], strides = [1, 1]} : vector<256x32xf32> to vector<255x32xf32>
    %cst_23 = arith.constant 0.000000e+00 : f32
    %51 = vector.broadcast %cst_23 : f32 to vector<1x32xf32>
    %52 = tpu.concatenate %50, %51 in 0 : vector<255x32xf32>, vector<1x32xf32> -> vector<256x32xf32>
    %53 = arith.maximumf %49, %52 : vector<256x32xf32>
    %c0_24 = arith.constant 0 : index
    %c0_25 = arith.constant 0 : index
    %54 = vector.load %arg5[%c0_24, %c0_25] : memref<128x256xf32, #tpu.memory_space<vmem>>, vector<128x256xf32>
    %cst_26 = arith.constant dense<0.000000e+00> : vector<128x32xf32>
    %55 = tpu.matmul %54, %53, %cst_26 {dimension_numbers = #tpu.dot_dimension_numbers<[1], [0], [0], [1], [0, 0, 1, 1], [], []>} : vector<128x256xf32>, vector<256x32xf32>, vector<128x32xf32> -> vector<128x32xf32>
    %56 = vector.shape_cast %55 : vector<128x32xf32> to vector<2x8x8x32xf32>
    %c0_27 = arith.constant 0 : index
    %c0_28 = arith.constant 0 : index
    %57 = vector.load %arg7[%c0_27, %c0_28] : memref<1x16xf32, #tpu.memory_space<vmem>>, vector<1x16xf32>
    %cst_29 = arith.constant 0.000000e+00 : f32
    %58 = vector.broadcast %cst_29 : f32 to vector<2x1x8x32xf32>
    %59 = tpu.concatenate %58, %56, %58 in 1 : vector<2x1x8x32xf32>, vector<2x8x8x32xf32>, vector<2x1x8x32xf32> -> vector<2x10x8x32xf32>
    %cst_30 = arith.constant 0.000000e+00 : f32
    %60 = vector.broadcast %cst_30 : f32 to vector<2x10x1x32xf32>
    %61 = vector.extract_strided_slice %59 {offsets = [0, 0, 0, 0], sizes = [2, 10, 7, 32], strides = [1, 1, 1, 1]} : vector<2x10x8x32xf32> to vector<2x10x7x32xf32>
    %62 = tpu.concatenate %60, %61 in 2 : vector<2x10x1x32xf32>, vector<2x10x7x32xf32> -> vector<2x10x8x32xf32>
    %cst_31 = arith.constant 0.000000e+00 : f32
    %63 = vector.broadcast %cst_31 : f32 to vector<2x10x1x32xf32>
    %64 = vector.extract_strided_slice %59 {offsets = [0, 0, 1, 0], sizes = [2, 10, 7, 32], strides = [1, 1, 1, 1]} : vector<2x10x8x32xf32> to vector<2x10x7x32xf32>
    %65 = tpu.concatenate %64, %63 in 2 : vector<2x10x7x32xf32>, vector<2x10x1x32xf32> -> vector<2x10x8x32xf32>
    %66 = tpu.concatenate %62, %59, %65 in 3 : vector<2x10x8x32xf32>, vector<2x10x8x32xf32>, vector<2x10x8x32xf32> -> vector<2x10x8x96xf32>
    %cst_32 = arith.constant 0.000000e+00 : f32
    %67 = vector.broadcast %cst_32 : f32 to vector<128x16xf32>
    %68 = vector.extract_strided_slice %66 {offsets = [0, 0, 0, 0], sizes = [2, 8, 8, 96], strides = [1, 1, 1, 1]} : vector<2x10x8x96xf32> to vector<2x8x8x96xf32>
    %69 = vector.shape_cast %68 : vector<2x8x8x96xf32> to vector<128x96xf32>
    %c0_33 = arith.constant 0 : index
    %c0_34 = arith.constant 0 : index
    %c0_35 = arith.constant 0 : index
    %70 = vector.load %arg6[%c0_33, %c0_34, %c0_35] : memref<3x96x16xf32, #tpu.memory_space<vmem>>, vector<1x96x16xf32>
    %71 = vector.shape_cast %70 : vector<1x96x16xf32> to vector<96x16xf32>
    %cst_36 = arith.constant dense<0.000000e+00> : vector<128x16xf32>
    %72 = tpu.matmul %69, %71, %cst_36 {dimension_numbers = #tpu.dot_dimension_numbers<[1], [0], [0], [1], [0, 0, 1, 1], [], []>} : vector<128x96xf32>, vector<96x16xf32>, vector<128x16xf32> -> vector<128x16xf32>
    %73 = arith.addf %67, %72 : vector<128x16xf32>
    %74 = vector.extract_strided_slice %66 {offsets = [0, 1, 0, 0], sizes = [2, 8, 8, 96], strides = [1, 1, 1, 1]} : vector<2x10x8x96xf32> to vector<2x8x8x96xf32>
    %75 = vector.shape_cast %74 : vector<2x8x8x96xf32> to vector<128x96xf32>
    %c1_37 = arith.constant 1 : index
    %c0_38 = arith.constant 0 : index
    %c0_39 = arith.constant 0 : index
    %76 = vector.load %arg6[%c1_37, %c0_38, %c0_39] : memref<3x96x16xf32, #tpu.memory_space<vmem>>, vector<1x96x16xf32>
    %77 = vector.shape_cast %76 : vector<1x96x16xf32> to vector<96x16xf32>
    %cst_40 = arith.constant dense<0.000000e+00> : vector<128x16xf32>
    %78 = tpu.matmul %75, %77, %cst_40 {dimension_numbers = #tpu.dot_dimension_numbers<[1], [0], [0], [1], [0, 0, 1, 1], [], []>} : vector<128x96xf32>, vector<96x16xf32>, vector<128x16xf32> -> vector<128x16xf32>
    %79 = arith.addf %73, %78 : vector<128x16xf32>
    %80 = vector.extract_strided_slice %66 {offsets = [0, 2, 0, 0], sizes = [2, 8, 8, 96], strides = [1, 1, 1, 1]} : vector<2x10x8x96xf32> to vector<2x8x8x96xf32>
    %81 = vector.shape_cast %80 : vector<2x8x8x96xf32> to vector<128x96xf32>
    %c2_41 = arith.constant 2 : index
    %c0_42 = arith.constant 0 : index
    %c0_43 = arith.constant 0 : index
    %82 = vector.load %arg6[%c2_41, %c0_42, %c0_43] : memref<3x96x16xf32, #tpu.memory_space<vmem>>, vector<1x96x16xf32>
    %83 = vector.shape_cast %82 : vector<1x96x16xf32> to vector<96x16xf32>
    %cst_44 = arith.constant dense<0.000000e+00> : vector<128x16xf32>
    %84 = tpu.matmul %81, %83, %cst_44 {dimension_numbers = #tpu.dot_dimension_numbers<[1], [0], [0], [1], [0, 0, 1, 1], [], []>} : vector<128x96xf32>, vector<96x16xf32>, vector<128x16xf32> -> vector<128x16xf32>
    %85 = arith.addf %79, %84 : vector<128x16xf32>
    %86 = vector.broadcast %57 : vector<1x16xf32> to vector<128x16xf32>
    %87 = arith.addf %85, %86 : vector<128x16xf32>
    %cst_45 = arith.constant 0.000000e+00 : f32
    %88 = vector.broadcast %cst_45 : f32 to vector<128x16xf32>
    %89 = arith.maximumf %87, %88 : vector<128x16xf32>
    %90 = vector.shape_cast %89 : vector<128x16xf32> to vector<2x8x8x16xf32>
    %91 = vector.shape_cast %90 : vector<2x8x8x16xf32> to vector<128x16xf32>
    %c0_46 = arith.constant 0 : index
    %c0_47 = arith.constant 0 : index
    %92 = vector.load %arg8[%c0_46, %c0_47] : memref<512x128xf32, #tpu.memory_space<vmem>>, vector<512x128xf32>
    %cst_48 = arith.constant dense<0.000000e+00> : vector<512x16xf32>
    %93 = tpu.matmul %92, %91, %cst_48 {dimension_numbers = #tpu.dot_dimension_numbers<[1], [0], [0], [1], [0, 0, 1, 1], [], []>} : vector<512x128xf32>, vector<128x16xf32>, vector<512x16xf32> -> vector<512x16xf32>
    %94 = vector.shape_cast %93 : vector<512x16xf32> to vector<2x16x16x16xf32>
    %c0_49 = arith.constant 0 : index
    %c0_50 = arith.constant 0 : index
    %95 = vector.load %arg10[%c0_49, %c0_50] : memref<1x2xf32, #tpu.memory_space<vmem>>, vector<1x2xf32>
    %cst_51 = arith.constant 0.000000e+00 : f32
    %96 = vector.broadcast %cst_51 : f32 to vector<2x2x16x16xf32>
    %97 = tpu.concatenate %96, %94, %96 in 1 : vector<2x2x16x16xf32>, vector<2x16x16x16xf32>, vector<2x2x16x16xf32> -> vector<2x20x16x16xf32>
    %cst_52 = arith.constant 0.000000e+00 : f32
    %98 = vector.broadcast %cst_52 : f32 to vector<2x20x2x16xf32>
    %99 = vector.extract_strided_slice %97 {offsets = [0, 0, 0, 0], sizes = [2, 20, 14, 16], strides = [1, 1, 1, 1]} : vector<2x20x16x16xf32> to vector<2x20x14x16xf32>
    %100 = tpu.concatenate %98, %99 in 2 : vector<2x20x2x16xf32>, vector<2x20x14x16xf32> -> vector<2x20x16x16xf32>
    %cst_53 = arith.constant 0.000000e+00 : f32
    %101 = vector.broadcast %cst_53 : f32 to vector<2x20x1x16xf32>
    %102 = vector.extract_strided_slice %97 {offsets = [0, 0, 0, 0], sizes = [2, 20, 15, 16], strides = [1, 1, 1, 1]} : vector<2x20x16x16xf32> to vector<2x20x15x16xf32>
    %103 = tpu.concatenate %101, %102 in 2 : vector<2x20x1x16xf32>, vector<2x20x15x16xf32> -> vector<2x20x16x16xf32>
    %cst_54 = arith.constant 0.000000e+00 : f32
    %104 = vector.broadcast %cst_54 : f32 to vector<2x20x1x16xf32>
    %105 = vector.extract_strided_slice %97 {offsets = [0, 0, 1, 0], sizes = [2, 20, 15, 16], strides = [1, 1, 1, 1]} : vector<2x20x16x16xf32> to vector<2x20x15x16xf32>
    %106 = tpu.concatenate %105, %104 in 2 : vector<2x20x15x16xf32>, vector<2x20x1x16xf32> -> vector<2x20x16x16xf32>
    %cst_55 = arith.constant 0.000000e+00 : f32
    %107 = vector.broadcast %cst_55 : f32 to vector<2x20x2x16xf32>
    %108 = vector.extract_strided_slice %97 {offsets = [0, 0, 2, 0], sizes = [2, 20, 14, 16], strides = [1, 1, 1, 1]} : vector<2x20x16x16xf32> to vector<2x20x14x16xf32>
    %109 = tpu.concatenate %108, %107 in 2 : vector<2x20x14x16xf32>, vector<2x20x2x16xf32> -> vector<2x20x16x16xf32>
    %110 = tpu.concatenate %100, %103, %97, %106, %109 in 3 : vector<2x20x16x16xf32>, vector<2x20x16x16xf32>, vector<2x20x16x16xf32>, vector<2x20x16x16xf32>, vector<2x20x16x16xf32> -> vector<2x20x16x80xf32>
    %cst_56 = arith.constant 0.000000e+00 : f32
    %111 = vector.broadcast %cst_56 : f32 to vector<512x2xf32>
    %112 = vector.extract_strided_slice %110 {offsets = [0, 0, 0, 0], sizes = [2, 16, 16, 80], strides = [1, 1, 1, 1]} : vector<2x20x16x80xf32> to vector<2x16x16x80xf32>
    %113 = vector.shape_cast %112 : vector<2x16x16x80xf32> to vector<512x80xf32>
    %c0_57 = arith.constant 0 : index
    %c0_58 = arith.constant 0 : index
    %c0_59 = arith.constant 0 : index
    %114 = vector.load %arg9[%c0_57, %c0_58, %c0_59] : memref<5x80x2xf32, #tpu.memory_space<vmem>>, vector<1x80x2xf32>
    %115 = vector.shape_cast %114 : vector<1x80x2xf32> to vector<80x2xf32>
    %cst_60 = arith.constant dense<0.000000e+00> : vector<512x2xf32>
    %116 = tpu.matmul %113, %115, %cst_60 {dimension_numbers = #tpu.dot_dimension_numbers<[1], [0], [0], [1], [0, 0, 1, 1], [], []>} : vector<512x80xf32>, vector<80x2xf32>, vector<512x2xf32> -> vector<512x2xf32>
    %117 = arith.addf %111, %116 : vector<512x2xf32>
    %118 = vector.extract_strided_slice %110 {offsets = [0, 1, 0, 0], sizes = [2, 16, 16, 80], strides = [1, 1, 1, 1]} : vector<2x20x16x80xf32> to vector<2x16x16x80xf32>
    %119 = vector.shape_cast %118 : vector<2x16x16x80xf32> to vector<512x80xf32>
    %c1_61 = arith.constant 1 : index
    %c0_62 = arith.constant 0 : index
    %c0_63 = arith.constant 0 : index
    %120 = vector.load %arg9[%c1_61, %c0_62, %c0_63] : memref<5x80x2xf32, #tpu.memory_space<vmem>>, vector<1x80x2xf32>
    %121 = vector.shape_cast %120 : vector<1x80x2xf32> to vector<80x2xf32>
    %cst_64 = arith.constant dense<0.000000e+00> : vector<512x2xf32>
    %122 = tpu.matmul %119, %121, %cst_64 {dimension_numbers = #tpu.dot_dimension_numbers<[1], [0], [0], [1], [0, 0, 1, 1], [], []>} : vector<512x80xf32>, vector<80x2xf32>, vector<512x2xf32> -> vector<512x2xf32>
    %123 = arith.addf %117, %122 : vector<512x2xf32>
    %124 = vector.extract_strided_slice %110 {offsets = [0, 2, 0, 0], sizes = [2, 16, 16, 80], strides = [1, 1, 1, 1]} : vector<2x20x16x80xf32> to vector<2x16x16x80xf32>
    %125 = vector.shape_cast %124 : vector<2x16x16x80xf32> to vector<512x80xf32>
    %c2_65 = arith.constant 2 : index
    %c0_66 = arith.constant 0 : index
    %c0_67 = arith.constant 0 : index
    %126 = vector.load %arg9[%c2_65, %c0_66, %c0_67] : memref<5x80x2xf32, #tpu.memory_space<vmem>>, vector<1x80x2xf32>
    %127 = vector.shape_cast %126 : vector<1x80x2xf32> to vector<80x2xf32>
    %cst_68 = arith.constant dense<0.000000e+00> : vector<512x2xf32>
    %128 = tpu.matmul %125, %127, %cst_68 {dimension_numbers = #tpu.dot_dimension_numbers<[1], [0], [0], [1], [0, 0, 1, 1], [], []>} : vector<512x80xf32>, vector<80x2xf32>, vector<512x2xf32> -> vector<512x2xf32>
    %129 = arith.addf %123, %128 : vector<512x2xf32>
    %130 = vector.extract_strided_slice %110 {offsets = [0, 3, 0, 0], sizes = [2, 16, 16, 80], strides = [1, 1, 1, 1]} : vector<2x20x16x80xf32> to vector<2x16x16x80xf32>
    %131 = vector.shape_cast %130 : vector<2x16x16x80xf32> to vector<512x80xf32>
    %c3 = arith.constant 3 : index
    %c0_69 = arith.constant 0 : index
    %c0_70 = arith.constant 0 : index
    %132 = vector.load %arg9[%c3, %c0_69, %c0_70] : memref<5x80x2xf32, #tpu.memory_space<vmem>>, vector<1x80x2xf32>
    %133 = vector.shape_cast %132 : vector<1x80x2xf32> to vector<80x2xf32>
    %cst_71 = arith.constant dense<0.000000e+00> : vector<512x2xf32>
    %134 = tpu.matmul %131, %133, %cst_71 {dimension_numbers = #tpu.dot_dimension_numbers<[1], [0], [0], [1], [0, 0, 1, 1], [], []>} : vector<512x80xf32>, vector<80x2xf32>, vector<512x2xf32> -> vector<512x2xf32>
    %135 = arith.addf %129, %134 : vector<512x2xf32>
    %136 = vector.extract_strided_slice %110 {offsets = [0, 4, 0, 0], sizes = [2, 16, 16, 80], strides = [1, 1, 1, 1]} : vector<2x20x16x80xf32> to vector<2x16x16x80xf32>
    %137 = vector.shape_cast %136 : vector<2x16x16x80xf32> to vector<512x80xf32>
    %c4 = arith.constant 4 : index
    %c0_72 = arith.constant 0 : index
    %c0_73 = arith.constant 0 : index
    %138 = vector.load %arg9[%c4, %c0_72, %c0_73] : memref<5x80x2xf32, #tpu.memory_space<vmem>>, vector<1x80x2xf32>
    %139 = vector.shape_cast %138 : vector<1x80x2xf32> to vector<80x2xf32>
    %cst_74 = arith.constant dense<0.000000e+00> : vector<512x2xf32>
    %140 = tpu.matmul %137, %139, %cst_74 {dimension_numbers = #tpu.dot_dimension_numbers<[1], [0], [0], [1], [0, 0, 1, 1], [], []>} : vector<512x80xf32>, vector<80x2xf32>, vector<512x2xf32> -> vector<512x2xf32>
    %141 = arith.addf %135, %140 : vector<512x2xf32>
    %142 = vector.broadcast %95 : vector<1x2xf32> to vector<512x2xf32>
    %143 = arith.addf %141, %142 : vector<512x2xf32>
    %144 = vector.shape_cast %143 : vector<512x2xf32> to vector<2x16x16x2xf32>
    %c0_75 = arith.constant 0 : index
    %c0_76 = arith.constant 0 : index
    %c0_77 = arith.constant 0 : index
    %c0_78 = arith.constant 0 : index
    %145 = vector.load %arg11[%c0_75, %c0_76, %c0_77, %c0_78] : memref<2x16x16x2xf32, #tpu.memory_space<vmem>>, vector<2x16x16x2xf32>
    tpu.vector_store %arg11[%c0_75, %c0_76, %c0_77, %c0_78], %144 {strides = array<i32>} : memref<2x16x16x2xf32, #tpu.memory_space<vmem>>, vector<2x16x16x2xf32>,
    return
  }
}

</mosaic_0001>

<bundles_post_ra>
// kernel: _lambda_.1
= control target key start
LH: loop header
LB: loop body
LE: loop exit
PB: predicated region body
PF: predicated region fallthrough
CT: control target
= control target key end

     0   :  { %vm303_vm0 = vcmask 1042432   ;;  %vm110_vm1 = vcmask 220160   ;;  %s8104_s21 = smov 16   ;;  %vm844_vm2 = vcmask 1046528   ;;  %vm646_vm3 = vcmask 1040384   ;;  %s8105_s26 = smov 32   ;;  %s14782_s1 = inlined_call_operand.vmem [shape: f32[27,16], index: 1, kind: input, shape index: {}]   ;;  %s14783_s0 = inlined_call_operand.vmem [shape: f32[512,27], index: 0, kind: input, shape index: {}]   ;;  %s14784_s2 = inlined_call_operand.vmem [shape: f32[1,16], index: 2, kind: input, shape index: {}]   ;;  %s14785_s3 = inlined_call_operand.vmem [shape: f32[3,48,32], index: 3, kind: input, shape index: {}]   ;;  %s14786_s4 = inlined_call_operand.vmem [shape: f32[1,32], index: 4, kind: input, shape index: {}]   ;;  %s14787_s6 = inlined_call_operand.vmem [shape: f32[3,96,16], index: 6, kind: input, shape index: {}]   ;;  %s14788_s5 = inlined_call_operand.vmem [shape: f32[128,256], index: 5, kind: input, shape index: {}]   ;;  %s14789_s7 = inlined_call_operand.vmem [shape: f32[1,16], index: 7, kind: input, shape index: {}]   ;;  %s14790_s9 = inlined_call_operand.vmem [shape: f32[5,80,2], index: 9, kind: input, shape index: {}]   ;;  %s14791_s8 = inlined_call_operand.vmem [shape: f32[512,128], index: 8, kind: input, shape index: {}]   ;;  %s14792_s10 = inlined_call_operand.vmem [shape: f32[1,2], index: 10, kind: input, shape index: {}]   ;;  %s14793_s11 = inlined_call_operand.vmem [shape: f32[2,16,16,2], index: 11, kind: output, shape index: {}]  }
   0x1   :  { %v105_v0 = vld [vmem:[%s14782_s1 + $0x18] sm:$0x7]  ;;  %v104_v1 = vld [vmem:[%s14782_s1 + $0x10] sm:$0xff]  ;;  %v103_v2 = vld [vmem:[%s14782_s1 + $0x8] sm:$0xff]  ;;  %vm1435_vm4 = vcmask 130048   ;;  %vm1582_vm5 = vcmask 392192  }
   0x2   :  { %7361 = vmatpush.msk.msra.mxu0 %vm303_vm0, %v105_v0  ;;  %8062 = vmatpush.msk.msra.mxu3 %vm303_vm0, %v105_v0  ;;  %v102_v3 = vld [vmem:[%s14782_s1] sm:$0xff]  ;;  %v39_v5 = vld [vmem:[%s14783_s0 + $0x8] sm:$0xff]  ;;  %v40_v6 = vld [vmem:[%s14783_s0 + $0x10] sm:$0xff]  ;;  %vm1502_vm6 = vcmask 261120   ;;  %s8107_s25 = smov 64   ;;  %vm3212_vm7 = vcmask 523264  }
   0x3   :  { %v38_v4 = vld [vmem:[%s14783_s0] sm:$0xff]  ;;  %v41_v7 = vld [vmem:[%s14783_s0 + $0x18] sm:$0xff]  ;;  %v43_v9 = vld [vmem:[%s14783_s0 + $0x28] sm:$0xff]  ;;  %vm3255_vm8 = vcmask 785408   ;;  %vm4422_vm9 = vcmask 1045504   ;;  %vm3904_vm10 = vcmask 1041408  }
   0x4   :  { %320 = vmatpush.msra.mxu0 %v104_v1  ;;  %8063 = vmatpush.msra.mxu3 %v104_v1  ;;  %v42_v8 = vld [vmem:[%s14783_s0 + $0x20] sm:$0xff]  ;;  %v44_v10 = vld [vmem:[%s14783_s0 + $0x30] sm:$0xff]  ;;  %v45_v11 = vld [vmem:[%s14783_s0 + $0x38] sm:$0xff]  ;;  %vm5756_vm11 = vcmask 654336   ;;  %vm7292_vm12 = vcmask 15360  }
   0x5   :  { %v46_v12 = vld [vmem:[%s14783_s0 + $0x40] sm:$0xff]  ;;  %v47_v13 = vld [vmem:[%s14783_s0 + $0x48] sm:$0xff]  ;;  %v48_v14 = vld [vmem:[%s14783_s0 + $0x50] sm:$0xff] }
   0x6   :  { %321 = vmatpush.msra.mxu0 %v103_v2  ;;  %8064 = vmatpush.msra.mxu3 %v103_v2  ;;  %v49_v15 = vld [vmem:[%s14783_s0 + $0x58] sm:$0xff]  ;;  %v50_v16 = vld [vmem:[%s14783_s0 + $0x60] sm:$0xff]  ;;  %v51_v17 = vld [vmem:[%s14783_s0 + $0x68] sm:$0xff] }
   0x7   :  { %v52_v18 = vld [vmem:[%s14783_s0 + $0x70] sm:$0xff]  ;;  %v53_v19 = vld [vmem:[%s14783_s0 + $0x78] sm:$0xff]  ;;  %v54_v21 = vld [vmem:[%s14783_s0 + $0x80] sm:$0xff] }
   0x8   :  { %322 = vmatpush.msra.mxu0 %v102_v3  ;;  %8065 = vmatpush.msra.mxu3 %v102_v3  ;;  %v55_v23 = vld [vmem:[%s14783_s0 + $0x88] sm:$0xff]  ;;  %v56_v25 = vld [vmem:[%s14783_s0 + $0x90] sm:$0xff]  ;;  %v57_v27 = vld [vmem:[%s14783_s0 + $0x98] sm:$0xff] }
   0x9   :  { %7362 = vmatmul.msk.f32.vlgmr.msra.gmra.mxu0 %vm110_vm1, %v38_v4  ;;  %v58_v29 = vld [vmem:[%s14783_s0 + $0xa0] sm:$0xff]  ;;  %v59_v31 = vld [vmem:[%s14783_s0 + $0xa8] sm:$0xff]  ;;  %v60_v33 = vld [vmem:[%s14783_s0 + $0xb0] sm:$0xff] }
   0xa   :  { %v61_v35 = vld [vmem:[%s14783_s0 + $0xb8] sm:$0xff]  ;;  %v62_v37 = vld [vmem:[%s14783_s0 + $0xc0] sm:$0xff]  ;;  %v63_v39 = vld [vmem:[%s14783_s0 + $0xc8] sm:$0xff] }
   0xb   :  { %v64_v41 = vld [vmem:[%s14783_s0 + $0xd0] sm:$0xff]  ;;  %v65_v43 = vld [vmem:[%s14783_s0 + $0xd8] sm:$0xff]  ;;  %v66_v45 = vld [vmem:[%s14783_s0 + $0xe0] sm:$0xff] }
   0xc   :  { %v67_v47 = vld [vmem:[%s14783_s0 + $0xe8] sm:$0xff]  ;;  %v68_v49 = vld [vmem:[%s14783_s0 + $0xf0] sm:$0xff]  ;;  %v69_v51 = vld [vmem:[%s14783_s0 + $0xf8] sm:$0xff] }
   0xd   :  { %v70_v53 = vld [vmem:[%s14783_s0 + $0x100] sm:$0xff]  ;;  %v71_v55 = vld [vmem:[%s14783_s0 + $0x108] sm:$0xff]  ;;  %v72_v57 = vld [vmem:[%s14783_s0 + $0x110] sm:$0xff] }
   0xe   :  { %v73_v59 = vld [vmem:[%s14783_s0 + $0x118] sm:$0xff]  ;;  %v74_v61 = vld [vmem:[%s14783_s0 + $0x120] sm:$0xff]  ;;  %v75_v63 = vld [vmem:[%s14783_s0 + $0x128] sm:$0xff] }
   0xf   :  { %v76_v1 = vld [vmem:[%s14783_s0 + $0x130] sm:$0xff]  ;;  %v77_v3 = vld [vmem:[%s14783_s0 + $0x138] sm:$0xff] }
  0x11   :  { %7363 = vmatmul.msk.f32.gmra.mxu0 %vm110_vm1, %v39_v5  ;;  %v78_v5 = vld [vmem:[%s14783_s0 + $0x140] sm:$0xff] }
  0x19   :  { %7364 = vmatmul.msk.f32.gmra.mxu0 %vm110_vm1, %v40_v6 }
  0x21   :  { %7365 = vmatmul.msk.f32.gmra.mxu0 %vm110_vm1, %v41_v7  ;;  %v79_v7 = vld [vmem:[%s14783_s0 + $0x148] sm:$0xff] }
  0x29   :  { %7366 = vmatmul.msk.f32.gmra.mxu0 %vm110_vm1, %v42_v8 }
  0x31   :  { %7367 = vmatmul.msk.f32.gmra.mxu0 %vm110_vm1, %v43_v9  ;;  %v80_v9 = vld [vmem:[%s14783_s0 + $0x150] sm:$0xff] }
  0x39   :  { %7368 = vmatmul.msk.f32.gmra.mxu0 %vm110_vm1, %v44_v10 }
  0x41   :  { %7369 = vmatmul.msk.f32.gmra.mxu0 %vm110_vm1, %v45_v11  ;;  %v81_v11 = vld [vmem:[%s14783_s0 + $0x158] sm:$0xff] }
  0x49   :  { %7370 = vmatmul.msk.f32.gmra.mxu0 %vm110_vm1, %v46_v12 }
  0x51   :  { %7371 = vmatmul.msk.f32.gmra.mxu0 %vm110_vm1, %v47_v13  ;;  %v82_v13 = vld [vmem:[%s14783_s0 + $0x160] sm:$0xff] }
  0x59   :  { %7372 = vmatmul.msk.f32.gmra.mxu0 %vm110_vm1, %v48_v14 }
  0x61   :  { %7373 = vmatmul.msk.f32.gmra.mxu0 %vm110_vm1, %v49_v15  ;;  %v83_v15 = vld [vmem:[%s14783_s0 + $0x168] sm:$0xff] }
  0x69   :  { %7374 = vmatmul.msk.f32.gmra.mxu0 %vm110_vm1, %v50_v16 }
  0x71   :  { %7375 = vmatmul.msk.f32.gmra.mxu0 %vm110_vm1, %v51_v17  ;;  %v84_v17 = vld [vmem:[%s14783_s0 + $0x170] sm:$0xff] }
  0x79   :  { %7376 = vmatmul.msk.f32.gmra.mxu0 %vm110_vm1, %v52_v18 }
  0x81   :  { %7377 = vmatmul.msk.f32.gmra.mxu0 %vm110_vm1, %v53_v19  ;;  %v85_v19 = vld [vmem:[%s14783_s0 + $0x178] sm:$0xff] }
  0x86   :  { %v8245_v20 = vpop.f32.mrf.mxu0 }
  0x87   :  { %14944 = vst [vmem:[#allocation2_spill] sm:$0xff] %v8245_v20 }
  0x89   :  { %7378 = vmatmul.msk.f32.gmra.mxu0 %vm110_vm1, %v54_v21 }
  0x8e   :  { %v8251_v22 = vpop.f32.mrf.mxu0 }
  0x8f   :  { %14945 = vst [vmem:[#allocation3_spill] sm:$0xff] %v8251_v22 }
  0x91   :  { %7379 = vmatmul.msk.f32.gmra.mxu0 %vm110_vm1, %v55_v23  ;;  %v86_v23 = vld [vmem:[%s14783_s0 + $0x180] sm:$0xff] }
  0x96   :  { %v8257_v24 = vpop.f32.mrf.mxu0 }
  0x99   :  { %7380 = vmatmul.msk.f32.gmra.mxu0 %vm110_vm1, %v56_v25 }
  0x9e   :  { %v8263_v26 = vpop.f32.mrf.mxu0 }
  0xa1   :  { %7381 = vmatmul.msk.f32.gmra.mxu0 %vm110_vm1, %v57_v27  ;;  %v87_v27 = vld [vmem:[%s14783_s0 + $0x188] sm:$0xff] }
  0xa6   :  { %v8269_v28 = vpop.f32.mrf.mxu0 }
  0xa9   :  { %7382 = vmatmul.msk.f32.gmra.mxu0 %vm110_vm1, %v58_v29  ;;  %v95_v29 = vld [vmem:[%s14783_s0 + $0x1c8] sm:$0xff] }
  0xaa   :  { %7419 = vmatmul.msk.f32.vlgmr.msra.gmra.mxu3 %vm110_vm1, %v95_v29 }
  0xae   :  { %v8275_v30 = vpop.f32.mrf.mxu0 }
  0xb1   :  { %7383 = vmatmul.msk.f32.gmra.mxu0 %vm110_vm1, %v59_v31 }
  0xb6   :  { %v8281_v32 = vpop.f32.mrf.mxu0 }
  0xb9   :  { %7384 = vmatmul.msk.f32.gmra.mxu0 %vm110_vm1, %v60_v33  ;;  %v88_v33 = vld [vmem:[%s14783_s0 + $0x190] sm:$0xff] }
  0xbe   :  { %v8287_v34 = vpop.f32.mrf.mxu0 }
  0xc1   :  { %7385 = vmatmul.msk.f32.gmra.mxu0 %vm110_vm1, %v61_v35  ;;  %v96_v35 = vld [vmem:[%s14783_s0 + $0x1d0] sm:$0xff] }
  0xc2   :  { %7420 = vmatmul.msk.f32.gmra.mxu3 %vm110_vm1, %v96_v35 }
  0xc6   :  { %v8293_v36 = vpop.f32.mrf.mxu0 }
  0xc9   :  { %7386 = vmatmul.msk.f32.gmra.mxu0 %vm110_vm1, %v62_v37 }
  0xce   :  { %v8299_v38 = vpop.f32.mrf.mxu0 }
  0xd1   :  { %7387 = vmatmul.msk.f32.gmra.mxu0 %vm110_vm1, %v63_v39  ;;  %v89_v39 = vld [vmem:[%s14783_s0 + $0x198] sm:$0xff] }
  0xd6   :  { %v8305_v40 = vpop.f32.mrf.mxu0 }
  0xd9   :  { %7388 = vmatmul.msk.f32.gmra.mxu0 %vm110_vm1, %v64_v41  ;;  %v97_v41 = vld [vmem:[%s14783_s0 + $0x1d8] sm:$0xff] }
  0xda   :  { %7421 = vmatmul.msk.f32.gmra.mxu3 %vm110_vm1, %v97_v41  ;;  %v101_v41 = vld [vmem:[%s14783_s0 + $0x1f8] sm:$0xff] }
  0xde   :  { %v8311_v42 = vpop.f32.mrf.mxu0 }
  0xe1   :  { %7389 = vmatmul.msk.f32.gmra.mxu0 %vm110_vm1, %v65_v43  ;;  %v8476_v43 = vld [vmem:[%s14784_s2] ss:$0 sm:$0xff] }
  0xe6   :  { %v8317_v44 = vpop.f32.mrf.mxu0 }
  0xe9   :  { %7390 = vmatmul.msk.f32.gmra.mxu0 %vm110_vm1, %v66_v45 }
  0xee   :  { %v8323_v46 = vpop.f32.mrf.mxu0 }
  0xf1   :  { %7391 = vmatmul.msk.f32.gmra.mxu0 %vm110_vm1, %v67_v47  ;;  %v90_v47 = vld [vmem:[%s14783_s0 + $0x1a0] sm:$0xff] }
  0xf6   :  { %v8329_v48 = vpop.f32.mrf.mxu0 }
  0xf9   :  { %7392 = vmatmul.msk.f32.gmra.mxu0 %vm110_vm1, %v68_v49 }
  0xfe   :  { %v8335_v50 = vpop.f32.mrf.mxu0 }
 0x101   :  { %7393 = vmatmul.msk.f32.gmra.mxu0 %vm110_vm1, %v69_v51 }
 0x106   :  { %v8341_v52 = vpop.f32.mrf.mxu0 }
 0x109   :  { %7394 = vmatmul.msk.f32.gmra.mxu0 %vm110_vm1, %v70_v53  ;;  %v98_v53 = vld [vmem:[%s14783_s0 + $0x1e0] sm:$0xff] }
 0x10a   :  { %7422 = vmatmul.msk.f32.gmra.mxu3 %vm110_vm1, %v98_v53 }
 0x10e   :  { %v8347_v54 = vpop.f32.mrf.mxu0 }
 0x111   :  { %7395 = vmatmul.msk.f32.gmra.mxu0 %vm110_vm1, %v71_v55 }
 0x116   :  { %v8353_v56 = vpop.f32.mrf.mxu0 }
 0x119   :  { %7396 = vmatmul.msk.f32.gmra.mxu0 %vm110_vm1, %v72_v57  ;;  %v91_v57 = vld [vmem:[%s14783_s0 + $0x1a8] sm:$0xff] }
 0x11e   :  { %v8359_v58 = vpop.f32.mrf.mxu0 }
 0x121   :  { %7397 = vmatmul.msk.f32.gmra.mxu0 %vm110_vm1, %v73_v59 }
 0x126   :  { %v8365_v60 = vpop.f32.mrf.mxu0 }
 0x129   :  { %7398 = vmatmul.msk.f32.gmra.mxu0 %vm110_vm1, %v74_v61 }
 0x12e   :  { %v8371_v62 = vpop.f32.mrf.mxu0 }
 0x131   :  { %7399 = vmatmul.msk.f32.gmra.mxu0 %vm110_vm1, %v75_v63  ;;  %v99_v63 = vld [vmem:[%s14783_s0 + $0x1e8] sm:$0xff] }
 0x132   :  { %7423 = vmatmul.msk.f32.gmra.mxu3 %vm110_vm1, %v99_v63  ;;  %v94_v63 = vld [vmem:[%s14783_s0 + $0x1c0] sm:$0xff] }
 0x136   :  { %v8377_v0 = vpop.f32.mrf.mxu0 }
 0x139   :  { %7400 = vmatmul.msk.f32.gmra.mxu0 %vm110_vm1, %v76_v1 }
 0x13e   :  { %v8383_v2 = vpop.f32.mrf.mxu0 }
 0x141   :  { %7401 = vmatmul.msk.f32.gmra.mxu0 %vm110_vm1, %v77_v3 }
 0x146   :  { %v8389_v4 = vpop.f32.mrf.mxu0 }
 0x149   :  { %7402 = vmatmul.msk.f32.gmra.mxu0 %vm110_vm1, %v78_v5 }
 0x14e   :  { %v8395_v6 = vpop.f32.mrf.mxu0 }
 0x151   :  { %7403 = vmatmul.msk.f32.gmra.mxu0 %vm110_vm1, %v79_v7 }
 0x156   :  { %v8401_v8 = vpop.f32.mrf.mxu0 }
 0x159   :  { %7404 = vmatmul.msk.f32.gmra.mxu0 %vm110_vm1, %v80_v9 }
 0x15e   :  { %v8407_v10 = vpop.f32.mrf.mxu0 }
 0x161   :  { %7405 = vmatmul.msk.f32.gmra.mxu0 %vm110_vm1, %v81_v11 }
 0x166   :  { %v8413_v12 = vpop.f32.mrf.mxu0 }
 0x169   :  { %7406 = vmatmul.msk.f32.gmra.mxu0 %vm110_vm1, %v82_v13 }
 0x16e   :  { %v8419_v14 = vpop.f32.mrf.mxu0 }
 0x16f   :  { %14946 = vst [vmem:[#allocation4_spill] sm:$0xff] %v8419_v14 }
 0x171   :  { %7407 = vmatmul.msk.f32.gmra.mxu0 %vm110_vm1, %v83_v15  ;;  %v92_v15 = vld [vmem:[%s14783_s0 + $0x1b0] sm:$0xff] }
 0x176   :  { %v8425_v16 = vpop.f32.mrf.mxu0 }
 0x177   :  { %14947 = vst [vmem:[#allocation5_spill] sm:$0xff] %v8425_v16 }
 0x179   :  { %7408 = vmatmul.msk.f32.gmra.mxu0 %vm110_vm1, %v84_v17 }
 0x17e   :  { %v8431_v18 = vpop.f32.mrf.mxu0 }
 0x17f   :  { %14948 = vst [vmem:[#allocation6_spill] sm:$0xff] %v8431_v18 }
 0x181   :  { %7409 = vmatmul.msk.f32.gmra.mxu0 %vm110_vm1, %v85_v19 }
 0x186   :  { %v8437_v21 = vpop.f32.mrf.mxu0 }
 0x187   :  { %14949 = vst [vmem:[#allocation7_spill] sm:$0xff] %v8437_v21 }
 0x189   :  { %7410 = vmatmul.msk.f32.gmra.mxu0 %vm110_vm1, %v86_v23 }
 0x18e   :  { %v8443_v25 = vpop.f32.mrf.mxu0 }
 0x18f   :  { %14950 = vst [vmem:[#allocation8_spill] sm:$0xff] %v8443_v25 }
 0x191   :  { %7411 = vmatmul.msk.f32.gmra.mxu0 %vm110_vm1, %v87_v27  ;;  %v100_v27 = vld [vmem:[%s14783_s0 + $0x1f0] sm:$0xff] }
 0x192   :  { %7424 = vmatmul.msk.f32.gmra.mxu3 %vm110_vm1, %v100_v27 }
 0x196   :  { %v8453_v31 = vpop.f32.mrf.mxu0 }
 0x197   :  { %14951 = vst [vmem:[#allocation9_spill] sm:$0xff] %v8453_v31 }
 0x199   :  { %7412 = vmatmul.msk.f32.gmra.mxu0 %vm110_vm1, %v88_v33  ;;  %v93_v33 = vld [vmem:[%s14783_s0 + $0x1b8] sm:$0xff] }
 0x19a   :  { %7425 = vmatmul.msk.f32.gmra.mxu3 %vm110_vm1, %v101_v41 }
 0x19e   :  { %v8463_v37 = vpop.f32.mrf.mxu0 }
 0x19f   :  { %14952 = vst [vmem:[#allocation10_spill] sm:$0xff] %v8463_v37 }
 0x1a1   :  { %7413 = vmatmul.msk.f32.gmra.mxu0 %vm110_vm1, %v89_v39 }
 0x1a6   :  { %v432_v45 = vpop.f32.mrf.mxu0 }
 0x1a7   :  { %v433_v49 = vadd.f32 %v8476_v43, %v432_v45 }
 0x1a9   :  { %v8482_v51 = vmax.f32 %v433_v49, 0.0  ;;  %7414 = vmatmul.msk.f32.gmra.mxu0 %vm110_vm1, %v90_v47 }
 0x1ab   :  { %1083 = vrot.lane.b32.xlu0 %v8482_v51, %s8104_s21  ;;  %v901_v3 = vrot.slane %v8482_v51, 1  ;;  %v14800_v7 = vrot.slane %v8482_v51, 7 }
 0x1ae   :  { %v435_v55 = vpop.f32.mrf.mxu0 }
 0x1af   :  { %v436_v59 = vadd.f32 %v8476_v43, %v435_v55 }
 0x1b1   :  { %v553_v61 = vmax.f32 %v436_v59, 0.0  ;;  %7415 = vmatmul.msk.f32.gmra.mxu0 %vm110_vm1, %v91_v57 }
 0x1b3   :  { %v704_v1 = vrot.slane %v553_v61, 7  ;;  %1085 = vrot.lane.b32.xlu1 %v553_v61, %s8104_s21  ;;  %v902_v5 = vrot.slane %v553_v61, 1 }
 0x1b5   :  { %v903_v9 = vsel %vm844_vm2, %v901_v3, %v902_v5  ;;  %v8507_v11 = vsel %vm646_vm3, %v14800_v7, %v704_v1  ;;  %v995_v23 = vsel %vm844_vm2, %v902_v5, 0.0 }
 0x1b6   :  { %v438_v13 = vpop.f32.mrf.mxu0  ;;  %1313 = vrot.lane.b32.xlu0 %v903_v9, %s8105_s26 }
 0x1b7   :  { %v439_v17 = vadd.f32 %v8476_v43, %v438_v13 }
 0x1b9   :  { %v8514_v19 = vmax.f32 %v439_v17, 0.0  ;;  %7416 = vmatmul.msk.f32.gmra.mxu0 %vm110_vm1, %v92_v15 }
 0x1bb   :  { %1087 = vrot.lane.b32.xlu2 %v8514_v19, %s8104_s21  ;;  %1315 = vrot.lane.b32.xlu1 %v995_v23, %s8105_s26  ;;  %v904_v47 = vrot.slane %v8514_v19, 1  ;;  %v14799_v53 = vrot.slane %v8514_v19, 7 }
 0x1be   :  { %v441_v29 = vpop.f32.mrf.mxu0 }
 0x1bf   :  { %v442_v35 = vadd.f32 %v8476_v43, %v441_v29 }
 0x1c1   :  { %v555_v39 = vmax.f32 %v442_v35, 0.0  ;;  %7417 = vmatmul.msk.f32.gmra.mxu0 %vm110_vm1, %v93_v33 }
 0x1c3   :  { %v707_v45 = vrot.slane %v555_v39, 7  ;;  %1089 = vrot.lane.b32.xlu0 %v555_v39, %s8104_s21  ;;  %v905_v49 = vrot.slane %v555_v39, 1 }
 0x1c5   :  { %v906_v55 = vsel %vm844_vm2, %v904_v47, %v905_v49  ;;  %v996_v57 = vsel %vm844_vm2, %v905_v49, 0.0  ;;  %v8542_v59 = vsel %vm646_vm3, %v14799_v53, %v707_v45 }
 0x1c6   :  { %v444_v61 = vpop.f32.mrf.mxu0  ;;  %1317 = vrot.lane.b32.xlu2 %v906_v55, %s8105_s26  ;;  %1319 = vrot.lane.b32.xlu1 %v996_v57, %s8105_s26 }
 0x1c7   :  { %v445_v1 = vadd.f32 %v8476_v43, %v444_v61 }
 0x1c9   :  { %7418 = vmatmul.msk.f32.gmra.mxu0 %vm110_vm1, %v94_v63  ;;  %v8551_v3 = vmax.f32 %v445_v1, 0.0 }
 0x1cb   :  { %v907_v23 = vrot.slane %v8551_v3, 1  ;;  %v14797_v27 = vrot.slane %v8551_v3, 7 }
 0x1ce   :  { %v447_v5 = vpop.f32.mrf.mxu0  ;;  %1091 = vrot.lane.b32.xlu2 %v8551_v3, %s8104_s21 }
 0x1cf   :  { %v448_v9 = vadd.f32 %v8476_v43, %v447_v5 }
 0x1d1   :  { %v557_v13 = vmax.f32 %v448_v9, 0.0 }
 0x1d3   :  { %v710_v15 = vrot.slane %v557_v13, 7  ;;  %1093 = vrot.lane.b32.xlu1 %v557_v13, %s8104_s21  ;;  %v908_v17 = vrot.slane %v557_v13, 1 }
 0x1d5   :  { %v997_v29 = vsel %vm844_vm2, %v908_v17, 0.0  ;;  %v909_v33 = vsel %vm844_vm2, %v907_v23, %v908_v17  ;;  %v8564_v35 = vsel %vm646_vm3, %v14797_v27, %v710_v15 }
 0x1d6   :  { %v450_v39 = vpop.f32.mrf.mxu0  ;;  %1323 = vrot.lane.b32.xlu2 %v997_v29, %s8105_s26  ;;  %1321 = vrot.lane.b32.xlu0 %v909_v33, %s8105_s26 }
 0x1d7   :  { %v451_v41 = vadd.f32 %v8476_v43, %v450_v39 }
 0x1d9   :  { %v8569_v45 = vmax.f32 %v451_v41, 0.0 }
 0x1db   :  { %v14796_v57 = vrot.slane %v8569_v45, 7  ;;  %v910_v63 = vrot.slane %v8569_v45, 1 }
 0x1de   :  { %v453_v47 = vpop.f32.mrf.mxu0  ;;  %1095 = vrot.lane.b32.xlu0 %v8569_v45, %s8104_s21 }
 0x1df   :  { %v454_v49 = vadd.f32 %v8476_v43, %v453_v47 }
 0x1e1   :  { %v559_v55 = vmax.f32 %v454_v49, 0.0 }
 0x1e3   :  { %v713_v61 = vrot.slane %v559_v55, 7  ;;  %1097 = vrot.lane.b32.xlu2 %v559_v55, %s8104_s21  ;;  %v911_v1 = vrot.slane %v559_v55, 1 }
 0x1e5   :  { %v912_v5 = vsel %vm844_vm2, %v910_v63, %v911_v1  ;;  %v998_v9 = vsel %vm844_vm2, %v911_v1, 0.0  ;;  %v8582_v13 = vsel %vm646_vm3, %v14796_v57, %v713_v61 }
 0x1e6   :  { %v456_v15 = vpop.f32.mrf.mxu0  ;;  %1325 = vrot.lane.b32.xlu1 %v912_v5, %s8105_s26  ;;  %1327 = vrot.lane.b32.xlu0 %v998_v9, %s8105_s26 }
 0x1e7   :  { %v457_v17 = vadd.f32 %v8476_v43, %v456_v15 }
 0x1e9   :  { %v8587_v23 = vmax.f32 %v457_v17, 0.0 }
 0x1eb   :  { %v913_v47 = vrot.slane %v8587_v23, 1  ;;  %v14795_v55 = vrot.slane %v8587_v23, 7 }
 0x1ee   :  { %v459_v29 = vpop.f32.mrf.mxu0  ;;  %1099 = vrot.lane.b32.xlu1 %v8587_v23, %s8104_s21 }
 0x1ef   :  { %v460_v33 = vadd.f32 %v8476_v43, %v459_v29  ;;  %v7431_v29 = vld [vmem:[%s14785_s3 + $0x58] sm:$0xff] }
 0x1f0   :  { %8066 = vmatpush.msrb.mxu3 %v7431_v29  ;;  %1785 = vmatpush.msra.mxu1 %v7431_v29 }
 0x1f1   :  { %v561_v39 = vmax.f32 %v460_v33, 0.0 }
 0x1f3   :  { %v716_v41 = vrot.slane %v561_v39, 7  ;;  %1101 = vrot.lane.b32.xlu0 %v561_v39, %s8104_s21  ;;  %v914_v49 = vrot.slane %v561_v39, 1  ;;  %v7430_v39 = vld [vmem:[%s14785_s3 + $0x50] sm:$0xff] }
 0x1f4   :  { %8067 = vmatpush.msrb.mxu3 %v7430_v39  ;;  %1786 = vmatpush.msra.mxu1 %v7430_v39 }
 0x1f5   :  { %v915_v61 = vsel %vm844_vm2, %v913_v47, %v914_v49  ;;  %v999_v63 = vsel %vm844_vm2, %v914_v49, 0.0  ;;  %v8600_v1 = vsel %vm646_vm3, %v14795_v55, %v716_v41  ;;  %v7429_v47 = vld [vmem:[%s14785_s3 + $0x48] sm:$0xff] }
 0x1f6   :  { %v462_v5 = vpop.f32.mrf.mxu0  ;;  %1329 = vrot.lane.b32.xlu2 %v915_v61, %s8105_s26  ;;  %1331 = vrot.lane.b32.xlu1 %v999_v63, %s8105_s26 }
 0x1f7   :  { %v463_v9 = vadd.f32 %v8476_v43, %v462_v5  ;;  %8068 = vmatpush.msrb.mxu3 %v7429_v47  ;;  %v7428_v5 = vld [vmem:[%s14785_s3 + $0x40] sm:$0xff]  ;;  %1787 = vmatpush.msra.mxu1 %v7429_v47 }
 0x1f9   :  { %v8605_v15 = vmax.f32 %v463_v9, 0.0  ;;  %8069 = vmatpush.msrb.mxu3 %v7428_v5  ;;  %1788 = vmatpush.msra.mxu1 %v7428_v5 }
 0x1fb   :  { %v916_v63 = vrot.slane %v8605_v15, 1  ;;  %v14794_v9 = vrot.slane %v8605_v15, 7 }
 0x1fe   :  { %v465_v17 = vpop.f32.mrf.mxu0  ;;  %1103 = vrot.lane.b32.xlu2 %v8605_v15, %s8104_s21 }
 0x1ff   :  { %v466_v33 = vadd.f32 %v8476_v43, %v465_v17 }
 0x201   :  { %v563_v41 = vmax.f32 %v466_v33, 0.0 }
 0x203   :  { %v719_v49 = vrot.slane %v563_v41, 7  ;;  %1105 = vrot.lane.b32.xlu1 %v563_v41, %s8104_s21  ;;  %v917_v61 = vrot.slane %v563_v41, 1  ;;  %v7427_v41 = vld [vmem:[%s14785_s3 + $0x38] sm:$0xff] }
 0x204   :  { %8070 = vmatpush.msrb.mxu3 %v7427_v41  ;;  %1789 = vmatpush.msra.mxu1 %v7427_v41 }
 0x205   :  { %v1000_v17 = vsel %vm844_vm2, %v917_v61, 0.0  ;;  %v918_v29 = vsel %vm844_vm2, %v916_v63, %v917_v61  ;;  %v8630_v33 = vsel %vm646_vm3, %v14794_v9, %v719_v49  ;;  %v7426_v61 = vld [vmem:[%s14785_s3 + $0x30] sm:$0xff] }
 0x206   :  { %v468_v39 = vpop.f32.mrf.mxu0  ;;  %1335 = vrot.lane.b32.xlu2 %v1000_v17, %s8105_s26  ;;  %1333 = vrot.lane.b32.xlu0 %v918_v29, %s8105_s26 }
 0x207   :  { %v469_v47 = vadd.f32 %v8476_v43, %v468_v39  ;;  %8071 = vmatpush.msrb.mxu3 %v7426_v61  ;;  %1790 = vmatpush.msra.mxu1 %v7426_v61 }
 0x209   :  { %v8641_v49 = vmax.f32 %v469_v47, 0.0 }
 0x20b   :  { %v14798_v5 = vrot.slane %v8641_v49, 7  ;;  %v919_v39 = vrot.slane %v8641_v49, 1 }
 0x20e   :  { %v471_v63 = vpop.f32.mrf.mxu0  ;;  %1107 = vrot.lane.b32.xlu0 %v8641_v49, %s8104_s21 }
 0x20f   :  { %v472_v17 = vadd.f32 %v8476_v43, %v471_v63 }
 0x211   :  { %v565_v29 = vmax.f32 %v472_v17, 0.0  ;;  %v8659_v17 = vpop.f32.mrf.mxu3 }
 0x213   :  { %v722_v9 = vrot.slane %v565_v29, 7  ;;  %1109 = vrot.lane.b32.xlu2 %v565_v29, %s8104_s21  ;;  %v920_v55 = vrot.slane %v565_v29, 1 }
 0x215   :  { %v921_v41 = vsel %vm844_vm2, %v919_v39, %v920_v55  ;;  %v1001_v47 = vsel %vm844_vm2, %v920_v55, 0.0  ;;  %v8654_v61 = vsel %vm646_vm3, %v14798_v5, %v722_v9 }
 0x216   :  { %v474_v57 = vpop.f32.mrf.mxu0  ;;  %1337 = vrot.lane.b32.xlu1 %v921_v41, %s8105_s26  ;;  %1339 = vrot.lane.b32.xlu0 %v1001_v47, %s8105_s26 }
 0x217   :  { %v475_v63 = vadd.f32 %v8476_v43, %v474_v57 }
 0x219   :  { %v8661_v27 = vmax.f32 %v475_v63, 0.0  ;;  %v498_v21 = vpop.f32.mrf.mxu3 }
 0x21b   :  { %v922_v41 = vrot.slane %v8661_v27, 1  ;;  %v14801_v57 = vrot.slane %v8661_v27, 7 }
 0x21d   :  { %v1084_v39 = vpop.permute.xlu0 %1083 }
 0x21e   :  { %v477_v29 = vpop.f32.mrf.mxu0  ;;  %1111 = vrot.lane.b32.xlu1 %v8661_v27, %s8104_s21 }
 0x21f   :  { %v478_v55 = vadd.f32 %v8476_v43, %v477_v29 }
 0x221   :  { %v567_v9 = vmax.f32 %v478_v55, 0.0 }
 0x223   :  { %v725_v5 = vrot.slane %v567_v9, 7  ;;  %1113 = vrot.lane.b32.xlu0 %v567_v9, %s8104_s21  ;;  %v923_v47 = vrot.slane %v567_v9, 1  ;;  %v14953_v9 = vrot.slane %v8482_v51, 7 }
 0x225   :  { %v1086_v53 = vpop.permute.xlu1 %1085  ;;  %v924_v63 = vsel %vm844_vm2, %v922_v41, %v923_v47  ;;  %v1002_v7 = vsel %vm844_vm2, %v923_v47, 0.0  ;;  %v8674_v29 = vsel %vm646_vm3, %v14801_v57, %v725_v5  ;;  %v830_v25 = vsel %vm646_vm3, 0.0, %v14953_v9 }
 0x226   :  { %v480_v55 = vpop.f32.mrf.mxu0  ;;  %1341 = vrot.lane.b32.xlu2 %v924_v63, %s8105_s26  ;;  %1343 = vrot.lane.b32.xlu1 %v1002_v7, %s8105_s26  ;;  %v1474_v41 = vsel %vm1435_vm4, %v830_v25, %v1084_v39  ;;  %v1088_v7 = vpop.permute.xlu2 %1087 }
 0x227   :  { %v481_v47 = vadd.f32 %v8476_v43, %v480_v55  ;;  %v501_v39 = vpop.f32.mrf.mxu3  ;;  %v1475_v55 = vsel %vm1435_vm4, %v8507_v11, %v1086_v53 }
 0x228   :  { %v1314_v37 = vpop.permute.xlu0 %1313 }
 0x229   :  { %v8684_v5 = vsel %vm1502_vm6, %v1474_v41, %v1314_v37  ;;  %v8688_v63 = vmax.f32 %v481_v47, 0.0 }
 0x22a   :  { %14954 = vst [vmem:[#allocation11_spill] sm:$0xff] %v8684_v5  ;;  %7468 = vmatmul.msk.f32.vlgmr.msrb.gmra.mxu3 %vm1582_vm5, %v8684_v5 }
 0x22b   :  { %v925_v5 = vrot.slane %v8688_v63, 1  ;;  %v14806_v31 = vrot.slane %v8688_v63, 7 }
 0x22d   :  { %v1316_v57 = vpop.permute.xlu1 %1315 }
 0x22e   :  { %v483_v51 = vpop.f32.mrf.mxu0  ;;  %1115 = vrot.lane.b32.xlu2 %v8688_v63, %s8104_s21  ;;  %v8696_v37 = vsel %vm1502_vm6, %v1475_v55, %v1316_v57  ;;  %v1318_v57 = vpop.permute.xlu2 %1317  ;;  %v499_v55 = vadd.f32 %v8476_v43, %v498_v21 }
 0x22f   :  { %v484_v25 = vadd.f32 %v8476_v43, %v483_v51  ;;  %14955 = vst [vmem:[#allocation12_spill] sm:$0xff] %v8696_v37  ;;  %v502_v51 = vadd.f32 %v8476_v43, %v501_v39 }
 0x231   :  { %v569_v9 = vmax.f32 %v484_v25, 0.0 }
 0x232   :  { %7469 = vmatmul.msk.f32.gmra.mxu3 %vm1582_vm5, %v8696_v37 }
 0x233   :  { %v728_v41 = vrot.slane %v569_v9, 7  ;;  %1117 = vrot.lane.b32.xlu1 %v569_v9, %s8104_s21  ;;  %v926_v47 = vrot.slane %v569_v9, 1  ;;  %v14956_v9 = vrot.slane %v8514_v19, 7 }
 0x235   :  { %v1003_v20 = vsel %vm844_vm2, %v926_v47, 0.0  ;;  %v927_v11 = vsel %vm844_vm2, %v925_v5, %v926_v47  ;;  %v8709_v53 = vsel %vm646_vm3, %v14806_v31, %v728_v41  ;;  %v831_v39 = vsel %vm646_vm3, 0.0, %v14956_v9  ;;  %v504_v31 = vpop.f32.mrf.mxu3 }
 0x236   :  { %v486_v25 = vpop.f32.mrf.mxu0  ;;  %1347 = vrot.lane.b32.xlu2 %v1003_v20, %s8105_s26  ;;  %1345 = vrot.lane.b32.xlu0 %v927_v11, %s8105_s26  ;;  %v1476_v37 = vsel %vm1435_vm4, %v831_v39, %v1088_v7  ;;  %v8719_v47 = vmax.f32 %v502_v51, 0.0  ;;  %v8726_v20 = vmax.f32 %v499_v55, 0.0  ;;  %v1090_v7 = vpop.permute.xlu0 %1089  ;;  %v496_v55 = vadd.f32 %v8476_v43, %v8659_v17 }
 0x237   :  { %v487_v5 = vadd.f32 %v8476_v43, %v486_v25  ;;  %v8722_v41 = vsel %vm1502_vm6, %v1476_v37, %v1318_v57  ;;  %v1477_v57 = vsel %vm1435_vm4, %v8542_v59, %v1090_v7  ;;  %v505_v59 = vadd.f32 %v8476_v43, %v504_v31  ;;  %v1092_v7 = vpop.permute.xlu2 %1091 }
 0x238   :  { %14957 = vst [vmem:[#allocation13_spill] sm:$0xff] %v8722_v41  ;;  %v737_v21 = vrot.slane %v8719_v47, 7  ;;  %v14809_v11 = vrot.slane %v8726_v20, 7  ;;  %v1320_v9 = vpop.permute.xlu1 %1319  ;;  %v14959_v31 = vrot.slane %v8551_v3, 7 }
 0x239   :  { %v8729_v19 = vmax.f32 %v487_v5, 0.0  ;;  %v8745_v5 = vsel %vm1502_vm6, %v1477_v57, %v1320_v9 }
 0x23a   :  { %7470 = vmatmul.msk.f32.gmra.mxu3 %vm1582_vm5, %v8722_v41  ;;  %v8737_v37 = vsel %vm646_vm3, %v14809_v11, %v737_v21  ;;  %14958 = vst [vmem:[#allocation14_spill] sm:$0xff] %v8745_v5 }
 0x23b   :  { %v14812_v41 = vrot.slane %v8729_v19, 7  ;;  %v928_v21 = vrot.slane %v8729_v19, 1 }
 0x23d   :  { %v507_v11 = vpop.f32.mrf.mxu3 }
 0x23e   :  { %v489_v25 = vpop.f32.mrf.mxu0  ;;  %1119 = vrot.lane.b32.xlu0 %v8729_v19, %s8104_s21  ;;  %v508_v17 = vadd.f32 %v8476_v43, %v507_v11  ;;  %v832_v11 = vsel %vm646_vm3, 0.0, %v14959_v31 }
 0x23f   :  { %v490_v51 = vadd.f32 %v8476_v43, %v489_v25 }
 0x240   :  { %v577_v18 = vmax.f32 %v508_v17, 0.0 }
 0x241   :  { %v571_v39 = vmax.f32 %v490_v51, 0.0  ;;  %v573_v51 = vmax.f32 %v496_v55, 0.0 }
 0x242   :  { %7471 = vmatmul.msk.f32.gmra.mxu3 %vm1582_vm5, %v8745_v5 }
 0x243   :  { %v731_v22 = vrot.slane %v571_v39, 7  ;;  %1121 = vrot.lane.b32.xlu2 %v571_v39, %s8104_s21  ;;  %v929_v25 = vrot.slane %v571_v39, 1  ;;  %v1478_v39 = vsel %vm1435_vm4, %v832_v11, %v1092_v7  ;;  %v734_v14 = vrot.slane %v573_v51, 7 }
 0x245   :  { %v930_v9 = vsel %vm844_vm2, %v928_v21, %v929_v25  ;;  %v1004_v57 = vsel %vm844_vm2, %v929_v25, 0.0  ;;  %v8759_v5 = vsel %vm646_vm3, %v14812_v41, %v731_v22  ;;  %v8768_v25 = vmax.f32 %v505_v59, 0.0 }
 0x246   :  { %v492_v16 = vpop.f32.mrf.mxu0  ;;  %1349 = vrot.lane.b32.xlu1 %v930_v9, %s8105_s26  ;;  %1351 = vrot.lane.b32.xlu0 %v1004_v57, %s8105_s26  ;;  %v932_v9 = vrot.slane %v573_v51, 1  ;;  %v740_v57 = vrot.slane %v577_v18, 7 }
 0x247   :  { %v493_v55 = vadd.f32 %v8476_v43, %v492_v16  ;;  %v14813_v3 = vrot.slane %v8768_v25, 7  ;;  %v1094_v16 = vpop.permute.xlu1 %1093 }
 0x248   :  { %v1322_v21 = vpop.permute.xlu0 %1321  ;;  %v1479_v11 = vsel %vm1435_vm4, %v8564_v35, %v1094_v16  ;;  %v1005_v16 = vsel %vm844_vm2, %v932_v9, 0.0 }
 0x249   :  { %v8770_v22 = vmax.f32 %v493_v55, 0.0  ;;  %v8773_v41 = vsel %vm1502_vm6, %v1478_v39, %v1322_v21  ;;  %v8794_v55 = vsel %vm646_vm3, %v14813_v3, %v740_v57  ;;  %v510_v39 = vpop.f32.mrf.mxu3  ;;  %v1324_v21 = vpop.permute.xlu2 %1323 }
 0x24a   :  { %14960 = vst [vmem:[#allocation15_spill] sm:$0xff] %v8773_v41  ;;  %7472 = vmatmul.msk.f32.gmra.mxu3 %vm1582_vm5, %v8773_v41  ;;  %v8800_v35 = vsel %vm1502_vm6, %v1479_v11, %v1324_v21 }
 0x24b   :  { %v931_v7 = vrot.slane %v8770_v22, 1  ;;  %v14814_v59 = vrot.slane %v8770_v22, 7  ;;  %14961 = vst [vmem:[#allocation16_spill] sm:$0xff] %v8800_v35 }
 0x24d   :  { %v933_v17 = vsel %vm844_vm2, %v931_v7, %v932_v9  ;;  %v8784_v31 = vsel %vm646_vm3, %v14814_v59, %v734_v14  ;;  %v934_v14 = vrot.slane %v8726_v20, 1  ;;  %v935_v7 = vrot.slane %v8719_v47, 1 }
 0x24e   :  { %1353 = vrot.lane.b32.xlu2 %v933_v17, %s8105_s26  ;;  %1123 = vrot.lane.b32.xlu1 %v8770_v22, %s8104_s21 }
 0x24f   :  { %1125 = vrot.lane.b32.xlu0 %v573_v51, %s8104_s21  ;;  %v936_v57 = vsel %vm844_vm2, %v934_v14, %v935_v7  ;;  %v14962_v51 = vrot.slane %v8569_v45, 7  ;;  %v1006_v14 = vsel %vm844_vm2, %v935_v7, 0.0 }
 0x250   :  { %v1096_v17 = vpop.permute.xlu0 %1095 }
 0x251   :  { %v833_v3 = vsel %vm646_vm3, 0.0, %v14962_v51  ;;  %v1098_v11 = vpop.permute.xlu2 %1097  ;;  %v511_v51 = vadd.f32 %v8476_v43, %v510_v39 }
 0x252   :  { %7473 = vmatmul.msk.f32.gmra.mxu3 %vm1582_vm5, %v8800_v35  ;;  %v1480_v21 = vsel %vm1435_vm4, %v833_v3, %v1096_v17  ;;  %v513_v35 = vpop.f32.mrf.mxu3  ;;  %v937_v3 = vrot.slane %v8768_v25, 1  ;;  %v1481_v17 = vsel %vm1435_vm4, %v8582_v13, %v1098_v11  ;;  %v14965_v13 = vrot.slane %v8587_v23, 7 }
 0x253   :  { %v8833_v39 = vmax.f32 %v511_v51, 0.0 }
 0x254   :  { %v834_v11 = vsel %vm646_vm3, 0.0, %v14965_v13 }
 0x255   :  { %v14821_v41 = vrot.slane %v8833_v39, 7  ;;  %v940_v51 = vrot.slane %v8833_v39, 1 }
 0x256   :  { %1127 = vrot.lane.b32.xlu2 %v8726_v20, %s8104_s21  ;;  %1355 = vrot.lane.b32.xlu1 %v1005_v16, %s8105_s26  ;;  %v514_v16 = vadd.f32 %v8476_v43, %v513_v35 }
 0x257   :  { %1357 = vrot.lane.b32.xlu0 %v936_v57, %s8105_s26 }
 0x258   :  { %v1326_v59 = vpop.permute.xlu1 %1325  ;;  %v1328_v45 = vpop.permute.xlu0 %1327  ;;  %v579_v57 = vmax.f32 %v514_v16, 0.0 }
 0x259   :  { %v8815_v9 = vsel %vm1502_vm6, %v1480_v21, %v1326_v59  ;;  %v938_v59 = vrot.slane %v577_v18, 1  ;;  %v1330_v7 = vpop.permute.xlu2 %1329  ;;  %v8831_v35 = vsel %vm1502_vm6, %v1481_v17, %v1328_v45 }
 0x25a   :  { %14963 = vst [vmem:[#allocation17_spill] sm:$0xff] %v8815_v9  ;;  %7474 = vmatmul.msk.f32.gmra.mxu3 %vm1582_vm5, %v8815_v9 }
 0x25b   :  { %14964 = vst [vmem:[#allocation18_spill] sm:$0xff] %v8831_v35  ;;  %v1007_v9 = vsel %vm844_vm2, %v938_v59, 0.0 }
 0x25e   :  { %1359 = vrot.lane.b32.xlu2 %v1006_v14, %s8105_s26  ;;  %1129 = vrot.lane.b32.xlu1 %v8719_v47, %s8104_s21  ;;  %v743_v47 = vrot.slane %v579_v57, 7  ;;  %v939_v14 = vsel %vm844_vm2, %v937_v3, %v938_v59  ;;  %v941_v3 = vrot.slane %v579_v57, 1  ;;  %v334_v59 = vadd.f32 %v8476_v43, %v8263_v26 }
 0x25f   :  { %1131 = vrot.lane.b32.xlu0 %v8768_v25, %s8104_s21 }
 0x260   :  { %v1100_v21 = vpop.permute.xlu1 %1099  ;;  %v8849_v45 = vsel %vm646_vm3, %v14821_v41, %v743_v47  ;;  %v331_v47 = vadd.f32 %v8476_v43, %v8257_v24 }
 0x261   :  { %v1482_v16 = vsel %vm1435_vm4, %v834_v11, %v1100_v21  ;;  %v1104_v17 = vpop.permute.xlu2 %1103  ;;  %v1008_v11 = vsel %vm844_vm2, %v941_v3, 0.0 }
 0x262   :  { %7475 = vmatmul.msk.f32.gmra.mxu3 %vm1582_vm5, %v8831_v35  ;;  %v8854_v23 = vsel %vm1502_vm6, %v1482_v16, %v1330_v7  ;;  %v8869_v26 = vmax.f32 %v331_v47, 0.0 }
 0x263   :  { %14966 = vst [vmem:[#allocation19_spill] sm:$0xff] %v8854_v23 }
 0x265   :  { %v1102_v21 = vpop.permute.xlu0 %1101 }
 0x266   :  { %1133 = vrot.lane.b32.xlu2 %v577_v18, %s8104_s21  ;;  %1361 = vrot.lane.b32.xlu1 %v939_v14, %s8105_s26  ;;  %v942_v18 = vsel %vm844_vm2, %v940_v51, %v941_v3  ;;  %v1483_v7 = vsel %vm1435_vm4, %v8600_v1, %v1102_v21  ;;  %v850_v51 = vrot.slane %v8869_v26, 1  ;;  %v337_v3 = vadd.f32 %v8476_v43, %v8269_v28 }
 0x267   :  { %1363 = vrot.lane.b32.xlu0 %v1007_v9, %s8105_s26  ;;  %v8863_v9 = vmax.f32 %v334_v59, 0.0  ;;  %v340_v21 = vadd.f32 %v8476_v43, %v8275_v30  ;;  %v346_v30 = vadd.f32 %v8476_v43, %v8287_v34 }
 0x268   :  { %v1332_v14 = vpop.permute.xlu1 %1331 }
 0x269   :  { %v8874_v13 = vsel %vm1502_vm6, %v1483_v7, %v1332_v14  ;;  %v851_v24 = vrot.slane %v8863_v9, 1  ;;  %v1336_v16 = vpop.permute.xlu2 %1335 }
 0x26a   :  { %7476 = vmatmul.msk.f32.gmra.mxu3 %vm1582_vm5, %v8854_v23  ;;  %14967 = vst [vmem:[#allocation20_spill] sm:$0xff] %v8874_v13 }
 0x26b   :  { %v852_v1 = vsel %vm844_vm2, %v850_v51, %v851_v24  ;;  %v8901_v51 = vmax.f32 %v340_v21, 0.0  ;;  %v14971_v21 = vrot.slane %v8641_v49, 7 }
 0x26e   :  { %1365 = vrot.lane.b32.xlu2 %v942_v18, %s8105_s26  ;;  %1135 = vrot.lane.b32.xlu1 %v8833_v39, %s8104_s21 }
 0x26f   :  { %1137 = vrot.lane.b32.xlu0 %v579_v57, %s8104_s21  ;;  %v14968_v57 = vrot.slane %v8605_v15, 7 }
 0x271   :  { %v835_v59 = vsel %vm646_vm3, 0.0, %v14968_v57  ;;  %v1110_v7 = vpop.permute.xlu2 %1109  ;;  %v854_v57 = vrot.slane %v8901_v51, 1 }
 0x272   :  { %7477 = vmatmul.msk.f32.gmra.mxu3 %vm1582_vm5, %v8874_v13  ;;  %v1484_v18 = vsel %vm1435_vm4, %v835_v59, %v1104_v17  ;;  %v978_v17 = vsel %vm844_vm2, %v851_v24, 0.0 }
 0x273   :  { %v979_v34 = vsel %vm844_vm2, %v854_v57, 0.0 }
 0x275   :  { %v1106_v15 = vpop.permute.xlu1 %1105 }
 0x276   :  { %1367 = vrot.lane.b32.xlu1 %v1008_v11, %s8105_s26  ;;  %1015 = vrot.lane.b32.xlu2 %v8869_v26, %s8104_s21  ;;  %v8899_v11 = vmax.f32 %v337_v3, 0.0  ;;  %v1485_v28 = vsel %vm1435_vm4, %v8630_v33, %v1106_v15  ;;  %v343_v33 = vadd.f32 %v8476_v43, %v8281_v32  ;;  %v836_v32 = vsel %vm646_vm3, 0.0, %v14971_v21 }
 0x277   :  { %1245 = vrot.lane.b32.xlu0 %v852_v1, %s8105_s26  ;;  %v8914_v1 = vsel %vm1502_vm6, %v1485_v28, %v1336_v16  ;;  %v1487_v21 = vsel %vm1435_vm4, %v8654_v61, %v1110_v7 }
 0x278   :  { %v1334_v47 = vpop.permute.xlu0 %1333  ;;  %14970 = vst [vmem:[#allocation22_spill] sm:$0xff] %v8914_v1  ;;  %v853_v24 = vrot.slane %v8899_v11, 1  ;;  %v8929_v16 = vmax.f32 %v343_v33, 0.0 }
 0x279   :  { %v8895_v14 = vsel %vm1502_vm6, %v1484_v18, %v1334_v47  ;;  %v8922_v47 = vmax.f32 %v346_v30, 0.0 }
 0x27a   :  { %14969 = vst [vmem:[#allocation21_spill] sm:$0xff] %v8895_v14  ;;  %7478 = vmatmul.msk.f32.gmra.mxu3 %vm1582_vm5, %v8895_v14  ;;  %v855_v3 = vsel %vm844_vm2, %v853_v24, %v854_v57  ;;  %v352_v24 = vadd.f32 %v8476_v43, %v8299_v38  ;;  %v856_v49 = vrot.slane %v8929_v16, 1  ;;  %v349_v57 = vadd.f32 %v8476_v43, %v8293_v36  ;;  %v15019_v14 = vld [vmem:[#allocation10_spill] sm:$0xff] }
 0x27b   :  { %v857_v30 = vrot.slane %v8922_v47, 1 }
 0x27c   :  { %v8955_v38 = vmax.f32 %v349_v57, 0.0 }
 0x27d   :  { %v858_v33 = vsel %vm844_vm2, %v856_v49, %v857_v30  ;;  %v980_v57 = vsel %vm844_vm2, %v857_v30, 0.0 }
 0x27e   :  { %1017 = vrot.lane.b32.xlu1 %v8863_v9, %s8104_s21  ;;  %1247 = vrot.lane.b32.xlu2 %v978_v17, %s8105_s26 }
 0x27f   :  { %1019 = vrot.lane.b32.xlu0 %v8899_v11, %s8104_s21 }
 0x280   :  { %v1342_v59 = vpop.permute.xlu2 %1341  ;;  %v1108_v18 = vpop.permute.xlu0 %1107 }
 0x281   :  { %v1486_v15 = vsel %vm1435_vm4, %v836_v32, %v1108_v18  ;;  %v8948_v18 = vmax.f32 %v352_v24, 0.0  ;;  %v14974_v24 = vrot.slane %v8661_v27, 7  ;;  %v358_v27 = vadd.f32 %v8476_v43, %v8311_v42 }
 0x282   :  { %7479 = vmatmul.msk.f32.gmra.mxu3 %vm1582_vm5, %v8914_v1 }
 0x283   :  { %v860_v32 = vrot.slane %v8948_v18, 1  ;;  %v837_v49 = vsel %vm646_vm3, 0.0, %v14974_v24 }
 0x285   :  { %v981_v24 = vsel %vm844_vm2, %v860_v32, 0.0 }
 0x286   :  { %1249 = vrot.lane.b32.xlu1 %v855_v3, %s8105_s26  ;;  %1021 = vrot.lane.b32.xlu2 %v8901_v51, %s8104_s21 }
 0x287   :  { %1251 = vrot.lane.b32.xlu0 %v979_v34, %s8105_s26 }
 0x288   :  { %v1338_v17 = vpop.permute.xlu1 %1337  ;;  %v1116_v3 = vpop.permute.xlu2 %1115 }
 0x289   :  { %v8937_v28 = vsel %vm1502_vm6, %v1486_v15, %v1338_v17  ;;  %v1340_v34 = vpop.permute.xlu0 %1339  ;;  %v859_v17 = vrot.slane %v8955_v38, 1 }
 0x28a   :  { %14972 = vst [vmem:[#allocation23_spill] sm:$0xff] %v8937_v28  ;;  %7480 = vmatmul.msk.f32.gmra.mxu3 %vm1582_vm5, %v8937_v28  ;;  %v8960_v36 = vsel %vm1502_vm6, %v1487_v21, %v1340_v34  ;;  %v355_v34 = vadd.f32 %v8476_v43, %v8305_v40 }
 0x28b   :  { %14973 = vst [vmem:[#allocation24_spill] sm:$0xff] %v8960_v36  ;;  %v861_v61 = vsel %vm844_vm2, %v859_v17, %v860_v32 }
 0x28c   :  { %v8985_v21 = vmax.f32 %v355_v34, 0.0 }
 0x28e   :  { %1023 = vrot.lane.b32.xlu1 %v8929_v16, %s8104_s21  ;;  %1253 = vrot.lane.b32.xlu2 %v858_v33, %s8105_s26 }
 0x28f   :  { %1025 = vrot.lane.b32.xlu0 %v8922_v47, %s8104_s21 }
 0x290   :  { %v1112_v15 = vpop.permute.xlu1 %1111  ;;  %v1348_v7 = vpop.permute.xlu2 %1347 }
 0x291   :  { %v1488_v33 = vsel %vm1435_vm4, %v837_v49, %v1112_v15  ;;  %v8987_v15 = vmax.f32 %v358_v27, 0.0 }
 0x292   :  { %7481 = vmatmul.msk.f32.gmra.mxu3 %vm1582_vm5, %v8960_v36  ;;  %v8981_v30 = vsel %vm1502_vm6, %v1488_v33, %v1342_v59  ;;  %v364_v59 = vadd.f32 %v8476_v43, %v8323_v46  ;;  %v361_v33 = vadd.f32 %v8476_v43, %v8317_v44 }
 0x293   :  { %14975 = vst [vmem:[#allocation25_spill] sm:$0xff] %v8981_v30  ;;  %v863_v32 = vrot.slane %v8987_v15, 1 }
 0x294   :  { %v9008_v34 = vmax.f32 %v364_v59, 0.0  ;;  %v9015_v27 = vmax.f32 %v361_v33, 0.0 }
 0x295   :  { %v1114_v17 = vpop.permute.xlu0 %1113  ;;  %v982_v46 = vsel %vm844_vm2, %v863_v32, 0.0 }
 0x296   :  { %1255 = vrot.lane.b32.xlu1 %v980_v57, %s8105_s26  ;;  %1027 = vrot.lane.b32.xlu2 %v8955_v38, %s8104_s21  ;;  %v1489_v40 = vsel %vm1435_vm4, %v8674_v29, %v1114_v17  ;;  %v14977_v17 = vrot.slane %v8688_v63, 7  ;;  %v865_v33 = vrot.slane %v9015_v27, 1 }
 0x297   :  { %1257 = vrot.lane.b32.xlu0 %v861_v61, %s8105_s26  ;;  %v862_v61 = vrot.slane %v8985_v21, 1 }
 0x298   :  { %v1344_v49 = vpop.permute.xlu1 %1343 }
 0x299   :  { %v9000_v57 = vsel %vm1502_vm6, %v1489_v40, %v1344_v49  ;;  %v864_v29 = vsel %vm844_vm2, %v862_v61, %v863_v32  ;;  %v866_v61 = vrot.slane %v9008_v34, 1  ;;  %v370_v32 = vadd.f32 %v8476_v43, %v8335_v50 }
 0x29a   :  { %7482 = vmatmul.msk.f32.gmra.mxu3 %vm1582_vm5, %v8981_v30  ;;  %14976 = vst [vmem:[#allocation26_spill] sm:$0xff] %v9000_v57 }
 0x29d   :  { %v1122_v42 = vpop.permute.xlu2 %1121 }
 0x29e   :  { %1029 = vrot.lane.b32.xlu1 %v8948_v18, %s8104_s21  ;;  %1259 = vrot.lane.b32.xlu2 %v981_v24, %s8105_s26  ;;  %v838_v24 = vsel %vm646_vm3, 0.0, %v14977_v17  ;;  %v9038_v17 = vmax.f32 %v370_v32, 0.0 }
 0x29f   :  { %1031 = vrot.lane.b32.xlu0 %v8985_v21, %s8104_s21  ;;  %v1490_v44 = vsel %vm1435_vm4, %v838_v24, %v1116_v3  ;;  %v367_v3 = vadd.f32 %v8476_v43, %v8329_v48 }
 0x2a1   :  { %v9047_v50 = vmax.f32 %v367_v3, 0.0 }
 0x2a2   :  { %7483 = vmatmul.msk.f32.gmra.mxu3 %vm1582_vm5, %v9000_v57 }
 0x2a3   :  { %v868_v32 = vrot.slane %v9047_v50, 1 }
 0x2a5   :  { %v1118_v63 = vpop.permute.xlu1 %1117 }
 0x2a6   :  { %1261 = vrot.lane.b32.xlu1 %v864_v29, %s8105_s26  ;;  %1033 = vrot.lane.b32.xlu2 %v8987_v15, %s8104_s21  ;;  %v1491_v24 = vsel %vm1435_vm4, %v8709_v53, %v1118_v63  ;;  %v869_v53 = vrot.slane %v9038_v17, 1 }
 0x2a7   :  { %1263 = vrot.lane.b32.xlu0 %v982_v46, %s8105_s26  ;;  %v867_v46 = vsel %vm844_vm2, %v865_v33, %v866_v61  ;;  %v983_v33 = vsel %vm844_vm2, %v866_v61, 0.0  ;;  %v373_v61 = vadd.f32 %v8476_v43, %v8341_v52  ;;  %v1493_v52 = vsel %vm1435_vm4, %v8759_v5, %v1122_v42 }
 0x2a8   :  { %v9022_v49 = vpop.permute.xlu2 %1353  ;;  %v1346_v40 = vpop.permute.xlu0 %1345  ;;  %v870_v3 = vsel %vm844_vm2, %v868_v32, %v869_v53 }
 0x2a9   :  { %v9025_v59 = vsel %vm1502_vm6, %v1490_v44, %v1346_v40  ;;  %v9052_v40 = vsel %vm1502_vm6, %v1491_v24, %v1348_v7  ;;  %v14982_v7 = vrot.slane %v8729_v19, 7  ;;  %v9081_v19 = vmax.f32 %v373_v61, 0.0 }
 0x2aa   :  { %14978 = vst [vmem:[#allocation27_spill] sm:$0xff] %v9025_v59  ;;  %7484 = vmatmul.msk.f32.gmra.mxu3 %vm1582_vm5, %v9025_v59  ;;  %v15012_v59 = vld [vmem:[#allocation3_spill] sm:$0xff] }
 0x2ab   :  { %14980 = vst [vmem:[#allocation29_spill] sm:$0xff] %v9052_v40  ;;  %v871_v5 = vrot.slane %v9081_v19, 1 }
 0x2ad   :  { %v9035_v29 = vpop.f32.mrf.mxu3 }
 0x2ae   :  { %14979 = vst [vmem:[#allocation28_spill] sm:$0xff] %v9035_v29  ;;  %1035 = vrot.lane.b32.xlu1 %v9015_v27, %s8104_s21  ;;  %1265 = vrot.lane.b32.xlu2 %v867_v46, %s8105_s26  ;;  %v839_v46 = vsel %vm646_vm3, 0.0, %v14982_v7  ;;  %v984_v7 = vsel %vm844_vm2, %v869_v53, 0.0 }
 0x2af   :  { %1037 = vrot.lane.b32.xlu0 %v9008_v34, %s8104_s21 }
 0x2b0   :  { %v9049_v48 = vpop.permute.xlu2 %1127  ;;  %v1120_v44 = vpop.permute.xlu0 %1119 }
 0x2b1   :  { %v1492_v24 = vsel %vm1435_vm4, %v839_v46, %v1120_v44  ;;  %v382_v46 = vadd.f32 %v8476_v43, %v8359_v58 }
 0x2b2   :  { %7485 = vmatmul.msk.f32.gmra.mxu3 %vm1582_vm5, %v9052_v40 }
 0x2b3   :  { %v9108_v42 = vmax.f32 %v382_v46, 0.0 }
 0x2b5   :  { %v9058_v63 = vpop.f32.mrf.mxu3 }
 0x2b6   :  { %14981 = vst [vmem:[#allocation30_spill] sm:$0xff] %v9058_v63  ;;  %1267 = vrot.lane.b32.xlu1 %v983_v33, %s8105_s26  ;;  %1039 = vrot.lane.b32.xlu2 %v9047_v50, %s8104_s21  ;;  %v376_v33 = vadd.f32 %v8476_v43, %v8347_v54 }
 0x2b7   :  { %1269 = vrot.lane.b32.xlu0 %v870_v3, %s8105_s26 }
 0x2b8   :  { %v9070_v41 = vpop.permute.xlu2 %1359  ;;  %v1350_v63 = vpop.permute.xlu1 %1349  ;;  %v9083_v3 = vmax.f32 %v376_v33, 0.0  ;;  %v379_v33 = vadd.f32 %v8476_v43, %v8353_v56 }
 0x2b9   :  { %v9077_v29 = vsel %vm1502_vm6, %v1492_v24, %v1350_v63  ;;  %v1352_v32 = vpop.permute.xlu0 %1351 }
 0x2ba   :  { %14983 = vst [vmem:[#allocation31_spill] sm:$0xff] %v9077_v29  ;;  %7486 = vmatmul.msk.f32.gmra.mxu3 %vm1582_vm5, %v9077_v29  ;;  %v9100_v24 = vsel %vm1502_vm6, %v1493_v52, %v1352_v32  ;;  %v872_v61 = vrot.slane %v9083_v3, 1 }
 0x2bb   :  { %14985 = vst [vmem:[#allocation33_spill] sm:$0xff] %v9100_v24 }
 0x2bc   :  { %v873_v32 = vsel %vm844_vm2, %v871_v5, %v872_v61  ;;  %v985_v56 = vsel %vm844_vm2, %v872_v61, 0.0 }
 0x2bd   :  { %v9085_v44 = vpop.f32.mrf.mxu3 }
 0x2be   :  { %14984 = vst [vmem:[#allocation32_spill] sm:$0xff] %v9085_v44  ;;  %1041 = vrot.lane.b32.xlu1 %v9038_v17, %s8104_s21  ;;  %1271 = vrot.lane.b32.xlu2 %v984_v7, %s8105_s26  ;;  %v14986_v7 = vrot.slane %v8770_v22, 7 }
 0x2bf   :  { %1043 = vrot.lane.b32.xlu0 %v9081_v19, %s8104_s21 }
 0x2c0   :  { %v9095_v54 = vpop.permute.xlu2 %1133  ;;  %v1124_v63 = vpop.permute.xlu1 %1123  ;;  %v840_v58 = vsel %vm646_vm3, 0.0, %v14986_v7 }
 0x2c1   :  { %v1126_v53 = vpop.permute.xlu0 %1125  ;;  %v1494_v52 = vsel %vm1435_vm4, %v840_v58, %v1124_v63  ;;  %v875_v63 = vrot.slane %v9108_v42, 1  ;;  %v388_v58 = vadd.f32 %v8476_v43, %v8371_v62 }
 0x2c2   :  { %7487 = vmatmul.msk.f32.gmra.mxu3 %vm1582_vm5, %v9100_v24  ;;  %v9121_v24 = vmax.f32 %v379_v33, 0.0  ;;  %v9128_v5 = vsel %vm1502_vm6, %v1494_v52, %v9022_v49  ;;  %v9139_v33 = vld [vmem:[%s14784_s2] ss:$0 sm:$0xff]  ;;  %v1495_v43 = vsel %vm1435_vm4, %v8784_v31, %v1126_v53  ;;  %v14992_v53 = vrot.slane %v8726_v20, 7 }
 0x2c3   :  { %14988 = vst [vmem:[#allocation35_spill] sm:$0xff] %v9128_v5 }
 0x2c4   :  { %v874_v61 = vrot.slane %v9121_v24, 1 }
 0x2c5   :  { %v9113_v44 = vpop.f32.mrf.mxu3 }
 0x2c6   :  { %14987 = vst [vmem:[#allocation34_spill] sm:$0xff] %v9113_v44  ;;  %1273 = vrot.lane.b32.xlu1 %v873_v32, %s8105_s26  ;;  %1045 = vrot.lane.b32.xlu2 %v9083_v3, %s8104_s21  ;;  %v385_v32 = vadd.f32 %v9139_v33, %v8365_v60  ;;  %v876_v52 = vsel %vm844_vm2, %v874_v61, %v875_v63 }
 0x2c7   :  { %1275 = vrot.lane.b32.xlu0 %v985_v56, %s8105_s26  ;;  %v9146_v56 = vmax.f32 %v388_v58, 0.0 }
 0x2c8   :  { %v9124_v22 = vpop.permute.xlu2 %1365  ;;  %v1356_v46 = vpop.permute.xlu1 %1355  ;;  %v9153_v62 = vmax.f32 %v385_v32, 0.0  ;;  %v986_v32 = vsel %vm844_vm2, %v875_v63, 0.0  ;;  %v391_v63 = vadd.f32 %v9139_v33, %v8377_v0 }
 0x2c9   :  { %v1358_v7 = vpop.permute.xlu0 %1357  ;;  %v9160_v61 = vsel %vm1502_vm6, %v1495_v43, %v1356_v46  ;;  %v841_v46 = vsel %vm646_vm3, 0.0, %v14992_v53 }
 0x2ca   :  { %7488 = vmatmul.msk.f32.gmra.mxu3 %vm1582_vm5, %v9128_v5  ;;  %14990 = vst [vmem:[#allocation37_spill] sm:$0xff] %v9160_v61  ;;  %v1496_v43 = vsel %vm1435_vm4, %v841_v46, %v9049_v48 }
 0x2cd   :  { %v9143_v49 = vpop.f32.mrf.mxu3 }
 0x2ce   :  { %14989 = vst [vmem:[#allocation36_spill] sm:$0xff] %v9143_v49  ;;  %1047 = vrot.lane.b32.xlu1 %v9121_v24, %s8104_s21  ;;  %1277 = vrot.lane.b32.xlu2 %v876_v52, %s8105_s26  ;;  %v878_v52 = vrot.slane %v9146_v56, 1  ;;  %v877_v49 = vrot.slane %v9153_v62, 1 }
 0x2cf   :  { %1049 = vrot.lane.b32.xlu0 %v9108_v42, %s8104_s21 }
 0x2d0   :  { %v1130_v60 = vpop.permute.xlu1 %1129  ;;  %v9157_v44 = vpop.permute.xlu2 %1015  ;;  %v879_v31 = vsel %vm844_vm2, %v877_v49, %v878_v52  ;;  %v9186_v49 = vsel %vm1502_vm6, %v1496_v43, %v1358_v7  ;;  %v987_v46 = vsel %vm844_vm2, %v878_v52, 0.0  ;;  %v400_v52 = vadd.f32 %v9139_v33, %v8395_v6 }
 0x2d1   :  { %v1132_v58 = vpop.permute.xlu0 %1131  ;;  %14993 = vst [vmem:[#allocation39_spill] sm:$0xff] %v9186_v49  ;;  %v1497_v0 = vsel %vm1435_vm4, %v8737_v37, %v1130_v60  ;;  %v397_v6 = vadd.f32 %v9139_v33, %v8389_v4 }
 0x2d2   :  { %7489 = vmatmul.msk.f32.gmra.mxu3 %vm1582_vm5, %v9160_v61  ;;  %v9215_v60 = vsel %vm1502_vm6, %v1497_v0, %v9070_v41  ;;  %v9229_v41 = vmax.f32 %v400_v52, 0.0  ;;  %v14997_v52 = vrot.slane %v8768_v25, 7 }
 0x2d3   :  { %14995 = vst [vmem:[#allocation41_spill] sm:$0xff] %v9215_v60 }
 0x2d4   :  { %v884_v25 = vrot.slane %v9229_v41, 1 }
 0x2d5   :  { %v9166_v5 = vpop.f32.mrf.mxu3 }
 0x2d6   :  { %14991 = vst [vmem:[#allocation38_spill] sm:$0xff] %v9166_v5  ;;  %1279 = vrot.lane.b32.xlu1 %v986_v32, %s8105_s26  ;;  %1051 = vrot.lane.b32.xlu2 %v9153_v62, %s8104_s21  ;;  %v394_v32 = vadd.f32 %v9139_v33, %v8383_v2  ;;  %v7565_v2 = vld [vmem:[%s14785_s3 + $0x88] sm:$0xff] }
 0x2d7   :  { %1281 = vrot.lane.b32.xlu0 %v879_v31, %s8105_s26  ;;  %v9190_v31 = vmax.f32 %v391_v63, 0.0  ;;  %2216 = vmatpush.msra.mxu3 %v7565_v2 }
 0x2d8   :  { %v1362_v61 = vpop.permute.xlu1 %1361  ;;  %v9179_v5 = vpop.permute.xlu2 %1247  ;;  %v9192_v53 = vmax.f32 %v394_v32, 0.0  ;;  %v7564_v32 = vld [vmem:[%s14785_s3 + $0x80] sm:$0xff] }
 0x2d9   :  { %v1364_v20 = vpop.permute.xlu0 %1363  ;;  %v880_v2 = vrot.slane %v9190_v31, 1  ;;  %2217 = vmatpush.msra.mxu3 %v7564_v32  ;;  %v842_v32 = vsel %vm646_vm3, 0.0, %v14997_v52 }
 0x2da   :  { %7490 = vmatmul.msk.f32.gmra.mxu3 %vm1582_vm5, %v9186_v49  ;;  %v881_v63 = vrot.slane %v9192_v53, 1  ;;  %v9241_v49 = vmax.f32 %v397_v6, 0.0 }
 0x2dc   :  { %v988_v4 = vsel %vm844_vm2, %v881_v63, 0.0 }
 0x2dd   :  { %v9194_v48 = vpop.f32.mrf.mxu3 }
 0x2de   :  { %14994 = vst [vmem:[#allocation40_spill] sm:$0xff] %v9194_v48  ;;  %1053 = vrot.lane.b32.xlu1 %v9146_v56, %s8104_s21  ;;  %1283 = vrot.lane.b32.xlu2 %v987_v46, %s8105_s26  ;;  %v7563_v46 = vld [vmem:[%s14785_s3 + $0x78] sm:$0xff]  ;;  %v882_v48 = vsel %vm844_vm2, %v880_v2, %v881_v63 }
 0x2df   :  { %1055 = vrot.lane.b32.xlu0 %v9190_v31, %s8104_s21  ;;  %2218 = vmatpush.msra.mxu3 %v7563_v46  ;;  %v7561_v46 = vld [vmem:[%s14785_s3 + $0x68] sm:$0xff] }
 0x2e0   :  { %v1136_v7 = vpop.permute.xlu1 %1135  ;;  %v9207_v43 = vpop.permute.xlu2 %1021 }
 0x2e1   :  { %v9211_v37 = vpop.permute.xlu0 %1137 }
 0x2e2   :  { %7491 = vmatmul.msk.f32.gmra.mxu3 %vm1582_vm5, %v9215_v60  ;;  %v7562_v60 = vld [vmem:[%s14785_s3 + $0x70] sm:$0xff] }
 0x2e3   :  { %2219 = vmatpush.msra.mxu3 %v7562_v60  ;;  %v7560_v60 = vld [vmem:[%s14785_s3 + $0x60] sm:$0xff] }
 0x2e5   :  { %v9231_v0 = vpop.f32.mrf.mxu3  ;;  %2220 = vmatpush.msra.mxu3 %v7561_v46 }
 0x2e6   :  { %14996 = vst [vmem:[#allocation42_spill] sm:$0xff] %v9231_v0  ;;  %1285 = vrot.lane.b32.xlu1 %v882_v48, %s8105_s26  ;;  %1057 = vrot.lane.b32.xlu2 %v9192_v53, %s8104_s21  ;;  %v1498_v48 = vsel %vm1435_vm4, %v842_v32, %v1132_v58  ;;  %v883_v58 = vrot.slane %v9241_v49, 1 }
 0x2e7   :  { %1287 = vrot.lane.b32.xlu0 %v988_v4, %s8105_s26  ;;  %v9254_v63 = vsel %vm1502_vm6, %v1498_v48, %v1362_v61  ;;  %v406_v4 = vadd.f32 %v9139_v33, %v8407_v10  ;;  %2221 = vmatpush.msra.mxu3 %v7560_v60  ;;  %v403_v61 = vadd.f32 %v9139_v33, %v8401_v8 }
 0x2e8   :  { %v1368_v2 = vpop.permute.xlu1 %1367  ;;  %v9251_v0 = vpop.permute.xlu2 %1253  ;;  %14998 = vst [vmem:[#allocation43_spill] sm:$0xff] %v9254_v63  ;;  %v885_v32 = vsel %vm844_vm2, %v883_v58, %v884_v25  ;;  %v1499_v8 = vsel %vm1435_vm4, %v8794_v55, %v9095_v54 }
 0x2e9   :  { %v9256_v6 = vpop.permute.xlu0 %1245  ;;  %v9272_v46 = vmax.f32 %v406_v4, 0.0  ;;  %v9279_v10 = vmax.f32 %v403_v61, 0.0  ;;  %v9289_v4 = vsel %vm1502_vm6, %v1499_v8, %v1364_v20 }
 0x2ea   :  { %7492 = vmatmul.msk.f32.gmra.mxu3 %vm1582_vm5, %v9254_v63  ;;  %15000 = vst [vmem:[#allocation45_spill] sm:$0xff] %v9289_v4  ;;  %v989_v63 = vsel %vm844_vm2, %v884_v25, 0.0 }
 0x2eb   :  { %v886_v61 = vrot.slane %v9279_v10, 1 }
 0x2ed   :  { %v9269_v52 = vpop.f32.mrf.mxu3 }
 0x2ee   :  { %14999 = vst [vmem:[#allocation44_spill] sm:$0xff] %v9269_v52  ;;  %1059 = vrot.lane.b32.xlu1 %v9241_v49, %s8104_s21  ;;  %1289 = vrot.lane.b32.xlu2 %v885_v32, %s8105_s26  ;;  %v887_v32 = vrot.slane %v9272_v46, 1  ;;  %v15001_v52 = vrot.slane %v8833_v39, 7 }
 0x2ef   :  { %1061 = vrot.lane.b32.xlu0 %v9229_v41, %s8104_s21 }
 0x2f0   :  { %v9284_v48 = vpop.permute.xlu1 %1017  ;;  %v9286_v60 = vpop.permute.xlu2 %1027  ;;  %v843_v55 = vsel %vm646_vm3, 0.0, %v15001_v52  ;;  %v888_v8 = vsel %vm844_vm2, %v886_v61, %v887_v32  ;;  %v409_v52 = vadd.f32 %v9139_v33, %v8413_v12  ;;  %v990_v12 = vsel %vm844_vm2, %v887_v32, 0.0 }
 0x2f1   :  { %v9291_v58 = vpop.permute.xlu0 %1019  ;;  %v1500_v20 = vsel %vm1435_vm4, %v843_v55, %v1136_v7 }
 0x2f2   :  { %7493 = vmatmul.msk.f32.gmra.mxu3 %vm1582_vm5, %v9289_v4  ;;  %v9325_v61 = vmax.f32 %v409_v52, 0.0  ;;  %v15006_v52 = vld [vmem:[#allocation6_spill] sm:$0xff] }
 0x2f4   :  { %v889_v29 = vrot.slane %v9325_v61, 1 }
 0x2f5   :  { %v9300_v54 = vpop.f32.mrf.mxu3 }
 0x2f6   :  { %15002 = vst [vmem:[#allocation46_spill] sm:$0xff] %v9300_v54  ;;  %1291 = vrot.lane.b32.xlu1 %v989_v63, %s8105_s26  ;;  %1063 = vrot.lane.b32.xlu2 %v9279_v10, %s8104_s21  ;;  %v15003_v54 = vld [vmem:[#allocation4_spill] sm:$0xff]  ;;  %v9321_v63 = vsel %vm1502_vm6, %v1500_v20, %v9124_v22  ;;  %v1501_v22 = vsel %vm1435_vm4, %v8849_v45, %v9211_v37  ;;  %v652_v37 = vrot.slane %v8869_v26, 7 }
 0x2f7   :  { %1293 = vrot.lane.b32.xlu0 %v888_v8, %s8105_s26  ;;  %v412_v25 = vadd.f32 %v9139_v33, %v15003_v54  ;;  %15004 = vst [vmem:[#allocation4_spill] sm:$0xff] %v9321_v63  ;;  %v9347_v32 = vsel %vm1502_vm6, %v1501_v22, %v1368_v2 }
 0x2f8   :  { %v9309_v4 = vpop.permute.xlu1 %1249  ;;  %v9311_v39 = vpop.permute.xlu2 %1259  ;;  %15007 = vst [vmem:[#allocation6_spill] sm:$0xff] %v9347_v32 }
 0x2f9   :  { %v9317_v7 = vpop.permute.xlu0 %1251  ;;  %v9327_v55 = vmax.f32 %v412_v25, 0.0  ;;  %v418_v25 = vadd.f32 %v9139_v33, %v15006_v52 }
 0x2fa   :  { %7494 = vmatmul.msk.f32.gmra.mxu3 %vm1582_vm5, %v9321_v63  ;;  %v15008_v63 = vld [vmem:[#allocation5_spill] sm:$0xff] }
 0x2fb   :  { %v415_v45 = vadd.f32 %v9139_v33, %v15008_v63  ;;  %v9358_v40 = vmax.f32 %v418_v25, 0.0  ;;  %v813_v63 = vsel %vm646_vm3, 0.0, %v652_v37 }
 0x2fc   :  { %v1440_v26 = vsel %vm1435_vm4, %v813_v63, %v9157_v44  ;;  %v15013_v63 = vld [vmem:[#allocation2_spill] sm:$0xff] }
 0x2fd   :  { %v9329_v8 = vpop.f32.mrf.mxu3  ;;  %15009 = vst [vmem:[#allocation5_spill] sm:$0xff] %v9358_v40  ;;  %v325_v57 = vadd.f32 %v9139_v33, %v15013_v63  ;;  %v655_v63 = vrot.slane %v8899_v11, 7 }
 0x2fe   :  { %15005 = vst [vmem:[#allocation47_spill] sm:$0xff] %v9329_v8  ;;  %1065 = vrot.lane.b32.xlu1 %v9272_v46, %s8104_s21  ;;  %1295 = vrot.lane.b32.xlu2 %v990_v12, %s8105_s26  ;;  %v890_v12 = vrot.slane %v9327_v55, 1 }
 0x2ff   :  { %1067 = vrot.lane.b32.xlu0 %v9325_v61, %s8104_s21 }
 0x300   :  { %v9340_v54 = vpop.permute.xlu1 %1023  ;;  %v9342_v20 = vpop.permute.xlu2 %1033  ;;  %v891_v2 = vsel %vm844_vm2, %v889_v29, %v890_v12  ;;  %v991_v22 = vsel %vm844_vm2, %v890_v12, 0.0  ;;  %v653_v29 = vrot.slane %v8863_v9, 7 }
 0x301   :  { %v9349_v8 = vpop.permute.xlu0 %1025 }
 0x302   :  { %7495 = vmatmul.msk.f32.gmra.mxu3 %vm1582_vm5, %v9347_v32  ;;  %v9367_v32 = vmax.f32 %v415_v45, 0.0  ;;  %v893_v45 = vrot.slane %v9358_v40, 1  ;;  %v654_v9 = vsel %vm646_vm3, %v652_v37, %v653_v29 }
 0x303   :  { %v1441_v36 = vsel %vm1435_vm4, %v654_v9, %v9284_v48 }
 0x304   :  { %15011 = vst [vmem:[#allocation49_spill] sm:$0xff] %v9367_v32  ;;  %v892_v44 = vrot.slane %v9367_v32, 1 }
 0x305   :  { %v9360_v52 = vpop.f32.mrf.mxu3 }
 0x306   :  { %15010 = vst [vmem:[#allocation48_spill] sm:$0xff] %v9360_v52  ;;  %1297 = vrot.lane.b32.xlu1 %v891_v2, %s8105_s26  ;;  %1069 = vrot.lane.b32.xlu2 %v9327_v55, %s8104_s21  ;;  %v9380_v2 = vsel %vm1502_vm6, %v1440_v26, %v9256_v6  ;;  %v894_v6 = vsel %vm844_vm2, %v892_v44, %v893_v45 }
 0x307   :  { %1299 = vrot.lane.b32.xlu0 %v991_v22, %s8105_s26  ;;  %v328_v22 = vadd.f32 %v9139_v33, %v15012_v59  ;;  %v9405_v59 = vmax.f32 %v325_v57, 0.0 }
 0x308   :  { %v9373_v25 = vpop.permute.xlu1 %1255  ;;  %v9375_v52 = vpop.permute.xlu2 %1265 }
 0x309   :  { %v9382_v12 = vpop.permute.xlu0 %1257  ;;  %v9396_v26 = vmax.f32 %v328_v22, 0.0  ;;  %v9415_v22 = vsel %vm1502_vm6, %v1441_v36, %v9179_v5  ;;  %v847_v57 = vrot.slane %v9405_v59, 1  ;;  %v814_v5 = vsel %vm646_vm3, 0.0, %v655_v63 }
 0x30a   :  { %7566 = vmatmul.msk.f32.vlgmr.msra.gmra.mxu3 %vm1582_vm5, %v9380_v2  ;;  %v1442_v11 = vsel %vm1435_vm4, %v814_v5, %v9291_v58 }
 0x30b   :  { %v848_v48 = vrot.slane %v9396_v26, 1 }
 0x30d   :  { %v9393_v30 = vpop.f32.mrf.mxu3  ;;  %v849_v36 = vsel %vm844_vm2, %v847_v57, %v848_v48  ;;  %v14856_v57 = vmov 0.0  }
 0x30e   :  { %15014 = vst [vmem:[#allocation3_spill] sm:$0xff] %v9393_v30  ;;  %1071 = vrot.lane.b32.xlu1 %v9367_v32, %s8104_s21  ;;  %1301 = vrot.lane.b32.xlu2 %v894_v6, %s8105_s26  ;;  %v992_v6 = vsel %vm844_vm2, %v893_v45, 0.0  ;;  %v9439_v45 = vsel %vm1502_vm6, %v1442_v11, %v9309_v4 }
 0x30f   :  { %1073 = vrot.lane.b32.xlu0 %v9358_v40, %s8104_s21 }
 0x310   :  { %v9407_v37 = vpop.permute.xlu1 %1029  ;;  %v9409_v29 = vpop.permute.xlu2 %1039 }
 0x311   :  { %v9411_v44 = vpop.permute.xlu0 %1031 }
 0x312   :  { %7567 = vmatmul.msk.f32.gmra.mxu3 %vm1582_vm5, %v9415_v22 }
 0x315   :  { %v9422_v9 = vpop.f32.mrf.mxu3 }
 0x316   :  { %15015 = vst [vmem:[#allocation2_spill] sm:$0xff] %v9422_v9  ;;  %1303 = vrot.lane.b32.xlu1 %v992_v6, %s8105_s26  ;;  %1011 = vrot.lane.b32.xlu2 %v9405_v59, %s8104_s21  ;;  %v9446_v9 = vrot.slane %v14856_v57, 1 }
 0x317   :  { %1241 = vrot.lane.b32.xlu0 %v849_v36, %s8105_s26  ;;  %v656_v36 = vrot.slane %v8901_v51, 7  ;;  %v15018_v51 = vld [vmem:[#allocation9_spill] sm:$0xff] }
 0x318   :  { %v9433_v30 = vpop.permute.xlu1 %1261  ;;  %v9435_v28 = vpop.permute.xlu2 %1271  ;;  %15016 = vst [vmem:[#allocation50_spill] sm:$0xff] %v9446_v9 }
 0x319   :  { %v9441_v6 = vpop.permute.xlu0 %1263  ;;  %v657_v4 = vsel %vm646_vm3, %v655_v63, %v656_v36  ;;  %v658_v63 = vrot.slane %v8929_v16, 7 }
 0x31a   :  { %7568 = vmatmul.msk.f32.gmra.mxu3 %vm1582_vm5, %v9439_v45  ;;  %v1443_v5 = vsel %vm1435_vm4, %v657_v4, %v9207_v43  ;;  %v9479_v43 = vsel %vm844_vm2, %v9446_v9, 0.0 }
 0x31b   :  { %v9470_v13 = vsel %vm1502_vm6, %v1443_v5, %v9317_v7  ;;  %15020 = vst [vmem:[#allocation9_spill] sm:$0xff] %v9479_v43  ;;  %v977_v7 = vsel %vm844_vm2, %v848_v48, 0.0  ;;  %v15022_v5 = vld [vmem:[#allocation8_spill] sm:$0xff] }
 0x31d   :  { %v9449_v58 = vpop.f32.mrf.mxu3 }
 0x31e   :  { %15017 = vst [vmem:[#allocation51_spill] sm:$0xff] %v9449_v58  ;;  %1009 = vrot.lane.b32.xlu1 %v14856_v57, %s8104_s21  ;;  %1237 = vrot.lane.b32.xlu2 %v9446_v9, %s8105_s26  ;;  %v427_v58 = vadd.f32 %v9139_v33, %v15018_v51  ;;  %v430_v57 = vadd.f32 %v9139_v33, %v15019_v14  ;;  %v815_v14 = vsel %vm646_vm3, 0.0, %v658_v63 }
 0x31f   :  { %1013 = vrot.lane.b32.xlu0 %v9396_v26, %s8104_s21  ;;  %v1444_v16 = vsel %vm1435_vm4, %v815_v14, %v9340_v54  ;;  %v424_v9 = vadd.f32 %v9139_v33, %v15022_v5  ;;  %v659_v14 = vrot.slane %v8922_v47, 7 }
 0x320   :  { %v9460_v11 = vpop.permute.xlu1 %1035  ;;  %v9462_v1 = vpop.permute.xlu2 %1045  ;;  %v9481_v4 = vmax.f32 %v427_v58, 0.0  ;;  %v9483_v51 = vmax.f32 %v430_v57, 0.0  ;;  %v9506_v54 = vsel %vm1502_vm6, %v1444_v16, %v9251_v0 }
 0x321   :  { %v9473_v36 = vpop.permute.xlu0 %1037  ;;  %v9515_v40 = vmax.f32 %v424_v9, 0.0  ;;  %v660_v47 = vsel %vm646_vm3, %v658_v63, %v659_v14  ;;  %v661_v63 = vrot.slane %v8955_v38, 7 }
 0x322   :  { %7569 = vmatmul.msk.f32.gmra.mxu3 %vm1582_vm5, %v9470_v13  ;;  %v899_v48 = vrot.slane %v9483_v51, 1  ;;  %v898_v35 = vrot.slane %v9481_v4, 1 }
 0x324   :  { %v900_v32 = vsel %vm844_vm2, %v898_v35, %v899_v48  ;;  %v994_v0 = vsel %vm844_vm2, %v899_v48, 0.0 }
 0x325   :  { %v9486_v23 = vpop.f32.mrf.mxu3 }
 0x326   :  { %15021 = vst [vmem:[#allocation10_spill] sm:$0xff] %v9486_v23  ;;  %1243 = vrot.lane.b32.xlu1 %v977_v7, %s8105_s26  ;;  %1239 = vrot.lane.b32.xlu2 %v9479_v43, %s8105_s26  ;;  %v15023_v7 = vld [vmem:[#allocation7_spill] sm:$0xff] }
 0x327   :  { %1079 = vrot.lane.b32.xlu0 %v9481_v4, %s8104_s21  ;;  %v421_v43 = vadd.f32 %v9139_v33, %v15023_v7  ;;  %v1445_v33 = vsel %vm1435_vm4, %v660_v47, %v9349_v8  ;;  %v662_v47 = vrot.slane %v8948_v18, 7  ;;  %v1574_v18 = vld [vmem:[%s14785_s3 + $0x28] sm:$0xff] }
 0x328   :  { %v9496_v58 = vpop.permute.xlu1 %1267  ;;  %v9498_v57 = vpop.permute.xlu2 %1277  ;;  %v9534_v35 = vsel %vm1502_vm6, %v1445_v33, %v9373_v25  ;;  %v816_v25 = vsel %vm646_vm3, 0.0, %v661_v63  ;;  %8072 = vmatpush.msra.mxu2 %v1574_v18  ;;  %2000 = vmatpush.msrb.mxu0 %v1574_v18  ;;  %v1571_v18 = vld [vmem:[%s14785_s3 + $0x10] sm:$0xff] }
 0x329   :  { %v9502_v23 = vpop.permute.xlu0 %1269  ;;  %v9524_v16 = vmax.f32 %v421_v43, 0.0  ;;  %15025 = vst [vmem:[#allocation7_spill] sm:$0xff] %v9534_v35  ;;  %v896_v43 = vrot.slane %v9515_v40, 1 }
 0x32a   :  { %7570 = vmatmul.msk.f32.gmra.mxu3 %vm1582_vm5, %v9506_v54 }
 0x32b   :  { %v895_v48 = vrot.slane %v9524_v16, 1 }
 0x32d   :  { %v9517_v5 = vpop.f32.mrf.mxu3  ;;  %v897_v14 = vsel %vm844_vm2, %v895_v48, %v896_v43 }
 0x32e   :  { %15024 = vst [vmem:[#allocation8_spill] sm:$0xff] %v9517_v5  ;;  %1309 = vrot.lane.b32.xlu1 %v900_v32, %s8105_s26  ;;  %1081 = vrot.lane.b32.xlu2 %v9483_v51, %s8104_s21 }
 0x32f   :  { %1311 = vrot.lane.b32.xlu0 %v994_v0, %s8105_s26  ;;  %v1446_v0 = vsel %vm1435_vm4, %v816_v25, %v9286_v60  ;;  %v993_v60 = vsel %vm844_vm2, %v896_v43, 0.0  ;;  %v15029_v25 = vmov 0.0  }
 0x330   :  { %v9530_v9 = vpop.permute.xlu1 %1041  ;;  %v9536_v32 = vpop.permute.xlu2 %1051  ;;  %v9561_v33 = vsel %vm1502_vm6, %v1446_v0, %v9382_v12 }
 0x331   :  { %v9538_v7 = vpop.permute.xlu0 %1043  ;;  %15027 = vst [vmem:[#allocation53_spill] sm:$0xff] %v9561_v33 }
 0x332   :  { %7571 = vmatmul.msk.f32.gmra.mxu3 %vm1582_vm5, %v9534_v35 }
 0x335   :  { %v9545_v8 = vpop.f32.mrf.mxu3 }
 0x336   :  { %15026 = vst [vmem:[#allocation52_spill] sm:$0xff] %v9545_v8  ;;  %1075 = vrot.lane.b32.xlu1 %v9524_v16, %s8104_s21  ;;  %1305 = vrot.lane.b32.xlu2 %v897_v14, %s8105_s26  ;;  %v663_v8 = vsel %vm646_vm3, %v661_v63, %v662_v47  ;;  %v1573_v47 = vld [vmem:[%s14785_s3 + $0x20] sm:$0xff] }
 0x337   :  { %1077 = vrot.lane.b32.xlu0 %v9515_v40, %s8104_s21  ;;  %v1447_v12 = vsel %vm1435_vm4, %v663_v8, %v9407_v37  ;;  %8073 = vmatpush.msra.mxu2 %v1573_v47  ;;  %v1572_v37 = vld [vmem:[%s14785_s3 + $0x18] sm:$0xff]  ;;  %v664_v8 = vrot.slane %v8985_v21, 7 }
 0x338   :  { %v9556_v38 = vpop.permute.xlu1 %1273  ;;  %v9567_v14 = vpop.permute.xlu2 %1283  ;;  %v9587_v43 = vsel %vm1502_vm6, %v1447_v12, %v9311_v39  ;;  %2001 = vmatpush.msrb.mxu0 %v1573_v47  ;;  %v1570_v12 = vld [vmem:[%s14785_s3 + $0x8] sm:$0xff] }
 0x339   :  { %v9563_v48 = vpop.permute.xlu0 %1275  ;;  %15030 = vst [vmem:[#allocation55_spill] sm:$0xff] %v9587_v43  ;;  %8074 = vmatpush.msra.mxu2 %v1572_v37 }
 0x33a   :  { %7572 = vmatmul.msk.f32.gmra.mxu3 %vm1582_vm5, %v9561_v33  ;;  %2002 = vmatpush.msrb.mxu0 %v1572_v37  ;;  %v1569_v37 = vld [vmem:[%s14785_s3] sm:$0xff] }
 0x33b   :  { %8075 = vmatpush.msra.mxu2 %v1571_v18 }
 0x33c   :  { %2003 = vmatpush.msrb.mxu0 %v1571_v18 }
 0x33d   :  { %v9570_v5 = vpop.f32.mrf.mxu3  ;;  %8076 = vmatpush.msra.mxu2 %v1570_v12 }
 0x33e   :  { %15028 = vst [vmem:[#allocation54_spill] sm:$0xff] %v9570_v5  ;;  %1307 = vrot.lane.b32.xlu1 %v993_v60, %s8105_s26  ;;  %3077 = vrot.lane.b32.xlu2 %v15029_v25, %s8105_s26  ;;  %v817_v5 = vsel %vm646_vm3, 0.0, %v664_v8 }
 0x33f   :  { %v1448_v21 = vsel %vm1435_vm4, %v817_v5, %v9411_v44  ;;  %2004 = vmatpush.msrb.mxu0 %v1570_v12  ;;  %8077 = vmatpush.msra.mxu2 %v1569_v37  ;;  %v665_v44 = vrot.slane %v8987_v15, 7 }
 0x340   :  { %v9581_v0 = vpop.permute.xlu1 %1047  ;;  %v9598_v60 = vpop.permute.xlu2 %1057 }
 0x341   :  { %v9583_v63 = vpop.permute.xlu0 %1049  ;;  %2005 = vmatpush.msrb.mxu0 %v1569_v37  ;;  %v666_v18 = vsel %vm646_vm3, %v664_v8, %v665_v44 }
 0x342   :  { %7573 = vmatmul.msk.f32.gmra.mxu3 %vm1582_vm5, %v9587_v43 }
 0x345   :  { %v9600_v39 = vpop.f32.mrf.mxu3 }
 0x346   :  { %15031 = vst [vmem:[#allocation56_spill] sm:$0xff] %v9600_v39  ;;  %v9615_v39 = vsel %vm1502_vm6, %v1448_v21, %v9433_v30  ;;  %v1449_v21 = vsel %vm1435_vm4, %v666_v18, %v9342_v20 }
 0x347   :  { %15032 = vst [vmem:[#allocation57_spill] sm:$0xff] %v9615_v39  ;;  %v9636_v12 = vsel %vm1502_vm6, %v1449_v21, %v9441_v6  ;;  %v668_v6 = vrot.slane %v9008_v34, 7  ;;  %v670_v34 = vrot.slane %v9047_v50, 7 }
 0x348   :  { %v9611_v47 = vpop.permute.xlu1 %1279  ;;  %v9628_v30 = vpop.permute.xlu2 %1289 }
 0x349   :  { %v9617_v43 = vpop.permute.xlu0 %1281 }
 0x34a   :  { %7574 = vmatmul.msk.f32.gmra.mxu3 %vm1582_vm5, %v9615_v39  ;;  %v667_v39 = vrot.slane %v9015_v27, 7 }
 0x34c   :  { %v818_v15 = vsel %vm646_vm3, 0.0, %v667_v39 }
 0x34d   :  { %v9625_v5 = vpop.f32.mrf.mxu3  ;;  %v1450_v20 = vsel %vm1435_vm4, %v818_v15, %v9460_v11 }
 0x34e   :  { %15033 = vst [vmem:[#allocation58_spill] sm:$0xff] %v9625_v5  ;;  %v9654_v27 = vsel %vm1502_vm6, %v1450_v20, %v9375_v52  ;;  %v669_v5 = vsel %vm646_vm3, %v667_v39, %v668_v6 }
 0x34f   :  { %15035 = vst [vmem:[#allocation60_spill] sm:$0xff] %v9654_v27  ;;  %v1451_v11 = vsel %vm1435_vm4, %v669_v5, %v9473_v36  ;;  %v819_v36 = vsel %vm646_vm3, 0.0, %v670_v34 }
 0x350   :  { %v9632_v33 = vpop.permute.xlu1 %1053  ;;  %v1064_v44 = vpop.permute.xlu2 %1063  ;;  %v1452_v5 = vsel %vm1435_vm4, %v819_v36, %v9409_v29  ;;  %v689_v29 = vrot.slane %v9272_v46, 7 }
 0x351   :  { %v9639_v35 = vpop.permute.xlu0 %1055 }
 0x352   :  { %7575 = vmatmul.msk.f32.gmra.mxu3 %vm1582_vm5, %v9636_v12 }
 0x355   :  { %v9644_v8 = vpop.f32.mrf.mxu3 }
 0x356   :  { %15034 = vst [vmem:[#allocation59_spill] sm:$0xff] %v9644_v8  ;;  %v9668_v8 = vsel %vm1502_vm6, %v1451_v11, %v9496_v58  ;;  %v671_v11 = vrot.slane %v9038_v17, 7 }
 0x357   :  { %15037 = vst [vmem:[#allocation62_spill] sm:$0xff] %v9668_v8 }
 0x358   :  { %v9648_v37 = vpop.permute.xlu1 %1285  ;;  %v1296_v20 = vpop.permute.xlu2 %1295  ;;  %v672_v17 = vsel %vm646_vm3, %v670_v34, %v671_v11  ;;  %v673_v34 = vrot.slane %v9081_v19, 7 }
 0x359   :  { %v9650_v18 = vpop.permute.xlu0 %1287 }
 0x35a   :  { %7576 = vmatmul.msk.f32.gmra.mxu3 %vm1582_vm5, %v9654_v27  ;;  %v820_v11 = vsel %vm646_vm3, 0.0, %v673_v34 }
 0x35d   :  { %v9659_v21 = vpop.f32.mrf.mxu3 }
 0x35e   :  { %15036 = vst [vmem:[#allocation61_spill] sm:$0xff] %v9659_v21  ;;  %v688_v21 = vrot.slane %v9279_v10, 7 }
 0x360   :  { %v9664_v15 = vpop.permute.xlu1 %1059  ;;  %v825_v58 = vsel %vm646_vm3, 0.0, %v688_v21  ;;  %v1070_v36 = vpop.permute.xlu2 %1069 }
 0x361   :  { %v9670_v52 = vpop.permute.xlu0 %1061  ;;  %v1464_v50 = vsel %vm1435_vm4, %v825_v58, %v1064_v44  ;;  %v690_v44 = vsel %vm646_vm3, %v688_v21, %v689_v29 }
 0x362   :  { %7577 = vmatmul.msk.f32.gmra.mxu3 %vm1582_vm5, %v9668_v8  ;;  %v9687_v8 = vsel %vm1502_vm6, %v1452_v5, %v9502_v23  ;;  %v1453_v23 = vsel %vm1435_vm4, %v672_v17, %v9530_v9  ;;  %v691_v9 = vrot.slane %v9325_v61, 7  ;;  %v1454_v17 = vsel %vm1435_vm4, %v820_v11, %v9538_v7 }
 0x363   :  { %v9729_v19 = vsel %vm1502_vm6, %v1454_v17, %v9556_v38  ;;  %v692_v7 = vrot.slane %v9327_v55, 7 }
 0x365   :  { %v9676_v39 = vpop.f32.mrf.mxu3  ;;  %v693_v11 = vsel %vm646_vm3, %v691_v9, %v692_v7 }
 0x366   :  { %15038 = vst [vmem:[#allocation63_spill] sm:$0xff] %v9676_v39 }
 0x368   :  { %v9682_v6 = vpop.permute.xlu1 %1291  ;;  %v9721_v29 = vpop.permute.xlu2 %1301 }
 0x369   :  { %v1294_v10 = vpop.permute.xlu0 %1293 }
 0x36a   :  { %v9691_v39 = vsel %vm1502_vm6, %v1464_v50, %v1294_v10  ;;  %7578 = vmatmul.msk.f32.gmra.mxu3 %vm1582_vm5, %v9687_v8  ;;  %v9707_v10 = vsel %vm1502_vm6, %v1453_v23, %v9435_v28  ;;  %v826_v28 = vsel %vm646_vm3, 0.0, %v691_v9 }
 0x36b   :  { %7524 = vmatmul.msk.f32.vlgmr.msra.gmra.mxu2 %vm1582_vm5, %v9691_v39 }
 0x36d   :  { %v9699_v27 = vpop.f32.mrf.mxu3 }
 0x36e   :  { %15039 = vst [vmem:[#allocation64_spill] sm:$0xff] %v9699_v27 }
 0x370   :  { %v1066_v5 = vpop.permute.xlu1 %1065  ;;  %v1012_v55 = vpop.permute.xlu2 %1011 }
 0x371   :  { %v1465_v58 = vsel %vm1435_vm4, %v690_v44, %v1066_v5  ;;  %v1068_v50 = vpop.permute.xlu0 %1067  ;;  %v674_v5 = vrot.slane %v9083_v3, 7  ;;  %v676_v3 = vrot.slane %v9121_v24, 7 }
 0x372   :  { %7579 = vmatmul.msk.f32.gmra.mxu3 %vm1582_vm5, %v9707_v10  ;;  %v9712_v46 = vsel %vm1502_vm6, %v1465_v58, %v1296_v20  ;;  %v1466_v20 = vsel %vm1435_vm4, %v826_v28, %v1068_v50 }
 0x373   :  { %7525 = vmatmul.msk.f32.gmra.mxu2 %vm1582_vm5, %v9712_v46  ;;  %v675_v50 = vsel %vm646_vm3, %v673_v34, %v674_v5  ;;  %v649_v34 = vrot.slane %v9405_v59, 7 }
 0x374   :  { %v1455_v38 = vsel %vm1435_vm4, %v675_v50, %v9462_v1 }
 0x375   :  { %v9718_v21 = vpop.f32.mrf.mxu3  ;;  %v9750_v17 = vsel %vm1502_vm6, %v1455_v38, %v9563_v48  ;;  %v821_v48 = vsel %vm646_vm3, 0.0, %v676_v3  ;;  %v9781_v38 = vrot.slane %v15029_v25, 7 }
 0x376   :  { %15040 = vst [vmem:[#allocation65_spill] sm:$0xff] %v9718_v21  ;;  %v1456_v24 = vsel %vm1435_vm4, %v821_v48, %v9581_v0  ;;  %v677_v0 = vrot.slane %v9108_v42, 7 }
 0x377   :  { %v9775_v50 = vsel %vm1502_vm6, %v1456_v24, %v9498_v57  ;;  %15043 = vst [vmem:[#allocation68_spill] sm:$0xff] %v9781_v38 }
 0x378   :  { %v1298_v23 = vpop.permute.xlu1 %1297  ;;  %v678_v57 = vsel %vm646_vm3, %v676_v3, %v677_v0  ;;  %v650_v3 = vrot.slane %v9396_v26, 7  ;;  %v679_v0 = vrot.slane %v9153_v62, 7 }
 0x379   :  { %v1300_v61 = vpop.permute.xlu0 %1299  ;;  %v9732_v44 = vsel %vm1502_vm6, %v1466_v20, %v1298_v23  ;;  %v1467_v20 = vsel %vm1435_vm4, %v693_v11, %v1070_v36  ;;  %v812_v36 = vsel %vm646_vm3, 0.0, %v649_v34  ;;  %v1238_v11 = vpop.permute.xlu2 %1237  ;;  %v1457_v48 = vsel %vm1435_vm4, %v678_v57, %v9583_v63 }
 0x37a   :  { %7580 = vmatmul.msk.f32.gmra.mxu3 %vm1582_vm5, %v9729_v19  ;;  %v9759_v1 = vsel %vm1502_vm6, %v1467_v20, %v1300_v61  ;;  %v1438_v7 = vsel %vm1435_vm4, %v812_v36, %v1012_v55  ;;  %v9789_v55 = vsel %vm646_vm3, 0.0, %v9781_v38  ;;  %v9796_v36 = vsel %vm1502_vm6, %v1457_v48, %v9611_v47 }
 0x37b   :  { %7526 = vmatmul.msk.f32.gmra.mxu2 %vm1582_vm5, %v9732_v44  ;;  %15044 = vst [vmem:[#allocation69_spill] sm:$0xff] %v9789_v55  ;;  %v822_v48 = vsel %vm646_vm3, 0.0, %v679_v0 }
 0x37c   :  { %v1458_v26 = vsel %vm1435_vm4, %v822_v48, %v9536_v32 }
 0x37d   :  { %v9740_v58 = vpop.f32.mrf.mxu3 }
 0x37e   :  { %15041 = vst [vmem:[#allocation66_spill] sm:$0xff] %v9740_v58 }
 0x380   :  { %v9746_v28 = vpop.permute.xlu1 %1071 }
 0x381   :  { %v9754_v23 = vpop.permute.xlu0 %1073  ;;  %v1240_v63 = vpop.permute.xlu2 %1239 }
 0x382   :  { %7581 = vmatmul.msk.f32.gmra.mxu3 %vm1582_vm5, %v9750_v17 }
 0x383   :  { %7527 = vmatmul.msk.f32.gmra.mxu2 %vm1582_vm5, %v9759_v1 }
 0x385   :  { %v9765_v9 = vpop.f32.mrf.mxu3 }
 0x386   :  { %15042 = vst [vmem:[#allocation67_spill] sm:$0xff] %v9765_v9 }
 0x388   :  { %v9770_v5 = vpop.permute.xlu1 %1303 }
 0x389   :  { %v1242_v61 = vpop.permute.xlu0 %1241 }
 0x38a   :  { %v1505_v59 = vsel %vm1502_vm6, %v1438_v7, %v1242_v61  ;;  %7582 = vmatmul.msk.f32.gmra.mxu3 %vm1582_vm5, %v9775_v50 }
 0x38b   :  { %7432 = vmatmul.msk.f32.vlgmr.msra.gmra.mxu1 %vm1582_vm5, %v1505_v59 }
 0x38d   :  { %v9785_v20 = vpop.f32.mrf.mxu3 }
 0x390   :  { %v1010_v24 = vpop.permute.xlu1 %1009 }
 0x391   :  { %v1436_v42 = vsel %vm1435_vm4, %v9789_v55, %v1010_v24  ;;  %v1014_v7 = vpop.permute.xlu0 %1013  ;;  %v1437_v47 = vsel %vm1435_vm4, %v9781_v38, %v1010_v24  ;;  %v680_v55 = vrot.slane %v9146_v56, 7  ;;  %v9826_v24 = vsel %vm1502_vm6, %v1458_v26, %v9617_v43 }
 0x392   :  { %7583 = vmatmul.msk.f32.gmra.mxu3 %vm1582_vm5, %v9796_v36  ;;  %v9803_v61 = vsel %vm1502_vm6, %v1436_v42, %v1238_v11  ;;  %v651_v11 = vsel %vm646_vm3, %v649_v34, %v650_v3  ;;  %v9821_v25 = vsel %vm1502_vm6, %v1437_v47, %v1240_v63  ;;  %v1082_v34 = vpop.permute.xlu2 %1081  ;;  %v682_v63 = vrot.slane %v9190_v31, 7 }
 0x393   :  { %7496 = vmatmul.msk.f32.vlgmr.msrb.gmra.mxu0 %vm1582_vm5, %v9803_v61  ;;  %7528 = vmatmul.msk.f32.gmra.mxu2 %vm1582_vm5, %v9803_v61  ;;  %v1439_v62 = vsel %vm1435_vm4, %v651_v11, %v1014_v7  ;;  %v681_v56 = vsel %vm646_vm3, %v679_v0, %v680_v55  ;;  %v697_v0 = vrot.slane %v9524_v16, 7 }
 0x394   :  { %v1459_v43 = vsel %vm1435_vm4, %v681_v56, %v9632_v33  ;;  %v823_v47 = vsel %vm646_vm3, 0.0, %v682_v63 }
 0x395   :  { %v9813_v57 = vpop.f32.mrf.mxu3  ;;  %v9843_v3 = vsel %vm1502_vm6, %v1459_v43, %v9567_v14  ;;  %v1460_v14 = vsel %vm1435_vm4, %v823_v47, %v9639_v35  ;;  %v828_v48 = vsel %vm646_vm3, 0.0, %v697_v0  ;;  %v683_v35 = vrot.slane %v9192_v53, 7 }
 0x396   :  { %v9860_v26 = vsel %vm1502_vm6, %v1460_v14, %v9648_v37 }
 0x397   :  { %v684_v56 = vsel %vm646_vm3, %v682_v63, %v683_v35  ;;  %v15050_v35 = vld [vmem:[#allocation12_spill] sm:$0xff] }
 0x398   :  { %v1244_v42 = vpop.permute.xlu1 %1243  ;;  %v1461_v47 = vsel %vm1435_vm4, %v684_v56, %v9598_v60  ;;  %v700_v60 = vrot.slane %v9481_v4, 7  ;;  %v686_v4 = vrot.slane %v9229_v41, 7 }
 0x399   :  { %v1080_v38 = vpop.permute.xlu0 %1079  ;;  %v1506_v9 = vsel %vm1502_vm6, %v1439_v62, %v1244_v42 }
 0x39a   :  { %7433 = vmatmul.msk.f32.gmra.mxu1 %vm1582_vm5, %v1506_v9  ;;  %7584 = vmatmul.msk.f32.gmra.mxu3 %vm1582_vm5, %v9826_v24  ;;  %v1306_v31 = vpop.permute.xlu2 %1305 }
 0x39b   :  { %7497 = vmatmul.msk.f32.gmra.mxu0 %vm1582_vm5, %v9821_v25  ;;  %7529 = vmatmul.msk.f32.gmra.mxu2 %vm1582_vm5, %v9821_v25 }
 0x39d   :  { %v9837_v32 = vpop.f32.mrf.mxu3 }
 0x3a0   :  { %v1310_v7 = vpop.permute.xlu1 %1309 }
 0x3a1   :  { %v1312_v55 = vpop.permute.xlu0 %1311 }
 0x3a2   :  { %7434 = vmatmul.msk.f32.gmra.mxu1 %vm1582_vm5, %v9380_v2  ;;  %7585 = vmatmul.msk.f32.gmra.mxu3 %vm1582_vm5, %v9843_v3 }
 0x3a3   :  { %7498 = vmatmul.msk.f32.gmra.mxu0 %vm1582_vm5, %v1505_v59  ;;  %v698_v59 = vrot.slane %v9515_v40, 7  ;;  %v9884_v40 = vsel %vm1502_vm6, %v1461_v47, %v9650_v18  ;;  %v15055_v47 = vld [vmem:[#allocation57_spill] sm:$0xff] }
 0x3a5   :  { %v9852_v33 = vpop.f32.mrf.mxu3  ;;  %v699_v43 = vsel %vm646_vm3, %v697_v0, %v698_v59  ;;  %v829_v0 = vsel %vm646_vm3, 0.0, %v700_v60 }
 0x3a8   :  { %v1076_v11 = vpop.permute.xlu1 %1075 }
 0x3a9   :  { %v1470_v62 = vsel %vm1435_vm4, %v828_v48, %v1076_v11  ;;  %v1078_v37 = vpop.permute.xlu0 %1077  ;;  %v1472_v11 = vsel %vm1435_vm4, %v829_v0, %v1080_v38 }
 0x3aa   :  { %7435 = vmatmul.msk.f32.gmra.mxu1 %vm1582_vm5, %v9415_v22  ;;  %7586 = vmatmul.msk.f32.gmra.mxu3 %vm1582_vm5, %v9860_v26  ;;  %v9868_v16 = vsel %vm1502_vm6, %v1470_v62, %v1306_v31  ;;  %v1471_v14 = vsel %vm1435_vm4, %v699_v43, %v1078_v37  ;;  %v15052_v37 = vld [vmem:[#allocation13_spill] sm:$0xff] }
 0x3ab   :  { %7499 = vmatmul.msk.f32.gmra.mxu0 %vm1582_vm5, %v1506_v9  ;;  %7530 = vmatmul.msk.f32.gmra.mxu2 %vm1582_vm5, %v9868_v16  ;;  %v685_v9 = vrot.slane %v9241_v49, 7 }
 0x3ad   :  { %v9875_v42 = vpop.f32.mrf.mxu3  ;;  %v824_v18 = vsel %vm646_vm3, 0.0, %v685_v9  ;;  %v687_v38 = vsel %vm646_vm3, %v685_v9, %v686_v4 }
 0x3ae   :  { %v1462_v63 = vsel %vm1435_vm4, %v824_v18, %v9664_v15  ;;  %v1463_v62 = vsel %vm1435_vm4, %v687_v38, %v9670_v52  ;;  %v15061_v38 = vld [vmem:[#allocation60_spill] sm:$0xff] }
 0x3af   :  { %v9908_v31 = vsel %vm1502_vm6, %v1462_v63, %v9628_v30  ;;  %v701_v30 = vrot.slane %v9483_v51, 7  ;;  %v9931_v41 = vsel %vm1502_vm6, %v1463_v62, %v9682_v6  ;;  %v15046_v6 = vld [vmem:[#allocation7_spill] sm:$0xff]  ;;  %v15058_v63 = vld [vmem:[#allocation5_spill] sm:$0xff]  ;;  %v15062_v62 = vld [vmem:[#allocation16_spill] sm:$0xff] }
 0x3b0   :  { %v1308_v53 = vpop.permute.xlu1 %1307  ;;  %v695_v0 = vrot.slane %v15058_v63, 7 }
 0x3b1   :  { %v9888_v48 = vsel %vm1502_vm6, %v1471_v14, %v1308_v53  ;;  %v15056_v14 = vld [vmem:[#allocation14_spill] sm:$0xff] }
 0x3b2   :  { %7436 = vmatmul.msk.f32.gmra.mxu1 %vm1582_vm5, %v9439_v45  ;;  %7587 = vmatmul.msk.f32.gmra.mxu3 %vm1582_vm5, %v9884_v40 }
 0x3b3   :  { %7500 = vmatmul.msk.f32.gmra.mxu0 %vm1582_vm5, %v9380_v2  ;;  %7531 = vmatmul.msk.f32.gmra.mxu2 %vm1582_vm5, %v9888_v48  ;;  %v9915_v2 = vsel %vm1502_vm6, %v1472_v11, %v1310_v7  ;;  %v702_v7 = vsel %vm646_vm3, %v700_v60, %v701_v30  ;;  %v15059_v11 = vld [vmem:[#allocation15_spill] sm:$0xff] }
 0x3b5   :  { %v9900_v49 = vpop.f32.mrf.mxu3 }
 0x3ba   :  { %7437 = vmatmul.msk.f32.gmra.mxu1 %vm1582_vm5, %v9470_v13  ;;  %7588 = vmatmul.msk.f32.gmra.mxu3 %vm1582_vm5, %v9908_v31 }
 0x3bb   :  { %7501 = vmatmul.msk.f32.gmra.mxu0 %vm1582_vm5, %v9415_v22  ;;  %7532 = vmatmul.msk.f32.gmra.mxu2 %vm1582_vm5, %v9915_v2  ;;  %v1473_v22 = vsel %vm1435_vm4, %v702_v7, %v1082_v34  ;;  %v15047_v34 = vld [vmem:[#allocation11_spill] sm:$0xff] }
 0x3bc   :  { %v9939_v51 = vsel %vm1502_vm6, %v1473_v22, %v1312_v55  ;;  %v15064_v22 = vld [vmem:[#allocation62_spill] sm:$0xff] }
 0x3bd   :  { %v9923_v15 = vpop.f32.mrf.mxu3 }
 0x3be   :  { %15045 = vst [vmem:[#allocation70_spill] sm:$0xff] %v9923_v15 }
 0x3c2   :  { %7438 = vmatmul.msk.f32.gmra.mxu1 %vm1582_vm5, %v9506_v54  ;;  %7589 = vmatmul.msk.f32.gmra.mxu3 %vm1582_vm5, %v9931_v41 }
 0x3c3   :  { %7502 = vmatmul.msk.f32.gmra.mxu0 %vm1582_vm5, %v9439_v45  ;;  %7533 = vmatmul.msk.f32.gmra.mxu2 %vm1582_vm5, %v9939_v51  ;;  %v15049_v45 = vld [vmem:[#allocation53_spill] sm:$0xff] }
 0x3c5   :  { %v9945_v52 = vpop.f32.mrf.mxu3 }
 0x3ca   :  { %7439 = vmatmul.msk.f32.gmra.mxu1 %vm1582_vm5, %v15046_v6  ;;  %7590 = vmatmul.msk.f32.gmra.mxu3 %vm1582_vm5, %v9691_v39 }
 0x3cb   :  { %7503 = vmatmul.msk.f32.gmra.mxu0 %vm1582_vm5, %v9470_v13  ;;  %7534 = vmatmul.msk.f32.gmra.mxu2 %vm1582_vm5, %v15047_v34  ;;  %v15051_v13 = vld [vmem:[#allocation55_spill] sm:$0xff] }
 0x3cd   :  { %v9955_v55 = vpop.f32.mrf.mxu3 }
 0x3ce   :  { %15048 = vst [vmem:[#allocation7_spill] sm:$0xff] %v9955_v55 }
 0x3d2   :  { %7440 = vmatmul.msk.f32.gmra.mxu1 %vm1582_vm5, %v15049_v45  ;;  %7591 = vmatmul.msk.f32.gmra.mxu3 %vm1582_vm5, %v9712_v46 }
 0x3d3   :  { %7504 = vmatmul.msk.f32.gmra.mxu0 %vm1582_vm5, %v9506_v54  ;;  %7535 = vmatmul.msk.f32.gmra.mxu2 %vm1582_vm5, %v15050_v35  ;;  %v15054_v54 = vld [vmem:[#allocation49_spill] sm:$0xff] }
 0x3d4   :  { %v694_v43 = vrot.slane %v15054_v54, 7 }
 0x3d5   :  { %v9965_v59 = vpop.f32.mrf.mxu3 }
 0x3d6   :  { %v827_v53 = vsel %vm646_vm3, 0.0, %v694_v43 }
 0x3d7   :  { %v1468_v60 = vsel %vm1435_vm4, %v827_v53, %v9746_v28  ;;  %v696_v28 = vsel %vm646_vm3, %v694_v43, %v695_v0  ;;  %v15073_v0 = vld [vmem:[#allocation21_spill] sm:$0xff] }
 0x3d8   :  { %v9993_v18 = vsel %vm1502_vm6, %v1468_v60, %v9721_v29  ;;  %v1469_v29 = vsel %vm1435_vm4, %v696_v28, %v9754_v23  ;;  %v15065_v23 = vld [vmem:[#allocation17_spill] sm:$0xff] }
 0x3d9   :  { %v10011_v30 = vsel %vm1502_vm6, %v1469_v29, %v9770_v5 }
 0x3da   :  { %7441 = vmatmul.msk.f32.gmra.mxu1 %vm1582_vm5, %v15051_v13  ;;  %7592 = vmatmul.msk.f32.gmra.mxu3 %vm1582_vm5, %v9732_v44 }
 0x3db   :  { %7505 = vmatmul.msk.f32.gmra.mxu0 %vm1582_vm5, %v15046_v6  ;;  %7536 = vmatmul.msk.f32.gmra.mxu2 %vm1582_vm5, %v15052_v37  ;;  %v15067_v6 = vld [vmem:[#allocation18_spill] sm:$0xff] }
 0x3dd   :  { %v9975_v56 = vpop.f32.mrf.mxu3 }
 0x3de   :  { %15053 = vst [vmem:[#allocation11_spill] sm:$0xff] %v9975_v56 }
 0x3e2   :  { %7442 = vmatmul.msk.f32.gmra.mxu1 %vm1582_vm5, %v15055_v47  ;;  %7593 = vmatmul.msk.f32.gmra.mxu3 %vm1582_vm5, %v9759_v1 }
 0x3e3   :  { %7506 = vmatmul.msk.f32.gmra.mxu0 %vm1582_vm5, %v15049_v45  ;;  %7537 = vmatmul.msk.f32.gmra.mxu2 %vm1582_vm5, %v15056_v14 }
 0x3e5   :  { %v9987_v9 = vpop.f32.mrf.mxu3 }
 0x3e6   :  { %15057 = vst [vmem:[#allocation53_spill] sm:$0xff] %v9987_v9 }
 0x3ea   :  { %7443 = vmatmul.msk.f32.gmra.mxu1 %vm1582_vm5, %v9636_v12  ;;  %7594 = vmatmul.msk.f32.gmra.mxu3 %vm1582_vm5, %v9993_v18 }
 0x3eb   :  { %7507 = vmatmul.msk.f32.gmra.mxu0 %vm1582_vm5, %v15051_v13  ;;  %7538 = vmatmul.msk.f32.gmra.mxu2 %vm1582_vm5, %v15059_v11 }
 0x3ed   :  { %v10004_v4 = vpop.f32.mrf.mxu3 }
 0x3ee   :  { %15060 = vst [vmem:[#allocation12_spill] sm:$0xff] %v10004_v4  ;;  %v15090_v4 = vld [vmem:[#allocation27_spill] sm:$0xff] }
 0x3f2   :  { %7444 = vmatmul.msk.f32.gmra.mxu1 %vm1582_vm5, %v15061_v38  ;;  %7595 = vmatmul.msk.f32.gmra.mxu3 %vm1582_vm5, %v10011_v30 }
 0x3f3   :  { %7508 = vmatmul.msk.f32.gmra.mxu0 %vm1582_vm5, %v15055_v47  ;;  %7539 = vmatmul.msk.f32.gmra.mxu2 %vm1582_vm5, %v15062_v62  ;;  %v15071_v47 = vld [vmem:[#allocation20_spill] sm:$0xff] }
 0x3f5   :  { %v10021_v7 = vpop.f32.mrf.mxu3 }
 0x3f6   :  { %15063 = vst [vmem:[#allocation55_spill] sm:$0xff] %v10021_v7 }
 0x3fa   :  { %7445 = vmatmul.msk.f32.gmra.mxu1 %vm1582_vm5, %v15064_v22  ;;  %7596 = vmatmul.msk.f32.gmra.mxu3 %vm1582_vm5, %v9803_v61 }
 0x3fb   :  { %7509 = vmatmul.msk.f32.gmra.mxu0 %vm1582_vm5, %v9636_v12  ;;  %7540 = vmatmul.msk.f32.gmra.mxu2 %vm1582_vm5, %v15065_v23  ;;  %v15069_v12 = vld [vmem:[#allocation19_spill] sm:$0xff] }
 0x3fd   :  { %v10031_v5 = vpop.f32.mrf.mxu3 }
 0x3fe   :  { %15066 = vst [vmem:[#allocation13_spill] sm:$0xff] %v10031_v5 }
 0x402   :  { %7446 = vmatmul.msk.f32.gmra.mxu1 %vm1582_vm5, %v9687_v8  ;;  %7597 = vmatmul.msk.f32.gmra.mxu3 %vm1582_vm5, %v9821_v25 }
 0x403   :  { %7510 = vmatmul.msk.f32.gmra.mxu0 %vm1582_vm5, %v15061_v38  ;;  %7541 = vmatmul.msk.f32.gmra.mxu2 %vm1582_vm5, %v15067_v6 }
 0x405   :  { %v10041_v45 = vpop.f32.mrf.mxu3 }
 0x406   :  { %15068 = vst [vmem:[#allocation49_spill] sm:$0xff] %v10041_v45 }
 0x408   :  { %v10053_v54 = vpop.f32.mrf.mxu1 }
 0x40a   :  { %7447 = vmatmul.msk.f32.gmra.mxu1 %vm1582_vm5, %v9707_v10  ;;  %7598 = vmatmul.msk.f32.gmra.mxu3 %vm1582_vm5, %v9915_v2 }
 0x40b   :  { %7511 = vmatmul.msk.f32.gmra.mxu0 %vm1582_vm5, %v15064_v22  ;;  %7542 = vmatmul.msk.f32.gmra.mxu2 %vm1582_vm5, %v15069_v12 }
 0x40d   :  { %v10051_v13 = vpop.f32.mrf.mxu3 }
 0x40e   :  { %15070 = vst [vmem:[#allocation57_spill] sm:$0xff] %v10051_v13 }
 0x410   :  { %v10055_v43 = vpop.f32.mrf.mxu0 }
 0x412   :  { %7448 = vmatmul.msk.f32.gmra.mxu1 %vm1582_vm5, %v9729_v19  ;;  %7599 = vmatmul.msk.f32.gmra.mxu3 %vm1582_vm5, %v9939_v51 }
 0x413   :  { %7512 = vmatmul.msk.f32.gmra.mxu0 %vm1582_vm5, %v9687_v8  ;;  %7543 = vmatmul.msk.f32.gmra.mxu2 %vm1582_vm5, %v15071_v47 }
 0x415   :  { %v10065_v53 = vpop.f32.mrf.mxu3 }
 0x416   :  { %15072 = vst [vmem:[#allocation14_spill] sm:$0xff] %v10065_v53 }
 0x417   :  { %v10067_v60 = vpop.f32.mrf.mxu1 }
 0x418   :  { %v10069_v63 = vpop.f32.mrf.mxu0 }
 0x41a   :  { %7449 = vmatmul.msk.f32.gmra.mxu1 %vm1582_vm5, %v9750_v17  ;;  %7600 = vmatmul.msk.f32.gmra.mxu3 %vm1582_vm5, %v15047_v34  ;;  %v15075_v34 = vld [vmem:[#allocation22_spill] sm:$0xff] }
 0x41b   :  { %7513 = vmatmul.msk.f32.gmra.mxu0 %vm1582_vm5, %v9707_v10  ;;  %7544 = vmatmul.msk.f32.gmra.mxu2 %vm1582_vm5, %v15073_v0  ;;  %v10093_v10 = vpop.f32.mrf.mxu2 }
 0x41c   :  { %15076 = vst [vmem:[#allocation15_spill] sm:$0xff] %v10093_v10 }
 0x41d   :  { %v10079_v8 = vpop.f32.mrf.mxu3 }
 0x41e   :  { %15074 = vst [vmem:[#allocation5_spill] sm:$0xff] %v10079_v8 }
 0x41f   :  { %v10081_v28 = vpop.f32.mrf.mxu1 }
 0x420   :  { %v10083_v29 = vpop.f32.mrf.mxu0 }
 0x422   :  { %7450 = vmatmul.msk.f32.gmra.mxu1 %vm1582_vm5, %v9775_v50  ;;  %7601 = vmatmul.msk.f32.gmra.mxu3 %vm1582_vm5, %v15050_v35 }
 0x423   :  { %7514 = vmatmul.msk.f32.gmra.mxu0 %vm1582_vm5, %v9729_v19  ;;  %7545 = vmatmul.msk.f32.gmra.mxu2 %vm1582_vm5, %v15075_v34  ;;  %v15078_v19 = vld [vmem:[#allocation23_spill] sm:$0xff]  ;;  %v10111_v27 = vpop.f32.mrf.mxu2 }
 0x424   :  { %15080 = vst [vmem:[#allocation62_spill] sm:$0xff] %v10111_v27 }
 0x425   :  { %v10095_v38 = vpop.f32.mrf.mxu3 }
 0x426   :  { %15077 = vst [vmem:[#allocation60_spill] sm:$0xff] %v10095_v38 }
 0x427   :  { %v10097_v22 = vpop.f32.mrf.mxu1 }
 0x428   :  { %v10099_v21 = vpop.f32.mrf.mxu0 }
 0x42a   :  { %7451 = vmatmul.msk.f32.gmra.mxu1 %vm1582_vm5, %v9796_v36  ;;  %7602 = vmatmul.msk.f32.gmra.mxu3 %vm1582_vm5, %v15052_v37 }
 0x42b   :  { %7515 = vmatmul.msk.f32.gmra.mxu0 %vm1582_vm5, %v9750_v17  ;;  %7546 = vmatmul.msk.f32.gmra.mxu2 %vm1582_vm5, %v15078_v19  ;;  %v15081_v17 = vld [vmem:[#allocation24_spill] sm:$0xff]  ;;  %v10129_v8 = vpop.f32.mrf.mxu2 }
 0x42c   :  { %15083 = vst [vmem:[#allocation18_spill] sm:$0xff] %v10129_v8 }
 0x42d   :  { %v10109_v35 = vpop.f32.mrf.mxu3 }
 0x42e   :  { %15079 = vst [vmem:[#allocation16_spill] sm:$0xff] %v10109_v35 }
 0x42f   :  { %v10113_v58 = vpop.f32.mrf.mxu1 }
 0x430   :  { %v10115_v38 = vpop.f32.mrf.mxu0 }
 0x432   :  { %7452 = vmatmul.msk.f32.gmra.mxu1 %vm1582_vm5, %v9826_v24  ;;  %7603 = vmatmul.msk.f32.gmra.mxu3 %vm1582_vm5, %v15056_v14 }
 0x433   :  { %7516 = vmatmul.msk.f32.gmra.mxu0 %vm1582_vm5, %v9775_v50  ;;  %7547 = vmatmul.msk.f32.gmra.mxu2 %vm1582_vm5, %v15081_v17  ;;  %v15084_v50 = vld [vmem:[#allocation25_spill] sm:$0xff]  ;;  %v10149_v10 = vpop.f32.mrf.mxu2 }
 0x434   :  { %15086 = vst [vmem:[#allocation20_spill] sm:$0xff] %v10149_v10 }
 0x435   :  { %v10125_v37 = vpop.f32.mrf.mxu3 }
 0x436   :  { %15082 = vst [vmem:[#allocation17_spill] sm:$0xff] %v10125_v37 }
 0x437   :  { %v10127_v35 = vpop.f32.mrf.mxu1 }
 0x438   :  { %v10131_v13 = vpop.f32.mrf.mxu0 }
 0x43a   :  { %7453 = vmatmul.msk.f32.gmra.mxu1 %vm1582_vm5, %v9843_v3  ;;  %7604 = vmatmul.msk.f32.gmra.mxu3 %vm1582_vm5, %v15059_v11 }
 0x43b   :  { %7517 = vmatmul.msk.f32.gmra.mxu0 %vm1582_vm5, %v9796_v36  ;;  %7548 = vmatmul.msk.f32.gmra.mxu2 %vm1582_vm5, %v15084_v50  ;;  %v15087_v36 = vld [vmem:[#allocation26_spill] sm:$0xff] }
 0x43d   :  { %v10141_v14 = vpop.f32.mrf.mxu3 }
 0x43e   :  { %15085 = vst [vmem:[#allocation19_spill] sm:$0xff] %v10141_v14 }
 0x43f   :  { %v10143_v37 = vpop.f32.mrf.mxu1 }
 0x440   :  { %v10151_v53 = vpop.f32.mrf.mxu0 }
 0x442   :  { %7454 = vmatmul.msk.f32.gmra.mxu1 %vm1582_vm5, %v9860_v26  ;;  %7605 = vmatmul.msk.f32.gmra.mxu3 %vm1582_vm5, %v15062_v62  ;;  %v10165_v62 = vpop.f32.mrf.mxu2 }
 0x443   :  { %7518 = vmatmul.msk.f32.gmra.mxu0 %vm1582_vm5, %v9826_v24  ;;  %7549 = vmatmul.msk.f32.gmra.mxu2 %vm1582_vm5, %v15087_v36  ;;  %15089 = vst [vmem:[#allocation22_spill] sm:$0xff] %v10165_v62 }
 0x445   :  { %v10157_v11 = vpop.f32.mrf.mxu3 }
 0x446   :  { %15088 = vst [vmem:[#allocation21_spill] sm:$0xff] %v10157_v11 }
 0x447   :  { %v10159_v14 = vpop.f32.mrf.mxu1 }
 0x448   :  { %v10171_v24 = vpop.f32.mrf.mxu0 }
 0x44a   :  { %7455 = vmatmul.msk.f32.gmra.mxu1 %vm1582_vm5, %v9884_v40  ;;  %7606 = vmatmul.msk.f32.gmra.mxu3 %vm1582_vm5, %v15065_v23  ;;  %v15092_v23 = vld [vmem:[#allocation29_spill] sm:$0xff] }
 0x44b   :  { %7519 = vmatmul.msk.f32.gmra.mxu0 %vm1582_vm5, %v9843_v3  ;;  %7550 = vmatmul.msk.f32.gmra.mxu2 %vm1582_vm5, %v15090_v4  ;;  %v10185_v3 = vpop.f32.mrf.mxu2 }
 0x44c   :  { %15093 = vst [vmem:[#allocation24_spill] sm:$0xff] %v10185_v3 }
 0x44d   :  { %v10173_v8 = vpop.f32.mrf.mxu3 }
 0x44e   :  { %15091 = vst [vmem:[#allocation23_spill] sm:$0xff] %v10173_v8 }
 0x44f   :  { %v10175_v11 = vpop.f32.mrf.mxu1 }
 0x450   :  { %v10189_v45 = vpop.f32.mrf.mxu0 }
 0x452   :  { %7456 = vmatmul.msk.f32.gmra.mxu1 %vm1582_vm5, %v9908_v31  ;;  %7607 = vmatmul.msk.f32.gmra.mxu3 %vm1582_vm5, %v15067_v6 }
 0x453   :  { %7520 = vmatmul.msk.f32.gmra.mxu0 %vm1582_vm5, %v9860_v26  ;;  %7551 = vmatmul.msk.f32.gmra.mxu2 %vm1582_vm5, %v15092_v23  ;;  %v15095_v26 = vld [vmem:[#allocation31_spill] sm:$0xff]  ;;  %v10203_v3 = vpop.f32.mrf.mxu2 }
 0x454   :  { %15097 = vst [vmem:[#allocation27_spill] sm:$0xff] %v10203_v3 }
 0x455   :  { %v10187_v62 = vpop.f32.mrf.mxu3 }
 0x456   :  { %15094 = vst [vmem:[#allocation25_spill] sm:$0xff] %v10187_v62 }
 0x457   :  { %v10191_v8 = vpop.f32.mrf.mxu1 }
 0x458   :  { %v10207_v56 = vpop.f32.mrf.mxu0 }
 0x45a   :  { %7457 = vmatmul.msk.f32.gmra.mxu1 %vm1582_vm5, %v9931_v41  ;;  %7608 = vmatmul.msk.f32.gmra.mxu3 %vm1582_vm5, %v15069_v12 }
 0x45b   :  { %7521 = vmatmul.msk.f32.gmra.mxu0 %vm1582_vm5, %v9884_v40  ;;  %7552 = vmatmul.msk.f32.gmra.mxu2 %vm1582_vm5, %v15095_v26  ;;  %v15098_v40 = vld [vmem:[#allocation33_spill] sm:$0xff]  ;;  %v10221_v3 = vpop.f32.mrf.mxu2 }
 0x45c   :  { %15100 = vst [vmem:[#allocation31_spill] sm:$0xff] %v10221_v3 }
 0x45d   :  { %v10201_v6 = vpop.f32.mrf.mxu3 }
 0x45e   :  { %15096 = vst [vmem:[#allocation26_spill] sm:$0xff] %v10201_v6 }
 0x45f   :  { %v10205_v62 = vpop.f32.mrf.mxu1 }
 0x462   :  { %7458 = vmatmul.msk.f32.gmra.mxu1 %vm1582_vm5, %v9691_v39  ;;  %7609 = vmatmul.msk.f32.gmra.mxu3 %vm1582_vm5, %v15071_v47  ;;  %v10227_v39 = vpop.f32.mrf.mxu0 }
 0x463   :  { %7522 = vmatmul.msk.f32.gmra.mxu0 %vm1582_vm5, %v9908_v31  ;;  %7553 = vmatmul.msk.f32.gmra.mxu2 %vm1582_vm5, %v15098_v40  ;;  %v15101_v31 = vld [vmem:[#allocation35_spill] sm:$0xff] }
 0x465   :  { %v10217_v12 = vpop.f32.mrf.mxu3 }
 0x466   :  { %15099 = vst [vmem:[#allocation29_spill] sm:$0xff] %v10217_v12 }
 0x467   :  { %v10219_v6 = vpop.f32.mrf.mxu1 }
 0x46a   :  { %7459 = vmatmul.msk.f32.gmra.mxu1 %vm1582_vm5, %v9712_v46  ;;  %7610 = vmatmul.msk.f32.gmra.mxu3 %vm1582_vm5, %v15073_v0  ;;  %v2115_v46 = vpop.f32.mrf.mxu2  ;;  %v15104_v0 = vld [vmem:[#allocation37_spill] sm:$0xff]  ;;  %v10243_v3 = vpop.f32.mrf.mxu0 }
 0x46b   :  { %7523 = vmatmul.msk.f32.gmra.mxu0 %vm1582_vm5, %v9931_v41  ;;  %7554 = vmatmul.msk.f32.gmra.mxu2 %vm1582_vm5, %v15101_v31 }
 0x46d   :  { %v10233_v47 = vpop.f32.mrf.mxu3 }
 0x46e   :  { %15102 = vst [vmem:[#allocation33_spill] sm:$0xff] %v10233_v47 }
 0x46f   :  { %v10235_v12 = vpop.f32.mrf.mxu1 }
 0x470   :  { %15103 = vst [vmem:[#allocation35_spill] sm:$0xff] %v10235_v12 }
 0x472   :  { %7460 = vmatmul.msk.f32.gmra.mxu1 %vm1582_vm5, %v9732_v44  ;;  %7611 = vmatmul.msk.f32.gmra.mxu3 %vm1582_vm5, %v15075_v34  ;;  %v15106_v44 = vld [vmem:[#allocation39_spill] sm:$0xff]  ;;  %v2118_v34 = vpop.f32.mrf.mxu2  ;;  %v10257_v5 = vpop.f32.mrf.mxu0 }
 0x473   :  { %7555 = vmatmul.msk.f32.gmra.mxu2 %vm1582_vm5, %v15104_v0  ;;  %15108 = vst [vmem:[#allocation71_spill] sm:$0xff] %v10257_v5 }
 0x475   :  { %v10245_v41 = vpop.f32.mrf.mxu3 }
 0x476   :  { %15105 = vst [vmem:[#allocation37_spill] sm:$0xff] %v10245_v41 }
 0x477   :  { %v10247_v27 = vpop.f32.mrf.mxu1 }
 0x47a   :  { %7461 = vmatmul.msk.f32.gmra.mxu1 %vm1582_vm5, %v9759_v1  ;;  %7612 = vmatmul.msk.f32.gmra.mxu3 %vm1582_vm5, %v15078_v19  ;;  %v15109_v1 = vld [vmem:[#allocation41_spill] sm:$0xff]  ;;  %v2121_v41 = vpop.f32.mrf.mxu2  ;;  %v10271_v15 = vpop.f32.mrf.mxu0 }
 0x47b   :  { %7556 = vmatmul.msk.f32.gmra.mxu2 %vm1582_vm5, %v15106_v44 }
 0x47d   :  { %v10255_v47 = vpop.f32.mrf.mxu3 }
 0x47e   :  { %15107 = vst [vmem:[#allocation39_spill] sm:$0xff] %v10255_v47 }
 0x47f   :  { %v10259_v55 = vpop.f32.mrf.mxu1 }
 0x482   :  { %7462 = vmatmul.msk.f32.gmra.mxu1 %vm1582_vm5, %v9993_v18  ;;  %7613 = vmatmul.msk.f32.gmra.mxu3 %vm1582_vm5, %v15081_v17  ;;  %v15111_v18 = vld [vmem:[#allocation43_spill] sm:$0xff]  ;;  %v2124_v7 = vpop.f32.mrf.mxu2 }
 0x483   :  { %7557 = vmatmul.msk.f32.gmra.mxu2 %vm1582_vm5, %v15109_v1 }
 0x485   :  { %v10267_v19 = vpop.f32.mrf.mxu3 }
 0x486   :  { %15110 = vst [vmem:[#allocation41_spill] sm:$0xff] %v10267_v19  ;;  %v10287_v19 = vpop.f32.mrf.mxu0 }
 0x487   :  { %v10269_v10 = vpop.f32.mrf.mxu1 }
 0x48a   :  { %7463 = vmatmul.msk.f32.gmra.mxu1 %vm1582_vm5, %v10011_v30  ;;  %7614 = vmatmul.msk.f32.gmra.mxu3 %vm1582_vm5, %v15084_v50  ;;  %v15114_v30 = vld [vmem:[#allocation45_spill] sm:$0xff] }
 0x48b   :  { %7558 = vmatmul.msk.f32.gmra.mxu2 %vm1582_vm5, %v15111_v18 }
 0x48d   :  { %v10279_v17 = vpop.f32.mrf.mxu3 }
 0x48e   :  { %15112 = vst [vmem:[#allocation43_spill] sm:$0xff] %v10279_v17  ;;  %v10299_v17 = vpop.f32.mrf.mxu2 }
 0x48f   :  { %v10281_v47 = vpop.f32.mrf.mxu1  ;;  %15117 = vst [vmem:[#allocation74_spill] sm:$0xff] %v10299_v17  ;;  %v15124_v17 = vld [vmem:[#allocation28_spill] sm:$0xff] }
 0x490   :  { %15113 = vst [vmem:[#allocation72_spill] sm:$0xff] %v10281_v47 }
 0x492   :  { %7464 = vmatmul.msk.f32.gmra.mxu1 %vm1582_vm5, %v9868_v16  ;;  %7615 = vmatmul.msk.f32.gmra.mxu3 %vm1582_vm5, %v15087_v36  ;;  %v10301_v16 = vpop.f32.mrf.mxu0 }
 0x493   :  { %7559 = vmatmul.msk.f32.gmra.mxu2 %vm1582_vm5, %v15114_v30 }
 0x495   :  { %v10291_v50 = vpop.f32.mrf.mxu3 }
 0x496   :  { %15115 = vst [vmem:[#allocation45_spill] sm:$0xff] %v10291_v50  ;;  %v10311_v50 = vpop.f32.mrf.mxu2 }
 0x497   :  { %v10293_v5 = vpop.f32.mrf.mxu1  ;;  %15120 = vst [vmem:[#allocation77_spill] sm:$0xff] %v10311_v50 }
 0x498   :  { %15116 = vst [vmem:[#allocation73_spill] sm:$0xff] %v10293_v5 }
 0x49a   :  { %7465 = vmatmul.msk.f32.gmra.mxu1 %vm1582_vm5, %v9888_v48  ;;  %7616 = vmatmul.msk.f32.gmra.mxu3 %vm1582_vm5, %v15090_v4  ;;  %v10315_v5 = vpop.f32.mrf.mxu0 }
 0x49b   :  { %15122 = vst [vmem:[#allocation79_spill] sm:$0xff] %v10315_v5 }
 0x49d   :  { %v10303_v36 = vpop.f32.mrf.mxu3 }
 0x49e   :  { %15118 = vst [vmem:[#allocation75_spill] sm:$0xff] %v10303_v36  ;;  %v2116_v36 = vadd.f32 %v2115_v46, %v15124_v17  ;;  %v10324_v12 = vpop.f32.mrf.mxu2  ;;  %v10344_v17 = vld [vmem:[%s14786_s4] ss:$0 sm:$0xff] }
 0x49f   :  { %v10305_v47 = vpop.f32.mrf.mxu1  ;;  %15125 = vst [vmem:[#allocation28_spill] sm:$0xff] %v10324_v12 }
 0x4a0   :  { %15119 = vst [vmem:[#allocation76_spill] sm:$0xff] %v10305_v47 }
 0x4a2   :  { %7466 = vmatmul.msk.f32.gmra.mxu1 %vm1582_vm5, %v9915_v2  ;;  %7617 = vmatmul.msk.f32.gmra.mxu3 %vm1582_vm5, %v15092_v23  ;;  %v10328_v50 = vpop.f32.mrf.mxu0 }
 0x4a5   :  { %v10313_v48 = vpop.f32.mrf.mxu3 }
 0x4a6   :  { %15121 = vst [vmem:[#allocation78_spill] sm:$0xff] %v10313_v48  ;;  %v15127_v48 = vld [vmem:[#allocation30_spill] sm:$0xff] }
 0x4a7   :  { %v10317_v4 = vpop.f32.mrf.mxu1 }
 0x4a8   :  { %15123 = vst [vmem:[#allocation80_spill] sm:$0xff] %v10317_v4  ;;  %v2119_v4 = vadd.f32 %v2118_v34, %v15127_v48 }
 0x4aa   :  { %7467 = vmatmul.msk.f32.gmra.mxu1 %vm1582_vm5, %v9939_v51  ;;  %7618 = vmatmul.msk.f32.gmra.mxu3 %vm1582_vm5, %v15095_v26  ;;  %v10335_v26 = vpop.f32.mrf.mxu2  ;;  %v10339_v46 = vpop.f32.mrf.mxu0 }
 0x4ab   :  { %15129 = vst [vmem:[#allocation82_spill] sm:$0xff] %v10335_v26 }
 0x4ac   :  { %15130 = vst [vmem:[#allocation83_spill] sm:$0xff] %v10339_v46 }
 0x4ad   :  { %v2331_v2 = vpop.f32.mrf.mxu3 }
 0x4ae   :  { %v2451_v47 = vadd.f32 %v2331_v2, %v2116_v36  ;;  %v15131_v36 = vld [vmem:[#allocation32_spill] sm:$0xff] }
 0x4af   :  { %v10326_v23 = vpop.f32.mrf.mxu1 }
 0x4b0   :  { %15126 = vst [vmem:[#allocation81_spill] sm:$0xff] %v10326_v23  ;;  %v2518_v34 = vadd.f32 %v10344_v17, %v2451_v47  ;;  %v15133_v23 = vld [vmem:[#allocation34_spill] sm:$0xff] }
 0x4b2   :  { %7619 = vmatmul.msk.f32.gmra.mxu3 %vm1582_vm5, %v15098_v40  ;;  %v2122_v40 = vadd.f32 %v2121_v41, %v15131_v36  ;;  %v2582_v26 = vmax.f32 %v2518_v34, 0.0  ;;  %v10358_v41 = vpop.f32.mrf.mxu0 }
 0x4b5   :  { %v2334_v5 = vpop.f32.mrf.mxu3 }
 0x4b6   :  { %v2452_v51 = vadd.f32 %v2334_v5, %v2119_v4 }
 0x4b7   :  { %v10333_v9 = vpop.f32.mrf.mxu1 }
 0x4b8   :  { %15128 = vst [vmem:[#allocation30_spill] sm:$0xff] %v10333_v9  ;;  %v2125_v9 = vadd.f32 %v2124_v7, %v15133_v23  ;;  %v2519_v47 = vadd.f32 %v10344_v17, %v2452_v51 }
 0x4ba   :  { %7620 = vmatmul.msk.f32.gmra.mxu3 %vm1582_vm5, %v15101_v31  ;;  %v10353_v31 = vpop.f32.mrf.mxu2 }
 0x4bb   :  { %15132 = vst [vmem:[#allocation32_spill] sm:$0xff] %v10353_v31 }
 0x4bd   :  { %v2337_v2 = vpop.f32.mrf.mxu3 }
 0x4be   :  { %v2453_v5 = vadd.f32 %v2337_v2, %v2122_v40 }
 0x4bf   :  { %v10348_v48 = vpop.f32.mrf.mxu1 }
 0x4c0   :  { %v2520_v4 = vadd.f32 %v10344_v17, %v2453_v5  ;;  %v2583_v5 = vmax.f32 %v2519_v47, 0.0 }
 0x4c2   :  { %v2584_v12 = vmax.f32 %v2520_v4, 0.0  ;;  %7621 = vmatmul.msk.f32.gmra.mxu3 %vm1582_vm5, %v15104_v0  ;;  %v10368_v7 = vpop.f32.mrf.mxu2 }
 0x4c3   :  { %15136 = vst [vmem:[#allocation85_spill] sm:$0xff] %v10368_v7 }
 0x4c4   :  { %v10356_v46 = vmax.f32 %v2582_v26, %v2584_v12 }
 0x4c5   :  { %v2340_v36 = vpop.f32.mrf.mxu3 }
 0x4c6   :  { %15134 = vst [vmem:[#allocation34_spill] sm:$0xff] %v10356_v46  ;;  %v2454_v40 = vadd.f32 %v2340_v36, %v2125_v9  ;;  %v14885_v51 = vrot.slane %v10356_v46, 1  ;;  %v10374_v9 = vpop.f32.mrf.mxu0  ;;  %v15145_v46 = vld [vmem:[#allocation4_spill] sm:$0xff] }
 0x4c7   :  { %v10361_v2 = vpop.f32.mrf.mxu1  ;;  %15138 = vst [vmem:[#allocation87_spill] sm:$0xff] %v10374_v9  ;;  %v2008_v9 = vadd.f32 %v10055_v43, %v10053_v54  ;;  %v2035_v54 = vadd.f32 %v10207_v56, %v10191_v8  ;;  %v2020_v43 = vadd.f32 %v10115_v38, %v10113_v58  ;;  %v2026_v56 = vadd.f32 %v10151_v53, %v10143_v37 }
 0x4c8   :  { %v2521_v34 = vadd.f32 %v10344_v17, %v2454_v40 }
 0x4c9   :  { %v10491_v53 = vadd.f32 %v9875_v42, %v2020_v43  ;;  %v15161_v42 = vld [vmem:[#allocation20_spill] sm:$0xff]  ;;  %v15167_v43 = vld [vmem:[#allocation18_spill] sm:$0xff] }
 0x4ca   :  { %v2585_v4 = vmax.f32 %v2521_v34, 0.0  ;;  %7622 = vmatmul.msk.f32.gmra.mxu3 %vm1582_vm5, %v15106_v44  ;;  %v10391_v40 = vpop.f32.mrf.mxu2 }
 0x4cb   :  { %15141 = vst [vmem:[#allocation90_spill] sm:$0xff] %v10391_v40 }
 0x4cc   :  { %v10366_v0 = vmax.f32 %v2583_v5, %v2585_v4 }
 0x4cd   :  { %v10370_v12 = vpop.f32.mrf.mxu3 }
 0x4ce   :  { %15135 = vst [vmem:[#allocation84_spill] sm:$0xff] %v10366_v0  ;;  %v14886_v23 = vrot.slane %v10366_v0, 1  ;;  %v10395_v5 = vpop.f32.mrf.mxu0 }
 0x4cf   :  { %15137 = vst [vmem:[#allocation86_spill] sm:$0xff] %v10370_v12  ;;  %v10376_v26 = vpop.f32.mrf.mxu1  ;;  %v15148_v12 = vld [vmem:[#allocation6_spill] sm:$0xff] }
 0x4d0   :  { %v10383_v44 = vsel %vm844_vm2, %v14885_v51, %v14886_v23 }
 0x4d1   :  { %15139 = vst [vmem:[#allocation88_spill] sm:$0xff] %v10383_v44 }
 0x4d2   :  { %7623 = vmatmul.msk.f32.gmra.mxu3 %vm1582_vm5, %v15109_v1  ;;  %v10403_v23 = vpop.f32.mrf.mxu2 }
 0x4d3   :  { %15143 = vst [vmem:[#allocation92_spill] sm:$0xff] %v10403_v23 }
 0x4d5   :  { %v10389_v47 = vpop.f32.mrf.mxu3 }
 0x4d6   :  { %15140 = vst [vmem:[#allocation89_spill] sm:$0xff] %v10389_v47  ;;  %v10407_v1 = vpop.f32.mrf.mxu0 }
 0x4d7   :  { %v10393_v34 = vpop.f32.mrf.mxu1 }
 0x4da   :  { %7624 = vmatmul.msk.f32.gmra.mxu3 %vm1582_vm5, %v15111_v18  ;;  %v10415_v0 = vpop.f32.mrf.mxu2 }
 0x4db   :  { %15146 = vst [vmem:[#allocation4_spill] sm:$0xff] %v10415_v0 }
 0x4dd   :  { %v10399_v4 = vpop.f32.mrf.mxu3 }
 0x4de   :  { %15142 = vst [vmem:[#allocation91_spill] sm:$0xff] %v10399_v4  ;;  %v10417_v18 = vpop.f32.mrf.mxu0 }
 0x4df   :  { %v10401_v51 = vpop.f32.mrf.mxu1 }
 0x4e2   :  { %7625 = vmatmul.msk.f32.gmra.mxu3 %vm1582_vm5, %v15114_v30  ;;  %v10425_v30 = vpop.f32.mrf.mxu2 }
 0x4e3   :  { %15149 = vst [vmem:[#allocation6_spill] sm:$0xff] %v10425_v30 }
 0x4e5   :  { %v10409_v36 = vpop.f32.mrf.mxu3 }
 0x4e6   :  { %15144 = vst [vmem:[#allocation93_spill] sm:$0xff] %v10409_v36  ;;  %v10429_v36 = vpop.f32.mrf.mxu0 }
 0x4e7   :  { %v10411_v44 = vpop.f32.mrf.mxu1 }
 0x4ea   :  { %7626 = vmatmul.msk.f32.gmra.mxu3 %vm1582_vm5, %v15145_v46  ;;  %v10435_v0 = vpop.f32.mrf.mxu2 }
 0x4eb   :  { %15152 = vst [vmem:[#allocation97_spill] sm:$0xff] %v10435_v0  ;;  %v2014_v0 = vadd.f32 %v10083_v29, %v10081_v28  ;;  %v10466_v28 = vadd.f32 %v9785_v20, %v2008_v9  ;;  %v2050_v20 = vadd.f32 %v10287_v19, %v10259_v55  ;;  %v15158_v55 = vld [vmem:[#allocation55_spill] sm:$0xff]  ;;  %v15163_v19 = vld [vmem:[#allocation13_spill] sm:$0xff] }
 0x4ed   :  { %v10419_v4 = vpop.f32.mrf.mxu3  ;;  %v10475_v58 = vadd.f32 %v9837_v32, %v2014_v0  ;;  %v2053_v32 = vadd.f32 %v10301_v16, %v10269_v10  ;;  %v2429_v16 = vadd.f32 %v15163_v19, %v2050_v20  ;;  %v15164_v0 = vld [vmem:[#allocation62_spill] sm:$0xff]  ;;  %v15177_v19 = vld [vmem:[#allocation39_spill] sm:$0xff] }
 0x4ee   :  { %15147 = vst [vmem:[#allocation94_spill] sm:$0xff] %v10419_v4  ;;  %v2082_v7 = vpop.f32.mrf.mxu0 }
 0x4ef   :  { %v10421_v47 = vpop.f32.mrf.mxu1 }
 0x4f2   :  { %7627 = vmatmul.msk.f32.gmra.mxu3 %vm1582_vm5, %v15148_v12  ;;  %v10441_v31 = vpop.f32.mrf.mxu2 }
 0x4f3   :  { %15154 = vst [vmem:[#allocation99_spill] sm:$0xff] %v10441_v31  ;;  %v2017_v31 = vadd.f32 %v10099_v21, %v10097_v22  ;;  %v15157_v22 = vld [vmem:[#allocation71_spill] sm:$0xff] }
 0x4f5   :  { %v10427_v23 = vpop.f32.mrf.mxu3 }
 0x4f6   :  { %15150 = vst [vmem:[#allocation95_spill] sm:$0xff] %v10427_v23  ;;  %v2085_v23 = vpop.f32.mrf.mxu0 }
 0x4f7   :  { %v1879_v40 = vpop.f32.mrf.mxu1 }
 0x4f8   :  { %v2095_v9 = vadd.f32 %v15164_v0, %v1879_v40 }
 0x4fa   :  { %7628 = vmatmul.msk.f32.gmra.mxu3 %vm1582_vm5, %v9803_v61  ;;  %v2011_v61 = vadd.f32 %v10069_v63, %v10067_v60  ;;  %v2047_v60 = vadd.f32 %v10271_v15, %v10247_v27  ;;  %v2032_v27 = vadd.f32 %v10189_v45, %v10175_v11  ;;  %v10483_v15 = vadd.f32 %v9852_v33, %v2017_v31  ;;  %v15156_v45 = vld [vmem:[#allocation35_spill] sm:$0xff]  ;;  %v10497_v33 = vpop.f32.mrf.mxu2 }
 0x4fc   :  { %v10469_v29 = vadd.f32 %v9813_v57, %v2011_v61  ;;  %v2424_v57 = vadd.f32 %v9965_v59, %v2035_v54  ;;  %v2428_v37 = vadd.f32 %v15158_v55, %v2047_v60  ;;  %v10543_v55 = vadd.f32 %v10344_v17, %v2429_v16  ;;  %v15180_v16 = vld [vmem:[#allocation30_spill] sm:$0xff] }
 0x4fd   :  { %v10433_v46 = vpop.f32.mrf.mxu3 }
 0x4fe   :  { %15151 = vst [vmem:[#allocation96_spill] sm:$0xff] %v10433_v46  ;;  %v2023_v46 = vadd.f32 %v10131_v13, %v10127_v35  ;;  %v2041_v13 = vadd.f32 %v10243_v3, %v10219_v6  ;;  %v2044_v35 = vadd.f32 %v15157_v22, %v15156_v45  ;;  %v15162_v6 = vld [vmem:[#allocation7_spill] sm:$0xff]  ;;  %v2088_v31 = vpop.f32.mrf.mxu0  ;;  %v10519_v61 = vadd.f32 %v10344_v17, %v2424_v57  ;;  %v15173_v22 = vld [vmem:[#allocation41_spill] sm:$0xff] }
 0x4ff   :  { %v1882_v4 = vpop.f32.mrf.mxu1  ;;  %v10533_v40 = vadd.f32 %v10344_v17, %v2428_v37  ;;  %v2089_v45 = vadd.f32 %v2088_v31, %v10411_v44  ;;  %v2086_v37 = vadd.f32 %v2085_v23, %v10401_v51  ;;  %v2077_v23 = vadd.f32 %v10417_v18, %v10361_v2  ;;  %v15184_v2 = vld [vmem:[#allocation26_spill] sm:$0xff] }
 0x500   :  { %v2420_v21 = vadd.f32 %v9900_v49, %v2023_v46  ;;  %v2038_v49 = vadd.f32 %v10227_v39, %v10205_v62  ;;  %v15160_v62 = vld [vmem:[#allocation73_spill] sm:$0xff]  ;;  %v10512_v39 = vadd.f32 %v15162_v6, %v2032_v27  ;;  %v15170_v27 = vld [vmem:[#allocation79_spill] sm:$0xff]  ;;  %v2080_v51 = vadd.f32 %v10429_v36, %v10376_v26 }
 0x501   :  { %v2059_v10 = vadd.f32 %v10328_v50, %v15160_v62  ;;  %v15176_v6 = vld [vmem:[#allocation83_spill] sm:$0xff]  ;;  %v2441_v18 = vadd.f32 %v15184_v2, %v2086_v37 }
 0x502   :  { %7629 = vmatmul.msk.f32.gmra.mxu3 %vm1582_vm5, %v9821_v25  ;;  %v2029_v25 = vadd.f32 %v10171_v24, %v10159_v14  ;;  %v10500_v59 = vadd.f32 %v10344_v17, %v2420_v21  ;;  %v15159_v14 = vld [vmem:[#allocation70_spill] sm:$0xff]  ;;  %v15168_v21 = vld [vmem:[#allocation12_spill] sm:$0xff]  ;;  %v15196_v2 = vld [vmem:[#allocation75_spill] sm:$0xff] }
 0x503   :  { %v10503_v11 = vadd.f32 %v15159_v14, %v2026_v56  ;;  %v10530_v56 = vadd.f32 %v15168_v21, %v2044_v35  ;;  %v2083_v35 = vadd.f32 %v2082_v7, %v10393_v34  ;;  %v15174_v14 = vld [vmem:[#allocation37_spill] sm:$0xff]  ;;  %v2071_v7 = vadd.f32 %v10395_v5, %v15180_v16  ;;  %v10572_v21 = vpop.f32.mrf.mxu2 }
 0x504   :  { %v2422_v8 = vadd.f32 %v9945_v52, %v2029_v25  ;;  %v15155_v52 = vld [vmem:[#allocation53_spill] sm:$0xff]  ;;  %v15165_v25 = vld [vmem:[#allocation11_spill] sm:$0xff]  ;;  %v2444_v62 = vadd.f32 %v15174_v14, %v2095_v9 }
 0x505   :  { %v10439_v12 = vpop.f32.mrf.mxu3  ;;  %v2426_v38 = vadd.f32 %v15155_v52, %v2041_v13  ;;  %v10522_v50 = vadd.f32 %v15165_v25, %v2038_v49  ;;  %v2098_v13 = vadd.f32 %v15167_v43, %v1882_v4  ;;  %v15171_v52 = vld [vmem:[#allocation14_spill] sm:$0xff]  ;;  %v15181_v9 = vld [vmem:[#allocation29_spill] sm:$0xff] }
 0x506   :  { %15153 = vst [vmem:[#allocation98_spill] sm:$0xff] %v10439_v12  ;;  %v10509_v3 = vadd.f32 %v10344_v17, %v2422_v8  ;;  %v15169_v8 = vld [vmem:[#allocation72_spill] sm:$0xff]  ;;  %v2432_v49 = vadd.f32 %v15171_v52, %v2059_v10  ;;  %v15183_v5 = vld [vmem:[#allocation25_spill] sm:$0xff]  ;;  %v2511_v26 = vadd.f32 %v10344_v17, %v2444_v62 }
 0x507   :  { %v1885_v30 = vpop.f32.mrf.mxu1  ;;  %v10527_v60 = vadd.f32 %v10344_v17, %v2426_v38  ;;  %v2056_v20 = vadd.f32 %v15170_v27, %v15169_v8  ;;  %v15175_v10 = vld [vmem:[#allocation76_spill] sm:$0xff]  ;;  %v2445_v31 = vadd.f32 %v15177_v19, %v2098_v13  ;;  %v2074_v13 = vadd.f32 %v10407_v1, %v10348_v48  ;;  %v15185_v27 = vld [vmem:[#allocation5_spill] sm:$0xff]  ;;  %v15189_v1 = vld [vmem:[#allocation87_spill] sm:$0xff] }
 0x508   :  { %v2101_v24 = vadd.f32 %v15161_v42, %v1885_v30  ;;  %v15166_v30 = vld [vmem:[#allocation49_spill] sm:$0xff]  ;;  %v2062_v44 = vadd.f32 %v15176_v6, %v15175_v10  ;;  %v10565_v34 = vadd.f32 %v10344_v17, %v2432_v49  ;;  %v2440_v8 = vadd.f32 %v15183_v5, %v2083_v35  ;;  %v15186_v52 = vld [vmem:[#allocation80_spill] sm:$0xff]  ;;  %v15192_v10 = vld [vmem:[#allocation23_spill] sm:$0xff] }
 0x509   :  { %v2430_v54 = vadd.f32 %v15166_v30, %v2053_v32  ;;  %v15172_v32 = vld [vmem:[#allocation15_spill] sm:$0xff]  ;;  %v2442_v30 = vadd.f32 %v15181_v9, %v2089_v45  ;;  %v2065_v49 = vadd.f32 %v10358_v41, %v15186_v52  ;;  %v2512_v45 = vadd.f32 %v10344_v17, %v2445_v31  ;;  %v15188_v48 = vld [vmem:[#allocation81_spill] sm:$0xff]  ;;  %v15195_v5 = vld [vmem:[#allocation24_spill] sm:$0xff] }
 0x50a   :  { %v2092_v4 = vadd.f32 %v15172_v32, %v10421_v47  ;;  %v2446_v38 = vadd.f32 %v15173_v22, %v2101_v24  ;;  %v15178_v47 = vld [vmem:[#allocation22_spill] sm:$0xff]  ;;  %v15179_v24 = vld [vmem:[#allocation57_spill] sm:$0xff]  ;;  %v15187_v32 = vld [vmem:[#allocation43_spill] sm:$0xff]  ;;  %v2068_v22 = vadd.f32 %v15189_v1, %v15188_v48  ;;  %v2439_v62 = vadd.f32 %v15192_v10, %v2080_v51 }
 0x50b   :  { %v10549_v42 = vadd.f32 %v10344_v17, %v2430_v54  ;;  %v10556_v25 = vadd.f32 %v15179_v24, %v2056_v20  ;;  %v15182_v54 = vld [vmem:[#allocation33_spill] sm:$0xff]  ;;  %v2433_v20 = vadd.f32 %v15185_v27, %v2062_v44  ;;  %v2509_v19 = vadd.f32 %v10344_v17, %v2442_v30  ;;  %v15193_v41 = vld [vmem:[#allocation27_spill] sm:$0xff]  ;;  %v15197_v30 = vld [vmem:[#allocation60_spill] sm:$0xff] }
 0x50c   :  { %v2443_v43 = vadd.f32 %v15182_v54, %v2092_v4  ;;  %v15191_v14 = vld [vmem:[#allocation21_spill] sm:$0xff]  ;;  %v15194_v31 = vld [vmem:[#allocation19_spill] sm:$0xff]  ;;  %v2508_v9 = vadd.f32 %v10344_v17, %v2441_v18  ;;  %v2575_v54 = vmax.f32 %v2511_v26, 0.0  ;;  %v2434_v52 = vadd.f32 %v15197_v30, %v2065_v49 }
 0x50d   :  { %v10453_v12 = vpop.f32.mrf.mxu3  ;;  %v2438_v37 = vadd.f32 %v15191_v14, %v2077_v23  ;;  %v2437_v16 = vadd.f32 %v15194_v31, %v2074_v13  ;;  %v2506_v13 = vadd.f32 %v10344_v17, %v2439_v62  ;;  %v2573_v48 = vmax.f32 %v2509_v19, 0.0  ;;  %v15199_v14 = vld [vmem:[#allocation45_spill] sm:$0xff]  ;;  %v15200_v31 = vld [vmem:[#allocation31_spill] sm:$0xff] }
 0x50e   :  { %v2510_v44 = vadd.f32 %v10344_v17, %v2443_v43  ;;  %v15198_v43 = vld [vmem:[#allocation16_spill] sm:$0xff]  ;;  %v2501_v62 = vadd.f32 %v10344_v17, %v2434_v52  ;;  %v2498_v52 = vadd.f32 %v10344_v17, %v10556_v25 }
 0x50f   :  { %v1888_v63 = vpop.f32.mrf.mxu1 }
 0x510   :  { %v2104_v0 = vadd.f32 %v15178_v47, %v1888_v63  ;;  %v2513_v63 = vadd.f32 %v10344_v17, %v2446_v38  ;;  %v15190_v38 = vld [vmem:[#allocation17_spill] sm:$0xff] }
 0x511   :  { %v2436_v35 = vadd.f32 %v15190_v38, %v2071_v7  ;;  %v2576_v7 = vmax.f32 %v2512_v45, 0.0  ;;  %v2504_v45 = vadd.f32 %v10344_v17, %v2437_v16 }
 0x512   :  { %v2447_v4 = vadd.f32 %v15187_v32, %v2104_v0  ;;  %v2577_v47 = vmax.f32 %v2513_v63, 0.0  ;;  %v2507_v0 = vadd.f32 %v10344_v17, %v2440_v8  ;;  %v2435_v63 = vadd.f32 %v15198_v43, %v2068_v22 }
 0x513   :  { %v2505_v32 = vadd.f32 %v10344_v17, %v2438_v37  ;;  %v2574_v8 = vmax.f32 %v2510_v44, 0.0  ;;  %v2503_v26 = vadd.f32 %v10344_v17, %v2436_v35  ;;  %v10610_v44 = vpop.f32.mrf.mxu2  ;;  %v2565_v43 = vmax.f32 %v2501_v62, 0.0 }
 0x514   :  { %v2514_v23 = vadd.f32 %v10344_v17, %v2447_v4  ;;  %v2625_v1 = vmax.f32 %v2575_v54, %v2577_v47  ;;  %v2572_v4 = vmax.f32 %v2508_v9, 0.0  ;;  %v2570_v47 = vmax.f32 %v2506_v13, 0.0 }
 0x515   :  { %v10516_v46 = vpop.f32.mrf.mxu3  ;;  %v2624_v37 = vmax.f32 %v2574_v8, %v2576_v7  ;;  %v2569_v19 = vmax.f32 %v2505_v32, 0.0  ;;  %v2500_v9 = vadd.f32 %v10344_v17, %v2433_v20  ;;  %v2567_v54 = vmax.f32 %v2503_v26, 0.0 }
 0x516   :  { %v2578_v49 = vmax.f32 %v2514_v23, 0.0  ;;  %v2568_v23 = vmax.f32 %v2504_v45, 0.0  ;;  %v2622_v7 = vmax.f32 %v2570_v47, %v2572_v4  ;;  %v2561_v62 = vmax.f32 %v10549_v42, 0.0 }
 0x517   :  { %v1891_v57 = vpop.f32.mrf.mxu1  ;;  %v2701_v30 = vrot.slane %v2624_v37, 1  ;;  %v2621_v32 = vmax.f32 %v2567_v54, %v2569_v19  ;;  %v2564_v26 = vmax.f32 %v2500_v9, 0.0 }
 0x518   :  { %v2107_v51 = vadd.f32 %v15195_v5, %v1891_v57  ;;  %v2571_v57 = vmax.f32 %v2507_v0, 0.0  ;;  %v2697_v25 = vrot.slane %v2622_v7, 1 }
 0x519   :  { %v2695_v47 = vrot.slane %v2621_v32, 1 }
 0x51a   :  { %v2448_v22 = vadd.f32 %v15199_v14, %v2107_v51  ;;  %v2623_v0 = vmax.f32 %v2571_v57, %v2573_v48 }
 0x51b   :  { %v10638_v9 = vpop.f32.mrf.mxu2  ;;  %v2698_v42 = vsel %vm844_vm2, %v2695_v47, %v2697_v25 }
 0x51c   :  { %v2515_v5 = vadd.f32 %v10344_v17, %v2448_v22  ;;  %v2699_v8 = vrot.slane %v2623_v0, 1 }
 0x51d   :  { %v10577_v36 = vpop.f32.mrf.mxu3 }
 0x51e   :  { %v2579_v14 = vmax.f32 %v2515_v5, 0.0  ;;  %v2490_v5 = vadd.f32 %v10344_v17, %v10512_v39 }
 0x51f   :  { %v1894_v6 = vpop.f32.mrf.mxu1 }
 0x520   :  { %v2110_v24 = vadd.f32 %v15193_v41, %v1894_v6  ;;  %v2502_v6 = vadd.f32 %v10344_v17, %v2435_v63  ;;  %v2703_v41 = vrot.slane %v2625_v1, 1 }
 0x522   :  { %v2449_v27 = vadd.f32 %v15196_v2, %v2110_v24  ;;  %v15201_v2 = vld [vmem:[#allocation78_spill] sm:$0xff]  ;;  %v2566_v63 = vmax.f32 %v2502_v6, 0.0  ;;  %v2704_v48 = vsel %vm844_vm2, %v2701_v30, %v2703_v41  ;;  %v2562_v6 = vmax.f32 %v2498_v52, 0.0 }
 0x523   :  { %v2784_v19 = vmax.f32 %v2624_v37, %v2704_v48  ;;  %v2488_v52 = vadd.f32 %v10344_v17, %v10503_v11  ;;  %v2486_v11 = vadd.f32 %v10344_v17, %v10491_v53 }
 0x524   :  { %v2516_v18 = vadd.f32 %v10344_v17, %v2449_v27  ;;  %v2620_v4 = vmax.f32 %v2566_v63, %v2568_v23  ;;  %v2618_v54 = vmax.f32 %v2562_v6, %v2564_v26  ;;  %v10673_v6 = vpop.f32.mrf.mxu2 }
 0x525   :  { %v10605_v38 = vpop.f32.mrf.mxu3  ;;  %v2552_v53 = vmax.f32 %v2488_v52, 0.0 }
 0x526   :  { %v2580_v10 = vmax.f32 %v2516_v18, 0.0  ;;  %v2563_v18 = vmax.f32 %v10565_v34, 0.0  ;;  %v2700_v34 = vsel %vm844_vm2, %v2697_v25, %v2699_v8  ;;  %v2693_v37 = vrot.slane %v2620_v4, 1 }
 0x527   :  { %v1897_v35 = vpop.f32.mrf.mxu1  ;;  %v2484_v25 = vadd.f32 %v10344_v17, %v10475_v58 }
 0x528   :  { %v10612_v24 = vmax.f32 %v2578_v49, %v2580_v10  ;;  %v2113_v16 = vadd.f32 %v15200_v31, %v1897_v35  ;;  %v2702_v49 = vsel %vm844_vm2, %v2699_v8, %v2701_v30  ;;  %v2494_v10 = vadd.f32 %v10344_v17, %v10530_v56 }
 0x529   :  { %v2619_v35 = vmax.f32 %v2563_v18, %v2565_v43  ;;  %v2559_v31 = vmax.f32 %v10533_v40, 0.0  ;;  %v2783_v56 = vmax.f32 %v2623_v0, %v2702_v49  ;;  %v2782_v40 = vmax.f32 %v2622_v7, %v2700_v34 }
 0x52a   :  { %v2705_v51 = vrot.slane %v10612_v24, 1  ;;  %v2450_v27 = vadd.f32 %v15201_v2, %v2113_v16  ;;  %v2560_v16 = vmax.f32 %v10543_v55, 0.0  ;;  %v2557_v2 = vmax.f32 %v10527_v60, 0.0 }
 0x52b   :  { %v2696_v55 = vsel %vm844_vm2, %v2693_v37, %v2695_v47  ;;  %v2617_v30 = vmax.f32 %v2559_v31, %v2561_v62  ;;  %v2555_v43 = vmax.f32 %v10519_v61, 0.0  ;;  %v2781_v60 = vmax.f32 %v2621_v32, %v2698_v42 }
 0x52c   :  { %v2517_v13 = vadd.f32 %v10344_v17, %v2450_v27  ;;  %v2706_v20 = vsel %vm844_vm2, %v2703_v41, %v2705_v51  ;;  %v2691_v27 = vrot.slane %v2619_v35, 1  ;;  %v2553_v61 = vmax.f32 %v10509_v3, 0.0 }
 0x52d   :  { %v10625_v45 = vpop.f32.mrf.mxu3  ;;  %v2785_v57 = vmax.f32 %v2625_v1, %v2706_v20  ;;  %v2492_v1 = vadd.f32 %v10344_v17, %v10522_v50  ;;  %v2558_v50 = vmax.f32 %v2494_v10, 0.0  ;;  %v2689_v20 = vrot.slane %v2618_v54, 1 }
 0x52e   :  { %v2581_v22 = vmax.f32 %v2517_v13, 0.0  ;;  %v2694_v13 = vsel %vm844_vm2, %v2691_v27, %v2693_v37  ;;  %v2780_v8 = vmax.f32 %v2620_v4, %v2696_v55  ;;  %v2554_v18 = vmax.f32 %v2490_v5, 0.0 }
 0x52f   :  { %2834 = vmatpush.msra.mxu0 %v2785_v57  ;;  %v2556_v63 = vmax.f32 %v2492_v1, 0.0  ;;  %v2616_v48 = vmax.f32 %v2558_v50, %v2560_v16  ;;  %v2692_v32 = vsel %vm844_vm2, %v2689_v20, %v2691_v27  ;;  %v2687_v26 = vrot.slane %v2617_v30, 1 }
 0x530   :  { %v10632_v41 = vmax.f32 %v2579_v14, %v2581_v22  ;;  %v2615_v57 = vmax.f32 %v2555_v43, %v2557_v2  ;;  %v2483_v49 = vadd.f32 %v10344_v17, %v10469_v29  ;;  %v2779_v14 = vmax.f32 %v2619_v35, %v2694_v13 }
 0x531   :  { %2835 = vmatpush.msra.mxu0 %v2784_v19  ;;  %v2690_v3 = vsel %vm844_vm2, %v2687_v26, %v2689_v20  ;;  %v2685_v22 = vrot.slane %v2616_v48, 1  ;;  %v2614_v4 = vmax.f32 %v2554_v18, %v2556_v63  ;;  %v2482_v10 = vadd.f32 %v10344_v17, %v10466_v28 }
 0x532   :  { %v2707_v23 = vrot.slane %v10632_v41, 1  ;;  %v2778_v29 = vmax.f32 %v2618_v54, %v2692_v32  ;;  %v2550_v19 = vmax.f32 %v2486_v11, 0.0  ;;  %v2683_v34 = vrot.slane %v2615_v57, 1 }
 0x533   :  { %2836 = vmatpush.msra.mxu0 %v2783_v56  ;;  %v2688_v58 = vsel %vm844_vm2, %v2685_v22, %v2687_v26  ;;  %v2547_v47 = vmax.f32 %v2483_v49, 0.0  ;;  %v2777_v1 = vmax.f32 %v2617_v30, %v2690_v3  ;;  %v2548_v31 = vmax.f32 %v2484_v25, 0.0 }
 0x534   :  { %v10649_v0 = vsel %vm844_vm2, %v2705_v51, %v2707_v23  ;;  %v2485_v51 = vadd.f32 %v10344_v17, %v10483_v15  ;;  %v2551_v15 = vmax.f32 %v10500_v59, 0.0  ;;  %v2686_v16 = vsel %vm844_vm2, %v2683_v34, %v2685_v22 }
 0x535   :  { %v10654_v39 = vpop.f32.mrf.mxu3  ;;  %2837 = vmatpush.msra.mxu0 %v2782_v40  ;;  %v2786_v7 = vmax.f32 %v10612_v24, %v10649_v0  ;;  %v2681_v56 = vrot.slane %v2614_v4, 1  ;;  %v2612_v28 = vmax.f32 %v2550_v19, %v2552_v53  ;;  %v2776_v42 = vmax.f32 %v2616_v48, %v2688_v58  ;;  %v15205_v19 = vld [vmem:[#allocation77_spill] sm:$0xff]  ;;  %v2807_v24 = vld [vmem:[%s14788_s5 + $0x28] sm:$0xff]  ;;  %v2814_v0 = vld [vmem:[%s14788_s5 + $0x60] sm:$0xff] }
 0x536   :  { %v2549_v62 = vmax.f32 %v2485_v51, 0.0  ;;  %v2613_v59 = vmax.f32 %v2551_v15, %v2553_v61  ;;  %v2546_v37 = vmax.f32 %v2482_v10, 0.0  ;;  %v2775_v50 = vmax.f32 %v2615_v57, %v2686_v16  ;;  %v15203_v10 = vld [vmem:[#allocation74_spill] sm:$0xff] }
 0x537   :  { %2838 = vmatpush.msra.mxu0 %v2781_v60  ;;  %v2684_v54 = vsel %vm844_vm2, %v2681_v56, %v2683_v34  ;;  %v2677_v55 = vrot.slane %v2612_v28, 1  ;;  %v2178_v60 = vpop.f32.mrf.mxu2  ;;  %v15206_v34 = vld [vmem:[#allocation40_spill] sm:$0xff] }
 0x538   :  { %v2679_v5 = vrot.slane %v2613_v59, 1  ;;  %v2611_v2 = vmax.f32 %v2547_v47, %v2549_v62  ;;  %v2610_v27 = vmax.f32 %v2546_v37, %v2548_v31  ;;  %v2774_v30 = vmax.f32 %v2614_v4, %v2684_v54  ;;  %v15202_v4 = vld [vmem:[#allocation36_spill] sm:$0xff]  ;;  %v15209_v31 = vld [vmem:[#allocation82_spill] sm:$0xff]  ;;  %v15213_v54 = vld [vmem:[#allocation85_spill] sm:$0xff] }
 0x539   :  { %2839 = vmatpush.msra.mxu0 %v2780_v8  ;;  %v2128_v62 = vadd.f32 %v15203_v10, %v15202_v4  ;;  %v15212_v37 = vld [vmem:[#allocation46_spill] sm:$0xff]  ;;  %v15224_v4 = vld [vmem:[#allocation97_spill] sm:$0xff] }
 0x53a   :  { %v2682_v40 = vsel %vm844_vm2, %v2679_v5, %v2681_v56  ;;  %v2680_v52 = vsel %vm844_vm2, %v2677_v55, %v2679_v5  ;;  %v2675_v43 = vrot.slane %v2611_v2, 1  ;;  %v2674_v48 = vrot.slane %v2610_v27, 1  ;;  %v15210_v56 = vld [vmem:[#allocation44_spill] sm:$0xff] }
 0x53b   :  { %2840 = vmatpush.msra.mxu0 %v2779_v14  ;;  %v2773_v13 = vmax.f32 %v2613_v59, %v2682_v40  ;;  %v2772_v51 = vmax.f32 %v2612_v28, %v2680_v52  ;;  %v15207_v59 = vld [vmem:[#allocation28_spill] sm:$0xff]  ;;  %v2143_v5 = vadd.f32 %v15213_v54, %v15212_v37 }
 0x53c   :  { %v2678_v20 = vsel %vm844_vm2, %v2675_v43, %v2677_v55  ;;  %v2676_v11 = vsel %vm844_vm2, %v2674_v48, %v2675_v43  ;;  %v2134_v47 = vadd.f32 %v15207_v59, %v15206_v34  ;;  %v15211_v28 = vld [vmem:[#allocation32_spill] sm:$0xff]  ;;  %v15216_v55 = vld [vmem:[#allocation66_spill] sm:$0xff]  ;;  %v15226_v34 = vld [vmem:[#allocation99_spill] sm:$0xff] }
 0x53d   :  { %v10676_v35 = vpop.f32.mrf.mxu3  ;;  %2841 = vmatpush.msra.mxu0 %v2778_v29  ;;  %v2771_v61 = vmax.f32 %v2611_v2, %v2678_v20  ;;  %v2770_v8 = vmax.f32 %v2610_v27, %v2676_v11  ;;  %v15204_v29 = vld [vmem:[#allocation38_spill] sm:$0xff]  ;;  %v15214_v2 = vld [vmem:[#allocation47_spill] sm:$0xff]  ;;  %v15218_v52 = vld [vmem:[#allocation92_spill] sm:$0xff] }
 0x53e   :  { %v2131_v58 = vadd.f32 %v15205_v19, %v15204_v29  ;;  %v15220_v20 = vld [vmem:[#allocation4_spill] sm:$0xff]  ;;  %v15222_v11 = vld [vmem:[#allocation6_spill] sm:$0xff] }
 0x53f   :  { %2842 = vmatpush.msra.mxu0 %v2777_v1  ;;  %v2181_v32 = vpop.f32.mrf.mxu2  ;;  %v15208_v1 = vld [vmem:[#allocation42_spill] sm:$0xff]  ;;  %v15229_v37 = vld [vmem:[#allocation8_spill] sm:$0xff] }
 0x540   :  { %v2137_v16 = vadd.f32 %v15209_v31, %v15208_v1  ;;  %v15225_v19 = vld [vmem:[#allocation10_spill] sm:$0xff]  ;;  %v15227_v1 = vld [vmem:[#allocation63_spill] sm:$0xff]  ;;  %v2164_v54 = vadd.f32 %v10497_v33, %v15229_v37  ;;  %v15237_v33 = vld [vmem:[#allocation56_spill] sm:$0xff] }
 0x541   :  { %2843 = vmatpush.msra.mxu0 %v2776_v42  ;;  %v2140_v42 = vadd.f32 %v15211_v28, %v15210_v56  ;;  %v2161_v59 = vadd.f32 %v15226_v34, %v15225_v19  ;;  %v15228_v56 = vld [vmem:[#allocation64_spill] sm:$0xff]  ;;  %v15235_v19 = vld [vmem:[#allocation54_spill] sm:$0xff] }
 0x543   :  { %2844 = vmatpush.msra.mxu0 %v2775_v50  ;;  %v15215_v50 = vld [vmem:[#allocation90_spill] sm:$0xff] }
 0x544   :  { %v10698_v40 = vadd.f32 %v15215_v50, %v15214_v2  ;;  %v15230_v2 = vld [vmem:[#allocation52_spill] sm:$0xff] }
 0x545   :  { %v2388_v63 = vpop.f32.mrf.mxu3  ;;  %2845 = vmatpush.msra.mxu0 %v2774_v30  ;;  %v15217_v30 = vld [vmem:[#allocation48_spill] sm:$0xff]  ;;  %v2167_v50 = vadd.f32 %v10572_v21, %v15230_v2  ;;  %v2173_v21 = vadd.f32 %v10638_v9, %v15237_v33  ;;  %v15242_v9 = vld [vmem:[#allocation67_spill] sm:$0xff] }
 0x546   :  { %v2149_v43 = vadd.f32 %v15218_v52, %v15217_v30  ;;  %v15232_v52 = vld [vmem:[#allocation59_spill] sm:$0xff] }
 0x547   :  { %2846 = vmatpush.msra.mxu0 %v2773_v13  ;;  %v2184_v57 = vpop.f32.mrf.mxu2  ;;  %v15219_v13 = vld [vmem:[#allocation3_spill] sm:$0xff]  ;;  %v2470_v37 = vadd.f32 %v2388_v63, %v2173_v21 }
 0x548   :  { %v2152_v48 = vadd.f32 %v15220_v20, %v15219_v13  ;;  %v2185_v31 = vadd.f32 %v2184_v57, %v15227_v1  ;;  %v2179_v13 = vadd.f32 %v2178_v60, %v15232_v52  ;;  %v15233_v20 = vld [vmem:[#allocation61_spill] sm:$0xff]  ;;  %v15238_v1 = vld [vmem:[#allocation58_spill] sm:$0xff] }
 0x549   :  { %2847 = vmatpush.msra.mxu0 %v2772_v51  ;;  %v15221_v51 = vld [vmem:[#allocation2_spill] sm:$0xff]  ;;  %v2176_v60 = vadd.f32 %v10673_v6, %v15238_v1 }
 0x54a   :  { %v2463_v33 = vadd.f32 %v10453_v12, %v2152_v48 }
 0x54b   :  { %2848 = vmatpush.msra.mxu0 %v2771_v61  ;;  %v2155_v61 = vadd.f32 %v15222_v11, %v15221_v51  ;;  %v2182_v51 = vadd.f32 %v2181_v32, %v15233_v20  ;;  %v15234_v11 = vld [vmem:[#allocation65_spill] sm:$0xff] }
 0x54d   :  { %v2391_v18 = vpop.f32.mrf.mxu3  ;;  %2849 = vmatpush.msra.mxu0 %v2770_v8  ;;  %v15223_v8 = vld [vmem:[#allocation51_spill] sm:$0xff] }
 0x54e   :  { %v2158_v10 = vadd.f32 %v15224_v4, %v15223_v8 }
 0x54f   :  { %v2187_v25 = vpop.f32.mrf.mxu2 }
 0x555   :  { %v2394_v26 = vpop.f32.mrf.mxu3 }
 0x557   :  { %v2190_v14 = vpop.f32.mrf.mxu2 }
 0x558   :  { %v2191_v8 = vadd.f32 %v2190_v14, %v15234_v11  ;;  %v2467_v11 = vadd.f32 %v10625_v45, %v2164_v54  ;;  %v15244_v54 = vld [vmem:[#allocation98_spill] sm:$0xff] }
 0x55d   :  { %v2397_v49 = vpop.f32.mrf.mxu3 }
 0x55f   :  { %v2193_v22 = vpop.f32.mrf.mxu2 }
 0x560   :  { %v2194_v27 = vadd.f32 %v2193_v22, %v15216_v55  ;;  %v2188_v22 = vadd.f32 %v2187_v25, %v15228_v56  ;;  %v15231_v55 = vld [vmem:[#allocation86_spill] sm:$0xff]  ;;  %v2170_v25 = vadd.f32 %v10610_v44, %v15235_v19  ;;  %v2473_v56 = vadd.f32 %v2397_v49, %v2182_v51  ;;  %v15243_v49 = vld [vmem:[#allocation95_spill] sm:$0xff] }
 0x561   :  { %v10718_v30 = vadd.f32 %v15231_v55, %v2128_v62  ;;  %v2472_v62 = vadd.f32 %v2394_v26, %v2179_v13  ;;  %v2471_v26 = vadd.f32 %v2391_v18, %v2176_v60  ;;  %v2464_v18 = vadd.f32 %v10516_v46, %v2155_v61  ;;  %v3241_v46 = vld [vmem:[%s14787_s6 + $0x58] sm:$0xff]  ;;  %v15245_v60 = vld [vmem:[#allocation96_spill] sm:$0xff] }
 0x562   :  { %v2466_v51 = vadd.f32 %v10605_v38, %v2161_v59  ;;  %3376 = vmatpush.msrb.mxu3 %v3241_v46 }
 0x565   :  { %v2400_v15 = vpop.f32.mrf.mxu3 }
 0x566   :  { %v2474_v4 = vadd.f32 %v2400_v15, %v2185_v31  ;;  %v15239_v15 = vld [vmem:[#allocation91_spill] sm:$0xff]  ;;  %v15240_v31 = vld [vmem:[#allocation93_spill] sm:$0xff] }
 0x567   :  { %v2196_v34 = vpop.f32.mrf.mxu2  ;;  %v10737_v44 = vadd.f32 %v15240_v31, %v2137_v16  ;;  %v2539_v16 = vadd.f32 %v10344_v17, %v2472_v62 }
 0x568   :  { %v2197_v2 = vadd.f32 %v2196_v34, %v15242_v9  ;;  %v2541_v55 = vadd.f32 %v10344_v17, %v2474_v4  ;;  %v2465_v4 = vadd.f32 %v10577_v36, %v2158_v10  ;;  %v2533_v36 = vadd.f32 %v10344_v17, %v2466_v51 }
 0x569   :  { %v2534_v10 = vadd.f32 %v10344_v17, %v2467_v11 }
 0x56a   :  { %v2597_v9 = vmax.f32 %v2533_v36, 0.0 }
 0x56d   :  { %v2403_v53 = vpop.f32.mrf.mxu3 }
 0x56e   :  { %v2475_v57 = vadd.f32 %v2403_v53, %v2188_v22  ;;  %v10734_v53 = vadd.f32 %v15239_v15, %v2134_v47  ;;  %v2469_v47 = vadd.f32 %v10676_v35, %v2170_v25  ;;  %v2605_v35 = vmax.f32 %v2541_v55, 0.0 }
 0x56f   :  { %v2603_v25 = vmax.f32 %v2539_v16, 0.0 }
 0x570   :  { %v2542_v6 = vadd.f32 %v10344_v17, %v2475_v57  ;;  %v2536_v19 = vadd.f32 %v10344_v17, %v2469_v47 }
 0x571   :  { %v2639_v1 = vmax.f32 %v2603_v25, %v2605_v35 }
 0x572   :  { %v2600_v31 = vmax.f32 %v2536_v19, 0.0 }
 0x575   :  { %v2406_v3 = vpop.f32.mrf.mxu3 }
 0x576   :  { %v2476_v32 = vadd.f32 %v2406_v3, %v2191_v8  ;;  %v2460_v3 = vadd.f32 %v15243_v49, %v2143_v5  ;;  %v2537_v5 = vadd.f32 %v10344_v17, %v2470_v37  ;;  %v2530_v37 = vadd.f32 %v10344_v17, %v2463_v33 }
 0x578   :  { %v2543_v63 = vadd.f32 %v10344_v17, %v2476_v32  ;;  %v2601_v21 = vmax.f32 %v2537_v5, 0.0  ;;  %v2531_v32 = vadd.f32 %v10344_v17, %v2464_v18  ;;  %v2527_v49 = vadd.f32 %v10344_v17, %v2460_v3 }
 0x579   :  { %v2525_v18 = vadd.f32 %v10344_v17, %v10737_v44  ;;  %v2594_v5 = vmax.f32 %v2530_v37, 0.0 }
 0x57a   :  { %v2607_v45 = vmax.f32 %v2543_v63, 0.0  ;;  %v2595_v47 = vmax.f32 %v2531_v32, 0.0 }
 0x57d   :  { %v2409_v29 = vpop.f32.mrf.mxu3 }
 0x57e   :  { %v2477_v28 = vadd.f32 %v2409_v29, %v2194_v27  ;;  %v15236_v27 = vld [vmem:[#allocation89_spill] sm:$0xff] }
 0x57f   :  { %v10726_v29 = vadd.f32 %v15236_v27, %v2131_v58  ;;  %v15241_v58 = vld [vmem:[#allocation94_spill] sm:$0xff]  ;;  %v2462_v27 = vadd.f32 %v15244_v54, %v2149_v43 }
 0x580   :  { %v2544_v14 = vadd.f32 %v10344_v17, %v2477_v28  ;;  %v10740_v22 = vadd.f32 %v15241_v58, %v2140_v42  ;;  %v2468_v28 = vadd.f32 %v10654_v39, %v2167_v50  ;;  %v2540_v42 = vadd.f32 %v10344_v17, %v2473_v56 }
 0x581   :  { %v2538_v39 = vadd.f32 %v10344_v17, %v2471_v26  ;;  %v2606_v50 = vmax.f32 %v2542_v6, 0.0  ;;  %v2461_v56 = vadd.f32 %v15245_v60, %v10698_v40  ;;  %v2529_v48 = vadd.f32 %v10344_v17, %v2462_v27 }
 0x582   :  { %v2608_v13 = vmax.f32 %v2544_v14, 0.0  ;;  %v2535_v57 = vadd.f32 %v10344_v17, %v2468_v28  ;;  %v2604_v38 = vmax.f32 %v2540_v42, 0.0  ;;  %v2532_v14 = vadd.f32 %v10344_v17, %v2465_v4 }
 0x583   :  { %v2602_v34 = vmax.f32 %v2538_v39, 0.0  ;;  %v2731_v40 = vrot.slane %v2639_v1, 1  ;;  %v2528_v28 = vadd.f32 %v10344_v17, %v2461_v56  ;;  %v2526_v3 = vadd.f32 %v10344_v17, %v10740_v22 }
 0x584   :  { %v2640_v59 = vmax.f32 %v2606_v50, %v2608_v13  ;;  %v2599_v15 = vmax.f32 %v2535_v57, 0.0  ;;  %v2596_v42 = vmax.f32 %v2532_v14, 0.0  ;;  %v2593_v51 = vmax.f32 %v2529_v48, 0.0 }
 0x585   :  { %v2412_v52 = vpop.f32.mrf.mxu3  ;;  %v2638_v12 = vmax.f32 %v2602_v34, %v2604_v38  ;;  %v2635_v50 = vmax.f32 %v2595_v47, %v2597_v9  ;;  %v2524_v4 = vadd.f32 %v10344_v17, %v10734_v53  ;;  %v2591_v57 = vmax.f32 %v2527_v49, 0.0 }
 0x586   :  { %v2478_v20 = vadd.f32 %v2412_v52, %v2197_v2  ;;  %v2733_v58 = vrot.slane %v2640_v59, 1  ;;  %v2598_v2 = vmax.f32 %v2534_v10, 0.0  ;;  %v2637_v6 = vmax.f32 %v2599_v15, %v2601_v21  ;;  %v2802_v52 = vld [vmem:[%s14788_s5] sm:$0xff] }
 0x587   :  { %v2729_v13 = vrot.slane %v2638_v12, 1  ;;  %2850 = vmatmul.f32.vlgmr.msra.gmra.mxu0 %v2802_v52  ;;  %v2592_v19 = vmax.f32 %v2528_v28, 0.0  ;;  %v2634_v46 = vmax.f32 %v2594_v5, %v2596_v42  ;;  %v2522_v38 = vadd.f32 %v10344_v17, %v10718_v30  ;;  %v15248_v42 = vld [vmem:[#allocation34_spill] sm:$0xff]  ;;  %v3240_v5 = vld [vmem:[%s14787_s6 + $0x50] sm:$0xff] }
 0x588   :  { %v2545_v8 = vadd.f32 %v10344_v17, %v2478_v20  ;;  %v2734_v63 = vsel %vm844_vm2, %v2731_v40, %v2733_v58  ;;  %v2636_v20 = vmax.f32 %v2598_v2, %v2600_v31  ;;  %v2727_v35 = vrot.slane %v2637_v6, 1  ;;  %3377 = vmatpush.msrb.mxu3 %v3240_v5 }
 0x589   :  { %v2732_v39 = vsel %vm844_vm2, %v2729_v13, %v2731_v40  ;;  %v2799_v44 = vmax.f32 %v2639_v1, %v2734_v63  ;;  %v2723_v54 = vrot.slane %v2635_v50, 1  ;;  %v2633_v27 = vmax.f32 %v2591_v57, %v2593_v51  ;;  %v2820_v57 = vld [vmem:[%s14788_s5 + $0x90] sm:$0xff] }
 0x58a   :  { %v2609_v61 = vmax.f32 %v2545_v8, 0.0  ;;  %v2523_v8 = vadd.f32 %v10344_v17, %v10726_v29  ;;  %v2730_v22 = vsel %vm844_vm2, %v2727_v35, %v2729_v13  ;;  %v2725_v25 = vrot.slane %v2636_v20, 1  ;;  %v2804_v29 = vld [vmem:[%s14788_s5 + $0x10] sm:$0xff] }
 0x58b   :  { %v2797_v36 = vmax.f32 %v2637_v6, %v2730_v22  ;;  %v2588_v10 = vmax.f32 %v2524_v4, 0.0  ;;  %v2721_v34 = vrot.slane %v2634_v46, 1  ;;  %v2719_v60 = vrot.slane %v2633_v27, 1  ;;  %v15246_v6 = vld [vmem:[#allocation84_spill] sm:$0xff]  ;;  %v2813_v4 = vld [vmem:[%s14788_s5 + $0x58] sm:$0xff]  ;;  %v2822_v22 = vld [vmem:[%s14788_s5 + $0xa0] sm:$0xff] }
 0x58c   :  { %v2641_v62 = vmax.f32 %v2607_v45, %v2609_v61  ;;  %v2589_v45 = vmax.f32 %v2525_v18, 0.0  ;;  %v2798_v61 = vmax.f32 %v2638_v12, %v2732_v39  ;;  %v2728_v53 = vsel %vm844_vm2, %v2725_v25, %v2727_v35  ;;  %v15251_v18 = vld [vmem:[#allocation88_spill] sm:$0xff] }
 0x58d   :  { %v2587_v33 = vmax.f32 %v2523_v8, 0.0  ;;  %v2726_v21 = vsel %vm844_vm2, %v2723_v54, %v2725_v25  ;;  %v2796_v30 = vmax.f32 %v2636_v20, %v2728_v53  ;;  %v2724_v1 = vsel %vm844_vm2, %v2721_v34, %v2723_v54  ;;  %v15250_v20 = vld [vmem:[#allocation9_spill] sm:$0xff]  ;;  %v2812_v39 = vld [vmem:[%s14788_s5 + $0x50] sm:$0xff]  ;;  %v2818_v8 = vld [vmem:[%s14788_s5 + $0x80] sm:$0xff] }
 0x58e   :  { %v2735_v43 = vrot.slane %v2641_v62, 1  ;;  %v2795_v32 = vmax.f32 %v2635_v50, %v2726_v21  ;;  %v2722_v14 = vsel %vm844_vm2, %v2719_v60, %v2721_v34  ;;  %v15247_v49 = vrot.slane %v15246_v6, 1  ;;  %3144 = vrot.lane.b32.xlu1 %v15250_v20, %s8107_s25  ;;  %v2816_v35 = vld [vmem:[%s14788_s5 + $0x70] sm:$0xff]  ;;  %v2811_v50 = vld [vmem:[%s14788_s5 + $0x48] sm:$0xff]  ;;  %v2817_v25 = vld [vmem:[%s14788_s5 + $0x78] sm:$0xff] }
 0x58f   :  { %2853 = vmatmul.f32.gmra.mxu0 %v2804_v29  ;;  %v2631_v56 = vmax.f32 %v2587_v33, %v2589_v45  ;;  %v2793_v37 = vmax.f32 %v2633_v27, %v2722_v14  ;;  %v15249_v63 = vrot.slane %v15248_v42, 1  ;;  %v2826_v45 = vld [vmem:[%s14788_s5 + $0xc0] sm:$0xff]  ;;  %v2828_v29 = vld [vmem:[%s14788_s5 + $0xd0] sm:$0xff]  ;;  %v2825_v27 = vld [vmem:[%s14788_s5 + $0xb8] sm:$0xff] }
 0x590   :  { %v2769_v26 = vsel %vm844_vm2, %v2735_v43, 0.0  ;;  %v2736_v55 = vsel %vm844_vm2, %v2733_v58, %v2735_v43  ;;  %v2794_v43 = vmax.f32 %v2634_v46, %v2724_v1  ;;  %v2806_v58 = vld [vmem:[%s14788_s5 + $0x20] sm:$0xff]  ;;  %v2824_v46 = vld [vmem:[%s14788_s5 + $0xb0] sm:$0xff]  ;;  %v2829_v21 = vld [vmem:[%s14788_s5 + $0xd8] sm:$0xff] }
 0x591   :  { %v2801_v16 = vmax.f32 %v2641_v62, %v2769_v26  ;;  %v2800_v11 = vmax.f32 %v2640_v59, %v2736_v55  ;;  %v2590_v59 = vmax.f32 %v2526_v3, 0.0  ;;  %v2586_v62 = vmax.f32 %v2522_v38, 0.0  ;;  %v2819_v38 = vld [vmem:[%s14788_s5 + $0x88] sm:$0xff]  ;;  %v2830_v53 = vld [vmem:[%s14788_s5 + $0xe0] sm:$0xff]  ;;  %v2832_v33 = vld [vmem:[%s14788_s5 + $0xf0] sm:$0xff] }
 0x592   :  { %v2715_v48 = vrot.slane %v2631_v56, 1  ;;  %v2710_v13 = vsel %vm844_vm2, %v2707_v23, %v15249_v63  ;;  %v15252_v3 = vmax.f32 %v15248_v42, %v15251_v18  ;;  %v2810_v23 = vld [vmem:[%s14788_s5 + $0x40] sm:$0xff]  ;;  %v3237_v14 = vld [vmem:[%s14787_s6 + $0x38] sm:$0xff] }
 0x593   :  { %2899 = vmatpush.msrb.mxu1 %v2801_v16  ;;  %v2632_v17 = vmax.f32 %v2590_v59, %v2592_v19  ;;  %v2630_v31 = vmax.f32 %v2586_v62, %v2588_v10  ;;  %v2808_v16 = vld [vmem:[%s14788_s5 + $0x30] sm:$0xff]  ;;  %v2787_v51 = vmax.f32 %v10632_v41, %v2710_v13  ;;  %v2805_v41 = vld [vmem:[%s14788_s5 + $0x18] sm:$0xff]  ;;  %v2815_v19 = vld [vmem:[%s14788_s5 + $0x68] sm:$0xff] }
 0x594   :  { %v2823_v59 = vld [vmem:[%s14788_s5 + $0xa8] sm:$0xff]  ;;  %v3238_v54 = vld [vmem:[%s14787_s6 + $0x40] sm:$0xff]  ;;  %v2833_v62 = vld [vmem:[%s14788_s5 + $0xf8] sm:$0xff] }
 0x595   :  { %2900 = vmatpush.msrb.mxu1 %v2800_v11  ;;  %v2717_v15 = vrot.slane %v2632_v17, 1  ;;  %v2713_v2 = vrot.slane %v2630_v31, 1  ;;  %v2803_v11 = vld [vmem:[%s14788_s5 + $0x8] sm:$0xff] }
 0x597   :  { %2901 = vmatpush.msrb.mxu1 %v2799_v44  ;;  %v2720_v12 = vsel %vm844_vm2, %v2717_v15, %v2719_v60  ;;  %v2718_v9 = vsel %vm844_vm2, %v2715_v48, %v2717_v15  ;;  %2856 = vmatmul.f32.gmra.mxu0 %v2806_v58  ;;  %v2716_v55 = vsel %vm844_vm2, %v2713_v2, %v2715_v48  ;;  %v3239_v44 = vld [vmem:[%s14787_s6 + $0x48] sm:$0xff] }
 0x598   :  { %v2792_v26 = vmax.f32 %v2632_v17, %v2720_v12  ;;  %v2791_v40 = vmax.f32 %v2631_v56, %v2718_v9  ;;  %v2714_v28 = vsel %vm844_vm2, %v15247_v49, %v2713_v2  ;;  %v2790_v47 = vmax.f32 %v2630_v31, %v2716_v55  ;;  %3378 = vmatpush.msrb.mxu3 %v3239_v44  ;;  %v2831_v17 = vld [vmem:[%s14788_s5 + $0xe8] sm:$0xff] }
 0x599   :  { %2902 = vmatpush.msrb.mxu1 %v2798_v61  ;;  %v2789_v52 = vmax.f32 %v15246_v6, %v2714_v28  ;;  %v2821_v61 = vld [vmem:[%s14788_s5 + $0x98] sm:$0xff] }
 0x59a   :  { %3379 = vmatpush.msrb.mxu3 %v3238_v54 }
 0x59b   :  { %2903 = vmatpush.msrb.mxu1 %v2797_v36  ;;  %v2827_v36 = vld [vmem:[%s14788_s5 + $0xc8] sm:$0xff] }
 0x59c   :  { %3380 = vmatpush.msrb.mxu3 %v3237_v14  ;;  %v11041_v14 = vpop.permute.xlu2 %3077 }
 0x59d   :  { %2904 = vmatpush.msrb.mxu1 %v2796_v30 }
 0x59f   :  { %2905 = vmatpush.msrb.mxu1 %v2795_v32  ;;  %2859 = vmatmul.f32.gmra.mxu0 %v2808_v16 }
 0x5a1   :  { %2906 = vmatpush.msrb.mxu1 %v2794_v43 }
 0x5a3   :  { %2907 = vmatpush.msrb.mxu1 %v2793_v37 }
 0x5a5   :  { %2908 = vmatpush.msrb.mxu1 %v2792_v26 }
 0x5a7   :  { %2909 = vmatpush.msrb.mxu1 %v2791_v40  ;;  %2862 = vmatmul.f32.gmra.mxu0 %v2810_v23 }
 0x5a9   :  { %2910 = vmatpush.msrb.mxu1 %v2790_v47 }
 0x5ab   :  { %2911 = vmatpush.msrb.mxu1 %v2789_v52 }
 0x5ad   :  { %2912 = vmatpush.msrb.mxu1 %v15252_v3 }
 0x5af   :  { %2913 = vmatpush.msrb.mxu1 %v2787_v51  ;;  %2865 = vmatmul.f32.gmra.mxu0 %v2812_v39  ;;  %v3236_v39 = vld [vmem:[%s14787_s6 + $0x30] sm:$0xff] }
 0x5b0   :  { %3381 = vmatpush.msrb.mxu3 %v3236_v39  ;;  %v7677_v39 = vld [vmem:[%s14787_s6 + $0xd8] sm:$0xff] }
 0x5b1   :  { %2914 = vmatpush.msrb.mxu1 %v2786_v7  ;;  %v2809_v7 = vld [vmem:[%s14788_s5 + $0x38] sm:$0xff] }
 0x5b2   :  { %2915 = vmatmul.f32.vlgmr.msrb.gmra.mxu1 %v2803_v11 }
 0x5b7   :  { %2868 = vmatmul.f32.gmra.mxu0 %v2814_v0 }
 0x5ba   :  { %2918 = vmatmul.f32.gmra.mxu1 %v2805_v41 }
 0x5bf   :  { %2871 = vmatmul.f32.gmra.mxu0 %v2816_v35 }
 0x5c2   :  { %2921 = vmatmul.f32.gmra.mxu1 %v2807_v24 }
 0x5c7   :  { %2874 = vmatmul.f32.gmra.mxu0 %v2818_v8 }
 0x5ca   :  { %2924 = vmatmul.f32.gmra.mxu1 %v2809_v7 }
 0x5cf   :  { %2877 = vmatmul.f32.gmra.mxu0 %v2820_v57 }
 0x5d2   :  { %2927 = vmatmul.f32.gmra.mxu1 %v2811_v50  ;;  %v7641_v50 = vld [vmem:[%s14787_s6 + $0xb8] sm:$0xff] }
 0x5d3   :  { %3308 = vmatpush.msrb.mxu2 %v7641_v50  ;;  %v7675_v50 = vld [vmem:[%s14787_s6 + $0xc8] sm:$0xff] }
 0x5d7   :  { %2880 = vmatmul.f32.gmra.mxu0 %v2822_v22  ;;  %v7640_v22 = vld [vmem:[%s14787_s6 + $0xb0] sm:$0xff] }
 0x5d8   :  { %3309 = vmatpush.msrb.mxu2 %v7640_v22 }
 0x5da   :  { %2930 = vmatmul.f32.gmra.mxu1 %v2813_v4 }
 0x5df   :  { %2883 = vmatmul.f32.gmra.mxu0 %v2824_v46  ;;  %v7639_v46 = vld [vmem:[%s14787_s6 + $0xa8] sm:$0xff] }
 0x5e0   :  { %3310 = vmatpush.msrb.mxu2 %v7639_v46 }
 0x5e2   :  { %2933 = vmatmul.f32.gmra.mxu1 %v2815_v19 }
 0x5e7   :  { %2886 = vmatmul.f32.gmra.mxu0 %v2826_v45 }
 0x5ea   :  { %2936 = vmatmul.f32.gmra.mxu1 %v2817_v25 }
 0x5ef   :  { %2889 = vmatmul.f32.gmra.mxu0 %v2828_v29  ;;  %v7638_v29 = vld [vmem:[%s14787_s6 + $0xa0] sm:$0xff] }
 0x5f0   :  { %3311 = vmatpush.msrb.mxu2 %v7638_v29 }
 0x5f2   :  { %2939 = vmatmul.f32.gmra.mxu1 %v2819_v38 }
 0x5f7   :  { %2892 = vmatmul.f32.gmra.mxu0 %v2830_v53 }
 0x5fa   :  { %2942 = vmatmul.f32.gmra.mxu1 %v2821_v61  ;;  %v3235_v61 = vld [vmem:[%s14787_s6 + $0x28] sm:$0xff] }
 0x5fb   :  { %3382 = vmatpush.msrb.mxu3 %v3235_v61 }
 0x5ff   :  { %2895 = vmatmul.f32.gmra.mxu0 %v2832_v33  ;;  %v7685_v33 = vld [vmem:[%s14787_s6 + $0x118] sm:$0xff] }
 0x600   :  { %3454 = vmatpush.msrb.mxu0 %v7685_v33 }
 0x602   :  { %2945 = vmatmul.f32.gmra.mxu1 %v2823_v59  ;;  %v3234_v59 = vld [vmem:[%s14787_s6 + $0x20] sm:$0xff] }
 0x603   :  { %3383 = vmatpush.msrb.mxu3 %v3234_v59 }
 0x604   :  { %v2851_v10 = vpop.f32.mrf.mxu0 }
 0x60a   :  { %2948 = vmatmul.f32.gmra.mxu1 %v2825_v27  ;;  %v7637_v27 = vld [vmem:[%s14787_s6 + $0x98] sm:$0xff] }
 0x60b   :  { %3312 = vmatpush.msrb.mxu2 %v7637_v27 }
 0x60c   :  { %v2854_v34 = vpop.f32.mrf.mxu0 }
 0x612   :  { %2951 = vmatmul.f32.gmra.mxu1 %v2827_v36  ;;  %v7636_v36 = vld [vmem:[%s14787_s6 + $0x90] sm:$0xff] }
 0x613   :  { %3313 = vmatpush.msrb.mxu2 %v7636_v36 }
 0x614   :  { %v2857_v30 = vpop.f32.mrf.mxu0 }
 0x61a   :  { %2954 = vmatmul.f32.gmra.mxu1 %v2829_v21  ;;  %v3233_v21 = vld [vmem:[%s14787_s6 + $0x18] sm:$0xff] }
 0x61b   :  { %3384 = vmatpush.msrb.mxu3 %v3233_v21 }
 0x61c   :  { %v2860_v1 = vpop.f32.mrf.mxu0 }
 0x622   :  { %2957 = vmatmul.f32.gmra.mxu1 %v2831_v17  ;;  %v3232_v17 = vld [vmem:[%s14787_s6 + $0x10] sm:$0xff] }
 0x623   :  { %3385 = vmatpush.msrb.mxu3 %v3232_v17 }
 0x624   :  { %v2863_v43 = vpop.f32.mrf.mxu0 }
 0x62a   :  { %2960 = vmatmul.f32.gmra.mxu1 %v2833_v62  ;;  %v7635_v62 = vld [vmem:[%s14787_s6 + $0x88] sm:$0xff] }
 0x62b   :  { %3314 = vmatpush.msrb.mxu2 %v7635_v62 }
 0x62c   :  { %v2866_v2 = vpop.f32.mrf.mxu0 }
 0x62f   :  { %v2916_v60 = vpop.f32.mrf.mxu1 }
 0x630   :  { %v10920_v56 = vadd.f32 %v2916_v60, %v2851_v10  ;;  %v7684_v10 = vld [vmem:[%s14787_s6 + $0x110] sm:$0xff] }
 0x631   :  { %3455 = vmatpush.msrb.mxu0 %v7684_v10 }
 0x632   :  { %3079 = vrot.lane.b32.xlu0 %v10920_v56, %s8105_s26  ;;  %v3029_v32 = vrot.slane %v10920_v56, 1  ;;  %v2981_v27 = vrot.slane %v10920_v56, 7 }
 0x634   :  { %v3061_v15 = vsel %vm844_vm2, %v3029_v32, 0.0  ;;  %v2869_v28 = vpop.f32.mrf.mxu0  ;;  %v7683_v32 = vld [vmem:[%s14787_s6 + $0x108] sm:$0xff]  ;;  %v3013_v21 = vsel %vm646_vm3, 0.0, %v2981_v27 }
 0x635   :  { %3146 = vrot.lane.b32.xlu2 %v3061_v15, %s8107_s25  ;;  %3456 = vmatpush.msrb.mxu0 %v7683_v32  ;;  %v7634_v15 = vld [vmem:[%s14787_s6 + $0x80] sm:$0xff] }
 0x636   :  { %3315 = vmatpush.msrb.mxu2 %v7634_v15 }
 0x637   :  { %v2919_v31 = vpop.f32.mrf.mxu1 }
 0x638   :  { %v10930_v58 = vadd.f32 %v2919_v31, %v2854_v34  ;;  %v3145_v31 = vpop.permute.xlu1 %3144 }
 0x63a   :  { %3081 = vrot.lane.b32.xlu0 %v10930_v58, %s8105_s26  ;;  %v3030_v12 = vrot.slane %v10930_v58, 1  ;;  %v2982_v15 = vrot.slane %v10930_v58, 7 }
 0x63c   :  { %v3062_v48 = vsel %vm844_vm2, %v3030_v12, 0.0  ;;  %v2872_v13 = vpop.f32.mrf.mxu0 }
 0x63d   :  { %3148 = vrot.lane.b32.xlu1 %v3062_v48, %s8107_s25  ;;  %v3230_v48 = vld [vmem:[%s14787_s6] sm:$0xff] }
 0x63f   :  { %v2922_v37 = vpop.f32.mrf.mxu1 }
 0x640   :  { %v10937_v9 = vadd.f32 %v2922_v37, %v2857_v30 }
 0x642   :  { %v3031_v26 = vrot.slane %v10937_v9, 1  ;;  %3083 = vrot.lane.b32.xlu2 %v10937_v9, %s8105_s26 }
 0x644   :  { %v3063_v55 = vsel %vm844_vm2, %v3031_v26, 0.0  ;;  %v2875_v5 = vpop.f32.mrf.mxu0 }
 0x645   :  { %3150 = vrot.lane.b32.xlu0 %v3063_v55, %s8107_s25  ;;  %v7682_v55 = vld [vmem:[%s14787_s6 + $0x100] sm:$0xff] }
 0x646   :  { %3457 = vmatpush.msrb.mxu0 %v7682_v55 }
 0x647   :  { %v2925_v40 = vpop.f32.mrf.mxu1 }
 0x648   :  { %v10944_v6 = vadd.f32 %v2925_v40, %v2860_v1  ;;  %v3231_v1 = vld [vmem:[%s14787_s6 + $0x8] sm:$0xff]  ;;  %v7633_v40 = vld [vmem:[%s14787_s6 + $0x78] sm:$0xff] }
 0x649   :  { %3386 = vmatpush.msrb.mxu3 %v3231_v1  ;;  %3316 = vmatpush.msrb.mxu2 %v7633_v40  ;;  %v15256_v40 = vld [vmem:[#allocation50_spill] sm:$0xff] }
 0x64a   :  { %3085 = vrot.lane.b32.xlu1 %v10944_v6, %s8105_s26  ;;  %v3032_v49 = vrot.slane %v10944_v6, 1 }
 0x64b   :  { %3387 = vmatpush.msrb.mxu3 %v3230_v48 }
 0x64c   :  { %v3064_v47 = vsel %vm844_vm2, %v3032_v49, 0.0  ;;  %v2878_v8 = vpop.f32.mrf.mxu0  ;;  %v7681_v49 = vld [vmem:[%s14787_s6 + $0xf8] sm:$0xff] }
 0x64d   :  { %3152 = vrot.lane.b32.xlu2 %v3064_v47, %s8107_s25  ;;  %3458 = vmatpush.msrb.mxu0 %v7681_v49  ;;  %v3014_v49 = vsel %vm646_vm3, 0.0, %v2982_v15 }
 0x64f   :  { %v2928_v16 = vpop.f32.mrf.mxu1 }
 0x650   :  { %v10951_v52 = vadd.f32 %v2928_v16, %v2863_v43  ;;  %v15253_v43 = vld [vmem:[#allocation69_spill] sm:$0xff]  ;;  %v7680_v16 = vld [vmem:[%s14787_s6 + $0xf0] sm:$0xff] }
 0x651   :  { %v3195_v12 = vsel %vm1502_vm6, %v15253_v43, %v11041_v14  ;;  %3459 = vmatpush.msrb.mxu0 %v7680_v16 }
 0x652   :  { %3087 = vrot.lane.b32.xlu0 %v10951_v52, %s8105_s26  ;;  %v3033_v42 = vrot.slane %v10951_v52, 1 }
 0x654   :  { %v3065_v63 = vsel %vm844_vm2, %v3033_v42, 0.0  ;;  %v2881_v38 = vpop.f32.mrf.mxu0 }
 0x655   :  { %3154 = vrot.lane.b32.xlu1 %v3065_v63, %s8107_s25  ;;  %v7631_v63 = vld [vmem:[%s14787_s6 + $0x68] sm:$0xff] }
 0x657   :  { %v2931_v18 = vpop.f32.mrf.mxu1 }
 0x658   :  { %v10958_v3 = vadd.f32 %v2931_v18, %v2866_v2  ;;  %v11053_v2 = vsel %vm3212_vm7, %v3195_v12, %v3145_v31  ;;  %v7630_v18 = vld [vmem:[%s14787_s6 + $0x60] sm:$0xff]  ;;  %v15255_v12 = vmov 0.0  }
 0x659   :  { %7658 = vmatmul.msk.f32.vlgmr.msrb.gmra.mxu3 %vm3255_vm8, %v11053_v2  ;;  %v4423_v48 = vrot.slane %v15255_v12, 2 }
 0x65a   :  { %v3034_v51 = vrot.slane %v10958_v3, 1  ;;  %3089 = vrot.lane.b32.xlu2 %v10958_v3, %s8105_s26 }
 0x65c   :  { %v3066_v11 = vsel %vm844_vm2, %v3034_v51, 0.0  ;;  %v2884_v60 = vpop.f32.mrf.mxu0  ;;  %v7678_v51 = vld [vmem:[%s14787_s6 + $0xe0] sm:$0xff] }
 0x65d   :  { %3156 = vrot.lane.b32.xlu0 %v3066_v11, %s8107_s25 }
 0x65f   :  { %v2934_v23 = vpop.f32.mrf.mxu1 }
 0x660   :  { %v10965_v41 = vadd.f32 %v2934_v23, %v2869_v28  ;;  %v7632_v28 = vld [vmem:[%s14787_s6 + $0x70] sm:$0xff] }
 0x661   :  { %3317 = vmatpush.msrb.mxu2 %v7632_v28  ;;  %v4554_v28 = vsel %vm4422_vm9, %v4423_v48, 0.0 }
 0x662   :  { %3091 = vrot.lane.b32.xlu1 %v10965_v41, %s8105_s26  ;;  %v3035_v24 = vrot.slane %v10965_v41, 1 }
 0x663   :  { %3318 = vmatpush.msrb.mxu2 %v7631_v63  ;;  %v2983_v63 = vrot.slane %v10937_v9, 7 }
 0x664   :  { %v3067_v0 = vsel %vm844_vm2, %v3035_v24, 0.0  ;;  %v2887_v23 = vpop.f32.mrf.mxu0 }
 0x665   :  { %3158 = vrot.lane.b32.xlu2 %v3067_v0, %s8107_s25  ;;  %3319 = vmatpush.msrb.mxu2 %v7630_v18  ;;  %v7676_v0 = vld [vmem:[%s14787_s6 + $0xd0] sm:$0xff] }
 0x667   :  { %v2937_v7 = vpop.f32.mrf.mxu1 }
 0x668   :  { %v10975_v35 = vadd.f32 %v2937_v7, %v2872_v13  ;;  %v7679_v13 = vld [vmem:[%s14787_s6 + $0xe8] sm:$0xff] }
 0x669   :  { %3460 = vmatpush.msrb.mxu0 %v7679_v13  ;;  %v3015_v13 = vsel %vm646_vm3, 0.0, %v2983_v63  ;;  %v5743_v63 = vld [vmem:[%s14790_s9 + $0x40] sm:$0xff] }
 0x66a   :  { %3093 = vrot.lane.b32.xlu0 %v10975_v35, %s8105_s26  ;;  %v3036_v4 = vrot.slane %v10975_v35, 1 }
 0x66b   :  { %3461 = vmatpush.msrb.mxu0 %v7678_v51 }
 0x66c   :  { %v3068_v57 = vsel %vm844_vm2, %v3036_v4, 0.0 }
 0x66d   :  { %3160 = vrot.lane.b32.xlu1 %v3068_v57, %s8107_s25  ;;  %3462 = vmatpush.msrb.mxu0 %v7677_v39  ;;  %v7674_v57 = vld [vmem:[%s14787_s6 + $0xc0] sm:$0xff]  ;;  %s8108_s6 = smov 48  }
 0x66f   :  { %v2940_v44 = vpop.f32.mrf.mxu1  ;;  %3463 = vmatpush.msrb.mxu0 %v7676_v0 }
 0x670   :  { %v10985_v19 = vadd.f32 %v2940_v44, %v2875_v5  ;;  %v2890_v44 = vpop.f32.mrf.mxu0 }
 0x671   :  { %3464 = vmatpush.msrb.mxu0 %v7675_v50 }
 0x672   :  { %v3037_v25 = vrot.slane %v10985_v19, 1  ;;  %3095 = vrot.lane.b32.xlu2 %v10985_v19, %s8105_s26 }
 0x673   :  { %3465 = vmatpush.msrb.mxu0 %v7674_v57 }
 0x674   :  { %v3069_v45 = vsel %vm844_vm2, %v3037_v25, 0.0 }
 0x675   :  { %3162 = vrot.lane.b32.xlu0 %v3069_v45, %s8107_s25 }
 0x677   :  { %v2943_v53 = vpop.f32.mrf.mxu1 }
 0x678   :  { %v11007_v54 = vadd.f32 %v2943_v53, %v2878_v8  ;;  %v2893_v61 = vpop.f32.mrf.mxu0 }
 0x67a   :  { %3097 = vrot.lane.b32.xlu1 %v11007_v54, %s8105_s26  ;;  %v3038_v34 = vrot.slane %v11007_v54, 1 }
 0x67c   :  { %v3070_v30 = vsel %vm844_vm2, %v3038_v34, 0.0 }
 0x67d   :  { %3164 = vrot.lane.b32.xlu2 %v3070_v30, %s8107_s25 }
 0x67f   :  { %v2946_v37 = vpop.f32.mrf.mxu1 }
 0x680   :  { %v11055_v26 = vadd.f32 %v2946_v37, %v2881_v38  ;;  %v2896_v30 = vpop.f32.mrf.mxu0 }
 0x682   :  { %3099 = vrot.lane.b32.xlu0 %v11055_v26, %s8105_s26  ;;  %v3039_v47 = vrot.slane %v11055_v26, 1 }
 0x684   :  { %v3071_v42 = vsel %vm844_vm2, %v3039_v47, 0.0 }
 0x685   :  { %3166 = vrot.lane.b32.xlu1 %v3071_v42, %s8107_s25  ;;  %v8093_v42 = vpack.i.bf16 %v4554_v28, %v4423_v48  ;;  %v2990_v48 = vrot.slane %v11007_v54, 7  ;;  %v2991_v54 = vrot.slane %v11055_v26, 7 }
 0x687   :  { %v2949_v11 = vpop.f32.mrf.mxu1  ;;  %v3023_v28 = vsel %vm646_vm3, 0.0, %v2991_v54 }
 0x688   :  { %v11091_v5 = vadd.f32 %v2949_v11, %v2884_v60  ;;  %v15254_v60 = vld [vmem:[#allocation68_spill] sm:$0xff] }
 0x689   :  { %v8083_v32 = vpack.i.bf16 %v15254_v60, %v15253_v43  ;;  %v8088_v43 = vpack.i.bf16 %v15250_v20, %v15256_v40 }
 0x68a   :  { %v3040_v24 = vrot.slane %v11091_v5, 1  ;;  %3101 = vrot.lane.b32.xlu2 %v11091_v5, %s8105_s26 }
 0x68c   :  { %v3072_v7 = vsel %vm844_vm2, %v3040_v24, 0.0 }
 0x68d   :  { %3168 = vrot.lane.b32.xlu0 %v3072_v7, %s8107_s25 }
 0x68f   :  { %v2952_v8 = vpop.f32.mrf.mxu1  ;;  %v3147_v17 = vpop.permute.xlu2 %3146 }
 0x690   :  { %v11107_v4 = vadd.f32 %v2952_v8, %v2887_v23  ;;  %v2984_v23 = vrot.slane %v10944_v6, 7  ;;  %v2985_v6 = vrot.slane %v10951_v52, 7 }
 0x692   :  { %3103 = vrot.lane.b32.xlu1 %v11107_v4, %s8105_s26  ;;  %v3041_v22 = vrot.slane %v11107_v4, 1  ;;  %v3016_v9 = vsel %vm646_vm3, 0.0, %v2984_v23  ;;  %v3017_v8 = vsel %vm646_vm3, 0.0, %v2985_v6  ;;  %v5741_v23 = vld [vmem:[%s14790_s9 + $0x30] sm:$0xff]  ;;  %v2993_v6 = vrot.slane %v11107_v4, 7  ;;  %v7705_v4 = vld [vmem:[%s14790_s9 + $0x68] sm:$0xff] }
 0x694   :  { %v3073_v25 = vsel %vm844_vm2, %v3041_v22, 0.0 }
 0x695   :  { %3170 = vrot.lane.b32.xlu2 %v3073_v25, %s8107_s25  ;;  %v2986_v25 = vrot.slane %v10958_v3, 7 }
 0x697   :  { %v2955_v46 = vpop.f32.mrf.mxu1  ;;  %v3018_v52 = vsel %vm646_vm3, 0.0, %v2986_v25  ;;  %v5738_v25 = vld [vmem:[%s14790_s9 + $0x18] sm:$0xff] }
 0x698   :  { %v11117_v38 = vadd.f32 %v2955_v46, %v2890_v44 }
 0x69a   :  { %3105 = vrot.lane.b32.xlu0 %v11117_v38, %s8105_s26  ;;  %v3042_v45 = vrot.slane %v11117_v38, 1 }
 0x69c   :  { %v3074_v29 = vsel %vm844_vm2, %v3042_v45, 0.0  ;;  %v3084_v20 = vpop.permute.xlu2 %3083 }
 0x69d   :  { %3172 = vrot.lane.b32.xlu1 %v3074_v29, %s8107_s25  ;;  %v3198_v18 = vsel %vm1502_vm6, %v3015_v13, %v3084_v20  ;;  %v7710_v20 = vld [vmem:[%s14790_s9 + $0x90] sm:$0xff]  ;;  %v2992_v13 = vrot.slane %v11091_v5, 7  ;;  %v7708_v5 = vld [vmem:[%s14790_s9 + $0x80] sm:$0xff] }
 0x69f   :  { %v2958_v59 = vpop.f32.mrf.mxu1 }
 0x6a0   :  { %v11124_v53 = vadd.f32 %v2958_v59, %v2893_v61  ;;  %v2987_v59 = vrot.slane %v10965_v41, 7  ;;  %v2988_v41 = vrot.slane %v10975_v35, 7 }
 0x6a2   :  { %v3043_v33 = vrot.slane %v11124_v53, 1  ;;  %3107 = vrot.lane.b32.xlu2 %v11124_v53, %s8105_s26  ;;  %v3019_v3 = vsel %vm646_vm3, 0.0, %v2987_v59  ;;  %v5737_v59 = vld [vmem:[%s14790_s9 + $0x10] sm:$0xff] }
 0x6a4   :  { %v3075_v36 = vsel %vm844_vm2, %v3043_v33, 0.0  ;;  %v3080_v10 = vpop.permute.xlu0 %3079 }
 0x6a5   :  { %3174 = vrot.lane.b32.xlu0 %v3075_v36, %s8107_s25  ;;  %v3196_v34 = vsel %vm1502_vm6, %v3013_v21, %v3080_v10 }
 0x6a6   :  { %v3214_v62 = vsel %vm3212_vm7, %v3196_v34, %v3147_v17  ;;  %v3020_v34 = vsel %vm646_vm3, 0.0, %v2988_v41 }
 0x6a7   :  { %v2961_v1 = vpop.f32.mrf.mxu1  ;;  %7642 = vmatmul.msk.f32.vlgmr.msrb.gmra.mxu2 %vm3255_vm8, %v3214_v62  ;;  %7659 = vmatmul.msk.f32.gmra.mxu3 %vm3255_vm8, %v3214_v62  ;;  %v3153_v0 = vpop.permute.xlu2 %3152 }
 0x6a8   :  { %v11137_v56 = vadd.f32 %v2961_v1, %v2896_v30  ;;  %v2989_v1 = vrot.slane %v10985_v19, 7  ;;  %v3022_v19 = vsel %vm646_vm3, 0.0, %v2990_v48  ;;  %v3905_v48 = vrot.slane %v15255_v12, 6 }
 0x6aa   :  { %3109 = vrot.lane.b32.xlu1 %v11137_v56, %s8105_s26  ;;  %v3044_v31 = vrot.slane %v11137_v56, 1  ;;  %v3021_v60 = vsel %vm646_vm3, 0.0, %v2989_v1 }
 0x6ac   :  { %v3082_v37 = vpop.permute.xlu0 %3081  ;;  %v3076_v55 = vsel %vm844_vm2, %v3044_v31, 0.0 }
 0x6ad   :  { %8084 = vrot.lane.b32.xlu0 %v8083_v32, %s8104_s21  ;;  %3176 = vrot.lane.b32.xlu2 %v3076_v55, %s8107_s25  ;;  %v3197_v58 = vsel %vm1502_vm6, %v3014_v49, %v3082_v37 }
 0x6af   :  { %v3149_v47 = vpop.permute.xlu1 %3148 }
 0x6b0   :  { %v3215_v16 = vsel %vm3212_vm7, %v3197_v58, %v3149_v47  ;;  %v5744_v58 = vld [vmem:[%s14790_s9 + $0x48] sm:$0xff]  ;;  %v7711_v47 = vld [vmem:[%s14790_s9 + $0x98] sm:$0xff] }
 0x6b1   :  { %7643 = vmatmul.msk.f32.gmra.mxu2 %vm3255_vm8, %v3215_v16  ;;  %7686 = vmatmul.msk.f32.vlgmr.msrb.gmra.mxu0 %vm3255_vm8, %v3215_v16 }
 0x6b2   :  { %8089 = vrot.lane.b32.xlu1 %v8088_v43, %s8108_s6  ;;  %7660 = vmatmul.msk.f32.gmra.mxu3 %vm3255_vm8, %v3215_v16 }
 0x6b3   :  { %6158 = vmatpush.msra.mxu3 %v5744_v58  ;;  %5949 = vmatpush.msra.mxu2 %v7711_v47 }
 0x6b4   :  { %v3090_v46 = vpop.permute.xlu2 %3089 }
 0x6b5   :  { %8094 = vrot.lane.b32.xlu2 %v8093_v42, %s8107_s25  ;;  %v3201_v45 = vsel %vm1502_vm6, %v3018_v52, %v3090_v46  ;;  %5950 = vmatpush.msra.mxu2 %v7710_v20  ;;  %v7704_v46 = vld [vmem:[%s14790_s9 + $0x60] sm:$0xff] }
 0x6b6   :  { %6159 = vmatpush.msra.mxu3 %v5743_v63 }
 0x6b7   :  { %v3151_v51 = vpop.permute.xlu0 %3150 }
 0x6b8   :  { %v3216_v11 = vsel %vm3212_vm7, %v3198_v18, %v3151_v51  ;;  %v5742_v18 = vld [vmem:[%s14790_s9 + $0x38] sm:$0xff]  ;;  %v7709_v51 = vld [vmem:[%s14790_s9 + $0x88] sm:$0xff] }
 0x6b9   :  { %7644 = vmatmul.msk.f32.gmra.mxu2 %vm3255_vm8, %v3216_v11  ;;  %7687 = vmatmul.msk.f32.gmra.mxu0 %vm3255_vm8, %v3216_v11 }
 0x6ba   :  { %7661 = vmatmul.msk.f32.gmra.mxu3 %vm3255_vm8, %v3216_v11  ;;  %5951 = vmatpush.msra.mxu2 %v7709_v51 }
 0x6bb   :  { %6160 = vmatpush.msra.mxu3 %v5742_v18 }
 0x6bc   :  { %v3086_v39 = vpop.permute.xlu1 %3085  ;;  %5952 = vmatpush.msra.mxu2 %v7708_v5 }
 0x6bd   :  { %v3199_v24 = vsel %vm1502_vm6, %v3016_v9, %v3086_v39  ;;  %v3024_v9 = vsel %vm646_vm3, 0.0, %v2992_v13  ;;  %v7707_v39 = vld [vmem:[%s14790_s9 + $0x78] sm:$0xff]  ;;  %6161 = vmatpush.msra.mxu3 %v5741_v23 }
 0x6be   :  { %v3217_v7 = vsel %vm3212_vm7, %v3199_v24, %v3153_v0  ;;  %5953 = vmatpush.msra.mxu2 %v7707_v39 }
 0x6bf   :  { %v3159_v36 = vpop.permute.xlu2 %3158 }
 0x6c1   :  { %7645 = vmatmul.msk.f32.gmra.mxu2 %vm3255_vm8, %v3217_v7  ;;  %7688 = vmatmul.msk.f32.gmra.mxu0 %vm3255_vm8, %v3217_v7 }
 0x6c2   :  { %7662 = vmatmul.msk.f32.gmra.mxu3 %vm3255_vm8, %v3217_v7 }
 0x6c4   :  { %v3088_v50 = vpop.permute.xlu0 %3087 }
 0x6c5   :  { %v3200_v57 = vsel %vm1502_vm6, %v3017_v8, %v3088_v50  ;;  %v5740_v50 = vld [vmem:[%s14790_s9 + $0x28] sm:$0xff]  ;;  %v7706_v8 = vld [vmem:[%s14790_s9 + $0x70] sm:$0xff] }
 0x6c6   :  { %5954 = vmatpush.msra.mxu2 %v7706_v8  ;;  %6162 = vmatpush.msra.mxu3 %v5740_v50 }
 0x6c7   :  { %v3155_v44 = vpop.permute.xlu1 %3154 }
 0x6c8   :  { %v3218_v22 = vsel %vm3212_vm7, %v3200_v57, %v3155_v44  ;;  %v5739_v57 = vld [vmem:[%s14790_s9 + $0x20] sm:$0xff]  ;;  %v3025_v44 = vsel %vm646_vm3, 0.0, %v2993_v6  ;;  %5955 = vmatpush.msra.mxu2 %v7705_v4 }
 0x6c9   :  { %7646 = vmatmul.msk.f32.gmra.mxu2 %vm3255_vm8, %v3218_v22  ;;  %7689 = vmatmul.msk.f32.gmra.mxu0 %vm3255_vm8, %v3218_v22 }
 0x6ca   :  { %7663 = vmatmul.msk.f32.gmra.mxu3 %vm3255_vm8, %v3218_v22  ;;  %5956 = vmatpush.msra.mxu2 %v7704_v46 }
 0x6cb   :  { %6163 = vmatpush.msra.mxu3 %v5739_v57 }
 0x6cc   :  { %v3096_v35 = vpop.permute.xlu2 %3095 }
 0x6cd   :  { %v3204_v32 = vsel %vm1502_vm6, %v3021_v60, %v3096_v35  ;;  %6164 = vmatpush.msra.mxu3 %v5738_v25 }
 0x6cf   :  { %v3157_v61 = vpop.permute.xlu0 %3156  ;;  %6165 = vmatpush.msra.mxu3 %v5737_v59 }
 0x6d0   :  { %v3219_v29 = vsel %vm3212_vm7, %v3201_v45, %v3157_v61  ;;  %v7703_v45 = vld [vmem:[%s14790_s9 + $0x58] sm:$0xff] }
 0x6d1   :  { %7647 = vmatmul.msk.f32.gmra.mxu2 %vm3255_vm8, %v3219_v29  ;;  %7690 = vmatmul.msk.f32.gmra.mxu0 %vm3255_vm8, %v3219_v29 }
 0x6d2   :  { %7664 = vmatmul.msk.f32.gmra.mxu3 %vm3255_vm8, %v3219_v29  ;;  %5957 = vmatpush.msra.mxu2 %v7703_v45 }
 0x6d4   :  { %v3092_v27 = vpop.permute.xlu1 %3091 }
 0x6d5   :  { %v3202_v33 = vsel %vm1502_vm6, %v3019_v3, %v3092_v27  ;;  %v7702_v3 = vld [vmem:[%s14790_s9 + $0x50] sm:$0xff]  ;;  %v2994_v27 = vrot.slane %v11117_v38, 7 }
 0x6d6   :  { %v3220_v10 = vsel %vm3212_vm7, %v3202_v33, %v3159_v36  ;;  %v5736_v33 = vld [vmem:[%s14790_s9 + $0x8] sm:$0xff]  ;;  %5958 = vmatpush.msra.mxu2 %v7702_v3 }
 0x6d7   :  { %v3165_v40 = vpop.permute.xlu2 %3164  ;;  %6166 = vmatpush.msra.mxu3 %v5736_v33  ;;  %v3026_v41 = vsel %vm646_vm3, 0.0, %v2994_v27 }
 0x6d9   :  { %7648 = vmatmul.msk.f32.gmra.mxu2 %vm3255_vm8, %v3220_v10  ;;  %7691 = vmatmul.msk.f32.gmra.mxu0 %vm3255_vm8, %v3220_v10 }
 0x6da   :  { %7665 = vmatmul.msk.f32.gmra.mxu3 %vm3255_vm8, %v3220_v10  ;;  %v5735_v10 = vld [vmem:[%s14790_s9] sm:$0xff] }
 0x6db   :  { %6167 = vmatpush.msra.mxu3 %v5735_v10 }
 0x6dc   :  { %v3094_v21 = vpop.permute.xlu0 %3093 }
 0x6dd   :  { %v3203_v17 = vsel %vm1502_vm6, %v3020_v34, %v3094_v21 }
 0x6df   :  { %v3161_v30 = vpop.permute.xlu1 %3160 }
 0x6e0   :  { %v3221_v62 = vsel %vm3212_vm7, %v3203_v17, %v3161_v30  ;;  %v2995_v30 = vrot.slane %v11124_v53, 7 }
 0x6e1   :  { %7649 = vmatmul.msk.f32.gmra.mxu2 %vm3255_vm8, %v3221_v62  ;;  %7692 = vmatmul.msk.f32.gmra.mxu0 %vm3255_vm8, %v3221_v62 }
 0x6e2   :  { %7666 = vmatmul.msk.f32.gmra.mxu3 %vm3255_vm8, %v11053_v2  ;;  %v3027_v62 = vsel %vm646_vm3, 0.0, %v2995_v30 }
 0x6e4   :  { %v3102_v11 = vpop.permute.xlu2 %3101 }
 0x6e5   :  { %v3207_v24 = vsel %vm1502_vm6, %v3024_v9, %v3102_v11 }
 0x6e7   :  { %v3163_v15 = vpop.permute.xlu0 %3162 }
 0x6e8   :  { %v3222_v31 = vsel %vm3212_vm7, %v3204_v32, %v3163_v15  ;;  %v2996_v32 = vrot.slane %v11137_v56, 7  ;;  %v4069_v56 = vsel %vm3904_vm10, 0.0, %v3905_v48 }
 0x6e9   :  { %7650 = vmatmul.msk.f32.gmra.mxu2 %vm3255_vm8, %v3222_v31  ;;  %7693 = vmatmul.msk.f32.gmra.mxu0 %vm3255_vm8, %v11053_v2 }
 0x6ea   :  { %7667 = vmatmul.msk.f32.gmra.mxu3 %vm3255_vm8, %v3222_v31  ;;  %v3028_v53 = vsel %vm646_vm3, 0.0, %v2996_v32 }
 0x6ec   :  { %v3098_v37 = vpop.permute.xlu1 %3097 }
 0x6ed   :  { %v3205_v55 = vsel %vm1502_vm6, %v3022_v19, %v3098_v37 }
 0x6ee   :  { %v3223_v43 = vsel %vm3212_vm7, %v3205_v55, %v3165_v40 }
 0x6ef   :  { %v3171_v61 = vpop.permute.xlu2 %3170 }
 0x6f1   :  { %7651 = vmatmul.msk.f32.gmra.mxu2 %vm3255_vm8, %v3223_v43  ;;  %7694 = vmatmul.msk.f32.gmra.mxu0 %vm3255_vm8, %v3223_v43 }
 0x6f2   :  { %7668 = vmatmul.msk.f32.gmra.mxu3 %vm3255_vm8, %v3223_v43 }
 0x6f4   :  { %v3100_v49 = vpop.permute.xlu0 %3099 }
 0x6f5   :  { %v3206_v16 = vsel %vm1502_vm6, %v3023_v28, %v3100_v49  ;;  %v11322_v49 = vpop.f32.mrf.mxu3 }
 0x6f7   :  { %v3167_v42 = vpop.permute.xlu1 %3166 }
 0x6f8   :  { %v3224_v26 = vsel %vm3212_vm7, %v3206_v16, %v3167_v42 }
 0x6f9   :  { %7652 = vmatmul.msk.f32.gmra.mxu2 %vm3255_vm8, %v3224_v26  ;;  %7695 = vmatmul.msk.f32.gmra.mxu0 %vm3255_vm8, %v3224_v26 }
 0x6fa   :  { %7669 = vmatmul.msk.f32.gmra.mxu3 %vm3255_vm8, %v3224_v26 }
 0x6fc   :  { %v3108_v17 = vpop.permute.xlu2 %3107 }
 0x6fd   :  { %v3210_v1 = vsel %vm1502_vm6, %v3027_v62, %v3108_v17 }
 0x6ff   :  { %v3169_v0 = vpop.permute.xlu0 %3168 }
 0x700   :  { %v3225_v7 = vsel %vm3212_vm7, %v3207_v24, %v3169_v0 }
 0x701   :  { %7653 = vmatmul.msk.f32.gmra.mxu2 %vm3255_vm8, %v3225_v7  ;;  %7696 = vmatmul.msk.f32.gmra.mxu0 %vm3255_vm8, %v3225_v7 }
 0x702   :  { %7670 = vmatmul.msk.f32.gmra.mxu3 %vm3255_vm8, %v3225_v7 }
 0x704   :  { %v3104_v22 = vpop.permute.xlu1 %3103 }
 0x705   :  { %v3208_v52 = vsel %vm1502_vm6, %v3025_v44, %v3104_v22 }
 0x706   :  { %v3226_v29 = vsel %vm3212_vm7, %v3208_v52, %v3171_v61 }
 0x707   :  { %v3177_v15 = vpop.permute.xlu2 %3176 }
 0x709   :  { %7654 = vmatmul.msk.f32.gmra.mxu2 %vm3255_vm8, %v3226_v29  ;;  %7697 = vmatmul.msk.f32.gmra.mxu0 %vm3255_vm8, %v3226_v29 }
 0x70a   :  { %7671 = vmatmul.msk.f32.gmra.mxu3 %vm3255_vm8, %v3226_v29 }
 0x70c   :  { %v3106_v36 = vpop.permute.xlu0 %3105 }
 0x70d   :  { %v3209_v21 = vsel %vm1502_vm6, %v3026_v41, %v3106_v36 }
 0x70f   :  { %v3173_v34 = vpop.permute.xlu1 %3172  ;;  %v8095_v43 = vpop.permute.xlu2 %8094 }
 0x710   :  { %v3227_v38 = vsel %vm3212_vm7, %v3209_v21, %v3173_v34  ;;  %v8096_v12 = vunpack.i.l.bf16 %v8095_v43  ;;  %v8097_v18 = vunpack.i.h.bf16 %v8095_v43 }
 0x711   :  { %7655 = vmatmul.msk.f32.gmra.mxu2 %vm3255_vm8, %v3227_v38  ;;  %7698 = vmatmul.msk.f32.gmra.mxu0 %vm3255_vm8, %v3227_v38 }
 0x712   :  { %7672 = vmatmul.msk.f32.gmra.mxu3 %vm3255_vm8, %v3227_v38 }
 0x717   :  { %v3175_v35 = vpop.permute.xlu0 %3174 }
 0x718   :  { %v3228_v60 = vsel %vm3212_vm7, %v3210_v1, %v3175_v35 }
 0x719   :  { %7656 = vmatmul.msk.f32.gmra.mxu2 %vm3255_vm8, %v3228_v60  ;;  %7699 = vmatmul.msk.f32.gmra.mxu0 %vm3255_vm8, %v3228_v60 }
 0x71a   :  { %7673 = vmatmul.msk.f32.gmra.mxu3 %vm3255_vm8, %v3228_v60 }
 0x71c   :  { %v3110_v31 = vpop.permute.xlu1 %3109 }
 0x71d   :  { %v3211_v19 = vsel %vm1502_vm6, %v3028_v53, %v3110_v31 }
 0x71e   :  { %v3229_v55 = vsel %vm3212_vm7, %v3211_v19, %v3177_v15 }
 0x71f   :  { %v8085_v37 = vpop.permute.xlu0 %8084 }
 0x720   :  { %v8086_v40 = vunpack.i.l.bf16 %v8085_v37  ;;  %v8087_v58 = vunpack.i.h.bf16 %v8085_v37 }
 0x721   :  { %7657 = vmatmul.msk.f32.gmra.mxu2 %vm3255_vm8, %v3229_v55  ;;  %7700 = vmatmul.msk.f32.gmra.mxu0 %vm3255_vm8, %v3229_v55 }
 0x722   :  { %v5471_v54 = vsel %vm1435_vm4, %v4069_v56, %v8086_v40  ;;  %v5472_v63 = vsel %vm1435_vm4, %v3905_v48, %v8087_v58  ;;  %v11390_v58 = vld [vmem:[%s14789_s7] ss:$0 sm:$0xff] }
 0x723   :  { %v5537_v16 = vsel %vm1502_vm6, %v5471_v54, %v11041_v14  ;;  %v5538_v13 = vsel %vm1502_vm6, %v5472_v63, %v11041_v14 }
 0x724   :  { %v8090_v28 = vpop.permute.xlu1 %8089 }
 0x725   :  { %v8091_v47 = vunpack.i.l.bf16 %v8090_v28  ;;  %v8092_v20 = vunpack.i.h.bf16 %v8090_v28 }
 0x727   :  { %v5603_v42 = vsel %vm1582_vm5, %v5537_v16, %v8091_v47  ;;  %v5604_v11 = vsel %vm1582_vm5, %v5538_v13, %v8092_v20 }
 0x728   :  { %v11328_v26 = vsel %vm3212_vm7, %v5603_v42, %v8096_v12 }
 0x729   :  { %7701 = vmatmul.msk.f32.gmra.mxu0 %vm3255_vm8, %v11053_v2  ;;  %7776 = vmatmul.msk.f32.vlgmr.msra.gmra.mxu3 %vm5756_vm11, %v11328_v26  ;;  %v11347_v2 = vsel %vm3212_vm7, %v5604_v11, %v8097_v18 }
 0x72a   :  { %7712 = vmatmul.msk.f32.vlgmr.msra.gmra.mxu2 %vm5756_vm11, %v11328_v26  ;;  %v11339_v51 = vpop.f32.mrf.mxu2  ;;  %v11342_v23 = vpop.f32.mrf.mxu3 }
 0x72e   :  { %v11344_v5 = vpop.f32.mrf.mxu0 }
 0x731   :  { %7777 = vmatmul.msk.f32.gmra.mxu3 %vm5756_vm11, %v11347_v2 }
 0x732   :  { %7713 = vmatmul.msk.f32.gmra.mxu2 %vm5756_vm11, %v11347_v2 }
 0x734   :  { %v11353_v9 = vpop.f32.mrf.mxu2 }
 0x735   :  { %v11355_v14 = vpop.f32.mrf.mxu3 }
 0x736   :  { %v11357_v39 = vpop.f32.mrf.mxu0 }
 0x739   :  { %7778 = vmatmul.msk.f32.gmra.mxu3 %vm5756_vm11, %v11328_v26 }
 0x73c   :  { %v11361_v24 = vpop.f32.mrf.mxu2 }
 0x73d   :  { %v11363_v0 = vpop.f32.mrf.mxu3 }
 0x73e   :  { %v11365_v7 = vpop.f32.mrf.mxu0 }
 0x741   :  { %7779 = vmatmul.msk.f32.gmra.mxu3 %vm5756_vm11, %v11347_v2 }
 0x744   :  { %v11369_v6 = vpop.f32.mrf.mxu2 }
 0x745   :  { %v11371_v50 = vpop.f32.mrf.mxu3 }
 0x746   :  { %v11373_v8 = vpop.f32.mrf.mxu0 }
 0x74c   :  { %v11375_v57 = vpop.f32.mrf.mxu2 }
 0x74d   :  { %v11377_v4 = vpop.f32.mrf.mxu3 }
 0x74e   :  { %v11379_v44 = vpop.f32.mrf.mxu0 }
 0x754   :  { %v11381_v22 = vpop.f32.mrf.mxu2 }
 0x755   :  { %v3407_v25 = vpop.f32.mrf.mxu3 }
 0x756   :  { %v11383_v46 = vpop.f32.mrf.mxu0 }
 0x75c   :  { %v3339_v52 = vpop.f32.mrf.mxu2 }
 0x75d   :  { %v3410_v45 = vpop.f32.mrf.mxu3 }
 0x75e   :  { %v11385_v61 = vpop.f32.mrf.mxu0 }
 0x764   :  { %v3342_v29 = vpop.f32.mrf.mxu2 }
 0x765   :  { %v3413_v59 = vpop.f32.mrf.mxu3 }
 0x766   :  { %v3488_v3 = vpop.f32.mrf.mxu0 }
 0x76c   :  { %v3345_v27 = vpop.f32.mrf.mxu2 }
 0x76d   :  { %v3416_v33 = vpop.f32.mrf.mxu3 }
 0x76e   :  { %v3491_v36 = vpop.f32.mrf.mxu0 }
 0x774   :  { %v3348_v10 = vpop.f32.mrf.mxu2 }
 0x775   :  { %v3419_v41 = vpop.f32.mrf.mxu3  ;;  %v3417_v11 = vadd.f32 %v3416_v33, %v3348_v10 }
 0x776   :  { %v3494_v21 = vpop.f32.mrf.mxu0 }
 0x77c   :  { %v3351_v34 = vpop.f32.mrf.mxu2 }
 0x77d   :  { %v3422_v38 = vpop.f32.mrf.mxu3  ;;  %v3420_v63 = vadd.f32 %v3419_v41, %v3351_v34 }
 0x77e   :  { %v3497_v17 = vpop.f32.mrf.mxu0 }
 0x784   :  { %v3354_v30 = vpop.f32.mrf.mxu2 }
 0x785   :  { %v3425_v1 = vpop.f32.mrf.mxu3  ;;  %v3423_v47 = vadd.f32 %v3422_v38, %v3354_v30  ;;  %v3411_v38 = vadd.f32 %v3410_v45, %v3342_v29  ;;  %v3524_v30 = vadd.f32 %v3494_v21, %v3417_v11  ;;  %v3402_v45 = vadd.f32 %v11371_v50, %v11375_v57  ;;  %v3576_v11 = vld [vmem:[%s14791_s8 + $0x50] sm:$0xff] }
 0x786   :  { %v3500_v62 = vpop.f32.mrf.mxu0 }
 0x787   :  { %v3519_v50 = vadd.f32 %v11379_v44, %v3402_v45 }
 0x78c   :  { %v3357_v35 = vpop.f32.mrf.mxu2 }
 0x78d   :  { %v3428_v32 = vpop.f32.mrf.mxu3  ;;  %v3426_v43 = vadd.f32 %v3425_v1, %v3357_v35 }
 0x78e   :  { %v3503_v60 = vpop.f32.mrf.mxu0 }
 0x78f   :  { %v3527_v20 = vadd.f32 %v3503_v60, %v3426_v43  ;;  %v3408_v60 = vadd.f32 %v3407_v25, %v3339_v52 }
 0x791   :  { %v3521_v29 = vadd.f32 %v11385_v61, %v3408_v60 }
 0x793   :  { %v3540_v57 = vadd.f32 %v11390_v58, %v3521_v29  ;;  %v3584_v29 = vld [vmem:[%s14791_s8 + $0x90] sm:$0xff] }
 0x794   :  { %v3360_v15 = vpop.f32.mrf.mxu2 }
 0x795   :  { %v3431_v31 = vpop.f32.mrf.mxu3  ;;  %v3429_v55 = vadd.f32 %v3428_v32, %v3360_v15  ;;  %v3526_v32 = vadd.f32 %v3500_v62, %v3423_v47  ;;  %v3414_v15 = vadd.f32 %v3413_v59, %v3345_v27  ;;  %v3405_v59 = vadd.f32 %v11377_v4, %v11381_v22  ;;  %v3569_v47 = vld [vmem:[%s14791_s8 + $0x18] sm:$0xff] }
 0x796   :  { %v3506_v53 = vpop.f32.mrf.mxu0  ;;  %v3522_v27 = vadd.f32 %v3488_v3, %v3411_v38  ;;  %v3396_v3 = vadd.f32 %v11355_v14, %v11361_v24  ;;  %v3556_v14 = vmax.f32 %v3540_v57, 0.0  ;;  %v3390_v24 = vadd.f32 %v11322_v49, %v11339_v51 }
 0x797   :  { %v3528_v16 = vadd.f32 %v3506_v53, %v3429_v55  ;;  %v3545_v41 = vadd.f32 %v11390_v58, %v3526_v32  ;;  %v3523_v53 = vadd.f32 %v3491_v36, %v3414_v15  ;;  %v3399_v36 = vadd.f32 %v11363_v0, %v11369_v6  ;;  %v3577_v32 = vld [vmem:[%s14791_s8 + $0x58] sm:$0xff]  ;;  %v3580_v15 = vld [vmem:[%s14791_s8 + $0x70] sm:$0xff] }
 0x798   :  { %v3520_v21 = vadd.f32 %v11383_v46, %v3405_v59  ;;  %v3541_v4 = vadd.f32 %v11390_v58, %v3522_v27  ;;  %v3517_v55 = vadd.f32 %v11365_v7, %v3396_v3 }
 0x799   :  { %v3547_v1 = vadd.f32 %v11390_v58, %v3528_v16  ;;  %v3561_v62 = vmax.f32 %v3545_v41, 0.0  ;;  %v3542_v25 = vadd.f32 %v11390_v58, %v3523_v53  ;;  %v3518_v0 = vadd.f32 %v11373_v8, %v3399_v36  ;;  %v3570_v16 = vld [vmem:[%s14791_s8 + $0x20] sm:$0xff] }
 0x79a   :  { %v3539_v6 = vadd.f32 %v11390_v58, %v3520_v21  ;;  %v3557_v46 = vmax.f32 %v3541_v4, 0.0  ;;  %v3536_v8 = vadd.f32 %v11390_v58, %v3517_v55 }
 0x79b   :  { %v3563_v34 = vmax.f32 %v3547_v1, 0.0  ;;  %v3558_v61 = vmax.f32 %v3542_v25, 0.0  ;;  %v3578_v1 = vld [vmem:[%s14791_s8 + $0x60] sm:$0xff] }
 0x79c   :  { %v3363_v48 = vpop.f32.mrf.mxu2  ;;  %v3552_v49 = vmax.f32 %v3536_v8, 0.0 }
 0x79d   :  { %v3432_v37 = vadd.f32 %v3431_v31, %v3363_v48  ;;  %v3434_v40 = vpop.f32.mrf.mxu3  ;;  %v3525_v31 = vadd.f32 %v3497_v17, %v3420_v63  ;;  %v3546_v48 = vadd.f32 %v11390_v58, %v3527_v20  ;;  %v3543_v17 = vadd.f32 %v11390_v58, %v3524_v30  ;;  %v3572_v63 = vld [vmem:[%s14791_s8 + $0x30] sm:$0xff]  ;;  %v3573_v20 = vld [vmem:[%s14791_s8 + $0x38] sm:$0xff] }
 0x79e   :  { %v3509_v19 = vpop.f32.mrf.mxu0 }
 0x79f   :  { %v3529_v54 = vadd.f32 %v3509_v19, %v3432_v37  ;;  %v3544_v33 = vadd.f32 %v11390_v58, %v3525_v31  ;;  %v3562_v10 = vmax.f32 %v3546_v48, 0.0  ;;  %v3559_v22 = vmax.f32 %v3543_v17, 0.0  ;;  %v3581_v31 = vld [vmem:[%s14791_s8 + $0x78] sm:$0xff] }
 0x7a0   :  { %v3393_v37 = vadd.f32 %v11342_v23, %v11353_v9  ;;  %v3555_v23 = vmax.f32 %v3539_v6, 0.0  ;;  %v3515_v9 = vadd.f32 %v11344_v5, %v3390_v24  ;;  %v3566_v5 = vld [vmem:[%s14791_s8] sm:$0xff] }
 0x7a1   :  { %v3548_v13 = vadd.f32 %v11390_v58, %v3529_v54  ;;  %v3560_v52 = vmax.f32 %v3544_v33, 0.0  ;;  %v3586_v6 = vld [vmem:[%s14791_s8 + $0xa0] sm:$0xff] }
 0x7a2   :  { %v3516_v44 = vadd.f32 %v11357_v39, %v3393_v37 }
 0x7a3   :  { %v3564_v19 = vmax.f32 %v3548_v13, 0.0  ;;  %v3574_v13 = vld [vmem:[%s14791_s8 + $0x40] sm:$0xff] }
 0x7a4   :  { %v3366_v56 = vpop.f32.mrf.mxu2  ;;  %v3535_v7 = vadd.f32 %v11390_v58, %v3516_v44 }
 0x7a5   :  { %v3435_v28 = vadd.f32 %v3434_v40, %v3366_v56  ;;  %v3538_v56 = vadd.f32 %v11390_v58, %v3519_v50  ;;  %v3537_v40 = vadd.f32 %v11390_v58, %v3518_v0 }
 0x7a6   :  { %v3512_v12 = vpop.f32.mrf.mxu0  ;;  %v3551_v51 = vmax.f32 %v3535_v7, 0.0 }
 0x7a7   :  { %v3530_v42 = vadd.f32 %v3512_v12, %v3435_v28  ;;  %v3554_v43 = vmax.f32 %v3538_v56, 0.0  ;;  %v3553_v54 = vmax.f32 %v3537_v40, 0.0  ;;  %v3534_v28 = vadd.f32 %v11390_v58, %v3515_v9  ;;  %v3567_v12 = vld [vmem:[%s14791_s8 + $0x8] sm:$0xff] }
 0x7a8   :  { %v3587_v40 = vld [vmem:[%s14791_s8 + $0xa8] sm:$0xff] }
 0x7a9   :  { %v3549_v18 = vadd.f32 %v11390_v58, %v3530_v42  ;;  %v3550_v39 = vmax.f32 %v3534_v28, 0.0  ;;  %v3568_v58 = vld [vmem:[%s14791_s8 + $0x10] sm:$0xff]  ;;  %v3571_v42 = vld [vmem:[%s14791_s8 + $0x28] sm:$0xff] }
 0x7ab   :  { %v3565_v35 = vmax.f32 %v3549_v18, 0.0  ;;  %v3575_v18 = vld [vmem:[%s14791_s8 + $0x48] sm:$0xff] }
 0x7ad   :  { %3630 = vmatpush.msra.mxu1 %v3565_v35  ;;  %v3579_v35 = vld [vmem:[%s14791_s8 + $0x68] sm:$0xff] }
 0x7af   :  { %3631 = vmatpush.msra.mxu1 %v3564_v19  ;;  %v3582_v19 = vld [vmem:[%s14791_s8 + $0x80] sm:$0xff] }
 0x7b1   :  { %3632 = vmatpush.msra.mxu1 %v3563_v34  ;;  %v3583_v34 = vld [vmem:[%s14791_s8 + $0x88] sm:$0xff] }
 0x7b3   :  { %3633 = vmatpush.msra.mxu1 %v3562_v10 }
 0x7b5   :  { %3634 = vmatpush.msra.mxu1 %v3561_v62 }
 0x7b7   :  { %3635 = vmatpush.msra.mxu1 %v3560_v52 }
 0x7b9   :  { %3636 = vmatpush.msra.mxu1 %v3559_v22  ;;  %v3585_v22 = vld [vmem:[%s14791_s8 + $0x98] sm:$0xff] }
 0x7bb   :  { %3637 = vmatpush.msra.mxu1 %v3558_v61 }
 0x7bd   :  { %3638 = vmatpush.msra.mxu1 %v3557_v46 }
 0x7bf   :  { %3639 = vmatpush.msra.mxu1 %v3556_v14 }
 0x7c1   :  { %3640 = vmatpush.msra.mxu1 %v3555_v23 }
 0x7c3   :  { %3641 = vmatpush.msra.mxu1 %v3554_v43 }
 0x7c5   :  { %3642 = vmatpush.msra.mxu1 %v3553_v54  ;;  %v3588_v54 = vld [vmem:[%s14791_s8 + $0xb0] sm:$0xff] }
 0x7c7   :  { %3643 = vmatpush.msra.mxu1 %v3552_v49 }
 0x7c9   :  { %3644 = vmatpush.msra.mxu1 %v3551_v51 }
 0x7cb   :  { %3645 = vmatpush.msra.mxu1 %v3550_v39 }
 0x7cc   :  { %3646 = vmatmul.f32.vlgmr.msra.gmra.mxu1 %v3566_v5 }
 0x7d4   :  { %3649 = vmatmul.f32.gmra.mxu1 %v3567_v12 }
 0x7dc   :  { %3652 = vmatmul.f32.gmra.mxu1 %v3568_v58  ;;  %v3589_v58 = vld [vmem:[%s14791_s8 + $0xb8] sm:$0xff] }
 0x7e4   :  { %3655 = vmatmul.f32.gmra.mxu1 %v3569_v47 }
 0x7ec   :  { %3658 = vmatmul.f32.gmra.mxu1 %v3570_v16 }
 0x7f4   :  { %3661 = vmatmul.f32.gmra.mxu1 %v3571_v42 }
 0x7fc   :  { %3664 = vmatmul.f32.gmra.mxu1 %v3572_v63 }
 0x804   :  { %3667 = vmatmul.f32.gmra.mxu1 %v3573_v20 }
 0x80c   :  { %3670 = vmatmul.f32.gmra.mxu1 %v3574_v13  ;;  %v3590_v13 = vld [vmem:[%s14791_s8 + $0xc0] sm:$0xff] }
 0x814   :  { %3673 = vmatmul.f32.gmra.mxu1 %v3575_v18 }
 0x81c   :  { %3676 = vmatmul.f32.gmra.mxu1 %v3576_v11 }
 0x824   :  { %3679 = vmatmul.f32.gmra.mxu1 %v3577_v32 }
 0x82c   :  { %3682 = vmatmul.f32.gmra.mxu1 %v3578_v1 }
 0x834   :  { %3685 = vmatmul.f32.gmra.mxu1 %v3579_v35 }
 0x83c   :  { %3688 = vmatmul.f32.gmra.mxu1 %v3580_v15  ;;  %v3591_v15 = vld [vmem:[%s14791_s8 + $0xc8] sm:$0xff] }
 0x844   :  { %3691 = vmatmul.f32.gmra.mxu1 %v3581_v31 }
 0x849   :  { %v11475_v48 = vpop.f32.mrf.mxu1 }
 0x84a   :  { %4818 = vrot.lane.b32.xlu1 %v11475_v48, %s8105_s26  ;;  %v4102_v38 = vrot.slane %v11475_v48, 7  ;;  %v4425_v60 = vrot.slane %v11475_v48, 2  ;;  %v4262_v17 = vrot.slane %v11475_v48, 1 }
 0x84c   :  { %3694 = vmatmul.f32.gmra.mxu1 %v3582_v19  ;;  %v4230_v30 = vsel %vm646_vm3, 0.0, %v4102_v38 }
 0x84d   :  { %4624 = vrot.lane.b32.xlu0 %v4230_v30, %s8104_s21 }
 0x851   :  { %v11485_v41 = vpop.f32.mrf.mxu1 }
 0x852   :  { %4820 = vrot.lane.b32.xlu2 %v11485_v41, %s8105_s26  ;;  %v4426_v53 = vrot.slane %v11485_v41, 2  ;;  %v4103_v33 = vrot.slane %v11485_v41, 7  ;;  %v4263_v27 = vrot.slane %v11485_v41, 1 }
 0x854   :  { %3697 = vmatmul.f32.gmra.mxu1 %v3583_v34  ;;  %v4427_v10 = vsel %vm4422_vm9, %v4425_v60, %v4426_v53  ;;  %v4104_v59 = vsel %vm646_vm3, %v4102_v38, %v4103_v33  ;;  %v4264_v45 = vsel %vm844_vm2, %v4262_v17, %v4263_v27  ;;  %v4390_v52 = vsel %vm844_vm2, %v4263_v27, 0.0  ;;  %v7849_v34 = vld [vmem:[%s14790_s9 + $0xe8] sm:$0xff]  ;;  %v7848_v60 = vld [vmem:[%s14790_s9 + $0xe0] sm:$0xff]  ;;  %v7846_v27 = vld [vmem:[%s14790_s9 + $0xd0] sm:$0xff] }
 0x855   :  { %5277 = vrot.lane.b32.xlu0 %v4427_v10, %s8107_s25  ;;  %4626 = vrot.lane.b32.xlu1 %v4104_v59, %s8104_s21  ;;  %v4555_v36 = vsel %vm4422_vm9, %v4426_v53, 0.0  ;;  %v3592_v10 = vld [vmem:[%s14791_s8 + $0xd0] sm:$0xff]  ;;  %v7847_v59 = vld [vmem:[%s14790_s9 + $0xd8] sm:$0xff] }
 0x856   :  { %6390 = vmatpush.msra.mxu0 %v7849_v34  ;;  %v3597_v34 = vld [vmem:[%s14791_s8 + $0xf8] sm:$0xff] }
 0x858   :  { %6391 = vmatpush.msra.mxu0 %v7848_v60 }
 0x859   :  { %v11501_v62 = vpop.f32.mrf.mxu1 }
 0x85a   :  { %5046 = vrot.lane.b32.xlu2 %v4264_v45, %s8108_s6  ;;  %v4105_v25 = vrot.slane %v11501_v62, 7  ;;  %v4428_v50 = vrot.slane %v11501_v62, 2  ;;  %v4265_v46 = vrot.slane %v11501_v62, 1  ;;  %6392 = vmatpush.msra.mxu0 %v7847_v59 }
 0x85c   :  { %3700 = vmatmul.f32.gmra.mxu1 %v3584_v29  ;;  %v4231_v21 = vsel %vm646_vm3, 0.0, %v4105_v25  ;;  %6393 = vmatpush.msra.mxu0 %v7846_v27 }
 0x85d   :  { %5048 = vrot.lane.b32.xlu0 %v4390_v52, %s8108_s6  ;;  %5279 = vrot.lane.b32.xlu1 %v4555_v36, %s8107_s25  ;;  %v7844_v36 = vld [vmem:[%s14790_s9 + $0xc0] sm:$0xff] }
 0x861   :  { %v11514_v4 = vpop.f32.mrf.mxu1 }
 0x862   :  { %4628 = vrot.lane.b32.xlu2 %v4231_v21, %s8104_s21  ;;  %v4429_v3 = vrot.slane %v11514_v4, 2  ;;  %v4266_v57 = vrot.slane %v11514_v4, 1  ;;  %v4106_v61 = vrot.slane %v11514_v4, 7 }
 0x864   :  { %3703 = vmatmul.f32.gmra.mxu1 %v3585_v22  ;;  %v4430_v0 = vsel %vm4422_vm9, %v4428_v50, %v4429_v3  ;;  %v4267_v55 = vsel %vm844_vm2, %v4265_v46, %v4266_v57  ;;  %v4107_v56 = vsel %vm646_vm3, %v4105_v25, %v4106_v61  ;;  %v4391_v44 = vsel %vm844_vm2, %v4266_v57, 0.0  ;;  %v7845_v25 = vld [vmem:[%s14790_s9 + $0xc8] sm:$0xff]  ;;  %v3593_v22 = vld [vmem:[%s14791_s8 + $0xd8] sm:$0xff]  ;;  %v7842_v50 = vld [vmem:[%s14790_s9 + $0xb0] sm:$0xff] }
 0x865   :  { %4822 = vrot.lane.b32.xlu0 %v11501_v62, %s8105_s26  ;;  %4824 = vrot.lane.b32.xlu1 %v11514_v4, %s8105_s26  ;;  %v4556_v9 = vsel %vm4422_vm9, %v4429_v3, 0.0  ;;  %v7843_v3 = vld [vmem:[%s14790_s9 + $0xb8] sm:$0xff] }
 0x866   :  { %6394 = vmatpush.msra.mxu0 %v7845_v25  ;;  %v3908_v25 = vrot.slane %v11485_v41, 6 }
 0x868   :  { %6395 = vmatpush.msra.mxu0 %v7844_v36 }
 0x869   :  { %v11528_v37 = vpop.f32.mrf.mxu1 }
 0x86a   :  { %5281 = vrot.lane.b32.xlu2 %v4430_v0, %s8107_s25  ;;  %v4108_v14 = vrot.slane %v11528_v37, 7  ;;  %v4431_v8 = vrot.slane %v11528_v37, 2  ;;  %v4268_v39 = vrot.slane %v11528_v37, 1  ;;  %6396 = vmatpush.msra.mxu0 %v7843_v3  ;;  %v7841_v0 = vld [vmem:[%s14790_s9 + $0xa8] sm:$0xff]  ;;  %v3598_v3 = vld [vmem:[%s14791_s8 + $0x100] sm:$0xff] }
 0x86c   :  { %3706 = vmatmul.f32.gmra.mxu1 %v3586_v6  ;;  %v4232_v23 = vsel %vm646_vm3, 0.0, %v4108_v14  ;;  %6397 = vmatpush.msra.mxu0 %v7842_v50 }
 0x86d   :  { %5050 = vrot.lane.b32.xlu1 %v4267_v55, %s8108_s6  ;;  %4630 = vrot.lane.b32.xlu0 %v4107_v56, %s8104_s21  ;;  %v7840_v56 = vld [vmem:[%s14790_s9 + $0xa0] sm:$0xff] }
 0x86e   :  { %6398 = vmatpush.msra.mxu0 %v7841_v0 }
 0x870   :  { %6399 = vmatpush.msra.mxu0 %v7840_v56 }
 0x871   :  { %v11541_v24 = vpop.f32.mrf.mxu1 }
 0x872   :  { %5052 = vrot.lane.b32.xlu2 %v4391_v44, %s8108_s6  ;;  %v4432_v43 = vrot.slane %v11541_v24, 2  ;;  %v4109_v49 = vrot.slane %v11541_v24, 7  ;;  %v4269_v51 = vrot.slane %v11541_v24, 1 }
 0x874   :  { %3709 = vmatmul.f32.gmra.mxu1 %v3587_v40  ;;  %v4433_v28 = vsel %vm4422_vm9, %v4431_v8, %v4432_v43  ;;  %v4110_v12 = vsel %vm646_vm3, %v4108_v14, %v4109_v49  ;;  %v4392_v47 = vsel %vm844_vm2, %v4269_v51, 0.0  ;;  %v4270_v16 = vsel %vm844_vm2, %v4268_v39, %v4269_v51  ;;  %v3594_v40 = vld [vmem:[%s14791_s8 + $0xe0] sm:$0xff]  ;;  %v3595_v49 = vld [vmem:[%s14791_s8 + $0xe8] sm:$0xff] }
 0x875   :  { %5283 = vrot.lane.b32.xlu0 %v4556_v9, %s8107_s25  ;;  %4632 = vrot.lane.b32.xlu1 %v4232_v23, %s8104_s21  ;;  %v4557_v20 = vsel %vm4422_vm9, %v4432_v43, 0.0 }
 0x879   :  { %v11554_v7 = vpop.f32.mrf.mxu1 }
 0x87a   :  { %4826 = vrot.lane.b32.xlu2 %v11528_v37, %s8105_s26  ;;  %v4111_v42 = vrot.slane %v11554_v7, 7  ;;  %v4434_v11 = vrot.slane %v11554_v7, 2  ;;  %v4271_v38 = vrot.slane %v11554_v7, 1 }
 0x87c   :  { %3712 = vmatmul.f32.gmra.mxu1 %v3588_v54  ;;  %v4233_v18 = vsel %vm646_vm3, 0.0, %v4111_v42 }
 0x87d   :  { %4828 = vrot.lane.b32.xlu0 %v11541_v24, %s8105_s26  ;;  %5285 = vrot.lane.b32.xlu1 %v4433_v28, %s8107_s25 }
 0x881   :  { %v11568_v5 = vpop.f32.mrf.mxu1 }
 0x882   :  { %4634 = vrot.lane.b32.xlu2 %v4110_v12, %s8104_s21  ;;  %v4435_v32 = vrot.slane %v11568_v5, 2  ;;  %v4112_v1 = vrot.slane %v11568_v5, 7  ;;  %v4272_v30 = vrot.slane %v11568_v5, 1 }
 0x884   :  { %3715 = vmatmul.f32.gmra.mxu1 %v3589_v58  ;;  %v4436_v31 = vsel %vm4422_vm9, %v4434_v11, %v4435_v32  ;;  %v4113_v19 = vsel %vm646_vm3, %v4111_v42, %v4112_v1  ;;  %v4273_v33 = vsel %vm844_vm2, %v4271_v38, %v4272_v30  ;;  %v4393_v45 = vsel %vm844_vm2, %v4272_v30, 0.0  ;;  %v3596_v42 = vld [vmem:[%s14791_s8 + $0xf0] sm:$0xff] }
 0x885   :  { %5056 = vrot.lane.b32.xlu1 %v4392_v47, %s8108_s6  ;;  %5054 = vrot.lane.b32.xlu0 %v4270_v16, %s8108_s6  ;;  %v4558_v29 = vsel %vm4422_vm9, %v4435_v32, 0.0 }
 0x889   :  { %v11580_v63 = vpop.f32.mrf.mxu1 }
 0x88a   :  { %5287 = vrot.lane.b32.xlu2 %v4557_v20, %s8107_s25  ;;  %v4114_v17 = vrot.slane %v11580_v63, 7  ;;  %v4437_v57 = vrot.slane %v11580_v63, 2  ;;  %v4274_v6 = vrot.slane %v11580_v63, 1 }
 0x88c   :  { %3718 = vmatmul.f32.gmra.mxu1 %v3590_v13  ;;  %v4234_v52 = vsel %vm646_vm3, 0.0, %v4114_v17 }
 0x88d   :  { %4830 = vrot.lane.b32.xlu1 %v11554_v7, %s8105_s26  ;;  %4636 = vrot.lane.b32.xlu0 %v4233_v18, %s8104_s21  ;;  %v3907_v18 = vrot.slane %v11475_v48, 6 }
 0x88f   :  { %v3909_v41 = vsel %vm3904_vm10, %v3907_v18, %v3908_v25 }
 0x891   :  { %v11594_v35 = vpop.f32.mrf.mxu1 }
 0x892   :  { %4832 = vrot.lane.b32.xlu2 %v11568_v5, %s8105_s26  ;;  %v4438_v61 = vrot.slane %v11594_v35, 2  ;;  %v4275_v46 = vrot.slane %v11594_v35, 1  ;;  %v4115_v55 = vrot.slane %v11594_v35, 7 }
 0x894   :  { %3721 = vmatmul.f32.gmra.mxu1 %v3591_v15  ;;  %v4439_v44 = vsel %vm4422_vm9, %v4437_v57, %v4438_v61  ;;  %v4276_v9 = vsel %vm844_vm2, %v4274_v6, %v4275_v46  ;;  %v4116_v8 = vsel %vm646_vm3, %v4114_v17, %v4115_v55  ;;  %v4394_v28 = vsel %vm844_vm2, %v4275_v46, 0.0 }
 0x895   :  { %5289 = vrot.lane.b32.xlu0 %v4436_v31, %s8107_s25  ;;  %4638 = vrot.lane.b32.xlu1 %v4113_v19, %s8104_s21  ;;  %v4559_v12 = vsel %vm4422_vm9, %v4438_v61, 0.0  ;;  %v4070_v15 = vsel %vm3904_vm10, 0.0, %v3907_v18  ;;  %v3910_v18 = vrot.slane %v11501_v62, 6 }
 0x899   :  { %v11613_v53 = vpop.f32.mrf.mxu1 }
 0x89a   :  { %5058 = vrot.lane.b32.xlu2 %v4273_v33, %s8108_s6  ;;  %v4117_v43 = vrot.slane %v11613_v53, 7  ;;  %v4440_v58 = vrot.slane %v11613_v53, 2  ;;  %v4277_v19 = vrot.slane %v11613_v53, 1 }
 0x89c   :  { %3724 = vmatmul.f32.gmra.mxu1 %v3592_v10  ;;  %v4235_v51 = vsel %vm646_vm3, 0.0, %v4117_v43 }
 0x89d   :  { %5060 = vrot.lane.b32.xlu0 %v4393_v45, %s8108_s6  ;;  %5291 = vrot.lane.b32.xlu1 %v4558_v29, %s8107_s25 }
 0x8a1   :  { %v11638_v21 = vpop.f32.mrf.mxu1 }
 0x8a2   :  { %4640 = vrot.lane.b32.xlu2 %v4234_v52, %s8104_s21  ;;  %v4441_v47 = vrot.slane %v11638_v21, 2  ;;  %v4118_v11 = vrot.slane %v11638_v21, 7  ;;  %v4278_v31 = vrot.slane %v11638_v21, 1 }
 0x8a4   :  { %3727 = vmatmul.f32.gmra.mxu1 %v3593_v22  ;;  %v4442_v13 = vsel %vm4422_vm9, %v4440_v58, %v4441_v47  ;;  %v4119_v48 = vsel %vm646_vm3, %v4117_v43, %v4118_v11  ;;  %v4395_v10 = vsel %vm844_vm2, %v4278_v31, 0.0  ;;  %v4279_v59 = vsel %vm844_vm2, %v4277_v19, %v4278_v31  ;;  %v3599_v43 = vld [vmem:[%s14791_s8 + $0x108] sm:$0xff] }
 0x8a5   :  { %4834 = vrot.lane.b32.xlu0 %v11580_v63, %s8105_s26  ;;  %4836 = vrot.lane.b32.xlu1 %v11594_v35, %s8105_s26  ;;  %v4560_v22 = vsel %vm4422_vm9, %v4441_v47, 0.0 }
 0x8a9   :  { %v11665_v14 = vpop.f32.mrf.mxu1 }
 0x8aa   :  { %5293 = vrot.lane.b32.xlu2 %v4439_v44, %s8107_s25  ;;  %v4120_v27 = vrot.slane %v11665_v14, 7  ;;  %v4443_v56 = vrot.slane %v11665_v14, 2 }
 0x8ac   :  { %v11672_v23 = vpop.permute.xlu2 %4820  ;;  %3730 = vmatmul.f32.gmra.mxu1 %v3594_v40  ;;  %v4236_v50 = vsel %vm646_vm3, 0.0, %v4120_v27 }
 0x8ad   :  { %5062 = vrot.lane.b32.xlu1 %v4276_v9, %s8108_s6  ;;  %4642 = vrot.lane.b32.xlu0 %v4116_v8, %s8104_s21 }
 0x8b1   :  { %v11679_v54 = vpop.f32.mrf.mxu1 }
 0x8b2   :  { %5064 = vrot.lane.b32.xlu2 %v4394_v28, %s8108_s6  ;;  %v4444_v44 = vrot.slane %v11679_v54, 2  ;;  %v4121_v40 = vrot.slane %v11679_v54, 7  ;;  %v4281_v58 = vrot.slane %v11679_v54, 1 }
 0x8b4   :  { %v5047_v39 = vpop.permute.xlu2 %5046  ;;  %3733 = vmatmul.f32.gmra.mxu1 %v3595_v49  ;;  %v4445_v28 = vsel %vm4422_vm9, %v4443_v56, %v4444_v44  ;;  %v4122_v49 = vsel %vm646_vm3, %v4120_v27, %v4121_v40  ;;  %v4396_v31 = vsel %vm844_vm2, %v4281_v58, 0.0  ;;  %v4561_v19 = vsel %vm4422_vm9, %v4444_v44, 0.0  ;;  %v3602_v44 = vld [vmem:[%s14791_s8 + $0x120] sm:$0xff] }
 0x8b5   :  { %5295 = vrot.lane.b32.xlu0 %v4559_v12, %s8107_s25  ;;  %4644 = vrot.lane.b32.xlu1 %v4235_v51, %s8104_s21  ;;  %v4280_v12 = vrot.slane %v11665_v14, 1 }
 0x8b9   :  { %v11692_v16 = vpop.f32.mrf.mxu1 }
 0x8ba   :  { %4838 = vrot.lane.b32.xlu2 %v11613_v53, %s8105_s26  ;;  %v4123_v62 = vrot.slane %v11692_v16, 7 }
 0x8bc   :  { %v11699_v20 = vpop.permute.xlu2 %4628  ;;  %3736 = vmatmul.f32.gmra.mxu1 %v3596_v42  ;;  %v4819_v32 = vpop.permute.xlu1 %4818 }
 0x8bd   :  { %4840 = vrot.lane.b32.xlu0 %v11638_v21, %s8105_s26  ;;  %5297 = vrot.lane.b32.xlu1 %v4442_v13, %s8107_s25 }
 0x8bf   :  { %v4625_v1 = vpop.permute.xlu0 %4624 }
 0x8c0   :  { %v5473_v38 = vsel %vm1435_vm4, %v4070_v15, %v4625_v1  ;;  %v4282_v1 = vsel %vm844_vm2, %v4280_v12, %v4281_v58  ;;  %v3913_v58 = vrot.slane %v11528_v37, 6 }
 0x8c1   :  { %v11711_v30 = vpop.f32.mrf.mxu1  ;;  %v5539_v60 = vsel %vm1502_vm6, %v5473_v38, %v4819_v32  ;;  %v3600_v32 = vld [vmem:[%s14791_s8 + $0x110] sm:$0xff]  ;;  %v3911_v38 = vrot.slane %v11514_v4, 6  ;;  %v4237_v4 = vsel %vm646_vm3, 0.0, %v4123_v62 }
 0x8c2   :  { %4646 = vrot.lane.b32.xlu2 %v4119_v48, %s8104_s21  ;;  %v5605_v45 = vsel %vm1582_vm5, %v5539_v60, %v5047_v39  ;;  %v4071_v48 = vsel %vm3904_vm10, 0.0, %v3910_v18 }
 0x8c4   :  { %v11719_v33 = vpop.permute.xlu2 %5281  ;;  %3739 = vmatmul.f32.gmra.mxu1 %v3597_v34  ;;  %v5475_v34 = vsel %vm1435_vm4, %v4071_v48, %v11699_v20  ;;  %v3601_v20 = vld [vmem:[%s14791_s8 + $0x118] sm:$0xff]  ;;  %v3914_v48 = vrot.slane %v11541_v24, 6  ;;  %v3604_v24 = vld [vmem:[%s14791_s8 + $0x130] sm:$0xff] }
 0x8c5   :  { %5068 = vrot.lane.b32.xlu1 %v4395_v10, %s8108_s6  ;;  %5066 = vrot.lane.b32.xlu0 %v4279_v59, %s8108_s6 }
 0x8c7   :  { %v5278_v17 = vpop.permute.xlu0 %5277  ;;  %v4627_v29 = vpop.permute.xlu1 %4626 }
 0x8c8   :  { %v5671_v52 = vsel %vm3212_vm7, %v5605_v45, %v5278_v17  ;;  %v5474_v57 = vsel %vm1435_vm4, %v3909_v41, %v4627_v29  ;;  %v3912_v17 = vsel %vm3904_vm10, %v3910_v18, %v3911_v38 }
 0x8c9   :  { %v11729_v36 = vpop.f32.mrf.mxu1  ;;  %7714 = vmatmul.msk.f32.gmra.mxu2 %vm5756_vm11, %v5671_v52  ;;  %7850 = vmatmul.msk.f32.vlgmr.msra.gmra.mxu0 %vm5756_vm11, %v5671_v52  ;;  %v5540_v6 = vsel %vm1502_vm6, %v5474_v57, %v11672_v23 }
 0x8ca   :  { %5299 = vrot.lane.b32.xlu2 %v4560_v22, %s8107_s25  ;;  %7780 = vmatmul.msk.f32.gmra.mxu3 %vm5756_vm11, %v5671_v52  ;;  %v3931_v51 = vrot.slane %v11729_v36, 6 }
 0x8cc   :  { %v11742_v61 = vpop.permute.xlu2 %5052  ;;  %3742 = vmatmul.f32.gmra.mxu1 %v3598_v3  ;;  %v4447_v3 = vrot.slane %v11711_v30, 2 }
 0x8cd   :  { %4842 = vrot.lane.b32.xlu1 %v11665_v14, %s8105_s26  ;;  %4648 = vrot.lane.b32.xlu0 %v4236_v50, %s8104_s21 }
 0x8ce   :  { %v4562_v37 = vsel %vm4422_vm9, %v4447_v3, 0.0 }
 0x8cf   :  { %v5049_v0 = vpop.permute.xlu0 %5048  ;;  %v5280_v46 = vpop.permute.xlu1 %5279 }
 0x8d0   :  { %v5606_v55 = vsel %vm1582_vm5, %v5540_v6, %v5049_v0  ;;  %v4283_v6 = vrot.slane %v11692_v16, 1 }
 0x8d1   :  { %v5672_v9 = vsel %vm3212_vm7, %v5606_v55, %v5280_v46  ;;  %v11754_v8 = vpop.f32.mrf.mxu1  ;;  %v4284_v46 = vrot.slane %v11711_v30, 1  ;;  %v4124_v55 = vrot.slane %v11711_v30, 7 }
 0x8d2   :  { %7715 = vmatmul.msk.f32.gmra.mxu2 %vm5756_vm11, %v5672_v9  ;;  %7851 = vmatmul.msk.f32.gmra.mxu0 %vm5756_vm11, %v5672_v9  ;;  %v3932_v39 = vrot.slane %v11754_v8, 6 }
 0x8d3   :  { %4844 = vrot.lane.b32.xlu2 %v11679_v54, %s8105_s26  ;;  %7781 = vmatmul.msk.f32.gmra.mxu3 %vm5756_vm11, %v5672_v9  ;;  %v4285_v9 = vsel %vm844_vm2, %v4283_v6, %v4284_v46 }
 0x8d4   :  { %v11764_v23 = vpop.permute.xlu2 %4826  ;;  %3745 = vmatmul.f32.gmra.mxu1 %v3599_v43  ;;  %v11777_v13 = vsel %vm3904_vm10, %v3931_v51, %v3932_v39  ;;  %v4125_v43 = vsel %vm646_vm3, %v4123_v62, %v4124_v55  ;;  %v4126_v39 = vrot.slane %v11729_v36, 7  ;;  %v4287_v55 = vrot.slane %v11754_v8, 1 }
 0x8d5   :  { %5301 = vrot.lane.b32.xlu0 %v4445_v28, %s8107_s25  ;;  %4650 = vrot.lane.b32.xlu1 %v4122_v49, %s8104_s21 }
 0x8d7   :  { %v4823_v47 = vpop.permute.xlu0 %4822  ;;  %v4825_v42 = vpop.permute.xlu1 %4824 }
 0x8d8   :  { %v5541_v60 = vsel %vm1502_vm6, %v5475_v34, %v4823_v47 }
 0x8d9   :  { %v11780_v11 = vpop.f32.mrf.mxu1 }
 0x8da   :  { %v3934_v28 = vrot.slane %v11780_v11, 6 }
 0x8db   :  { %5070 = vrot.lane.b32.xlu2 %v4282_v1, %s8108_s6  ;;  %v4397_v1 = vsel %vm844_vm2, %v4284_v46, 0.0 }
 0x8dc   :  { %v11787_v15 = vpop.permute.xlu2 %4634  ;;  %3748 = vmatmul.f32.gmra.mxu1 %v3600_v32  ;;  %v3603_v32 = vld [vmem:[%s14791_s8 + $0x128] sm:$0xff] }
 0x8dd   :  { %5072 = vrot.lane.b32.xlu0 %v4396_v31, %s8108_s6  ;;  %5303 = vrot.lane.b32.xlu1 %v4561_v19, %s8107_s25  ;;  %v4238_v31 = vsel %vm646_vm3, 0.0, %v4126_v39  ;;  %v4072_v19 = vsel %vm3904_vm10, 0.0, %v3913_v58 }
 0x8df   :  { %v5051_v10 = vpop.permute.xlu1 %5050  ;;  %v4631_v59 = vpop.permute.xlu0 %4630 }
 0x8e0   :  { %v5607_v27 = vsel %vm1582_vm5, %v5541_v60, %v5051_v10  ;;  %v5476_v45 = vsel %vm1435_vm4, %v3912_v17, %v4631_v59  ;;  %v4450_v17 = vrot.slane %v11754_v8, 2 }
 0x8e1   :  { %v11803_v29 = vpop.f32.mrf.mxu1  ;;  %v11807_v25 = vsel %vm3212_vm7, %v5607_v27, %v11719_v33  ;;  %v5542_v52 = vsel %vm1502_vm6, %v5476_v45, %v4825_v42  ;;  %v4446_v33 = vrot.slane %v11692_v16, 2  ;;  %v4449_v27 = vrot.slane %v11729_v36, 2 }
 0x8e2   :  { %7852 = vmatmul.msk.f32.gmra.mxu0 %vm5756_vm11, %v11807_v25  ;;  %7782 = vmatmul.msk.f32.gmra.mxu3 %vm5756_vm11, %v11807_v25  ;;  %v5608_v41 = vsel %vm1582_vm5, %v5542_v52, %v11742_v61  ;;  %v3935_v49 = vrot.slane %v11803_v29, 6 }
 0x8e3   :  { %4652 = vrot.lane.b32.xlu2 %v4237_v4, %s8104_s21  ;;  %7716 = vmatmul.msk.f32.gmra.mxu2 %vm5756_vm11, %v11807_v25  ;;  %v4448_v61 = vsel %vm4422_vm9, %v4446_v33, %v4447_v3  ;;  %v4451_v33 = vsel %vm4422_vm9, %v4449_v27, %v4450_v17  ;;  %v3916_v3 = vrot.slane %v11554_v7, 6 }
 0x8e4   :  { %v11820_v22 = vpop.permute.xlu2 %5287  ;;  %3751 = vmatmul.f32.gmra.mxu1 %v3601_v20  ;;  %v11861_v12 = vsel %vm3904_vm10, %v3934_v28, %v3935_v49  ;;  %v3605_v49 = vld [vmem:[%s14791_s8 + $0x138] sm:$0xff] }
 0x8e5   :  { %4846 = vrot.lane.b32.xlu0 %v11692_v16, %s8105_s26  ;;  %4848 = vrot.lane.b32.xlu1 %v11711_v30, %s8105_s26  ;;  %v4073_v46 = vsel %vm3904_vm10, 0.0, %v3916_v3 }
 0x8e7   :  { %v5284_v50 = vpop.permute.xlu0 %5283  ;;  %v4633_v57 = vpop.permute.xlu1 %4632 }
 0x8e8   :  { %v11831_v0 = vsel %vm3212_vm7, %v5608_v41, %v5284_v50  ;;  %v5477_v38 = vsel %vm1435_vm4, %v4072_v19, %v4633_v57  ;;  %v4127_v57 = vrot.slane %v11754_v8, 7 }
 0x8e9   :  { %v11836_v56 = vpop.f32.mrf.mxu1  ;;  %v5543_v60 = vsel %vm1502_vm6, %v5477_v38, %v11764_v23  ;;  %v3915_v23 = vsel %vm3904_vm10, %v3913_v58, %v3914_v48 }
 0x8ea   :  { %7853 = vmatmul.msk.f32.gmra.mxu0 %vm5756_vm11, %v11831_v0  ;;  %7783 = vmatmul.msk.f32.gmra.mxu3 %vm5756_vm11, %v11831_v0  ;;  %v5478_v20 = vsel %vm1435_vm4, %v3915_v23, %v11787_v15  ;;  %v3937_v7 = vrot.slane %v11836_v56, 6 }
 0x8eb   :  { %5305 = vrot.lane.b32.xlu2 %v4448_v61, %s8107_s25  ;;  %7717 = vmatmul.msk.f32.gmra.mxu2 %vm5756_vm11, %v11831_v0 }
 0x8ec   :  { %v11849_v40 = vpop.permute.xlu2 %4832  ;;  %3754 = vmatmul.f32.gmra.mxu1 %v3602_v44  ;;  %v4286_v44 = vrot.slane %v11729_v36, 1 }
 0x8ed   :  { %5074 = vrot.lane.b32.xlu1 %v4285_v9, %s8108_s6  ;;  %4654 = vrot.lane.b32.xlu0 %v4125_v43, %s8104_s21 }
 0x8ef   :  { %v4829_v47 = vpop.permute.xlu0 %4828  ;;  %v5286_v42 = vpop.permute.xlu1 %5285 }
 0x8f0   :  { %v5544_v50 = vsel %vm1502_vm6, %v5478_v20, %v4829_v47 }
 0x8f1   :  { %v11864_v18 = vpop.f32.mrf.mxu1 }
 0x8f2   :  { %v3938_v58 = vrot.slane %v11864_v18, 6 }
 0x8f3   :  { %5076 = vrot.lane.b32.xlu2 %v4397_v1, %s8108_s6  ;;  %v4129_v1 = vrot.slane %v11780_v11, 7 }
 0x8f4   :  { %v5059_v62 = vpop.permute.xlu2 %5058  ;;  %3757 = vmatmul.f32.gmra.mxu1 %v3603_v32  ;;  %v4288_v32 = vsel %vm844_vm2, %v4286_v44, %v4287_v55 }
 0x8f5   :  { %5307 = vrot.lane.b32.xlu0 %v4562_v37, %s8107_s25  ;;  %4656 = vrot.lane.b32.xlu1 %v4238_v31, %s8104_s21  ;;  %v3917_v37 = vrot.slane %v11568_v5, 6 }
 0x8f7   :  { %v5057_v34 = vpop.permute.xlu1 %5056  ;;  %v5055_v10 = vpop.permute.xlu0 %5054  ;;  %v3918_v5 = vsel %vm3904_vm10, %v3916_v3, %v3917_v37  ;;  %v4453_v3 = vrot.slane %v11803_v29, 2  ;;  %v3920_v37 = vrot.slane %v11594_v35, 6 }
 0x8f8   :  { %v5609_v59 = vsel %vm1582_vm5, %v5543_v60, %v5055_v10  ;;  %v5610_v41 = vsel %vm1582_vm5, %v5544_v50, %v5057_v34  ;;  %v3606_v60 = vld [vmem:[%s14791_s8 + $0x140] sm:$0xff]  ;;  %v4563_v10 = vsel %vm4422_vm9, %v4450_v17, 0.0  ;;  %v4130_v50 = vrot.slane %v11803_v29, 7 }
 0x8f9   :  { %v11884_v4 = vsel %vm3212_vm7, %v5609_v59, %v5286_v42  ;;  %v11886_v45 = vpop.f32.mrf.mxu1  ;;  %v11918_v61 = vsel %vm3212_vm7, %v5610_v41, %v11820_v22  ;;  %v11938_v22 = vsel %vm3904_vm10, %v3937_v7, %v3938_v58  ;;  %v4239_v59 = vsel %vm646_vm3, 0.0, %v4129_v1 }
 0x8fa   :  { %15257 = vst [vmem:[#allocation53_spill] sm:$0xff] %v11884_v4  ;;  %7784 = vmatmul.msk.f32.gmra.mxu3 %vm5756_vm11, %v11884_v4  ;;  %7718 = vmatmul.msk.f32.gmra.mxu2 %vm5756_vm11, %v11884_v4 }
 0x8fb   :  { %4850 = vrot.lane.b32.xlu2 %v11729_v36, %s8105_s26  ;;  %7854 = vmatmul.msk.f32.gmra.mxu0 %vm5756_vm11, %v11884_v4 }
 0x8fc   :  { %v11902_v52 = vpop.permute.xlu2 %4640  ;;  %3760 = vmatmul.f32.gmra.mxu1 %v3604_v24 }
 0x8fd   :  { %4852 = vrot.lane.b32.xlu0 %v11754_v8, %s8105_s26  ;;  %5309 = vrot.lane.b32.xlu1 %v4451_v33, %s8107_s25  ;;  %v4128_v8 = vsel %vm646_vm3, %v4126_v39, %v4127_v57  ;;  %v4398_v39 = vsel %vm844_vm2, %v4287_v55, 0.0  ;;  %v4452_v33 = vrot.slane %v11780_v11, 2  ;;  %v14894_v55 = vrot.slane %v11886_v45, 6 }
 0x8ff   :  { %v4831_v6 = vpop.permute.xlu1 %4830  ;;  %v4637_v15 = vpop.permute.xlu0 %4636 }
 0x900   :  { %v5479_v9 = vsel %vm1435_vm4, %v4073_v46, %v4637_v15  ;;  %v4454_v15 = vsel %vm4422_vm9, %v4452_v33, %v4453_v3  ;;  %v4131_v46 = vsel %vm646_vm3, %v4129_v1, %v4130_v50  ;;  %v3608_v1 = vld [vmem:[%s14791_s8 + $0x150] sm:$0xff]  ;;  %v4455_v50 = vrot.slane %v11836_v56, 2 }
 0x901   :  { %v11921_v43 = vpop.f32.mrf.mxu1  ;;  %v5545_v47 = vsel %vm1502_vm6, %v5479_v9, %v4831_v6  ;;  %v3607_v6 = vld [vmem:[%s14791_s8 + $0x148] sm:$0xff]  ;;  %v4289_v9 = vrot.slane %v11780_v11, 1 }
 0x902   :  { %7785 = vmatmul.msk.f32.gmra.mxu3 %vm5756_vm11, %v11918_v61  ;;  %7719 = vmatmul.msk.f32.gmra.mxu2 %vm5756_vm11, %v11918_v61  ;;  %v5611_v19 = vsel %vm1582_vm5, %v5545_v47, %v5059_v62  ;;  %v3941_v44 = vrot.slane %v11921_v43, 6 }
 0x903   :  { %4658 = vrot.lane.b32.xlu2 %v4128_v8, %s8104_s21  ;;  %7855 = vmatmul.msk.f32.gmra.mxu0 %vm5756_vm11, %v11918_v61 }
 0x904   :  { %v11941_v42 = vpop.permute.xlu2 %5293  ;;  %3763 = vmatmul.f32.gmra.mxu1 %v3605_v49  ;;  %v4290_v49 = vrot.slane %v11803_v29, 1  ;;  %v12009_v47 = vsel %vm3904_vm10, %v14894_v55, %v3941_v44  ;;  %v12469_v55 = vpop.f32.mrf.mxu3 }
 0x905   :  { %5080 = vrot.lane.b32.xlu1 %v4398_v39, %s8108_s6  ;;  %5078 = vrot.lane.b32.xlu0 %v4288_v32, %s8108_s6  ;;  %v3919_v39 = vrot.slane %v11580_v63, 6  ;;  %v4132_v63 = vrot.slane %v11836_v56, 7  ;;  %15275 = vst [vmem:[#allocation41_spill] sm:$0xff] %v12469_v55 }
 0x907   :  { %v5290_v31 = vpop.permute.xlu0 %5289  ;;  %v4639_v38 = vpop.permute.xlu1 %4638  ;;  %v4240_v35 = vsel %vm646_vm3, 0.0, %v4132_v63 }
 0x908   :  { %v11951_v48 = vsel %vm3212_vm7, %v5611_v19, %v5290_v31  ;;  %v5480_v62 = vsel %vm1435_vm4, %v3918_v5, %v4639_v38  ;;  %v4291_v31 = vsel %vm844_vm2, %v4289_v9, %v4290_v49  ;;  %v4399_v19 = vsel %vm844_vm2, %v4290_v49, 0.0 }
 0x909   :  { %15258 = vst [vmem:[#allocation35_spill] sm:$0xff] %v11951_v48  ;;  %v11953_v34 = vpop.f32.mrf.mxu1  ;;  %v5546_v24 = vsel %vm1502_vm6, %v5480_v62, %v11849_v40  ;;  %v4564_v38 = vsel %vm4422_vm9, %v4453_v3, 0.0  ;;  %v4292_v49 = vrot.slane %v11836_v56, 1 }
 0x90a   :  { %7786 = vmatmul.msk.f32.gmra.mxu3 %vm5756_vm11, %v11951_v48  ;;  %7720 = vmatmul.msk.f32.gmra.mxu2 %vm5756_vm11, %v11951_v48 }
 0x90b   :  { %5311 = vrot.lane.b32.xlu2 %v4563_v10, %s8107_s25  ;;  %7856 = vmatmul.msk.f32.gmra.mxu0 %vm5756_vm11, %v11951_v48 }
 0x90c   :  { %v11969_v27 = vpop.permute.xlu2 %5064  ;;  %3766 = vmatmul.f32.gmra.mxu1 %v3606_v60  ;;  %v4074_v60 = vsel %vm3904_vm10, 0.0, %v3919_v39 }
 0x90d   :  { %4854 = vrot.lane.b32.xlu1 %v11780_v11, %s8105_s26  ;;  %4660 = vrot.lane.b32.xlu0 %v4239_v59, %s8104_s21  ;;  %v5481_v10 = vsel %vm1435_vm4, %v4074_v60, %v11902_v52  ;;  %v3609_v52 = vld [vmem:[%s14791_s8 + $0x158] sm:$0xff] }
 0x90f   :  { %v5061_v17 = vpop.permute.xlu0 %5060  ;;  %v5292_v23 = vpop.permute.xlu1 %5291 }
 0x910   :  { %v5612_v20 = vsel %vm1582_vm5, %v5546_v24, %v5061_v17  ;;  %v3921_v24 = vsel %vm3904_vm10, %v3919_v39, %v3920_v37  ;;  %v14893_v37 = vrot.slane %v11953_v34, 6 }
 0x911   :  { %v11981_v41 = vsel %vm3212_vm7, %v5612_v20, %v5292_v23  ;;  %v11983_v57 = vpop.f32.mrf.mxu1 }
 0x912   :  { %15259 = vst [vmem:[#allocation71_spill] sm:$0xff] %v11981_v41  ;;  %7787 = vmatmul.msk.f32.gmra.mxu3 %vm5756_vm11, %v11981_v41  ;;  %7721 = vmatmul.msk.f32.gmra.mxu2 %vm5756_vm11, %v11981_v41  ;;  %v3944_v60 = vrot.slane %v11983_v57, 6 }
 0x913   :  { %4856 = vrot.lane.b32.xlu2 %v11803_v29, %s8105_s26  ;;  %7857 = vmatmul.msk.f32.gmra.mxu0 %vm5756_vm11, %v11981_v41 }
 0x914   :  { %v11996_v40 = vpop.permute.xlu2 %4838  ;;  %3769 = vmatmul.f32.gmra.mxu1 %v3607_v6  ;;  %v4456_v6 = vrot.slane %v11864_v18, 2 }
 0x915   :  { %5313 = vrot.lane.b32.xlu0 %v4454_v15, %s8107_s25  ;;  %4662 = vrot.lane.b32.xlu1 %v4131_v46, %s8104_s21 }
 0x917   :  { %v4835_v58 = vpop.permute.xlu0 %4834  ;;  %v4837_v8 = vpop.permute.xlu1 %4836 }
 0x918   :  { %v5547_v59 = vsel %vm1502_vm6, %v5481_v10, %v4835_v58  ;;  %v4293_v58 = vrot.slane %v11864_v18, 1  ;;  %v3922_v10 = vrot.slane %v11613_v53, 6 }
 0x919   :  { %v12012_v32 = vpop.f32.mrf.mxu1 }
 0x91b   :  { %5082 = vrot.lane.b32.xlu2 %v4291_v31, %s8108_s6  ;;  %v4457_v31 = vsel %vm4422_vm9, %v4455_v50, %v4456_v6  ;;  %v3923_v50 = vrot.slane %v11638_v21, 6  ;;  %v3612_v21 = vld [vmem:[%s14791_s8 + $0x170] sm:$0xff] }
 0x91c   :  { %v12019_v29 = vpop.permute.xlu2 %4646  ;;  %3772 = vmatmul.f32.gmra.mxu1 %v3608_v1  ;;  %v3610_v1 = vld [vmem:[%s14791_s8 + $0x160] sm:$0xff] }
 0x91d   :  { %5084 = vrot.lane.b32.xlu0 %v4399_v19, %s8108_s6  ;;  %5315 = vrot.lane.b32.xlu1 %v4564_v38, %s8107_s25  ;;  %v4135_v38 = vrot.slane %v11886_v45, 7 }
 0x91f   :  { %v5063_v5 = vpop.permute.xlu1 %5062  ;;  %v4643_v62 = vpop.permute.xlu0 %4642 }
 0x920   :  { %v5613_v17 = vsel %vm1582_vm5, %v5547_v59, %v5063_v5  ;;  %v5482_v20 = vsel %vm1435_vm4, %v3921_v24, %v4643_v62  ;;  %v4400_v24 = vsel %vm844_vm2, %v4293_v58, 0.0 }
 0x921   :  { %v12036_v23 = vsel %vm3212_vm7, %v5613_v17, %v11941_v42  ;;  %v12039_v33 = vpop.f32.mrf.mxu1  ;;  %v5548_v42 = vsel %vm1502_vm6, %v5482_v20, %v4837_v8  ;;  %v4133_v8 = vrot.slane %v11864_v18, 7  ;;  %v3611_v17 = vld [vmem:[%s14791_s8 + $0x168] sm:$0xff]  ;;  %v4075_v20 = vsel %vm3904_vm10, 0.0, %v3922_v10 }
 0x922   :  { %15260 = vst [vmem:[#allocation55_spill] sm:$0xff] %v12036_v23  ;;  %7788 = vmatmul.msk.f32.gmra.mxu3 %vm5756_vm11, %v12036_v23  ;;  %7722 = vmatmul.msk.f32.gmra.mxu2 %vm5756_vm11, %v12036_v23  ;;  %v5614_v46 = vsel %vm1582_vm5, %v5548_v42, %v11969_v27 }
 0x923   :  { %4664 = vrot.lane.b32.xlu2 %v4240_v35, %s8104_s21  ;;  %7858 = vmatmul.msk.f32.gmra.mxu0 %vm5756_vm11, %v12036_v23  ;;  %v4134_v27 = vsel %vm646_vm3, %v4132_v63, %v4133_v8  ;;  %v12094_v63 = vsel %vm3904_vm10, %v14893_v37, %v3944_v60  ;;  %v4241_v35 = vsel %vm646_vm3, 0.0, %v4135_v38  ;;  %v4458_v8 = vrot.slane %v11886_v45, 2 }
 0x924   :  { %v12052_v3 = vpop.permute.xlu2 %5299  ;;  %3775 = vmatmul.f32.gmra.mxu1 %v3609_v52  ;;  %v4565_v52 = vsel %vm4422_vm9, %v4456_v6, 0.0 }
 0x925   :  { %4858 = vrot.lane.b32.xlu0 %v11836_v56, %s8105_s26  ;;  %4860 = vrot.lane.b32.xlu1 %v11864_v18, %s8105_s26  ;;  %v4294_v18 = vsel %vm844_vm2, %v4292_v49, %v4293_v58 }
 0x927   :  { %v5296_v15 = vpop.permute.xlu0 %5295  ;;  %v4645_v44 = vpop.permute.xlu1 %4644 }
 0x928   :  { %v12063_v9 = vsel %vm3212_vm7, %v5614_v46, %v5296_v15  ;;  %v5483_v53 = vsel %vm1435_vm4, %v4075_v20, %v4645_v44  ;;  %v4459_v44 = vrot.slane %v11921_v43, 2  ;;  %v4296_v20 = vrot.slane %v11921_v43, 1 }
 0x929   :  { %15261 = vst [vmem:[#allocation70_spill] sm:$0xff] %v12063_v9  ;;  %v12068_v39 = vpop.f32.mrf.mxu1  ;;  %v5549_v46 = vsel %vm1502_vm6, %v5483_v53, %v11996_v40  ;;  %v3924_v40 = vsel %vm3904_vm10, %v3922_v10, %v3923_v50  ;;  %v3613_v50 = vld [vmem:[%s14791_s8 + $0x178] sm:$0xff] }
 0x92a   :  { %7789 = vmatmul.msk.f32.gmra.mxu3 %vm5756_vm11, %v12063_v9  ;;  %7723 = vmatmul.msk.f32.gmra.mxu2 %vm5756_vm11, %v12063_v9 }
 0x92b   :  { %5317 = vrot.lane.b32.xlu2 %v4457_v31, %s8107_s25  ;;  %7859 = vmatmul.msk.f32.gmra.mxu0 %vm5756_vm11, %v12063_v9  ;;  %v5484_v31 = vsel %vm1435_vm4, %v3924_v40, %v12019_v29  ;;  %v3926_v40 = vrot.slane %v11679_v54, 6 }
 0x92c   :  { %3778 = vmatmul.f32.gmra.mxu1 %v3610_v1 }
 0x92d   :  { %v12083_v19 = vpop.permute.xlu2 %4844  ;;  %5086 = vrot.lane.b32.xlu1 %v4294_v18, %s8108_s6  ;;  %4666 = vrot.lane.b32.xlu0 %v4134_v27, %s8104_s21  ;;  %v4460_v18 = vsel %vm4422_vm9, %v4458_v8, %v4459_v44  ;;  %v3925_v27 = vrot.slane %v11665_v14, 6  ;;  %v4295_v14 = vrot.slane %v11886_v45, 1 }
 0x92f   :  { %v4841_v59 = vpop.permute.xlu0 %4840  ;;  %v5298_v5 = vpop.permute.xlu1 %5297  ;;  %v3927_v54 = vsel %vm3904_vm10, %v3925_v27, %v3926_v40 }
 0x930   :  { %v5550_v60 = vsel %vm1502_vm6, %v5484_v31, %v4841_v59 }
 0x931   :  { %v12096_v62 = vpop.f32.mrf.mxu1 }
 0x933   :  { %5088 = vrot.lane.b32.xlu2 %v4400_v24, %s8108_s6 }
 0x934   :  { %3781 = vmatmul.f32.gmra.mxu1 %v3611_v17  ;;  %v4136_v17 = vrot.slane %v11921_v43, 7 }
 0x935   :  { %v5071_v42 = vpop.permute.xlu2 %5070  ;;  %5319 = vrot.lane.b32.xlu0 %v4565_v52, %s8107_s25  ;;  %4668 = vrot.lane.b32.xlu1 %v4241_v35, %s8104_s21  ;;  %v4076_v35 = vsel %vm3904_vm10, 0.0, %v3925_v27 }
 0x937   :  { %v5069_v15 = vpop.permute.xlu1 %5068  ;;  %v5067_v49 = vpop.permute.xlu0 %5066 }
 0x938   :  { %v5615_v58 = vsel %vm1582_vm5, %v5549_v46, %v5067_v49  ;;  %v5616_v10 = vsel %vm1582_vm5, %v5550_v60, %v5069_v15  ;;  %v4137_v15 = vsel %vm646_vm3, %v4135_v38, %v4136_v17  ;;  %v4297_v46 = vsel %vm844_vm2, %v4295_v14, %v4296_v20  ;;  %v3614_v60 = vld [vmem:[%s14791_s8 + $0x180] sm:$0xff] }
 0x939   :  { %v12116_v6 = vsel %vm3212_vm7, %v5615_v58, %v5298_v5  ;;  %v12118_v1 = vpop.f32.mrf.mxu1  ;;  %v12149_v59 = vsel %vm3212_vm7, %v5616_v10, %v12052_v3  ;;  %v4401_v3 = vsel %vm844_vm2, %v4296_v20, 0.0  ;;  %v4138_v38 = vrot.slane %v11953_v34, 7 }
 0x93a   :  { %15262 = vst [vmem:[#allocation73_spill] sm:$0xff] %v12116_v6  ;;  %7790 = vmatmul.msk.f32.gmra.mxu3 %vm5756_vm11, %v12116_v6  ;;  %7724 = vmatmul.msk.f32.gmra.mxu2 %vm5756_vm11, %v12116_v6  ;;  %v4566_v10 = vsel %vm4422_vm9, %v4459_v44, 0.0  ;;  %v4461_v20 = vrot.slane %v11953_v34, 2  ;;  %v4462_v14 = vrot.slane %v11983_v57, 2 }
 0x93b   :  { %4862 = vrot.lane.b32.xlu2 %v11886_v45, %s8105_s26  ;;  %7860 = vmatmul.msk.f32.gmra.mxu0 %vm5756_vm11, %v12116_v6  ;;  %v4242_v17 = vsel %vm646_vm3, 0.0, %v4138_v38 }
 0x93c   :  { %3784 = vmatmul.f32.gmra.mxu1 %v3612_v21 }
 0x93d   :  { %v12137_v5 = vpop.permute.xlu2 %4652  ;;  %4864 = vrot.lane.b32.xlu0 %v11921_v43, %s8105_s26  ;;  %5321 = vrot.lane.b32.xlu1 %v4460_v18, %s8107_s25 }
 0x93f   :  { %v4843_v24 = vpop.permute.xlu1 %4842  ;;  %v4649_v29 = vpop.permute.xlu0 %4648 }
 0x940   :  { %v5485_v53 = vsel %vm1435_vm4, %v4076_v35, %v4649_v29 }
 0x941   :  { %v12152_v52 = vpop.f32.mrf.mxu1  ;;  %v5551_v43 = vsel %vm1502_vm6, %v5485_v53, %v4843_v24  ;;  %v4139_v53 = vrot.slane %v11983_v57, 7 }
 0x942   :  { %15263 = vst [vmem:[#allocation20_spill] sm:$0xff] %v12152_v52  ;;  %7791 = vmatmul.msk.f32.gmra.mxu3 %vm5756_vm11, %v12149_v59  ;;  %7725 = vmatmul.msk.f32.gmra.mxu2 %vm5756_vm11, %v12149_v59  ;;  %v5617_v8 = vsel %vm1582_vm5, %v5551_v43, %v5071_v42  ;;  %v3615_v43 = vld [vmem:[%s14791_s8 + $0x188] sm:$0xff] }
 0x943   :  { %4670 = vrot.lane.b32.xlu2 %v4137_v15, %s8104_s21  ;;  %7861 = vmatmul.msk.f32.gmra.mxu0 %vm5756_vm11, %v12149_v59 }
 0x944   :  { %3787 = vmatmul.f32.gmra.mxu1 %v3613_v50 }
 0x945   :  { %v12168_v49 = vpop.permute.xlu2 %5305  ;;  %5092 = vrot.lane.b32.xlu1 %v4401_v3, %s8108_s6  ;;  %5090 = vrot.lane.b32.xlu0 %v4297_v46, %s8108_s6  ;;  %v4140_v3 = vsel %vm646_vm3, %v4138_v38, %v4139_v53  ;;  %v3928_v38 = vrot.slane %v11692_v16, 6  ;;  %v4141_v16 = vrot.slane %v12012_v32, 7 }
 0x947   :  { %v5302_v58 = vpop.permute.xlu0 %5301  ;;  %v4651_v21 = vpop.permute.xlu1 %4650 }
 0x948   :  { %v12176_v31 = vsel %vm3212_vm7, %v5617_v8, %v5302_v58  ;;  %v5486_v42 = vsel %vm1435_vm4, %v3927_v54, %v4651_v21  ;;  %v4298_v58 = vrot.slane %v11953_v34, 1  ;;  %v4299_v8 = vrot.slane %v11983_v57, 1 }
 0x949   :  { %v12178_v18 = vpop.f32.mrf.mxu1  ;;  %v5552_v29 = vsel %vm1502_vm6, %v5486_v42, %v12083_v19  ;;  %v4463_v19 = vsel %vm4422_vm9, %v4461_v20, %v4462_v14  ;;  %v4567_v42 = vsel %vm4422_vm9, %v4462_v14, 0.0 }
 0x94a   :  { %7792 = vmatmul.msk.f32.gmra.mxu3 %vm5756_vm11, %v12176_v31  ;;  %7726 = vmatmul.msk.f32.gmra.mxu2 %vm5756_vm11, %v12176_v31  ;;  %v4402_v54 = vsel %vm844_vm2, %v4299_v8, 0.0 }
 0x94b   :  { %5323 = vrot.lane.b32.xlu2 %v4566_v10, %s8107_s25  ;;  %7862 = vmatmul.msk.f32.gmra.mxu0 %vm5756_vm11, %v12176_v31  ;;  %v3616_v10 = vld [vmem:[%s14791_s8 + $0x190] sm:$0xff] }
 0x94c   :  { %3790 = vmatmul.f32.gmra.mxu1 %v3614_v60 }
 0x94d   :  { %v12194_v24 = vpop.permute.xlu2 %5076  ;;  %4866 = vrot.lane.b32.xlu1 %v11953_v34, %s8105_s26  ;;  %4672 = vrot.lane.b32.xlu0 %v4242_v17, %s8104_s21  ;;  %v4300_v17 = vsel %vm844_vm2, %v4298_v58, %v4299_v8 }
 0x94f   :  { %v5073_v44 = vpop.permute.xlu0 %5072  ;;  %v5304_v35 = vpop.permute.xlu1 %5303 }
 0x950   :  { %v5618_v27 = vsel %vm1582_vm5, %v5552_v29, %v5073_v44  ;;  %v4077_v29 = vsel %vm3904_vm10, 0.0, %v3928_v38 }
 0x951   :  { %v12206_v50 = vsel %vm3212_vm7, %v5618_v27, %v5304_v35  ;;  %v12208_v15 = vpop.f32.mrf.mxu1  ;;  %v5487_v27 = vsel %vm1435_vm4, %v4077_v29, %v12137_v5  ;;  %v4243_v5 = vsel %vm646_vm3, 0.0, %v4141_v16  ;;  %v4142_v29 = vrot.slane %v12039_v33, 7 }
 0x952   :  { %15264 = vst [vmem:[#allocation7_spill] sm:$0xff] %v12206_v50  ;;  %7793 = vmatmul.msk.f32.gmra.mxu3 %vm5756_vm11, %v12206_v50  ;;  %7727 = vmatmul.msk.f32.gmra.mxu2 %vm5756_vm11, %v12206_v50 }
 0x953   :  { %4868 = vrot.lane.b32.xlu2 %v11983_v57, %s8105_s26  ;;  %7863 = vmatmul.msk.f32.gmra.mxu0 %vm5756_vm11, %v12206_v50  ;;  %v3929_v57 = vrot.slane %v11711_v30, 6 }
 0x954   :  { %3793 = vmatmul.f32.gmra.mxu1 %v3615_v43 }
 0x955   :  { %v12223_v46 = vpop.permute.xlu2 %4850  ;;  %5325 = vrot.lane.b32.xlu0 %v4463_v19, %s8107_s25  ;;  %4674 = vrot.lane.b32.xlu1 %v4140_v3, %s8104_s21  ;;  %v3930_v14 = vsel %vm3904_vm10, %v3928_v38, %v3929_v57  ;;  %v3617_v19 = vld [vmem:[%s14791_s8 + $0x198] sm:$0xff]  ;;  %v4302_v57 = vrot.slane %v12039_v33, 1 }
 0x957   :  { %v4847_v21 = vpop.permute.xlu0 %4846  ;;  %v4849_v40 = vpop.permute.xlu1 %4848 }
 0x958   :  { %v5553_v20 = vsel %vm1502_vm6, %v5487_v27, %v4847_v21  ;;  %v3618_v27 = vld [vmem:[%s14791_s8 + $0x1a0] sm:$0xff] }
 0x959   :  { %v12229_v60 = vpop.f32.mrf.mxu1 }
 0x95a   :  { %v4153_v37 = vrot.slane %v12229_v60, 7 }
 0x95b   :  { %5094 = vrot.lane.b32.xlu2 %v4300_v17, %s8108_s6 }
 0x95c   :  { %3796 = vmatmul.f32.gmra.mxu1 %v3616_v10  ;;  %v4465_v10 = vrot.slane %v12039_v33, 2 }
 0x95d   :  { %v12240_v44 = vpop.permute.xlu2 %4658  ;;  %5096 = vrot.lane.b32.xlu0 %v4402_v54, %s8108_s6  ;;  %5327 = vrot.lane.b32.xlu1 %v4567_v42, %s8107_s25  ;;  %v4301_v42 = vrot.slane %v12012_v32, 1 }
 0x95f   :  { %v4655_v35 = vpop.permute.xlu0 %4654  ;;  %v5075_v53 = vpop.permute.xlu1 %5074 }
 0x960   :  { %v5619_v30 = vsel %vm1582_vm5, %v5553_v20, %v5075_v53  ;;  %v5488_v43 = vsel %vm1435_vm4, %v3930_v14, %v4655_v35  ;;  %v4143_v20 = vsel %vm646_vm3, %v4141_v16, %v4142_v29 }
 0x961   :  { %v12257_v3 = vsel %vm3212_vm7, %v5619_v30, %v12168_v49  ;;  %v12260_v58 = vpop.f32.mrf.mxu1  ;;  %v5554_v8 = vsel %vm1502_vm6, %v5488_v43, %v4849_v40  ;;  %v4464_v49 = vrot.slane %v12012_v32, 2  ;;  %v14892_v30 = vrot.slane %v12178_v18, 6 }
 0x962   :  { %15265 = vst [vmem:[#allocation13_spill] sm:$0xff] %v12257_v3  ;;  %7794 = vmatmul.msk.f32.gmra.mxu3 %vm5756_vm11, %v12257_v3  ;;  %7728 = vmatmul.msk.f32.gmra.mxu2 %vm5756_vm11, %v12257_v3  ;;  %v5620_v38 = vsel %vm1582_vm5, %v5554_v8, %v12194_v24  ;;  %v4303_v24 = vsel %vm844_vm2, %v4301_v42, %v4302_v57  ;;  %v3619_v8 = vld [vmem:[%s14791_s8 + $0x1a8] sm:$0xff]  ;;  %v4078_v42 = vsel %vm3904_vm10, 0.0, %v3931_v51 }
 0x963   :  { %4676 = vrot.lane.b32.xlu2 %v4243_v5, %s8104_s21  ;;  %7864 = vmatmul.msk.f32.gmra.mxu0 %vm5756_vm11, %v12257_v3  ;;  %v4466_v35 = vsel %vm4422_vm9, %v4464_v49, %v4465_v10  ;;  %v4144_v5 = vrot.slane %v12068_v39, 7 }
 0x964   :  { %3799 = vmatmul.f32.gmra.mxu1 %v3617_v19  ;;  %v3956_v19 = vrot.slane %v12208_v15, 6 }
 0x965   :  { %v12268_v21 = vpop.permute.xlu2 %5311  ;;  %4870 = vrot.lane.b32.xlu0 %v12012_v32, %s8105_s26  ;;  %4872 = vrot.lane.b32.xlu1 %v12039_v33, %s8105_s26 }
 0x966   :  { %v12314_v49 = vsel %vm3904_vm10, %v14892_v30, %v3956_v19 }
 0x967   :  { %v5308_v40 = vpop.permute.xlu0 %5307  ;;  %v4657_v54 = vpop.permute.xlu1 %4656 }
 0x968   :  { %v12281_v17 = vsel %vm3212_vm7, %v5620_v38, %v5308_v40  ;;  %v12316_v40 = vpop.f32.mrf.mxu2  ;;  %v4403_v38 = vsel %vm844_vm2, %v4302_v57, 0.0  ;;  %v5489_v29 = vsel %vm1435_vm4, %v4078_v42, %v4657_v54  ;;  %v4467_v54 = vrot.slane %v12068_v39, 2 }
 0x969   :  { %15266 = vst [vmem:[#allocation62_spill] sm:$0xff] %v12281_v17  ;;  %v12297_v53 = vpop.f32.mrf.mxu1  ;;  %v5555_v36 = vsel %vm1502_vm6, %v5489_v29, %v12223_v46 }
 0x96a   :  { %7795 = vmatmul.msk.f32.gmra.mxu3 %vm5756_vm11, %v12281_v17  ;;  %7729 = vmatmul.msk.f32.gmra.mxu2 %vm5756_vm11, %v12281_v17  ;;  %15267 = vst [vmem:[#allocation11_spill] sm:$0xff] %v12316_v40 }
 0x96b   :  { %5329 = vrot.lane.b32.xlu2 %v4466_v35, %s8107_s25  ;;  %7865 = vmatmul.msk.f32.gmra.mxu0 %vm5756_vm11, %v12281_v17  ;;  %v4244_v35 = vsel %vm646_vm3, 0.0, %v4144_v5 }
 0x96c   :  { %3802 = vmatmul.f32.gmra.mxu1 %v3618_v27  ;;  %v4568_v27 = vsel %vm4422_vm9, %v4465_v10, 0.0  ;;  %v4468_v10 = vrot.slane %v12096_v62, 2 }
 0x96d   :  { %v12299_v14 = vpop.permute.xlu2 %4856  ;;  %5098 = vrot.lane.b32.xlu1 %v4303_v24, %s8108_s6  ;;  %4678 = vrot.lane.b32.xlu0 %v4143_v20, %s8104_s21 }
 0x96e   :  { %v4469_v42 = vsel %vm4422_vm9, %v4467_v54, %v4468_v10 }
 0x96f   :  { %v4853_v43 = vpop.permute.xlu0 %4852  ;;  %v5310_v16 = vpop.permute.xlu1 %5309 }
 0x970   :  { %v12349_v46 = vpop.f32.mrf.mxu2 }
 0x971   :  { %v12328_v20 = vpop.f32.mrf.mxu1  ;;  %15268 = vst [vmem:[#allocation49_spill] sm:$0xff] %v12349_v46  ;;  %v15283_v46 = vrot.slane %v11886_v45, 6 }
 0x973   :  { %5100 = vrot.lane.b32.xlu2 %v4403_v38, %s8108_s6  ;;  %v3620_v38 = vld [vmem:[%s14791_s8 + $0x1b0] sm:$0xff]  ;;  %v4081_v55 = vsel %vm3904_vm10, 0.0, %v15283_v46  ;;  %v4479_v46 = vrot.slane %v12297_v53, 2 }
 0x974   :  { %3805 = vmatmul.f32.gmra.mxu1 %v3619_v8 }
 0x975   :  { %v5083_v24 = vpop.permute.xlu2 %5082  ;;  %5331 = vrot.lane.b32.xlu0 %v4568_v27, %s8107_s25  ;;  %4680 = vrot.lane.b32.xlu1 %v4244_v35, %s8104_s21 }
 0x977   :  { %v5079_v51 = vpop.permute.xlu0 %5078  ;;  %v5081_v57 = vpop.permute.xlu1 %5080 }
 0x978   :  { %v5621_v19 = vsel %vm1582_vm5, %v5555_v36, %v5079_v51  ;;  %v4145_v36 = vrot.slane %v12096_v62, 7 }
 0x979   :  { %v12336_v8 = vsel %vm3212_vm7, %v5621_v19, %v5310_v16  ;;  %v5490_v16 = vsel %vm1435_vm4, %v11777_v13, %v12240_v44  ;;  %v4079_v13 = vsel %vm3904_vm10, 0.0, %v3934_v28  ;;  %v4305_v44 = vrot.slane %v12096_v62, 1  ;;  %v12386_v28 = vpop.f32.mrf.mxu2 }
 0x97a   :  { %7796 = vmatmul.msk.f32.gmra.mxu3 %vm5756_vm11, %v12336_v8  ;;  %7730 = vmatmul.msk.f32.gmra.mxu2 %vm5756_vm11, %v12336_v8  ;;  %v5556_v29 = vsel %vm1502_vm6, %v5490_v16, %v4853_v43  ;;  %v4304_v43 = vrot.slane %v12068_v39, 1  ;;  %v3621_v16 = vld [vmem:[%s14791_s8 + $0x1b8] sm:$0xff]  ;;  %v4146_v11 = vsel %vm646_vm3, %v4144_v5, %v4145_v36  ;;  %15270 = vst [vmem:[#allocation12_spill] sm:$0xff] %v12386_v28 }
 0x97b   :  { %4874 = vrot.lane.b32.xlu2 %v12068_v39, %s8105_s26  ;;  %7866 = vmatmul.msk.f32.gmra.mxu0 %vm5756_vm11, %v12336_v8  ;;  %v5622_v35 = vsel %vm1582_vm5, %v5556_v29, %v5081_v57 }
 0x97c   :  { %3808 = vmatmul.f32.gmra.mxu1 %v3620_v38  ;;  %v12370_v54 = vsel %vm3212_vm7, %v5622_v35, %v12268_v21  ;;  %v12372_v38 = vpop.f32.mrf.mxu1  ;;  %v4306_v5 = vsel %vm844_vm2, %v4304_v43, %v4305_v44  ;;  %v4150_v35 = vrot.slane %v12178_v18, 7 }
 0x97d   :  { %v12356_v27 = vpop.permute.xlu2 %4664  ;;  %4876 = vrot.lane.b32.xlu0 %v12096_v62, %s8105_s26  ;;  %5333 = vrot.lane.b32.xlu1 %v4469_v42, %s8107_s25  ;;  %15269 = vst [vmem:[#allocation18_spill] sm:$0xff] %v12370_v54  ;;  %v4404_v42 = vsel %vm844_vm2, %v4305_v44, 0.0  ;;  %v4569_v44 = vsel %vm4422_vm9, %v4468_v10, 0.0 }
 0x97e   :  { %v4246_v43 = vsel %vm646_vm3, 0.0, %v4150_v35 }
 0x97f   :  { %v4661_v51 = vpop.permute.xlu0 %4660  ;;  %v4855_v19 = vpop.permute.xlu1 %4854 }
 0x980   :  { %v5491_v57 = vsel %vm1435_vm4, %v4079_v13, %v4661_v51 }
 0x981   :  { %v5557_v21 = vsel %vm1502_vm6, %v5491_v57, %v4855_v19  ;;  %v3622_v57 = vld [vmem:[%s14791_s8 + $0x1c0] sm:$0xff] }
 0x982   :  { %7797 = vmatmul.msk.f32.gmra.mxu3 %vm5756_vm11, %v12370_v54  ;;  %7731 = vmatmul.msk.f32.gmra.mxu2 %vm5756_vm11, %v12370_v54  ;;  %v5623_v51 = vsel %vm1582_vm5, %v5557_v21, %v5083_v24 }
 0x983   :  { %4682 = vrot.lane.b32.xlu2 %v4146_v11, %s8104_s21  ;;  %7867 = vmatmul.msk.f32.gmra.mxu0 %vm5756_vm11, %v12370_v54  ;;  %v12421_v11 = vpop.f32.mrf.mxu2 }
 0x984   :  { %3811 = vmatmul.f32.gmra.mxu1 %v3621_v16  ;;  %v12409_v16 = vpop.f32.mrf.mxu1  ;;  %15272 = vst [vmem:[#allocation79_spill] sm:$0xff] %v12421_v11 }
 0x985   :  { %v12391_v29 = vpop.permute.xlu2 %5317  ;;  %5104 = vrot.lane.b32.xlu1 %v4404_v42, %s8108_s6  ;;  %5102 = vrot.lane.b32.xlu0 %v4306_v5, %s8108_s6 }
 0x987   :  { %v5314_v36 = vpop.permute.xlu0 %5313  ;;  %v4663_v19 = vpop.permute.xlu1 %4662 }
 0x988   :  { %v12398_v13 = vsel %vm3212_vm7, %v5623_v51, %v5314_v36  ;;  %v5492_v24 = vsel %vm1435_vm4, %v11861_v12, %v4663_v19  ;;  %v4473_v51 = vrot.slane %v12178_v18, 2  ;;  %v4474_v12 = vrot.slane %v12208_v15, 2 }
 0x989   :  { %15271 = vst [vmem:[#allocation72_spill] sm:$0xff] %v12398_v13  ;;  %v5558_v42 = vsel %vm1502_vm6, %v5492_v24, %v12299_v14  ;;  %v4151_v19 = vrot.slane %v12208_v15, 7 }
 0x98a   :  { %7798 = vmatmul.msk.f32.gmra.mxu3 %vm5756_vm11, %v12398_v13  ;;  %7732 = vmatmul.msk.f32.gmra.mxu2 %vm5756_vm11, %v12398_v13  ;;  %v4475_v14 = vsel %vm4422_vm9, %v4473_v51, %v4474_v12 }
 0x98b   :  { %5335 = vrot.lane.b32.xlu2 %v4569_v44, %s8107_s25  ;;  %7868 = vmatmul.msk.f32.gmra.mxu0 %vm5756_vm11, %v12398_v13  ;;  %v3623_v44 = vld [vmem:[%s14791_s8 + $0x1c8] sm:$0xff] }
 0x98c   :  { %3814 = vmatmul.f32.gmra.mxu1 %v3622_v57  ;;  %v12445_v24 = vpop.f32.mrf.mxu1 }
 0x98d   :  { %v12416_v10 = vpop.permute.xlu2 %5088  ;;  %4882 = vrot.lane.b32.xlu1 %v12178_v18, %s8105_s26  ;;  %4688 = vrot.lane.b32.xlu0 %v4246_v43, %s8104_s21  ;;  %v4152_v43 = vsel %vm646_vm3, %v4150_v35, %v4151_v19  ;;  %v3624_v35 = vld [vmem:[%s14791_s8 + $0x1d0] sm:$0xff]  ;;  %v7923_v19 = vld [vmem:[%s14790_s9 + $0x138] sm:$0xff] }
 0x98e   :  { %6674 = vmatpush.msrb.mxu1 %v7923_v19 }
 0x98f   :  { %v5085_v21 = vpop.permute.xlu0 %5084  ;;  %v5316_v36 = vpop.permute.xlu1 %5315 }
 0x990   :  { %v5624_v5 = vsel %vm1582_vm5, %v5558_v42, %v5085_v21  ;;  %v4310_v42 = vrot.slane %v12178_v18, 1 }
 0x991   :  { %v12430_v57 = vsel %vm3212_vm7, %v5624_v5, %v5316_v36  ;;  %v4311_v5 = vrot.slane %v12208_v15, 1  ;;  %v12453_v36 = vpop.f32.mrf.mxu2 }
 0x992   :  { %15273 = vst [vmem:[#allocation14_spill] sm:$0xff] %v12430_v57  ;;  %7799 = vmatmul.msk.f32.gmra.mxu3 %vm5756_vm11, %v12430_v57  ;;  %7733 = vmatmul.msk.f32.gmra.mxu2 %vm5756_vm11, %v12430_v57 }
 0x993   :  { %4884 = vrot.lane.b32.xlu2 %v12208_v15, %s8105_s26  ;;  %7869 = vmatmul.msk.f32.gmra.mxu0 %vm5756_vm11, %v12430_v57  ;;  %15274 = vst [vmem:[#allocation15_spill] sm:$0xff] %v12453_v36  ;;  %v4312_v51 = vsel %vm844_vm2, %v4310_v42, %v4311_v5  ;;  %v7922_v15 = vld [vmem:[%s14790_s9 + $0x130] sm:$0xff] }
 0x994   :  { %3817 = vmatmul.f32.gmra.mxu1 %v3623_v44 }
 0x995   :  { %v12447_v21 = vpop.permute.xlu2 %4862  ;;  %5341 = vrot.lane.b32.xlu0 %v4475_v14, %s8107_s25  ;;  %4690 = vrot.lane.b32.xlu1 %v4152_v43, %s8104_s21  ;;  %v4406_v14 = vsel %vm844_vm2, %v4311_v5, 0.0  ;;  %v4571_v43 = vsel %vm4422_vm9, %v4474_v12, 0.0  ;;  %v7921_v5 = vld [vmem:[%s14790_s9 + $0x128] sm:$0xff] }
 0x996   :  { %6675 = vmatpush.msrb.mxu1 %v7922_v15 }
 0x997   :  { %v4859_v30 = vpop.permute.xlu0 %4858  ;;  %v4861_v44 = vpop.permute.xlu1 %4860 }
 0x998   :  { %6676 = vmatpush.msrb.mxu1 %v7921_v5 }
 0x999   :  { %v12490_v15 = vpop.f32.mrf.mxu2 }
 0x99a   :  { %15276 = vst [vmem:[#allocation37_spill] sm:$0xff] %v12490_v15 }
 0x99b   :  { %5110 = vrot.lane.b32.xlu2 %v4312_v51, %s8108_s6  ;;  %v4080_v51 = vsel %vm3904_vm10, 0.0, %v3937_v7  ;;  %v4247_v7 = vsel %vm646_vm3, 0.0, %v4153_v37 }
 0x99c   :  { %3820 = vmatmul.f32.gmra.mxu1 %v3624_v35  ;;  %v5493_v12 = vsel %vm1435_vm4, %v4080_v51, %v12356_v27  ;;  %v12483_v35 = vpop.f32.mrf.mxu1  ;;  %v3625_v51 = vld [vmem:[%s14791_s8 + $0x1d8] sm:$0xff] }
 0x99d   :  { %v12471_v42 = vpop.permute.xlu2 %4670  ;;  %5112 = vrot.lane.b32.xlu0 %v4406_v14, %s8108_s6  ;;  %5343 = vrot.lane.b32.xlu1 %v4571_v43, %s8107_s25  ;;  %v7920_v14 = vld [vmem:[%s14790_s9 + $0x120] sm:$0xff]  ;;  %v5559_v43 = vsel %vm1502_vm6, %v5493_v12, %v4859_v30  ;;  %v7919_v30 = vld [vmem:[%s14790_s9 + $0x118] sm:$0xff]  ;;  %v12524_v12 = vpop.f32.mrf.mxu3 }
 0x99e   :  { %6677 = vmatpush.msrb.mxu1 %v7920_v14  ;;  %15278 = vst [vmem:[#allocation83_spill] sm:$0xff] %v12524_v12 }
 0x99f   :  { %v4667_v19 = vpop.permute.xlu0 %4666  ;;  %v5087_v56 = vpop.permute.xlu1 %5086 }
 0x9a0   :  { %v5625_v36 = vsel %vm1582_vm5, %v5559_v43, %v5087_v56  ;;  %v5494_v27 = vsel %vm1435_vm4, %v11938_v22, %v4667_v19  ;;  %6678 = vmatpush.msrb.mxu1 %v7919_v30  ;;  %v7917_v43 = vld [vmem:[%s14790_s9 + $0x108] sm:$0xff]  ;;  %v4154_v30 = vrot.slane %v12260_v58, 7 }
 0x9a1   :  { %v12500_v11 = vsel %vm3212_vm7, %v5625_v36, %v12391_v29  ;;  %v5560_v22 = vsel %vm1502_vm6, %v5494_v27, %v4861_v44  ;;  %v7918_v29 = vld [vmem:[%s14790_s9 + $0x110] sm:$0xff]  ;;  %v4476_v36 = vrot.slane %v12229_v60, 2  ;;  %v4477_v44 = vrot.slane %v12260_v58, 2  ;;  %v12537_v15 = vpop.f32.mrf.mxu2 }
 0x9a2   :  { %15277 = vst [vmem:[#allocation76_spill] sm:$0xff] %v12500_v11  ;;  %7800 = vmatmul.msk.f32.gmra.mxu3 %vm5756_vm11, %v12500_v11  ;;  %7734 = vmatmul.msk.f32.gmra.mxu2 %vm5756_vm11, %v12500_v11  ;;  %v5626_v14 = vsel %vm1582_vm5, %v5560_v22, %v12416_v10  ;;  %v4313_v27 = vrot.slane %v12229_v60, 1  ;;  %v3626_v10 = vld [vmem:[%s14791_s8 + $0x1e0] sm:$0xff] }
 0x9a3   :  { %4692 = vrot.lane.b32.xlu2 %v4247_v7, %s8104_s21  ;;  %7870 = vmatmul.msk.f32.gmra.mxu0 %vm5756_vm11, %v12500_v11  ;;  %15280 = vst [vmem:[#allocation22_spill] sm:$0xff] %v12537_v15  ;;  %v4478_v22 = vsel %vm4422_vm9, %v4476_v36, %v4477_v44  ;;  %v7915_v36 = vld [vmem:[%s14790_s9 + $0xf8] sm:$0xff] }
 0x9a4   :  { %3823 = vmatmul.f32.gmra.mxu1 %v3625_v51  ;;  %v4314_v51 = vrot.slane %v12260_v58, 1  ;;  %v12539_v28 = vpop.f32.mrf.mxu1 }
 0x9a5   :  { %v12511_v5 = vpop.permute.xlu2 %5323  ;;  %4886 = vrot.lane.b32.xlu0 %v12229_v60, %s8105_s26  ;;  %4888 = vrot.lane.b32.xlu1 %v12260_v58, %s8105_s26 }
 0x9a6   :  { %6679 = vmatpush.msrb.mxu1 %v7918_v29  ;;  %v4315_v29 = vsel %vm844_vm2, %v4313_v27, %v4314_v51  ;;  %v7914_v27 = vld [vmem:[%s14790_s9 + $0xf0] sm:$0xff] }
 0x9a7   :  { %v5320_v19 = vpop.permute.xlu0 %5319  ;;  %v4669_v7 = vpop.permute.xlu1 %4668 }
 0x9a8   :  { %v12532_v56 = vsel %vm3212_vm7, %v5626_v14, %v5320_v19  ;;  %6680 = vmatpush.msrb.mxu1 %v7917_v43  ;;  %v7916_v19 = vld [vmem:[%s14790_s9 + $0x100] sm:$0xff]  ;;  %v4155_v14 = vsel %vm646_vm3, %v4153_v37, %v4154_v30  ;;  %v4156_v43 = vrot.slane %v12297_v53, 7 }
 0x9a9   :  { %15279 = vst [vmem:[#allocation39_spill] sm:$0xff] %v12532_v56 }
 0x9aa   :  { %7801 = vmatmul.msk.f32.gmra.mxu3 %vm5756_vm11, %v12532_v56  ;;  %7735 = vmatmul.msk.f32.gmra.mxu2 %vm5756_vm11, %v12532_v56 }
 0x9ab   :  { %5345 = vrot.lane.b32.xlu2 %v4478_v22, %s8107_s25  ;;  %6681 = vmatpush.msrb.mxu1 %v7916_v19  ;;  %v12571_v22 = vpop.f32.mrf.mxu3  ;;  %v4248_v19 = vsel %vm646_vm3, 0.0, %v4156_v43 }
 0x9ac   :  { %3826 = vmatmul.f32.gmra.mxu1 %v3626_v10  ;;  %7871 = vmatmul.msk.f32.gmra.mxu0 %vm5756_vm11, %v12532_v56  ;;  %v3627_v10 = vld [vmem:[%s14791_s8 + $0x1e8] sm:$0xff]  ;;  %15281 = vst [vmem:[#allocation57_spill] sm:$0xff] %v12571_v22  ;;  %v12577_v12 = vpop.f32.mrf.mxu1  ;;  %v4572_v22 = vsel %vm4422_vm9, %v4477_v44, 0.0  ;;  %v3628_v44 = vld [vmem:[%s14791_s8 + $0x1f0] sm:$0xff] }
 0x9ad   :  { %v12555_v15 = vpop.permute.xlu2 %4868  ;;  %5114 = vrot.lane.b32.xlu1 %v4315_v29, %s8108_s6  ;;  %4694 = vrot.lane.b32.xlu0 %v4155_v14, %s8104_s21  ;;  %v4407_v29 = vsel %vm844_vm2, %v4314_v51, 0.0  ;;  %v12575_v14 = vpop.f32.mrf.mxu2 }
 0x9ae   :  { %6682 = vmatpush.msrb.mxu1 %v7915_v36  ;;  %15282 = vst [vmem:[#allocation30_spill] sm:$0xff] %v12575_v14  ;;  %v5495_v36 = vsel %vm1435_vm4, %v4081_v55, %v4669_v7  ;;  %v5496_v7 = vsel %vm1435_vm4, %v12009_v47, %v12471_v42  ;;  %v4157_v47 = vrot.slane %v12328_v20, 7 }
 0x9af   :  { %v4865_v37 = vpop.permute.xlu0 %4864  ;;  %v5322_v30 = vpop.permute.xlu1 %5321  ;;  %v5561_v51 = vsel %vm1502_vm6, %v5495_v36, %v12447_v21 }
 0x9b0   :  { %6683 = vmatpush.msrb.mxu1 %v7914_v27 }
 0x9b3   :  { %5116 = vrot.lane.b32.xlu2 %v4407_v29, %s8108_s6  ;;  %v4480_v29 = vrot.slane %v12328_v20, 2  ;;  %v12606_v21 = vpop.f32.mrf.mxu3 }
 0x9b4   :  { %3829 = vmatmul.f32.gmra.mxu1 %v3627_v10  ;;  %15285 = vst [vmem:[#allocation33_spill] sm:$0xff] %v12606_v21 }
 0x9b5   :  { %v5095_v40 = vpop.permute.xlu2 %5094  ;;  %5347 = vrot.lane.b32.xlu0 %v4572_v22, %s8107_s25  ;;  %4696 = vrot.lane.b32.xlu1 %v4248_v19, %s8104_s21  ;;  %v12612_v10 = vpop.f32.mrf.mxu2  ;;  %v5562_v19 = vsel %vm1502_vm6, %v5496_v7, %v4865_v37  ;;  %v4316_v37 = vrot.slane %v12297_v53, 1 }
 0x9b6   :  { %15286 = vst [vmem:[#allocation25_spill] sm:$0xff] %v12612_v10  ;;  %v12614_v22 = vpop.f32.mrf.mxu1 }
 0x9b7   :  { %v5091_v27 = vpop.permute.xlu0 %5090  ;;  %v5093_v14 = vpop.permute.xlu1 %5092 }
 0x9b8   :  { %v5627_v45 = vsel %vm1582_vm5, %v5561_v51, %v5091_v27  ;;  %v5628_v51 = vsel %vm1582_vm5, %v5562_v19, %v5093_v14  ;;  %v3629_v14 = vld [vmem:[%s14791_s8 + $0x1f8] sm:$0xff]  ;;  %v4158_v19 = vsel %vm646_vm3, %v4156_v43, %v4157_v47  ;;  %v4159_v47 = vrot.slane %v12372_v38, 7 }
 0x9b9   :  { %v12593_v55 = vsel %vm3212_vm7, %v5627_v45, %v5322_v30  ;;  %v4481_v30 = vsel %vm4422_vm9, %v4479_v46, %v4480_v29  ;;  %v15287_v45 = vrot.slane %v11953_v34, 6  ;;  %v12631_v7 = vsel %vm3212_vm7, %v5628_v51, %v12511_v5 }
 0x9ba   :  { %15284 = vst [vmem:[#allocation29_spill] sm:$0xff] %v12593_v55  ;;  %7802 = vmatmul.msk.f32.gmra.mxu3 %vm5756_vm11, %v12593_v55  ;;  %7736 = vmatmul.msk.f32.gmra.mxu2 %vm5756_vm11, %v12593_v55 }
 0x9bb   :  { %4890 = vrot.lane.b32.xlu2 %v12297_v53, %s8105_s26  ;;  %7872 = vmatmul.msk.f32.gmra.mxu0 %vm5756_vm11, %v12593_v55  ;;  %v4082_v46 = vsel %vm3904_vm10, 0.0, %v15287_v45  ;;  %15288 = vst [vmem:[#allocation26_spill] sm:$0xff] %v12631_v7 }
 0x9bc   :  { %3832 = vmatmul.f32.gmra.mxu1 %v3628_v44  ;;  %v4317_v44 = vrot.slane %v12328_v20, 1 }
 0x9bd   :  { %v12617_v36 = vpop.permute.xlu2 %4676  ;;  %4892 = vrot.lane.b32.xlu0 %v12328_v20, %s8105_s26  ;;  %5349 = vrot.lane.b32.xlu1 %v4481_v30, %s8107_s25  ;;  %v12655_v45 = vpop.f32.mrf.mxu2 }
 0x9be   :  { %v4408_v5 = vsel %vm844_vm2, %v4317_v44, 0.0  ;;  %v4318_v51 = vsel %vm844_vm2, %v4316_v37, %v4317_v44  ;;  %15290 = vst [vmem:[#allocation80_spill] sm:$0xff] %v12655_v45  ;;  %v12663_v37 = vpop.f32.mrf.mxu0  ;;  %v4160_v45 = vrot.slane %v12409_v16, 7 }
 0x9bf   :  { %v4673_v42 = vpop.permute.xlu0 %4672  ;;  %v4867_v27 = vpop.permute.xlu1 %4866  ;;  %15291 = vst [vmem:[#allocation43_spill] sm:$0xff] %v12663_v37 }
 0x9c0   :  { %v5497_v30 = vsel %vm1435_vm4, %v4082_v46, %v4673_v42  ;;  %v12648_v42 = vpop.f32.mrf.mxu3  ;;  %v12657_v46 = vpop.f32.mrf.mxu1 }
 0x9c1   :  { %v5563_v34 = vsel %vm1502_vm6, %v5497_v30, %v4867_v27  ;;  %15289 = vst [vmem:[#allocation5_spill] sm:$0xff] %v12648_v42 }
 0x9c2   :  { %7803 = vmatmul.msk.f32.gmra.mxu3 %vm5756_vm11, %v12631_v7  ;;  %7737 = vmatmul.msk.f32.gmra.mxu2 %vm5756_vm11, %v12631_v7  ;;  %v5629_v30 = vsel %vm1582_vm5, %v5563_v34, %v5095_v40 }
 0x9c3   :  { %4698 = vrot.lane.b32.xlu2 %v4158_v19, %s8104_s21  ;;  %7873 = vmatmul.msk.f32.gmra.mxu0 %vm5756_vm11, %v12631_v7  ;;  %v4573_v19 = vsel %vm4422_vm9, %v4480_v29, 0.0 }
 0x9c4   :  { %3835 = vmatmul.f32.gmra.mxu1 %v3629_v14 }
 0x9c5   :  { %v12650_v43 = vpop.permute.xlu2 %5329  ;;  %5120 = vrot.lane.b32.xlu1 %v4408_v5, %s8108_s6  ;;  %5118 = vrot.lane.b32.xlu0 %v4318_v51, %s8108_s6  ;;  %v4249_v5 = vsel %vm646_vm3, 0.0, %v4159_v47  ;;  %v12683_v34 = vpop.f32.mrf.mxu2 }
 0x9c6   :  { %15292 = vst [vmem:[#allocation81_spill] sm:$0xff] %v12683_v34 }
 0x9c7   :  { %v5326_v27 = vpop.permute.xlu0 %5325  ;;  %v4675_v44 = vpop.permute.xlu1 %4674 }
 0x9c8   :  { %v12661_v14 = vsel %vm3212_vm7, %v5629_v30, %v5326_v27  ;;  %v5498_v40 = vsel %vm1435_vm4, %v12094_v63, %v4675_v44  ;;  %v12685_v51 = vpop.f32.mrf.mxu3  ;;  %v12693_v10 = vpop.f32.mrf.mxu1 }
 0x9c9   :  { %15293 = vst [vmem:[#allocation87_spill] sm:$0xff] %v12685_v51  ;;  %v5564_v30 = vsel %vm1502_vm6, %v5498_v40, %v12555_v15  ;;  %v12702_v15 = vpop.f32.mrf.mxu0 }
 0x9ca   :  { %7804 = vmatmul.msk.f32.gmra.mxu3 %vm5756_vm11, %v12661_v14  ;;  %7738 = vmatmul.msk.f32.gmra.mxu2 %vm5756_vm11, %v12661_v14  ;;  %15295 = vst [vmem:[#allocation21_spill] sm:$0xff] %v12702_v15 }
 0x9cb   :  { %5351 = vrot.lane.b32.xlu2 %v4573_v19, %s8107_s25  ;;  %7874 = vmatmul.msk.f32.gmra.mxu0 %vm5756_vm11, %v12661_v14  ;;  %v4483_v19 = vrot.slane %v12409_v16, 2 }
 0x9cc   :  { %7924 = vmatmul.msk.f32.vlgmr.msrb.gmra.mxu1 %vm5756_vm11, %v11807_v25  ;;  %v4482_v25 = vrot.slane %v12372_v38, 2 }
 0x9cd   :  { %v12678_v29 = vpop.permute.xlu2 %5100  ;;  %4894 = vrot.lane.b32.xlu1 %v12372_v38, %s8105_s26  ;;  %4700 = vrot.lane.b32.xlu0 %v4249_v5, %s8104_s21  ;;  %v12720_v21 = vpop.f32.mrf.mxu2 }
 0x9ce   :  { %v4484_v40 = vsel %vm4422_vm9, %v4482_v25, %v4483_v19  ;;  %15297 = vst [vmem:[#allocation27_spill] sm:$0xff] %v12720_v21 }
 0x9cf   :  { %v5097_v27 = vpop.permute.xlu0 %5096  ;;  %v5328_v44 = vpop.permute.xlu1 %5327 }
 0x9d0   :  { %v5630_v63 = vsel %vm1582_vm5, %v5564_v30, %v5097_v27  ;;  %v4161_v27 = vsel %vm646_vm3, %v4159_v47, %v4160_v45  ;;  %v12718_v34 = vpop.f32.mrf.mxu3  ;;  %v12724_v45 = vpop.f32.mrf.mxu1 }
 0x9d1   :  { %v12696_v5 = vsel %vm3212_vm7, %v5630_v63, %v5328_v44  ;;  %v4319_v63 = vrot.slane %v12372_v38, 1  ;;  %v4320_v44 = vrot.slane %v12409_v16, 1  ;;  %15296 = vst [vmem:[#allocation23_spill] sm:$0xff] %v12718_v34  ;;  %v4162_v34 = vrot.slane %v12445_v24, 7 }
 0x9d2   :  { %15294 = vst [vmem:[#allocation17_spill] sm:$0xff] %v12696_v5  ;;  %7805 = vmatmul.msk.f32.gmra.mxu3 %vm5756_vm11, %v12696_v5  ;;  %7739 = vmatmul.msk.f32.gmra.mxu2 %vm5756_vm11, %v12696_v5 }
 0x9d3   :  { %4896 = vrot.lane.b32.xlu2 %v12409_v16, %s8105_s26  ;;  %7875 = vmatmul.msk.f32.gmra.mxu0 %vm5756_vm11, %v12696_v5  ;;  %v4321_v47 = vsel %vm844_vm2, %v4319_v63, %v4320_v44  ;;  %v4409_v25 = vsel %vm844_vm2, %v4320_v44, 0.0 }
 0x9d4   :  { %7925 = vmatmul.msk.f32.gmra.mxu1 %vm5756_vm11, %v11831_v0  ;;  %v3946_v0 = vrot.slane %v12012_v32, 6 }
 0x9d5   :  { %v12712_v30 = vpop.permute.xlu2 %4874  ;;  %5353 = vrot.lane.b32.xlu0 %v4484_v40, %s8107_s25  ;;  %4702 = vrot.lane.b32.xlu1 %v4161_v27, %s8104_s21  ;;  %v4574_v40 = vsel %vm4422_vm9, %v4483_v19, 0.0  ;;  %v3947_v27 = vrot.slane %v12039_v33, 6  ;;  %v4250_v33 = vsel %vm646_vm3, 0.0, %v4162_v34  ;;  %v12743_v37 = vpop.f32.mrf.mxu2 }
 0x9d6   :  { %v4083_v32 = vsel %vm3904_vm10, 0.0, %v3946_v0  ;;  %15298 = vst [vmem:[#allocation19_spill] sm:$0xff] %v12743_v37 }
 0x9d7   :  { %v4871_v51 = vpop.permute.xlu0 %4870  ;;  %v4873_v42 = vpop.permute.xlu1 %4872  ;;  %v5499_v63 = vsel %vm1435_vm4, %v4083_v32, %v12617_v36  ;;  %v3948_v19 = vsel %vm3904_vm10, %v3946_v0, %v3947_v27 }
 0x9d8   :  { %v5565_v44 = vsel %vm1502_vm6, %v5499_v63, %v4871_v51  ;;  %v12756_v36 = vpop.f32.mrf.mxu0 }
 0x9d9   :  { %15301 = vst [vmem:[#allocation60_spill] sm:$0xff] %v12756_v36 }
 0x9db   :  { %5122 = vrot.lane.b32.xlu2 %v4321_v47, %s8108_s6 }
 0x9dc   :  { %7926 = vmatmul.msk.f32.gmra.mxu1 %vm5756_vm11, %v11884_v4  ;;  %v12745_v4 = vpop.f32.mrf.mxu3 }
 0x9dd   :  { %v12733_v21 = vpop.permute.xlu2 %4682  ;;  %5124 = vrot.lane.b32.xlu0 %v4409_v25, %s8108_s6  ;;  %5355 = vrot.lane.b32.xlu1 %v4574_v40, %s8107_s25  ;;  %15299 = vst [vmem:[#allocation24_spill] sm:$0xff] %v12745_v4  ;;  %v12786_v37 = vpop.f32.mrf.mxu2 }
 0x9de   :  { %15304 = vst [vmem:[#allocation31_spill] sm:$0xff] %v12786_v37 }
 0x9df   :  { %v4679_v47 = vpop.permute.xlu0 %4678  ;;  %v5099_v15 = vpop.permute.xlu1 %5098 }
 0x9e0   :  { %v5631_v25 = vsel %vm1582_vm5, %v5565_v44, %v5099_v15  ;;  %v5500_v40 = vsel %vm1435_vm4, %v3948_v19, %v4679_v47  ;;  %v12763_v15 = vpop.f32.mrf.mxu1  ;;  %v4322_v44 = vrot.slane %v12445_v24, 1  ;;  %v4323_v19 = vrot.slane %v12483_v35, 1 }
 0x9e1   :  { %v12751_v52 = vsel %vm3212_vm7, %v5631_v25, %v12650_v43  ;;  %v5566_v51 = vsel %vm1502_vm6, %v5500_v40, %v4873_v42  ;;  %v4485_v43 = vrot.slane %v12445_v24, 2  ;;  %v4486_v42 = vrot.slane %v12483_v35, 2 }
 0x9e2   :  { %15300 = vst [vmem:[#allocation75_spill] sm:$0xff] %v12751_v52  ;;  %7806 = vmatmul.msk.f32.gmra.mxu3 %vm5756_vm11, %v12751_v52  ;;  %7740 = vmatmul.msk.f32.gmra.mxu2 %vm5756_vm11, %v12751_v52  ;;  %v5632_v32 = vsel %vm1582_vm5, %v5566_v51, %v12678_v29  ;;  %v4324_v29 = vsel %vm844_vm2, %v4322_v44, %v4323_v19  ;;  %v4410_v37 = vsel %vm844_vm2, %v4323_v19, 0.0 }
 0x9e3   :  { %4704 = vrot.lane.b32.xlu2 %v4250_v33, %s8104_s21  ;;  %7876 = vmatmul.msk.f32.gmra.mxu0 %vm5756_vm11, %v12751_v52  ;;  %v4163_v33 = vrot.slane %v12483_v35, 7  ;;  %v4487_v40 = vsel %vm4422_vm9, %v4485_v43, %v4486_v42  ;;  %v12801_v43 = vpop.f32.mrf.mxu0 }
 0x9e4   :  { %7927 = vmatmul.msk.f32.gmra.mxu1 %vm5756_vm11, %v11918_v61  ;;  %v12783_v25 = vpop.f32.mrf.mxu3  ;;  %15305 = vst [vmem:[#allocation78_spill] sm:$0xff] %v12801_v43 }
 0x9e5   :  { %v12765_v0 = vpop.permute.xlu2 %5335  ;;  %4898 = vrot.lane.b32.xlu0 %v12445_v24, %s8105_s26  ;;  %4900 = vrot.lane.b32.xlu1 %v12483_v35, %s8105_s26  ;;  %15303 = vst [vmem:[#allocation45_spill] sm:$0xff] %v12783_v25  ;;  %v4164_v51 = vsel %vm646_vm3, %v4162_v34, %v4163_v33  ;;  %v3949_v34 = vrot.slane %v12068_v39, 6  ;;  %v4575_v39 = vsel %vm4422_vm9, %v4486_v42, 0.0  ;;  %v12821_v43 = vpop.f32.mrf.mxu2  ;;  %v4488_v42 = vrot.slane %v12539_v28, 2 }
 0x9e6   :  { %15307 = vst [vmem:[#allocation74_spill] sm:$0xff] %v12821_v43  ;;  %v4489_v43 = vrot.slane %v12577_v12, 2 }
 0x9e7   :  { %v5332_v27 = vpop.permute.xlu0 %5331  ;;  %v4681_v47 = vpop.permute.xlu1 %4680 }
 0x9e8   :  { %v12778_v63 = vsel %vm3212_vm7, %v5632_v32, %v5332_v27  ;;  %v4165_v32 = vrot.slane %v12539_v28, 7 }
 0x9e9   :  { %15302 = vst [vmem:[#allocation16_spill] sm:$0xff] %v12778_v63 }
 0x9ea   :  { %7807 = vmatmul.msk.f32.gmra.mxu3 %vm5756_vm11, %v12778_v63  ;;  %7741 = vmatmul.msk.f32.gmra.mxu2 %vm5756_vm11, %v12778_v63  ;;  %v4251_v25 = vsel %vm646_vm3, 0.0, %v4165_v32 }
 0x9eb   :  { %5357 = vrot.lane.b32.xlu2 %v4487_v40, %s8107_s25  ;;  %7877 = vmatmul.msk.f32.gmra.mxu0 %vm5756_vm11, %v12778_v63  ;;  %v12806_v40 = vpop.f32.mrf.mxu1 }
 0x9ec   :  { %7928 = vmatmul.msk.f32.gmra.mxu1 %vm5756_vm11, %v11951_v48 }
 0x9ed   :  { %v12797_v27 = vpop.permute.xlu2 %4884  ;;  %5126 = vrot.lane.b32.xlu1 %v4324_v29, %s8108_s6  ;;  %4706 = vrot.lane.b32.xlu0 %v4164_v51, %s8104_s21  ;;  %v12811_v29 = vpop.f32.mrf.mxu3  ;;  %v4084_v51 = vsel %vm3904_vm10, 0.0, %v3949_v34 }
 0x9ee   :  { %15306 = vst [vmem:[#allocation36_spill] sm:$0xff] %v12811_v29  ;;  %v5501_v4 = vsel %vm1435_vm4, %v4084_v51, %v4681_v47  ;;  %v3950_v29 = vrot.slane %v12096_v62, 6  ;;  %v12830_v47 = vpop.f32.mrf.mxu0 }
 0x9ef   :  { %v4877_v44 = vpop.permute.xlu0 %4876  ;;  %v5334_v33 = vpop.permute.xlu1 %5333  ;;  %15308 = vst [vmem:[#allocation38_spill] sm:$0xff] %v12830_v47 }
 0x9f2   :  { %7808 = vmatmul.msk.f32.gmra.mxu3 %vm5756_vm11, %v11328_v26 }
 0x9f3   :  { %5128 = vrot.lane.b32.xlu2 %v4410_v37, %s8108_s6  ;;  %v5567_v37 = vsel %vm1502_vm6, %v5501_v4, %v12712_v30  ;;  %v12835_v48 = vpop.f32.mrf.mxu1  ;;  %v3951_v4 = vsel %vm3904_vm10, %v3949_v34, %v3950_v29 }
 0x9f4   :  { %7929 = vmatmul.msk.f32.gmra.mxu1 %vm5756_vm11, %v11981_v41  ;;  %v5502_v62 = vsel %vm1435_vm4, %v3951_v4, %v12733_v21  ;;  %v4166_v21 = vrot.slane %v12577_v12, 7  ;;  %v4325_v4 = vrot.slane %v12539_v28, 1 }
 0x9f5   :  { %v12823_v19 = vpop.permute.xlu2 %5110  ;;  %5359 = vrot.lane.b32.xlu0 %v4575_v39, %s8107_s25  ;;  %4708 = vrot.lane.b32.xlu1 %v4251_v25, %s8104_s21  ;;  %v12854_v30 = vpop.f32.mrf.mxu3 }
 0x9f6   :  { %15310 = vst [vmem:[#allocation40_spill] sm:$0xff] %v12854_v30 }
 0x9f7   :  { %v5103_v36 = vpop.permute.xlu0 %5102  ;;  %v5105_v51 = vpop.permute.xlu1 %5104 }
 0x9f8   :  { %v5633_v41 = vsel %vm1582_vm5, %v5567_v37, %v5103_v36  ;;  %v5568_v36 = vsel %vm1502_vm6, %v5502_v62, %v4877_v44  ;;  %v12872_v62 = vpop.f32.mrf.mxu0 }
 0x9f9   :  { %v12838_v39 = vsel %vm3212_vm7, %v5633_v41, %v5334_v33  ;;  %v4490_v41 = vsel %vm4422_vm9, %v4488_v42, %v4489_v43  ;;  %v5634_v34 = vsel %vm1582_vm5, %v5568_v36, %v5105_v51  ;;  %v12864_v33 = vpop.f32.mrf.mxu2  ;;  %v4326_v42 = vrot.slane %v12577_v12, 1  ;;  %15313 = vst [vmem:[#allocation82_spill] sm:$0xff] %v12872_v62 }
 0x9fa   :  { %15309 = vst [vmem:[#allocation77_spill] sm:$0xff] %v12838_v39  ;;  %7742 = vmatmul.msk.f32.gmra.mxu2 %vm5756_vm11, %v12838_v39  ;;  %7878 = vmatmul.msk.f32.gmra.mxu0 %vm5756_vm11, %v12838_v39  ;;  %v12870_v44 = vsel %vm3212_vm7, %v5634_v34, %v12765_v0  ;;  %v4167_v51 = vsel %vm646_vm3, %v4165_v32, %v4166_v21  ;;  %v4168_v21 = vrot.slane %v12614_v22, 7  ;;  %v15316_v62 = vrot.slane %v12178_v18, 6 }
 0x9fb   :  { %7809 = vmatmul.msk.f32.gmra.mxu3 %vm5756_vm11, %v11347_v2  ;;  %4902 = vrot.lane.b32.xlu2 %v12539_v28, %s8105_s26  ;;  %15311 = vst [vmem:[#allocation28_spill] sm:$0xff] %v12864_v33  ;;  %v4411_v0 = vsel %vm844_vm2, %v4326_v42, 0.0  ;;  %v4327_v36 = vsel %vm844_vm2, %v4325_v4, %v4326_v42  ;;  %v4576_v42 = vsel %vm4422_vm9, %v4489_v43, 0.0 }
 0x9fc   :  { %7930 = vmatmul.msk.f32.gmra.mxu1 %vm5756_vm11, %v12036_v23  ;;  %15312 = vst [vmem:[#allocation42_spill] sm:$0xff] %v12870_v44  ;;  %v4086_v47 = vsel %vm3904_vm10, 0.0, %v15316_v62  ;;  %v4252_v4 = vsel %vm646_vm3, 0.0, %v4168_v21 }
 0x9fd   :  { %v12857_v25 = vpop.permute.xlu2 %4692  ;;  %4904 = vrot.lane.b32.xlu0 %v12577_v12, %s8105_s26  ;;  %5361 = vrot.lane.b32.xlu1 %v4490_v41, %s8107_s25  ;;  %v12879_v41 = vpop.f32.mrf.mxu1 }
 0x9fe   :  { %v12895_v33 = vpop.f32.mrf.mxu3 }
 0x9ff   :  { %v4689_v29 = vpop.permute.xlu0 %4688  ;;  %v4883_v37 = vpop.permute.xlu1 %4882  ;;  %15315 = vst [vmem:[#allocation32_spill] sm:$0xff] %v12895_v33  ;;  %v4492_v33 = vrot.slane %v12657_v46, 2 }
 0xa01   :  { %v12892_v32 = vpop.f32.mrf.mxu2 }
 0xa02   :  { %7743 = vmatmul.msk.f32.gmra.mxu2 %vm5756_vm11, %v12870_v44  ;;  %7879 = vmatmul.msk.f32.gmra.mxu0 %vm5756_vm11, %v12870_v44  ;;  %15314 = vst [vmem:[#allocation44_spill] sm:$0xff] %v12892_v32 }
 0xa03   :  { %7810 = vmatmul.msk.f32.gmra.mxu3 %vm5756_vm11, %v11328_v26  ;;  %4710 = vrot.lane.b32.xlu2 %v4167_v51, %s8104_s21 }
 0xa04   :  { %7931 = vmatmul.msk.f32.gmra.mxu1 %vm5756_vm11, %v12063_v9 }
 0xa05   :  { %v12888_v34 = vpop.permute.xlu2 %5345  ;;  %5132 = vrot.lane.b32.xlu1 %v4411_v0, %s8108_s6  ;;  %5130 = vrot.lane.b32.xlu0 %v4327_v36, %s8108_s6  ;;  %v5505_v0 = vsel %vm1435_vm4, %v4086_v47, %v4689_v29  ;;  %v12910_v18 = vpop.f32.mrf.mxu1 }
 0xa06   :  { %v5571_v43 = vsel %vm1502_vm6, %v5505_v0, %v4883_v37  ;;  %v12918_v47 = vpop.f32.mrf.mxu3 }
 0xa07   :  { %v5342_v51 = vpop.permute.xlu0 %5341  ;;  %v4691_v30 = vpop.permute.xlu1 %4690  ;;  %15317 = vst [vmem:[#allocation46_spill] sm:$0xff] %v12918_v47  ;;  %v5637_v9 = vsel %vm1582_vm5, %v5571_v43, %v12823_v19 }
 0xa08   :  { %v12928_v23 = vsel %vm3212_vm7, %v5637_v9, %v5342_v51  ;;  %v5506_v37 = vsel %vm1435_vm4, %v12314_v49, %v4691_v30  ;;  %v4328_v30 = vrot.slane %v12614_v22, 1 }
 0xa09   :  { %v12920_v32 = vpop.f32.mrf.mxu2  ;;  %v5572_v49 = vsel %vm1502_vm6, %v5506_v37, %v12797_v27  ;;  %v4171_v37 = vrot.slane %v12693_v10, 7 }
 0xa0a   :  { %7744 = vmatmul.msk.f32.gmra.mxu2 %vm5756_vm11, %v11328_v26  ;;  %15318 = vst [vmem:[#allocation85_spill] sm:$0xff] %v12920_v32 }
 0xa0b   :  { %7811 = vmatmul.msk.f32.gmra.mxu3 %vm5756_vm11, %v11347_v2  ;;  %5363 = vrot.lane.b32.xlu2 %v4576_v42, %s8107_s25  ;;  %v4491_v42 = vrot.slane %v12614_v22, 2 }
 0xa0c   :  { %7932 = vmatmul.msk.f32.gmra.mxu1 %vm5756_vm11, %v12116_v6  ;;  %v4169_v6 = vrot.slane %v12657_v46, 7 }
 0xa0d   :  { %v12912_v62 = vpop.permute.xlu2 %5116  ;;  %4906 = vrot.lane.b32.xlu1 %v12614_v22, %s8105_s26  ;;  %4712 = vrot.lane.b32.xlu0 %v4252_v4, %s8104_s21  ;;  %v4493_v19 = vsel %vm4422_vm9, %v4491_v42, %v4492_v33  ;;  %v4329_v4 = vrot.slane %v12657_v46, 1  ;;  %v12950_v0 = vpop.f32.mrf.mxu1 }
 0xa0e   :  { %v4170_v9 = vsel %vm646_vm3, %v4168_v21, %v4169_v6  ;;  %v12955_v21 = vpop.f32.mrf.mxu3 }
 0xa0f   :  { %v5113_v29 = vpop.permute.xlu0 %5112  ;;  %v5344_v36 = vpop.permute.xlu1 %5343  ;;  %15320 = vst [vmem:[#allocation90_spill] sm:$0xff] %v12955_v21  ;;  %v4330_v27 = vsel %vm844_vm2, %v4328_v30, %v4329_v4 }
 0xa10   :  { %v5638_v43 = vsel %vm1582_vm5, %v5572_v49, %v5113_v29  ;;  %v4412_v29 = vsel %vm844_vm2, %v4329_v4, 0.0 }
 0xa11   :  { %v12953_v6 = vpop.f32.mrf.mxu2 }
 0xa12   :  { %7745 = vmatmul.msk.f32.gmra.mxu2 %vm5756_vm11, %v11347_v2  ;;  %15319 = vst [vmem:[#allocation47_spill] sm:$0xff] %v12953_v6 }
 0xa13   :  { %4908 = vrot.lane.b32.xlu2 %v12657_v46, %s8105_s26  ;;  %7812 = vmatmul.msk.f32.gmra.mxu3 %vm5756_vm11, %v12928_v23 }
 0xa14   :  { %7933 = vmatmul.msk.f32.gmra.mxu1 %vm5756_vm11, %v12149_v59 }
 0xa15   :  { %v12942_v51 = vpop.permute.xlu2 %4890  ;;  %5365 = vrot.lane.b32.xlu0 %v4493_v19, %s8107_s25  ;;  %4714 = vrot.lane.b32.xlu1 %v4170_v9, %s8104_s21  ;;  %v3958_v19 = vrot.slane %v12229_v60, 6  ;;  %v12959_v9 = vsel %vm3212_vm7, %v5638_v43, %v5344_v36  ;;  %v4577_v60 = vsel %vm4422_vm9, %v4492_v33, 0.0  ;;  %v3959_v36 = vrot.slane %v12260_v58, 6 }
 0xa16   :  { %v4253_v58 = vsel %vm646_vm3, 0.0, %v4171_v37  ;;  %v12983_v21 = vpop.f32.mrf.mxu3 }
 0xa17   :  { %v4887_v42 = vpop.permute.xlu0 %4886  ;;  %v4889_v32 = vpop.permute.xlu1 %4888  ;;  %v4087_v30 = vsel %vm3904_vm10, 0.0, %v3958_v19  ;;  %v3960_v33 = vsel %vm3904_vm10, %v3958_v19, %v3959_v36  ;;  %15321 = vst [vmem:[#allocation66_spill] sm:$0xff] %v12983_v21  ;;  %v7997_v19 = vld [vmem:[%s14790_s9 + $0x188] sm:$0xff] }
 0xa18   :  { %v5507_v43 = vsel %vm1435_vm4, %v4087_v30, %v12857_v25  ;;  %6958 = vmatpush.msrb.mxu2 %v7997_v19 }
 0xa19   :  { %v5573_v4 = vsel %vm1502_vm6, %v5507_v43, %v4887_v42  ;;  %v12991_v25 = vpop.f32.mrf.mxu2 }
 0xa1a   :  { %7746 = vmatmul.msk.f32.gmra.mxu2 %vm5756_vm11, %v12928_v23  ;;  %15322 = vst [vmem:[#allocation48_spill] sm:$0xff] %v12991_v25  ;;  %v3961_v25 = vrot.slane %v12297_v53, 6 }
 0xa1b   :  { %5134 = vrot.lane.b32.xlu2 %v4330_v27, %s8108_s6  ;;  %7813 = vmatmul.msk.f32.gmra.mxu3 %vm5756_vm11, %v12959_v9 }
 0xa1c   :  { %7934 = vmatmul.msk.f32.gmra.mxu1 %vm5756_vm11, %v12176_v31 }
 0xa1d   :  { %v12973_v49 = vpop.permute.xlu2 %4698  ;;  %5136 = vrot.lane.b32.xlu0 %v4412_v29, %s8108_s6  ;;  %5367 = vrot.lane.b32.xlu1 %v4577_v60, %s8107_s25  ;;  %v12987_v60 = vpop.f32.mrf.mxu1 }
 0xa1e   :  { %v13025_v19 = vpop.f32.mrf.mxu3 }
 0xa1f   :  { %v4695_v27 = vpop.permute.xlu0 %4694  ;;  %v5115_v6 = vpop.permute.xlu1 %5114  ;;  %15323 = vst [vmem:[#allocation92_spill] sm:$0xff] %v13025_v19 }
 0xa20   :  { %v5639_v47 = vsel %vm1582_vm5, %v5573_v4, %v5115_v6  ;;  %v5508_v29 = vsel %vm1435_vm4, %v3960_v33, %v4695_v27  ;;  %v4331_v4 = vrot.slane %v12693_v10, 1  ;;  %v4332_v33 = vrot.slane %v12724_v45, 1 }
 0xa21   :  { %v12995_v42 = vsel %vm3212_vm7, %v5639_v47, %v12888_v34  ;;  %v5574_v6 = vsel %vm1502_vm6, %v5508_v29, %v4889_v32  ;;  %v4494_v34 = vrot.slane %v12693_v10, 2  ;;  %v4495_v47 = vrot.slane %v12724_v45, 2 }
 0xa22   :  { %7747 = vmatmul.msk.f32.gmra.mxu2 %vm5756_vm11, %v12959_v9  ;;  %v5640_v32 = vsel %vm1582_vm5, %v5574_v6, %v12912_v62  ;;  %v13034_v6 = vpop.f32.mrf.mxu2 }
 0xa23   :  { %4716 = vrot.lane.b32.xlu2 %v4253_v58, %s8104_s21  ;;  %7814 = vmatmul.msk.f32.gmra.mxu3 %vm5756_vm11, %v12995_v42  ;;  %v4172_v58 = vrot.slane %v12724_v45, 7  ;;  %v4496_v29 = vsel %vm4422_vm9, %v4494_v34, %v4495_v47  ;;  %15324 = vst [vmem:[#allocation3_spill] sm:$0xff] %v13034_v6  ;;  %v4578_v53 = vsel %vm4422_vm9, %v4495_v47, 0.0 }
 0xa24   :  { %7935 = vmatmul.msk.f32.gmra.mxu1 %vm5756_vm11, %v12206_v50  ;;  %v4498_v50 = vrot.slane %v12806_v40, 2 }
 0xa25   :  { %v13006_v36 = vpop.permute.xlu2 %5351  ;;  %4910 = vrot.lane.b32.xlu0 %v12693_v10, %s8105_s26  ;;  %4912 = vrot.lane.b32.xlu1 %v12724_v45, %s8105_s26  ;;  %v13030_v62 = vpop.f32.mrf.mxu1  ;;  %v4173_v34 = vsel %vm646_vm3, %v4171_v37, %v4172_v58  ;;  %v4088_v37 = vsel %vm3904_vm10, 0.0, %v3961_v25 }
 0xa26   :  { %v13054_v58 = vpop.f32.mrf.mxu3 }
 0xa27   :  { %v5348_v30 = vpop.permute.xlu0 %5347  ;;  %v4697_v27 = vpop.permute.xlu1 %4696  ;;  %15325 = vst [vmem:[#allocation4_spill] sm:$0xff] %v13054_v58  ;;  %v4497_v58 = vrot.slane %v12763_v15, 2 }
 0xa28   :  { %v13017_v43 = vsel %vm3212_vm7, %v5640_v32, %v5348_v30  ;;  %v4333_v30 = vsel %vm844_vm2, %v4331_v4, %v4332_v33  ;;  %v5509_v4 = vsel %vm1435_vm4, %v4088_v37, %v4697_v27 }
 0xa29   :  { %v5575_v27 = vsel %vm1502_vm6, %v5509_v4, %v12942_v51 }
 0xa2a   :  { %7748 = vmatmul.msk.f32.gmra.mxu2 %vm5756_vm11, %v12995_v42 }
 0xa2b   :  { %5369 = vrot.lane.b32.xlu2 %v4496_v29, %s8107_s25  ;;  %7815 = vmatmul.msk.f32.gmra.mxu3 %vm5756_vm11, %v13017_v43  ;;  %v4174_v29 = vrot.slane %v12763_v15, 7 }
 0xa2c   :  { %7936 = vmatmul.msk.f32.gmra.mxu1 %vm5756_vm11, %v12257_v3  ;;  %v4413_v3 = vsel %vm844_vm2, %v4332_v33, 0.0 }
 0xa2d   :  { %v13038_v32 = vpop.permute.xlu2 %4896  ;;  %5138 = vrot.lane.b32.xlu1 %v4333_v30, %s8108_s6  ;;  %4718 = vrot.lane.b32.xlu0 %v4173_v34, %s8104_s21  ;;  %v4254_v6 = vsel %vm646_vm3, 0.0, %v4174_v29  ;;  %v13058_v33 = vpop.f32.mrf.mxu1 }
 0xa2e   :  { %v13060_v34 = vpop.f32.mrf.mxu2 }
 0xa2f   :  { %v4893_v19 = vpop.permute.xlu0 %4892  ;;  %v5350_v21 = vpop.permute.xlu1 %5349  ;;  %15326 = vst [vmem:[#allocation2_spill] sm:$0xff] %v13060_v34 }
 0xa32   :  { %7749 = vmatmul.msk.f32.gmra.mxu2 %vm5756_vm11, %v13017_v43 }
 0xa33   :  { %5140 = vrot.lane.b32.xlu2 %v4413_v3, %s8108_s6  ;;  %v3962_v3 = vrot.slane %v12328_v20, 6 }
 0xa34   :  { %7937 = vmatmul.msk.f32.gmra.mxu1 %vm5756_vm11, %v12281_v17 }
 0xa35   :  { %v5123_v30 = vpop.permute.xlu2 %5122  ;;  %5371 = vrot.lane.b32.xlu0 %v4578_v53, %s8107_s25  ;;  %4720 = vrot.lane.b32.xlu1 %v4254_v6, %s8104_s21  ;;  %v3963_v20 = vsel %vm3904_vm10, %v3961_v25, %v3962_v3  ;;  %v3964_v6 = vrot.slane %v12372_v38, 6 }
 0xa36   :  { %v5510_v51 = vsel %vm1435_vm4, %v3963_v20, %v12973_v49  ;;  %v13091_v3 = vpop.f32.mrf.mxu2  ;;  %v4175_v49 = vrot.slane %v12806_v40, 7  ;;  %v4335_v20 = vrot.slane %v12806_v40, 1 }
 0xa37   :  { %v5119_v37 = vpop.permute.xlu0 %5118  ;;  %v5121_v17 = vpop.permute.xlu1 %5120  ;;  %v5576_v4 = vsel %vm1502_vm6, %v5510_v51, %v4893_v19  ;;  %15327 = vst [vmem:[#allocation6_spill] sm:$0xff] %v13091_v3  ;;  %v4089_v19 = vsel %vm3904_vm10, 0.0, %v3964_v6  ;;  %v4334_v51 = vrot.slane %v12763_v15, 1 }
 0xa38   :  { %v5641_v47 = vsel %vm1582_vm5, %v5575_v27, %v5119_v37  ;;  %v5642_v25 = vsel %vm1582_vm5, %v5576_v4, %v5121_v17  ;;  %v13094_v37 = vpop.f32.mrf.mxu3  ;;  %v4176_v4 = vsel %vm646_vm3, %v4174_v29, %v4175_v49  ;;  %v4177_v29 = vrot.slane %v12835_v48, 7 }
 0xa39   :  { %v13069_v53 = vsel %vm3212_vm7, %v5641_v47, %v5350_v21  ;;  %v4499_v21 = vsel %vm4422_vm9, %v4497_v58, %v4498_v50  ;;  %15328 = vst [vmem:[#allocation51_spill] sm:$0xff] %v13094_v37  ;;  %v13096_v47 = vpop.f32.mrf.mxu1 }
 0xa3a   :  { %7750 = vmatmul.msk.f32.gmra.mxu2 %vm5756_vm11, %v13069_v53  ;;  %7816 = vmatmul.msk.f32.gmra.mxu3 %vm5756_vm11, %v13069_v53 }
 0xa3b   :  { %4914 = vrot.lane.b32.xlu2 %v12763_v15, %s8105_s26 }
 0xa3c   :  { %7938 = vmatmul.msk.f32.gmra.mxu1 %vm5756_vm11, %v12336_v8 }
 0xa3d   :  { %v13085_v27 = vpop.permute.xlu2 %4704  ;;  %4916 = vrot.lane.b32.xlu0 %v12806_v40, %s8105_s26  ;;  %5373 = vrot.lane.b32.xlu1 %v4499_v21, %s8107_s25  ;;  %v13103_v21 = vsel %vm3212_vm7, %v5642_v25, %v13006_v36  ;;  %v4414_v36 = vsel %vm844_vm2, %v4335_v20, 0.0  ;;  %v4336_v25 = vsel %vm844_vm2, %v4334_v51, %v4335_v20 }
 0xa3f   :  { %v4701_v58 = vpop.permute.xlu0 %4700  ;;  %v4895_v38 = vpop.permute.xlu1 %4894 }
 0xa40   :  { %v5511_v17 = vsel %vm1435_vm4, %v4089_v19, %v4701_v58  ;;  %v13122_v49 = vpop.f32.mrf.mxu3 }
 0xa41   :  { %v5577_v3 = vsel %vm1502_vm6, %v5511_v17, %v4895_v38  ;;  %15329 = vst [vmem:[#allocation97_spill] sm:$0xff] %v13122_v49  ;;  %v3965_v17 = vrot.slane %v12409_v16, 6  ;;  %v13131_v51 = vpop.f32.mrf.mxu1 }
 0xa42   :  { %7751 = vmatmul.msk.f32.gmra.mxu2 %vm5756_vm11, %v13103_v21  ;;  %7817 = vmatmul.msk.f32.gmra.mxu3 %vm5756_vm11, %v13103_v21  ;;  %v5643_v38 = vsel %vm1582_vm5, %v5577_v3, %v5123_v30 }
 0xa43   :  { %4722 = vrot.lane.b32.xlu2 %v4176_v4, %s8104_s21  ;;  %v13126_v4 = vpop.f32.mrf.mxu2  ;;  %v3966_v16 = vsel %vm3904_vm10, %v3964_v6, %v3965_v17 }
 0xa44   :  { %7939 = vmatmul.msk.f32.gmra.mxu1 %vm5756_vm11, %v12370_v54  ;;  %15330 = vst [vmem:[#allocation10_spill] sm:$0xff] %v13126_v4 }
 0xa45   :  { %v13117_v58 = vpop.permute.xlu2 %5357  ;;  %5144 = vrot.lane.b32.xlu1 %v4414_v36, %s8108_s6  ;;  %5142 = vrot.lane.b32.xlu0 %v4336_v25, %s8108_s6  ;;  %v4579_v36 = vsel %vm4422_vm9, %v4498_v50, 0.0  ;;  %v4255_v25 = vsel %vm646_vm3, 0.0, %v4177_v29 }
 0xa47   :  { %v5354_v19 = vpop.permute.xlu0 %5353  ;;  %v4703_v20 = vpop.permute.xlu1 %4702 }
 0xa48   :  { %v13129_v34 = vsel %vm3212_vm7, %v5643_v38, %v5354_v19  ;;  %v5512_v30 = vsel %vm1435_vm4, %v3966_v16, %v4703_v20  ;;  %v4500_v20 = vrot.slane %v12835_v48, 2  ;;  %v4178_v16 = vrot.slane %v12879_v41, 7  ;;  %v13160_v49 = vpop.f32.mrf.mxu3 }
 0xa49   :  { %v5578_v19 = vsel %vm1502_vm6, %v5512_v30, %v13038_v32  ;;  %15333 = vst [vmem:[#allocation64_spill] sm:$0xff] %v13160_v49  ;;  %v13168_v32 = vpop.f32.mrf.mxu1  ;;  %v3967_v49 = vrot.slane %v12445_v24, 6  ;;  %v3968_v24 = vrot.slane %v12483_v35, 6 }
 0xa4a   :  { %7752 = vmatmul.msk.f32.gmra.mxu2 %vm5756_vm11, %v13129_v34  ;;  %7818 = vmatmul.msk.f32.gmra.mxu3 %vm5756_vm11, %v13129_v34  ;;  %v4179_v30 = vsel %vm646_vm3, %v4177_v29, %v4178_v16  ;;  %v7996_v29 = vld [vmem:[%s14790_s9 + $0x180] sm:$0xff] }
 0xa4b   :  { %5375 = vrot.lane.b32.xlu2 %v4579_v36, %s8107_s25  ;;  %v13151_v38 = vpop.f32.mrf.mxu2  ;;  %v4501_v36 = vrot.slane %v12879_v41, 2  ;;  %6959 = vmatpush.msrb.mxu2 %v7996_v29  ;;  %v3969_v35 = vsel %vm3904_vm10, %v3967_v49, %v3968_v24 }
 0xa4c   :  { %7940 = vmatmul.msk.f32.gmra.mxu1 %vm5756_vm11, %v12398_v13  ;;  %15331 = vst [vmem:[#allocation99_spill] sm:$0xff] %v13151_v38 }
 0xa4d   :  { %v13144_v3 = vpop.permute.xlu2 %5128  ;;  %4918 = vrot.lane.b32.xlu1 %v12835_v48, %s8105_s26  ;;  %4724 = vrot.lane.b32.xlu0 %v4255_v25, %s8104_s21  ;;  %v4502_v25 = vsel %vm4422_vm9, %v4500_v20, %v4501_v36 }
 0xa4f   :  { %v5125_v50 = vpop.permute.xlu0 %5124  ;;  %v5356_v17 = vpop.permute.xlu1 %5355 }
 0xa50   :  { %v5644_v6 = vsel %vm1582_vm5, %v5578_v19, %v5125_v50  ;;  %v4337_v19 = vrot.slane %v12835_v48, 1  ;;  %v13206_v13 = vpop.f32.mrf.mxu3 }
 0xa51   :  { %v13158_v4 = vsel %vm3212_vm7, %v5644_v6, %v5356_v17  ;;  %v4338_v6 = vrot.slane %v12879_v41, 1  ;;  %15335 = vst [vmem:[#allocation52_spill] sm:$0xff] %v13206_v13 }
 0xa52   :  { %15332 = vst [vmem:[#allocation63_spill] sm:$0xff] %v13158_v4  ;;  %7753 = vmatmul.msk.f32.gmra.mxu2 %vm5756_vm11, %v13158_v4  ;;  %7819 = vmatmul.msk.f32.gmra.mxu3 %vm5756_vm11, %v13158_v4 }
 0xa53   :  { %4920 = vrot.lane.b32.xlu2 %v12879_v41, %s8105_s26  ;;  %v13181_v37 = vpop.f32.mrf.mxu2  ;;  %v4339_v20 = vsel %vm844_vm2, %v4337_v19, %v4338_v6  ;;  %v4415_v16 = vsel %vm844_vm2, %v4338_v6, 0.0  ;;  %v13198_v19 = vpop.f32.mrf.mxu1 }
 0xa54   :  { %7941 = vmatmul.msk.f32.gmra.mxu1 %vm5756_vm11, %v12430_v57  ;;  %15334 = vst [vmem:[#allocation8_spill] sm:$0xff] %v13181_v37 }
 0xa55   :  { %v13174_v50 = vpop.permute.xlu2 %4902  ;;  %5377 = vrot.lane.b32.xlu0 %v4502_v25, %s8107_s25  ;;  %4726 = vrot.lane.b32.xlu1 %v4179_v30, %s8104_s21  ;;  %v4580_v25 = vsel %vm4422_vm9, %v4501_v36, 0.0  ;;  %v4180_v30 = vrot.slane %v12910_v18, 7 }
 0xa57   :  { %v4899_v17 = vpop.permute.xlu0 %4898  ;;  %v4901_v38 = vpop.permute.xlu1 %4900  ;;  %v4256_v57 = vsel %vm646_vm3, 0.0, %v4180_v30 }
 0xa5b   :  { %5146 = vrot.lane.b32.xlu2 %v4339_v20, %s8108_s6  ;;  %v4090_v20 = vsel %vm3904_vm10, 0.0, %v3967_v49  ;;  %v13234_v24 = vpop.f32.mrf.mxu1 }
 0xa5c   :  { %7942 = vmatmul.msk.f32.gmra.mxu1 %vm5756_vm11, %v12500_v11  ;;  %v5513_v29 = vsel %vm1435_vm4, %v4090_v20, %v13085_v27  ;;  %v13217_v27 = vpop.f32.mrf.mxu2 }
 0xa5d   :  { %v13194_v37 = vpop.permute.xlu2 %4710  ;;  %5148 = vrot.lane.b32.xlu0 %v4415_v16, %s8108_s6  ;;  %5379 = vrot.lane.b32.xlu1 %v4580_v25, %s8107_s25  ;;  %v5579_v36 = vsel %vm1502_vm6, %v5513_v29, %v4899_v17  ;;  %15337 = vst [vmem:[#allocation59_spill] sm:$0xff] %v13217_v27 }
 0xa5f   :  { %v4707_v6 = vpop.permute.xlu0 %4706  ;;  %v5127_v11 = vpop.permute.xlu1 %5126 }
 0xa60   :  { %v5645_v16 = vsel %vm1582_vm5, %v5579_v36, %v5127_v11  ;;  %v5514_v25 = vsel %vm1435_vm4, %v3969_v35, %v4707_v6  ;;  %v4340_v6 = vrot.slane %v12910_v18, 1  ;;  %v4341_v36 = vrot.slane %v12950_v0, 1 }
 0xa61   :  { %v13212_v54 = vsel %vm3212_vm7, %v5645_v16, %v13117_v58  ;;  %v5580_v49 = vsel %vm1502_vm6, %v5514_v25, %v4901_v38  ;;  %v4504_v58 = vrot.slane %v12950_v0, 2  ;;  %v4181_v35 = vrot.slane %v12950_v0, 7  ;;  %v13243_v25 = vpop.f32.mrf.mxu3 }
 0xa62   :  { %15336 = vst [vmem:[#allocation86_spill] sm:$0xff] %v13212_v54  ;;  %7754 = vmatmul.msk.f32.gmra.mxu2 %vm5756_vm11, %v13212_v54  ;;  %7820 = vmatmul.msk.f32.gmra.mxu3 %vm5756_vm11, %v13212_v54  ;;  %v5646_v38 = vsel %vm1582_vm5, %v5580_v49, %v13144_v3  ;;  %v4342_v3 = vsel %vm844_vm2, %v4340_v6, %v4341_v36 }
 0xa63   :  { %4728 = vrot.lane.b32.xlu2 %v4256_v57, %s8104_s21  ;;  %v4503_v57 = vrot.slane %v12910_v18, 2  ;;  %15339 = vst [vmem:[#allocation65_spill] sm:$0xff] %v13243_v25  ;;  %v4182_v49 = vsel %vm646_vm3, %v4180_v30, %v4181_v35  ;;  %v13262_v6 = vpop.f32.mrf.mxu1  ;;  %v4416_v30 = vsel %vm844_vm2, %v4341_v36, 0.0 }
 0xa64   :  { %7943 = vmatmul.msk.f32.gmra.mxu1 %vm5756_vm11, %v12532_v56 }
 0xa65   :  { %v13224_v11 = vpop.permute.xlu2 %5363  ;;  %4922 = vrot.lane.b32.xlu0 %v12910_v18, %s8105_s26  ;;  %4924 = vrot.lane.b32.xlu1 %v12950_v0, %s8105_s26  ;;  %v4505_v16 = vsel %vm4422_vm9, %v4503_v57, %v4504_v58  ;;  %v13258_v57 = vpop.f32.mrf.mxu2 }
 0xa66   :  { %15340 = vst [vmem:[#allocation54_spill] sm:$0xff] %v13258_v57 }
 0xa67   :  { %v5360_v17 = vpop.permute.xlu0 %5359  ;;  %v4709_v29 = vpop.permute.xlu1 %4708 }
 0xa68   :  { %v13237_v20 = vsel %vm3212_vm7, %v5646_v38, %v5360_v17  ;;  %v4183_v38 = vrot.slane %v12987_v60, 7 }
 0xa69   :  { %15338 = vst [vmem:[#allocation61_spill] sm:$0xff] %v13237_v20 }
 0xa6a   :  { %7755 = vmatmul.msk.f32.gmra.mxu2 %vm5756_vm11, %v13237_v20  ;;  %7821 = vmatmul.msk.f32.gmra.mxu3 %vm5756_vm11, %v13237_v20  ;;  %v4257_v35 = vsel %vm646_vm3, 0.0, %v4183_v38 }
 0xa6b   :  { %5381 = vrot.lane.b32.xlu2 %v4505_v16, %s8107_s25  ;;  %v3970_v16 = vrot.slane %v12539_v28, 6  ;;  %v13272_v28 = vpop.f32.mrf.mxu3 }
 0xa6c   :  { %7944 = vmatmul.msk.f32.gmra.mxu1 %vm5756_vm11, %v12593_v55  ;;  %15341 = vst [vmem:[#allocation89_spill] sm:$0xff] %v13272_v28  ;;  %v3971_v55 = vrot.slane %v12577_v12, 6  ;;  %v4507_v28 = vrot.slane %v13030_v62, 2 }
 0xa6d   :  { %v13254_v17 = vpop.permute.xlu2 %4908  ;;  %5150 = vrot.lane.b32.xlu1 %v4342_v3, %s8108_s6  ;;  %4730 = vrot.lane.b32.xlu0 %v4182_v49, %s8104_s21  ;;  %v4091_v13 = vsel %vm3904_vm10, 0.0, %v3970_v16  ;;  %v4581_v49 = vsel %vm4422_vm9, %v4504_v58, 0.0  ;;  %v13276_v36 = vpop.f32.mrf.mxu2  ;;  %v4506_v58 = vrot.slane %v12987_v60, 2 }
 0xa6e   :  { %v5515_v3 = vsel %vm1435_vm4, %v4091_v13, %v4709_v29  ;;  %15342 = vst [vmem:[#allocation56_spill] sm:$0xff] %v13276_v36  ;;  %v3972_v12 = vsel %vm3904_vm10, %v3970_v16, %v3971_v55 }
 0xa6f   :  { %v4905_v27 = vpop.permute.xlu0 %4904  ;;  %v5362_v25 = vpop.permute.xlu1 %5361 }
 0xa73   :  { %5152 = vrot.lane.b32.xlu2 %v4416_v30, %s8108_s6  ;;  %v5581_v30 = vsel %vm1502_vm6, %v5515_v3, %v13174_v50  ;;  %v13294_v50 = vpop.f32.mrf.mxu1  ;;  %v13310_v16 = vpop.f32.mrf.mxu3 }
 0xa74   :  { %7945 = vmatmul.msk.f32.gmra.mxu1 %vm5756_vm11, %v12631_v7  ;;  %15344 = vst [vmem:[#allocation91_spill] sm:$0xff] %v13294_v50 }
 0xa75   :  { %v5135_v57 = vpop.permute.xlu2 %5134  ;;  %5383 = vrot.lane.b32.xlu0 %v4581_v49, %s8107_s25  ;;  %4732 = vrot.lane.b32.xlu1 %v4257_v35, %s8104_s21  ;;  %v5516_v35 = vsel %vm1435_vm4, %v3972_v12, %v13194_v37  ;;  %v4184_v37 = vrot.slane %v13030_v62, 7  ;;  %15345 = vst [vmem:[#allocation93_spill] sm:$0xff] %v13310_v16  ;;  %v4343_v12 = vrot.slane %v12987_v60, 1  ;;  %v4189_v16 = vrot.slane %v13131_v51, 7 }
 0xa76   :  { %v5582_v3 = vsel %vm1502_vm6, %v5516_v35, %v4905_v27  ;;  %v4344_v27 = vrot.slane %v13030_v62, 1 }
 0xa77   :  { %v5131_v13 = vpop.permute.xlu0 %5130  ;;  %v5133_v29 = vpop.permute.xlu1 %5132 }
 0xa78   :  { %v5647_v7 = vsel %vm1582_vm5, %v5581_v30, %v5131_v13  ;;  %v5648_v55 = vsel %vm1582_vm5, %v5582_v3, %v5133_v29  ;;  %v13312_v13 = vpop.f32.mrf.mxu2 }
 0xa79   :  { %v13285_v56 = vsel %vm3212_vm7, %v5647_v7, %v5362_v25  ;;  %v4508_v7 = vsel %vm4422_vm9, %v4506_v58, %v4507_v28  ;;  %v3973_v25 = vrot.slane %v12614_v22, 6  ;;  %15346 = vst [vmem:[#allocation94_spill] sm:$0xff] %v13312_v13  ;;  %v13319_v35 = vsel %vm3212_vm7, %v5648_v55, %v13224_v11 }
 0xa7a   :  { %15343 = vst [vmem:[#allocation58_spill] sm:$0xff] %v13285_v56  ;;  %7756 = vmatmul.msk.f32.gmra.mxu2 %vm5756_vm11, %v13285_v56  ;;  %7822 = vmatmul.msk.f32.gmra.mxu3 %vm5756_vm11, %v13285_v56  ;;  %v4417_v11 = vsel %vm844_vm2, %v4344_v27, 0.0  ;;  %v4345_v55 = vsel %vm844_vm2, %v4343_v12, %v4344_v27 }
 0xa7b   :  { %4926 = vrot.lane.b32.xlu2 %v12987_v60, %s8105_s26  ;;  %v4092_v22 = vsel %vm3904_vm10, 0.0, %v3973_v25  ;;  %15347 = vst [vmem:[#allocation67_spill] sm:$0xff] %v13319_v35 }
 0xa7c   :  { %7946 = vmatmul.msk.f32.gmra.mxu1 %vm5756_vm11, %v12661_v14 }
 0xa7d   :  { %v13303_v49 = vpop.permute.xlu2 %4716  ;;  %4928 = vrot.lane.b32.xlu0 %v13030_v62, %s8105_s26  ;;  %5385 = vrot.lane.b32.xlu1 %v4508_v7, %s8107_s25  ;;  %v4185_v7 = vsel %vm646_vm3, %v4183_v38, %v4184_v37  ;;  %v13337_v38 = vpop.f32.mrf.mxu1  ;;  %v4186_v37 = vrot.slane %v13058_v33, 7 }
 0xa7f   :  { %v4713_v30 = vpop.permute.xlu0 %4712  ;;  %v4907_v58 = vpop.permute.xlu1 %4906 }
 0xa80   :  { %v5517_v29 = vsel %vm1435_vm4, %v4092_v22, %v4713_v30  ;;  %v13340_v22 = vpop.f32.mrf.mxu3  ;;  %v13344_v13 = vpop.f32.mrf.mxu2 }
 0xa81   :  { %v5583_v3 = vsel %vm1502_vm6, %v5517_v29, %v4907_v58  ;;  %15348 = vst [vmem:[#allocation95_spill] sm:$0xff] %v13340_v22  ;;  %v3976_v22 = vrot.slane %v12693_v10, 6 }
 0xa82   :  { %7757 = vmatmul.msk.f32.gmra.mxu2 %vm5756_vm11, %v13319_v35  ;;  %7823 = vmatmul.msk.f32.gmra.mxu3 %vm5756_vm11, %v13319_v35  ;;  %v5649_v29 = vsel %vm1582_vm5, %v5583_v3, %v5135_v57  ;;  %15349 = vst [vmem:[#allocation98_spill] sm:$0xff] %v13344_v13 }
 0xa83   :  { %4734 = vrot.lane.b32.xlu2 %v4185_v7, %s8104_s21  ;;  %v3974_v7 = vrot.slane %v12657_v46, 6  ;;  %v7995_v46 = vld [vmem:[%s14790_s9 + $0x178] sm:$0xff]  ;;  %v4093_v10 = vsel %vm3904_vm10, 0.0, %v3976_v22 }
 0xa84   :  { %7947 = vmatmul.msk.f32.gmra.mxu1 %vm5756_vm11, %v12696_v5  ;;  %6960 = vmatpush.msrb.mxu2 %v7995_v46  ;;  %v4187_v46 = vrot.slane %v13096_v47, 7  ;;  %v4515_v5 = vrot.slane %v13198_v19, 2 }
 0xa85   :  { %v13333_v30 = vpop.permute.xlu2 %5369  ;;  %5156 = vrot.lane.b32.xlu1 %v4417_v11, %s8108_s6  ;;  %5154 = vrot.lane.b32.xlu0 %v4345_v55, %s8108_s6  ;;  %v4582_v11 = vsel %vm4422_vm9, %v4507_v28, 0.0  ;;  %v4258_v55 = vsel %vm646_vm3, 0.0, %v4186_v37  ;;  %v3975_v57 = vsel %vm3904_vm10, %v3973_v25, %v3974_v7 }
 0xa87   :  { %v5366_v58 = vpop.permute.xlu0 %5365  ;;  %v4715_v12 = vpop.permute.xlu1 %4714 }
 0xa88   :  { %v13347_v27 = vsel %vm3212_vm7, %v5649_v29, %v5366_v58  ;;  %v5518_v3 = vsel %vm1435_vm4, %v3975_v57, %v4715_v12  ;;  %v13370_v29 = vpop.f32.mrf.mxu1  ;;  %v4510_v57 = vrot.slane %v13096_v47, 2  ;;  %v13379_v36 = vpop.f32.mrf.mxu3 }
 0xa89   :  { %15350 = vst [vmem:[#allocation96_spill] sm:$0xff] %v13347_v27  ;;  %v5584_v58 = vsel %vm1502_vm6, %v5518_v3, %v13254_v17  ;;  %v4188_v3 = vsel %vm646_vm3, %v4186_v37, %v4187_v46 }
 0xa8a   :  { %7758 = vmatmul.msk.f32.gmra.mxu2 %vm5756_vm11, %v13347_v27  ;;  %7824 = vmatmul.msk.f32.gmra.mxu3 %vm5756_vm11, %v13347_v27  ;;  %15352 = vst [vmem:[#allocation34_spill] sm:$0xff] %v13379_v36 }
 0xa8b   :  { %5387 = vrot.lane.b32.xlu2 %v4582_v11, %s8107_s25  ;;  %v4509_v11 = vrot.slane %v13058_v33, 2 }
 0xa8c   :  { %7948 = vmatmul.msk.f32.gmra.mxu1 %vm5756_vm11, %v12751_v52 }
 0xa8d   :  { %v13363_v28 = vpop.permute.xlu2 %5140  ;;  %4930 = vrot.lane.b32.xlu1 %v13058_v33, %s8105_s26  ;;  %4736 = vrot.lane.b32.xlu0 %v4258_v55, %s8104_s21  ;;  %v13381_v55 = vpop.f32.mrf.mxu2  ;;  %v4511_v17 = vsel %vm4422_vm9, %v4509_v11, %v4510_v57 }
 0xa8e   :  { %15353 = vst [vmem:[#allocation9_spill] sm:$0xff] %v13381_v55 }
 0xa8f   :  { %v5137_v25 = vpop.permute.xlu0 %5136  ;;  %v5368_v12 = vpop.permute.xlu1 %5367 }
 0xa90   :  { %v5650_v7 = vsel %vm1582_vm5, %v5584_v58, %v5137_v25  ;;  %v4346_v58 = vrot.slane %v13058_v33, 1  ;;  %v13399_v36 = vpop.f32.mrf.mxu1 }
 0xa91   :  { %v13377_v13 = vsel %vm3212_vm7, %v5650_v7, %v5368_v12  ;;  %v4347_v7 = vrot.slane %v13096_v47, 1 }
 0xa92   :  { %15351 = vst [vmem:[#allocation84_spill] sm:$0xff] %v13377_v13  ;;  %7759 = vmatmul.msk.f32.gmra.mxu2 %vm5756_vm11, %v13377_v13  ;;  %7825 = vmatmul.msk.f32.gmra.mxu3 %vm5756_vm11, %v13377_v13 }
 0xa93   :  { %4932 = vrot.lane.b32.xlu2 %v13096_v47, %s8105_s26  ;;  %v4348_v11 = vsel %vm844_vm2, %v4346_v58, %v4347_v7  ;;  %v4418_v46 = vsel %vm844_vm2, %v4347_v7, 0.0  ;;  %v5519_v58 = vsel %vm1435_vm4, %v4093_v10, %v13303_v49 }
 0xa94   :  { %7949 = vmatmul.msk.f32.gmra.mxu1 %vm5756_vm11, %v12778_v63 }
 0xa95   :  { %v13393_v25 = vpop.permute.xlu2 %4914  ;;  %5389 = vrot.lane.b32.xlu0 %v4511_v17, %s8107_s25  ;;  %4738 = vrot.lane.b32.xlu1 %v4188_v3, %s8104_s21  ;;  %v13404_v37 = vpop.f32.mrf.mxu2  ;;  %v4583_v17 = vsel %vm4422_vm9, %v4510_v57, 0.0  ;;  %v3977_v3 = vrot.slane %v12724_v45, 6  ;;  %v4259_v45 = vsel %vm646_vm3, 0.0, %v4189_v16 }
 0xa96   :  { %15354 = vst [vmem:[#allocation88_spill] sm:$0xff] %v13404_v37 }
 0xa97   :  { %v4911_v12 = vpop.permute.xlu0 %4910  ;;  %v4913_v55 = vpop.permute.xlu1 %4912  ;;  %v3978_v57 = vsel %vm3904_vm10, %v3976_v22, %v3977_v3 }
 0xa98   :  { %v5585_v7 = vsel %vm1502_vm6, %v5519_v58, %v4911_v12  ;;  %v13433_v49 = vpop.f32.mrf.mxu1  ;;  %v4349_v58 = vrot.slane %v13131_v51, 1 }
 0xa9b   :  { %5158 = vrot.lane.b32.xlu2 %v4348_v11, %s8108_s6 }
 0xa9c   :  { %7950 = vmatmul.msk.f32.gmra.mxu1 %vm5756_vm11, %v12838_v39 }
 0xa9d   :  { %v13412_v63 = vpop.permute.xlu2 %4722  ;;  %5160 = vrot.lane.b32.xlu0 %v4418_v46, %s8108_s6  ;;  %5391 = vrot.lane.b32.xlu1 %v4583_v17, %s8107_s25  ;;  %v13424_v46 = vpop.f32.mrf.mxu3 }
 0xa9e   :  { %15355 = vst [vmem:[#allocation69_spill] sm:$0xff] %v13424_v46 }
 0xa9f   :  { %v4719_v11 = vpop.permute.xlu0 %4718  ;;  %v5139_v37 = vpop.permute.xlu1 %5138 }
 0xaa0   :  { %v5651_v39 = vsel %vm1582_vm5, %v5585_v7, %v5139_v37  ;;  %v5520_v52 = vsel %vm1435_vm4, %v3978_v57, %v4719_v11  ;;  %v4350_v11 = vrot.slane %v13168_v32, 1  ;;  %v4190_v7 = vrot.slane %v13168_v32, 7 }
 0xaa1   :  { %v13428_v17 = vsel %vm3212_vm7, %v5651_v39, %v13333_v30  ;;  %v5586_v22 = vsel %vm1502_vm6, %v5520_v52, %v4913_v55  ;;  %v13446_v39 = vpop.f32.mrf.mxu2  ;;  %v4512_v30 = vrot.slane %v13131_v51, 2  ;;  %v4513_v52 = vrot.slane %v13168_v32, 2 }
 0xaa2   :  { %15356 = vst [vmem:[#allocation68_spill] sm:$0xff] %v13428_v17  ;;  %7760 = vmatmul.msk.f32.gmra.mxu2 %vm5756_vm11, %v13428_v17  ;;  %7826 = vmatmul.msk.f32.gmra.mxu3 %vm5756_vm11, %v13428_v17  ;;  %v5652_v37 = vsel %vm1582_vm5, %v5586_v22, %v13363_v28  ;;  %v4351_v28 = vsel %vm844_vm2, %v4349_v58, %v4350_v11  ;;  %v4419_v58 = vsel %vm844_vm2, %v4350_v11, 0.0 }
 0xaa3   :  { %4740 = vrot.lane.b32.xlu2 %v4259_v45, %s8104_s21  ;;  %15357 = vst [vmem:[#allocation50_spill] sm:$0xff] %v13446_v39  ;;  %v4514_v57 = vsel %vm4422_vm9, %v4512_v30, %v4513_v52  ;;  %v4191_v22 = vsel %vm646_vm3, %v4189_v16, %v4190_v7  ;;  %v4192_v30 = vrot.slane %v13198_v19, 7 }
 0xaa4   :  { %7951 = vmatmul.msk.f32.gmra.mxu1 %vm5756_vm11, %v12870_v44 }
 0xaa5   :  { %v13440_v12 = vpop.permute.xlu2 %5375  ;;  %4934 = vrot.lane.b32.xlu0 %v13131_v51, %s8105_s26  ;;  %4936 = vrot.lane.b32.xlu1 %v13168_v32, %s8105_s26  ;;  %v13462_v45 = vpop.f32.mrf.mxu3  ;;  %v4260_v16 = vsel %vm646_vm3, 0.0, %v4192_v30 }
 0xaa6   :  { %15359 = vst [vmem:[#allocation101_spill] sm:$0xff] %v13462_v45 }
 0xaa7   :  { %v5372_v55 = vpop.permute.xlu0 %5371  ;;  %v4721_v10 = vpop.permute.xlu1 %4720 }
 0xaa8   :  { %v13453_v3 = vsel %vm3212_vm7, %v5652_v37, %v5372_v55  ;;  %v3979_v37 = vrot.slane %v12763_v15, 6 }
 0xaa9   :  { %15358 = vst [vmem:[#allocation100_spill] sm:$0xff] %v13453_v3  ;;  %v13474_v39 = vpop.f32.mrf.mxu2 }
 0xaaa   :  { %7761 = vmatmul.msk.f32.gmra.mxu2 %vm5756_vm11, %v13453_v3  ;;  %7827 = vmatmul.msk.f32.gmra.mxu3 %vm5756_vm11, %v13453_v3  ;;  %15360 = vst [vmem:[#allocation102_spill] sm:$0xff] %v13474_v39  ;;  %v4094_v7 = vsel %vm3904_vm10, 0.0, %v3979_v37  ;;  %v3980_v39 = vrot.slane %v12806_v40, 6 }
 0xaab   :  { %5393 = vrot.lane.b32.xlu2 %v4514_v57, %s8107_s25 }
 0xaac   :  { %v3981_v40 = vsel %vm3904_vm10, %v3979_v37, %v3980_v39  ;;  %v4193_v37 = vrot.slane %v13234_v24, 7 }
 0xaad   :  { %v13468_v55 = vpop.permute.xlu2 %4920  ;;  %5162 = vrot.lane.b32.xlu1 %v4351_v28, %s8108_s6  ;;  %4742 = vrot.lane.b32.xlu0 %v4191_v22, %s8104_s21  ;;  %v5521_v28 = vsel %vm1435_vm4, %v4094_v7, %v4721_v10  ;;  %v4584_v22 = vsel %vm4422_vm9, %v4513_v52, 0.0  ;;  %v13484_v15 = vpop.f32.mrf.mxu3  ;;  %v4516_v52 = vrot.slane %v13234_v24, 2  ;;  %v4352_v7 = vrot.slane %v13198_v19, 1 }
 0xaae   :  { %15361 = vst [vmem:[#allocation103_spill] sm:$0xff] %v13484_v15  ;;  %v5587_v11 = vsel %vm1502_vm6, %v5521_v28, %v13393_v25  ;;  %v3982_v28 = vrot.slane %v12835_v48, 6 }
 0xaaf   :  { %v4917_v57 = vpop.permute.xlu0 %4916  ;;  %v5374_v45 = vpop.permute.xlu1 %5373  ;;  %v4517_v25 = vsel %vm4422_vm9, %v4515_v5, %v4516_v52  ;;  %v7994_v5 = vld [vmem:[%s14790_s9 + $0x170] sm:$0xff] }
 0xab0   :  { %6961 = vmatpush.msrb.mxu2 %v7994_v5 }
 0xab1   :  { %v13497_v15 = vpop.f32.mrf.mxu2 }
 0xab2   :  { %15363 = vst [vmem:[#allocation105_spill] sm:$0xff] %v13497_v15 }
 0xab3   :  { %5164 = vrot.lane.b32.xlu2 %v4419_v58, %s8108_s6 }
 0xab5   :  { %v5147_v46 = vpop.permute.xlu2 %5146  ;;  %5395 = vrot.lane.b32.xlu0 %v4584_v22, %s8107_s25  ;;  %4744 = vrot.lane.b32.xlu1 %v4260_v16, %s8104_s21  ;;  %v4353_v22 = vrot.slane %v13234_v24, 1 }
 0xab7   :  { %v5143_v44 = vpop.permute.xlu0 %5142  ;;  %v5145_v58 = vpop.permute.xlu1 %5144 }
 0xab8   :  { %v5653_v10 = vsel %vm1582_vm5, %v5587_v11, %v5143_v44  ;;  %v5522_v44 = vsel %vm1435_vm4, %v3981_v40, %v13412_v63 }
 0xab9   :  { %v13495_v16 = vsel %vm3212_vm7, %v5653_v10, %v5374_v45  ;;  %v4354_v45 = vsel %vm844_vm2, %v4352_v7, %v4353_v22  ;;  %v5588_v11 = vsel %vm1502_vm6, %v5522_v44, %v4917_v57  ;;  %v13521_v7 = vpop.f32.mrf.mxu3  ;;  %v4095_v57 = vsel %vm3904_vm10, 0.0, %v3982_v28 }
 0xaba   :  { %15362 = vst [vmem:[#allocation104_spill] sm:$0xff] %v13495_v16  ;;  %7762 = vmatmul.msk.f32.gmra.mxu2 %vm5756_vm11, %v13495_v16  ;;  %7828 = vmatmul.msk.f32.gmra.mxu3 %vm5756_vm11, %v13495_v16  ;;  %v5654_v39 = vsel %vm1582_vm5, %v5588_v11, %v5145_v58  ;;  %v4194_v58 = vsel %vm646_vm3, %v4192_v30, %v4193_v37  ;;  %v13537_v11 = vpop.f32.mrf.mxu2  ;;  %v3983_v37 = vrot.slane %v12879_v41, 6 }
 0xabb   :  { %4938 = vrot.lane.b32.xlu2 %v13198_v19, %s8105_s26  ;;  %15364 = vst [vmem:[#allocation106_spill] sm:$0xff] %v13521_v7  ;;  %v13526_v40 = vsel %vm3212_vm7, %v5654_v39, %v13440_v12 }
 0xabc   :  { %15365 = vst [vmem:[#allocation107_spill] sm:$0xff] %v13537_v11 }
 0xabd   :  { %v13512_v10 = vpop.permute.xlu2 %4728  ;;  %5397 = vrot.lane.b32.xlu1 %v4517_v25, %s8107_s25  ;;  %5166 = vrot.lane.b32.xlu0 %v4354_v45, %s8108_s6  ;;  %v4420_v45 = vsel %vm844_vm2, %v4353_v22, 0.0  ;;  %v4147_v22 = vrot.slane %v12118_v1, 7 }
 0xabf   :  { %v4725_v63 = vpop.permute.xlu0 %4724  ;;  %v4919_v48 = vpop.permute.xlu1 %4918 }
 0xac0   :  { %v5523_v44 = vsel %vm1435_vm4, %v4095_v57, %v4725_v63  ;;  %v4585_v57 = vsel %vm4422_vm9, %v4516_v52, 0.0  ;;  %v4307_v52 = vrot.slane %v12118_v1, 1 }
 0xac1   :  { %v5589_v25 = vsel %vm1502_vm6, %v5523_v44, %v4919_v48  ;;  %v13544_v5 = vpop.f32.mrf.mxu3  ;;  %v4245_v44 = vsel %vm646_vm3, 0.0, %v4147_v22 }
 0xac2   :  { %7763 = vmatmul.msk.f32.gmra.mxu2 %vm5756_vm11, %v13526_v40  ;;  %7829 = vmatmul.msk.f32.gmra.mxu3 %vm5756_vm11, %v13526_v40  ;;  %v5655_v39 = vsel %vm1582_vm5, %v5589_v25, %v5147_v46  ;;  %15366 = vst [vmem:[#allocation108_spill] sm:$0xff] %v13544_v5  ;;  %v3984_v46 = vsel %vm3904_vm10, %v3982_v28, %v3983_v37  ;;  %v15367_v25 = vld [vmem:[#allocation20_spill] sm:$0xff] }
 0xac3   :  { %4746 = vrot.lane.b32.xlu2 %v4194_v58, %s8104_s21  ;;  %v4471_v11 = vrot.slane %v15367_v25, 2 }
 0xac5   :  { %v5382_v12 = vpop.permute.xlu2 %5381  ;;  %5168 = vrot.lane.b32.xlu1 %v4420_v45, %s8108_s6  ;;  %4940 = vrot.lane.b32.xlu0 %v13234_v24, %s8105_s26  ;;  %v4308_v45 = vrot.slane %v15367_v25, 1 }
 0xac7   :  { %v5378_v30 = vpop.permute.xlu0 %5377  ;;  %v4727_v48 = vpop.permute.xlu1 %4726 }
 0xac8   :  { %v13547_v63 = vsel %vm3212_vm7, %v5655_v39, %v5378_v30  ;;  %v5524_v41 = vsel %vm1435_vm4, %v3984_v46, %v4727_v48  ;;  %v13564_v30 = vpop.f32.mrf.mxu2  ;;  %v4470_v46 = vrot.slane %v12118_v1, 2 }
 0xac9   :  { %15368 = vst [vmem:[#allocation20_spill] sm:$0xff] %v13564_v30  ;;  %v5590_v28 = vsel %vm1502_vm6, %v5524_v41, %v13468_v55  ;;  %v13575_v15 = vpop.f32.mrf.mxu3  ;;  %v4309_v30 = vsel %vm844_vm2, %v4307_v52, %v4308_v45 }
 0xaca   :  { %7764 = vmatmul.msk.f32.gmra.mxu2 %vm5756_vm11, %v13547_v63  ;;  %7830 = vmatmul.msk.f32.gmra.mxu3 %vm5756_vm11, %v13547_v63  ;;  %15369 = vst [vmem:[#allocation109_spill] sm:$0xff] %v13575_v15  ;;  %v4472_v41 = vsel %vm4422_vm9, %v4470_v46, %v4471_v11 }
 0xacb   :  { %5399 = vrot.lane.b32.xlu2 %v4585_v57, %s8107_s25  ;;  %v4148_v57 = vrot.slane %v15367_v25, 7 }
 0xacd   :  { %v5153_v58 = vpop.permute.xlu2 %5152  ;;  %4878 = vrot.lane.b32.xlu1 %v12118_v1, %s8105_s26  ;;  %4684 = vrot.lane.b32.xlu0 %v4245_v44, %s8104_s21  ;;  %v4149_v55 = vsel %vm646_vm3, %v4147_v22, %v4148_v57  ;;  %v4405_v22 = vsel %vm844_vm2, %v4308_v45, 0.0  ;;  %v3986_v57 = vrot.slane %v12950_v0, 6 }
 0xacf   :  { %v5149_v39 = vpop.permute.xlu0 %5148  ;;  %v5380_v48 = vpop.permute.xlu1 %5379 }
 0xad0   :  { %v5656_v37 = vsel %vm1582_vm5, %v5590_v28, %v5149_v39  ;;  %v13587_v52 = vpop.f32.mrf.mxu2 }
 0xad1   :  { %v13573_v44 = vsel %vm3212_vm7, %v5656_v37, %v5380_v48  ;;  %15370 = vst [vmem:[#allocation110_spill] sm:$0xff] %v13587_v52  ;;  %v3985_v48 = vrot.slane %v12910_v18, 6  ;;  %v13597_v46 = vpop.f32.mrf.mxu3 }
 0xad2   :  { %7765 = vmatmul.msk.f32.gmra.mxu2 %vm5756_vm11, %v13573_v44  ;;  %7831 = vmatmul.msk.f32.gmra.mxu3 %vm5756_vm11, %v13573_v44  ;;  %15371 = vst [vmem:[#allocation111_spill] sm:$0xff] %v13597_v46 }
 0xad3   :  { %5106 = vrot.lane.b32.xlu2 %v4309_v30, %s8108_s6  ;;  %v4570_v30 = vsel %vm4422_vm9, %v4471_v11, 0.0  ;;  %v3987_v45 = vsel %vm3904_vm10, %v3985_v48, %v3986_v57 }
 0xad5   :  { %v4927_v39 = vpop.permute.xlu2 %4926  ;;  %4686 = vrot.lane.b32.xlu1 %v4149_v55, %s8104_s21  ;;  %5337 = vrot.lane.b32.xlu0 %v4472_v41, %s8107_s25  ;;  %v4096_v55 = vsel %vm3904_vm10, 0.0, %v3985_v48 }
 0xad6   :  { %v5525_v18 = vsel %vm1435_vm4, %v4096_v55, %v13512_v10  ;;  %v3988_v55 = vrot.slane %v12987_v60, 6 }
 0xad7   :  { %v4923_v28 = vpop.permute.xlu0 %4922  ;;  %v4925_v37 = vpop.permute.xlu1 %4924 }
 0xad8   :  { %v5591_v15 = vsel %vm1502_vm6, %v5525_v18, %v4923_v28  ;;  %v13609_v46 = vpop.f32.mrf.mxu2 }
 0xad9   :  { %15372 = vst [vmem:[#allocation112_spill] sm:$0xff] %v13609_v46 }
 0xadb   :  { %4880 = vrot.lane.b32.xlu2 %v15367_v25, %s8105_s26 }
 0xadd   :  { %5339 = vrot.lane.b32.xlu1 %v4570_v30, %s8107_s25  ;;  %5108 = vrot.lane.b32.xlu0 %v4405_v22, %s8108_s6  ;;  %v4735_v41 = vpop.permute.xlu2 %4734 }
 0xadf   :  { %v4731_v52 = vpop.permute.xlu0 %4730  ;;  %v5151_v11 = vpop.permute.xlu1 %5150 }
 0xae0   :  { %v5657_v0 = vsel %vm1582_vm5, %v5591_v15, %v5151_v11  ;;  %v5526_v30 = vsel %vm1435_vm4, %v3987_v45, %v4731_v52  ;;  %v13619_v52 = vpop.f32.mrf.mxu3  ;;  %v7993_v45 = vld [vmem:[%s14790_s9 + $0x168] sm:$0xff] }
 0xae1   :  { %v13607_v22 = vsel %vm3212_vm7, %v5657_v0, %v5382_v12  ;;  %v5592_v10 = vsel %vm1502_vm6, %v5526_v30, %v4925_v37  ;;  %15373 = vst [vmem:[#allocation113_spill] sm:$0xff] %v13619_v52  ;;  %v13628_v37 = vpop.f32.mrf.mxu2  ;;  %v4097_v0 = vsel %vm3904_vm10, 0.0, %v3988_v55  ;;  %6962 = vmatpush.msrb.mxu2 %v7993_v45 }
 0xae2   :  { %7766 = vmatmul.msk.f32.gmra.mxu2 %vm5756_vm11, %v13607_v22  ;;  %7832 = vmatmul.msk.f32.gmra.mxu3 %vm5756_vm11, %v13607_v22  ;;  %v5658_v15 = vsel %vm1582_vm5, %v5592_v10, %v5153_v58  ;;  %15374 = vst [vmem:[#allocation114_spill] sm:$0xff] %v13628_v37 }
 0xae5   :  { %4942 = vrot.lane.b32.xlu0 %v13262_v6, %s8105_s26  ;;  %v5388_v57 = vpop.permute.xlu2 %5387 }
 0xae7   :  { %v5384_v28 = vpop.permute.xlu0 %5383  ;;  %v4733_v48 = vpop.permute.xlu1 %4732 }
 0xae8   :  { %v13622_v12 = vsel %vm3212_vm7, %v5658_v15, %v5384_v28  ;;  %v13631_v58 = vpop.f32.mrf.mxu3  ;;  %v5527_v10 = vsel %vm1435_vm4, %v4097_v0, %v4733_v48  ;;  %v3989_v15 = vrot.slane %v13030_v62, 6 }
 0xae9   :  { %15375 = vst [vmem:[#allocation115_spill] sm:$0xff] %v13631_v58  ;;  %v13638_v28 = vpop.f32.mrf.mxu2  ;;  %v5593_v60 = vsel %vm1502_vm6, %v5527_v10, %v4927_v39  ;;  %v3991_v39 = vrot.slane %v13058_v33, 6 }
 0xaea   :  { %7767 = vmatmul.msk.f32.gmra.mxu2 %vm5756_vm11, %v13622_v12  ;;  %7833 = vmatmul.msk.f32.gmra.mxu3 %vm5756_vm11, %v13622_v12  ;;  %15376 = vst [vmem:[#allocation116_spill] sm:$0xff] %v13638_v28  ;;  %v3990_v48 = vsel %vm3904_vm10, %v3988_v55, %v3989_v15 }
 0xaeb   :  { %v5528_v62 = vsel %vm1435_vm4, %v3990_v48, %v4735_v41  ;;  %v4098_v28 = vsel %vm3904_vm10, 0.0, %v3991_v39 }
 0xaed   :  { %v4933_v30 = vpop.permute.xlu2 %4932 }
 0xaef   :  { %v4929_v18 = vpop.permute.xlu0 %4928  ;;  %v5386_v11 = vpop.permute.xlu1 %5385 }
 0xaf0   :  { %v13651_v45 = vpop.f32.mrf.mxu3  ;;  %v5594_v0 = vsel %vm1502_vm6, %v5528_v62, %v4929_v18 }
 0xaf1   :  { %15377 = vst [vmem:[#allocation117_spill] sm:$0xff] %v13651_v45 }
 0xaf7   :  { %v5155_v37 = vpop.permute.xlu0 %5154  ;;  %v5157_v46 = vpop.permute.xlu1 %5156 }
 0xaf8   :  { %v5659_v58 = vsel %vm1582_vm5, %v5593_v60, %v5155_v37  ;;  %v5159_v37 = vpop.permute.xlu2 %5158  ;;  %v13671_v41 = vpop.f32.mrf.mxu3 }
 0xaf9   :  { %v13644_v52 = vsel %vm3212_vm7, %v5659_v58, %v5386_v11  ;;  %v5660_v11 = vsel %vm1582_vm5, %v5594_v0, %v5157_v46  ;;  %v13657_v58 = vpop.f32.mrf.mxu2  ;;  %v13669_v46 = vpop.f32.mrf.mxu1  ;;  %15379 = vst [vmem:[#allocation119_spill] sm:$0xff] %v13671_v41 }
 0xafa   :  { %7768 = vmatmul.msk.f32.gmra.mxu2 %vm5756_vm11, %v13644_v52  ;;  %7834 = vmatmul.msk.f32.gmra.mxu3 %vm5756_vm11, %v13644_v52  ;;  %15378 = vst [vmem:[#allocation118_spill] sm:$0xff] %v13657_v58  ;;  %v13661_v5 = vsel %vm3212_vm7, %v5660_v11, %v5388_v57  ;;  %v3992_v57 = vrot.slane %v13096_v47, 6 }
 0xafc   :  { %v3993_v11 = vsel %vm3904_vm10, %v3991_v39, %v3992_v57 }
 0xaff   :  { %v4737_v10 = vpop.permute.xlu0 %4736  ;;  %v4931_v60 = vpop.permute.xlu1 %4930 }
 0xb00   :  { %v5529_v55 = vsel %vm1435_vm4, %v4098_v28, %v4737_v10  ;;  %v4741_v18 = vpop.permute.xlu2 %4740  ;;  %v13695_v58 = vpop.f32.mrf.mxu3 }
 0xb01   :  { %v5595_v33 = vsel %vm1502_vm6, %v5529_v55, %v4931_v60  ;;  %v13678_v0 = vpop.f32.mrf.mxu2  ;;  %v13686_v60 = vpop.f32.mrf.mxu1  ;;  %15384 = vst [vmem:[#allocation124_spill] sm:$0xff] %v13695_v58 }
 0xb02   :  { %7769 = vmatmul.msk.f32.gmra.mxu2 %vm5756_vm11, %v13661_v5  ;;  %7835 = vmatmul.msk.f32.gmra.mxu3 %vm5756_vm11, %v13661_v5  ;;  %v5661_v48 = vsel %vm1582_vm5, %v5595_v33, %v5159_v37  ;;  %15381 = vst [vmem:[#allocation121_spill] sm:$0xff] %v13678_v0 }
 0xb07   :  { %v5390_v15 = vpop.permute.xlu0 %5389  ;;  %v4739_v62 = vpop.permute.xlu1 %4738 }
 0xb08   :  { %v13676_v28 = vsel %vm3212_vm7, %v5661_v48, %v5390_v15  ;;  %v5530_v10 = vsel %vm1435_vm4, %v3993_v11, %v4739_v62  ;;  %v5394_v48 = vpop.permute.xlu2 %5393  ;;  %v7992_v62 = vld [vmem:[%s14790_s9 + $0x160] sm:$0xff] }
 0xb09   :  { %15380 = vst [vmem:[#allocation120_spill] sm:$0xff] %v13676_v28  ;;  %v5596_v47 = vsel %vm1502_vm6, %v5530_v10, %v4933_v30  ;;  %v13690_v15 = vpop.f32.mrf.mxu2  ;;  %v13701_v30 = vpop.f32.mrf.mxu0  ;;  %v3994_v10 = vrot.slane %v13131_v51, 6  ;;  %6963 = vmatpush.msrb.mxu2 %v7992_v62  ;;  %v4355_v62 = vrot.slane %v13262_v6, 1 }
 0xb0a   :  { %7770 = vmatmul.msk.f32.gmra.mxu2 %vm5756_vm11, %v13676_v28  ;;  %7836 = vmatmul.msk.f32.gmra.mxu3 %vm5756_vm11, %v13676_v28  ;;  %15382 = vst [vmem:[#allocation122_spill] sm:$0xff] %v13690_v15  ;;  %v13706_v11 = vpop.f32.mrf.mxu1  ;;  %v3995_v15 = vrot.slane %v13168_v32, 6 }
 0xb0b   :  { %v4099_v58 = vsel %vm3904_vm10, 0.0, %v3994_v10 }
 0xb0c   :  { %v5531_v51 = vsel %vm1435_vm4, %v4099_v58, %v4741_v18  ;;  %v7989_v58 = vld [vmem:[%s14790_s9 + $0x148] sm:$0xff]  ;;  %v7988_v18 = vld [vmem:[%s14790_s9 + $0x140] sm:$0xff] }
 0xb0f   :  { %v5161_v37 = vpop.permute.xlu0 %5160  ;;  %v5392_v33 = vpop.permute.xlu1 %5391 }
 0xb10   :  { %v5662_v55 = vsel %vm1582_vm5, %v5596_v47, %v5161_v37  ;;  %v5165_v47 = vpop.permute.xlu2 %5164 }
 0xb11   :  { %v13693_v0 = vsel %vm3212_vm7, %v5662_v55, %v5392_v33  ;;  %v13709_v37 = vpop.f32.mrf.mxu2  ;;  %v7991_v55 = vld [vmem:[%s14790_s9 + $0x158] sm:$0xff]  ;;  %v7990_v33 = vld [vmem:[%s14790_s9 + $0x150] sm:$0xff] }
 0xb12   :  { %15383 = vst [vmem:[#allocation123_spill] sm:$0xff] %v13693_v0  ;;  %7771 = vmatmul.msk.f32.gmra.mxu2 %vm5756_vm11, %v13693_v0  ;;  %7837 = vmatmul.msk.f32.gmra.mxu3 %vm5756_vm11, %v13693_v0  ;;  %v3996_v0 = vsel %vm3904_vm10, %v3994_v10, %v3995_v15  ;;  %v4195_v15 = vrot.slane %v13262_v6, 7 }
 0xb13   :  { %15385 = vst [vmem:[#allocation125_spill] sm:$0xff] %v13709_v37  ;;  %6964 = vmatpush.msrb.mxu2 %v7991_v55  ;;  %v14921_v37 = vrot.slane %v13294_v50, 1  ;;  %v13726_v55 = vpop.f32.mrf.mxu3 }
 0xb14   :  { %15386 = vst [vmem:[#allocation126_spill] sm:$0xff] %v13726_v55  ;;  %v4519_v55 = vrot.slane %v13294_v50, 2 }
 0xb15   :  { %6965 = vmatpush.msrb.mxu2 %v7990_v33 }
 0xb17   :  { %v4935_v39 = vpop.permute.xlu0 %4934  ;;  %v4937_v57 = vpop.permute.xlu1 %4936  ;;  %6966 = vmatpush.msrb.mxu2 %v7989_v58 }
 0xb18   :  { %v5597_v45 = vsel %vm1502_vm6, %v5531_v51, %v4935_v39  ;;  %v4357_v39 = vsel %vm844_vm2, %v4355_v62, %v14921_v37  ;;  %v3997_v51 = vrot.slane %v13198_v19, 6  ;;  %v4586_v19 = vsel %vm4422_vm9, %v4519_v55, 0.0 }
 0xb19   :  { %5170 = vrot.lane.b32.xlu1 %v4357_v39, %s8108_s6  ;;  %v13752_v33 = vpop.f32.mrf.mxu2  ;;  %6967 = vmatpush.msrb.mxu2 %v7988_v18 }
 0xb1a   :  { %15388 = vst [vmem:[#allocation128_spill] sm:$0xff] %v13752_v33 }
 0xb1b   :  { %v13767_v18 = vpop.f32.mrf.mxu3 }
 0xb1c   :  { %15390 = vst [vmem:[#allocation130_spill] sm:$0xff] %v13767_v18 }
 0xb1f   :  { %v4743_v41 = vpop.permute.xlu0 %4742  ;;  %v5163_v7 = vpop.permute.xlu1 %5162 }
 0xb20   :  { %v5663_v28 = vsel %vm1582_vm5, %v5597_v45, %v5163_v7  ;;  %v5532_v32 = vsel %vm1435_vm4, %v3996_v0, %v4743_v41  ;;  %v4196_v45 = vrot.slane %v13294_v50, 7  ;;  %v13743_v41 = vpop.f32.mrf.mxu0  ;;  %v13749_v0 = vpop.f32.mrf.mxu1 }
 0xb21   :  { %v13739_v7 = vsel %vm3212_vm7, %v5663_v28, %v5394_v48  ;;  %v5598_v10 = vsel %vm1502_vm6, %v5532_v32, %v4937_v57  ;;  %v4939_v48 = vpop.permute.xlu2 %4938  ;;  %4944 = vrot.lane.b32.xlu1 %v13294_v50, %s8105_s26  ;;  %v4100_v32 = vsel %vm3904_vm10, 0.0, %v3997_v51 }
 0xb22   :  { %15387 = vst [vmem:[#allocation127_spill] sm:$0xff] %v13739_v7  ;;  %7772 = vmatmul.msk.f32.gmra.mxu2 %vm5756_vm11, %v13739_v7  ;;  %7838 = vmatmul.msk.f32.gmra.mxu3 %vm5756_vm11, %v13739_v7  ;;  %v4197_v28 = vsel %vm646_vm3, %v4195_v15, %v4196_v45  ;;  %v5664_v58 = vsel %vm1582_vm5, %v5598_v10, %v5165_v47  ;;  %v13778_v10 = vpop.f32.mrf.mxu2 }
 0xb23   :  { %4750 = vrot.lane.b32.xlu0 %v4197_v28, %s8104_s21  ;;  %15391 = vst [vmem:[#allocation131_spill] sm:$0xff] %v13778_v10 }
 0xb27   :  { %v5396_v62 = vpop.permute.xlu0 %5395  ;;  %v4745_v37 = vpop.permute.xlu1 %4744 }
 0xb28   :  { %v13759_v39 = vsel %vm3212_vm7, %v5664_v58, %v5396_v62  ;;  %v13764_v57 = vpop.f32.mrf.mxu0  ;;  %v5533_v47 = vsel %vm1435_vm4, %v4100_v32, %v4745_v37  ;;  %v13776_v45 = vpop.f32.mrf.mxu1  ;;  %v4261_v37 = vsel %vm646_vm3, 0.0, %v4195_v15  ;;  %v4518_v15 = vrot.slane %v13262_v6, 2 }
 0xb29   :  { %15389 = vst [vmem:[#allocation129_spill] sm:$0xff] %v13759_v39  ;;  %v4747_v28 = vpop.permute.xlu2 %4746  ;;  %v5599_v62 = vsel %vm1502_vm6, %v5533_v47, %v4939_v48  ;;  %4748 = vrot.lane.b32.xlu2 %v4261_v37, %s8104_s21 }
 0xb2a   :  { %7773 = vmatmul.msk.f32.gmra.mxu2 %vm5756_vm11, %v13759_v39  ;;  %7839 = vmatmul.msk.f32.gmra.mxu3 %vm5756_vm11, %v13759_v39  ;;  %v3998_v39 = vrot.slane %v13234_v24, 6 }
 0xb2b   :  { %5403 = vrot.lane.b32.xlu0 %v4586_v19, %s8107_s25  ;;  %v13793_v19 = vpop.f32.mrf.mxu2 }
 0xb2c   :  { %v3999_v48 = vsel %vm3904_vm10, %v3997_v51, %v3998_v39  ;;  %15393 = vst [vmem:[#allocation133_spill] sm:$0xff] %v13793_v19  ;;  %v4520_v51 = vsel %vm4422_vm9, %v4518_v15, %v4519_v55  ;;  %v3952_v39 = vrot.slane %v12118_v1, 6  ;;  %v15396_v55 = vrot.slane %v13294_v50, 1  ;;  %v15397_v15 = vld [vmem:[#allocation53_spill] sm:$0xff] }
 0xb2d   :  { %v5534_v47 = vsel %vm1435_vm4, %v3999_v48, %v4747_v28 }
 0xb2f   :  { %v5167_v58 = vpop.permute.xlu0 %5166  ;;  %v5398_v33 = vpop.permute.xlu1 %5397 }
 0xb30   :  { %v5665_v18 = vsel %vm1582_vm5, %v5599_v62, %v5167_v58  ;;  %v13790_v32 = vpop.f32.mrf.mxu0 }
 0xb31   :  { %v13783_v7 = vsel %vm3212_vm7, %v5665_v18, %v5398_v33  ;;  %v13796_v33 = vpop.f32.mrf.mxu1  ;;  %v5400_v58 = vpop.permute.xlu2 %5399  ;;  %5401 = vrot.lane.b32.xlu2 %v4520_v51, %s8107_s25 }
 0xb32   :  { %15392 = vst [vmem:[#allocation132_spill] sm:$0xff] %v13783_v7  ;;  %7774 = vmatmul.msk.f32.gmra.mxu2 %vm5756_vm11, %v13783_v7 }
 0xb33   :  { %v13812_v19 = vpop.f32.mrf.mxu2 }
 0xb34   :  { %15395 = vst [vmem:[#allocation135_spill] sm:$0xff] %v13812_v19  ;;  %v3953_v19 = vrot.slane %v15367_v25, 6 }
 0xb37   :  { %v4941_v62 = vpop.permute.xlu0 %4940  ;;  %v5169_v18 = vpop.permute.xlu1 %5168 }
 0xb38   :  { %v5600_v24 = vsel %vm1502_vm6, %v5534_v47, %v4941_v62  ;;  %v13809_v28 = vpop.f32.mrf.mxu0  ;;  %v4085_v62 = vsel %vm3904_vm10, 0.0, %v3952_v39 }
 0xb39   :  { %v5666_v10 = vsel %vm1582_vm5, %v5600_v24, %v5169_v18  ;;  %v13815_v18 = vpop.f32.mrf.mxu1  ;;  %v4421_v24 = vsel %vm844_vm2, %v15396_v55, 0.0  ;;  %v5107_v1 = vpop.permute.xlu2 %5106 }
 0xb3a   :  { %v13802_v37 = vsel %vm3212_vm7, %v5666_v10, %v5400_v58  ;;  %5172 = vrot.lane.b32.xlu2 %v4421_v24, %s8108_s6 }
 0xb3b   :  { %15394 = vst [vmem:[#allocation134_spill] sm:$0xff] %v13802_v37  ;;  %7775 = vmatmul.msk.f32.gmra.mxu2 %vm5756_vm11, %v13802_v37 }
 0xb3d   :  { %v13831_v55 = vpop.f32.mrf.mxu2 }
 0xb3e   :  { %15398 = vst [vmem:[#allocation53_spill] sm:$0xff] %v13831_v55 }
 0xb3f   :  { %v4685_v48 = vpop.permute.xlu0 %4684  ;;  %v4879_v47 = vpop.permute.xlu1 %4878 }
 0xb40   :  { %v5503_v10 = vsel %vm1435_vm4, %v4085_v62, %v4685_v48  ;;  %v13824_v51 = vpop.f32.mrf.mxu0 }
 0xb41   :  { %v5569_v58 = vsel %vm1502_vm6, %v5503_v10, %v4879_v47  ;;  %v3954_v47 = vsel %vm3904_vm10, %v3952_v39, %v3953_v19  ;;  %v13840_v25 = vpop.f32.mrf.mxu1  ;;  %v4881_v24 = vpop.permute.xlu2 %4880  ;;  %v15400_v19 = vld [vmem:[#allocation35_spill] sm:$0xff] }
 0xb42   :  { %v5635_v48 = vsel %vm1582_vm5, %v5569_v58, %v5107_v1 }
 0xb43   :  { %7998 = vmatmul.msk.f32.vlgmr.msrb.gmra.mxu2 %vm5756_vm11, %v15397_v15 }
 0xb47   :  { %v5338_v37 = vpop.permute.xlu0 %5337  ;;  %v4687_v62 = vpop.permute.xlu1 %4686 }
 0xb48   :  { %v13829_v50 = vsel %vm3212_vm7, %v5635_v48, %v5338_v37  ;;  %v5504_v10 = vsel %vm1435_vm4, %v3954_v47, %v4687_v62  ;;  %v13845_v48 = vpop.f32.mrf.mxu0  ;;  %v15401_v47 = vld [vmem:[#allocation71_spill] sm:$0xff] }
 0xb49   :  { %7880 = vmatmul.msk.f32.gmra.mxu0 %vm5756_vm11, %v13829_v50  ;;  %7952 = vmatmul.msk.f32.gmra.mxu1 %vm5756_vm11, %v13829_v50  ;;  %v5570_v15 = vsel %vm1502_vm6, %v5504_v10, %v4881_v24  ;;  %v13858_v39 = vpop.f32.mrf.mxu1 }
 0xb4b   :  { %7999 = vmatmul.msk.f32.gmra.mxu2 %vm5756_vm11, %v11918_v61  ;;  %v13854_v61 = vpop.f32.mrf.mxu2 }
 0xb4c   :  { %15399 = vst [vmem:[#allocation136_spill] sm:$0xff] %v13854_v61  ;;  %v15414_v61 = vld [vmem:[#allocation13_spill] sm:$0xff] }
 0xb4f   :  { %v5109_v37 = vpop.permute.xlu0 %5108  ;;  %v5340_v1 = vpop.permute.xlu1 %5339 }
 0xb50   :  { %v5636_v58 = vsel %vm1582_vm5, %v5570_v15, %v5109_v37  ;;  %v13864_v62 = vpop.f32.mrf.mxu0 }
 0xb51   :  { %v13848_v55 = vsel %vm3212_vm7, %v5636_v58, %v5340_v1  ;;  %v13870_v24 = vpop.f32.mrf.mxu1  ;;  %v15405_v58 = vld [vmem:[#allocation70_spill] sm:$0xff] }
 0xb52   :  { %7881 = vmatmul.msk.f32.gmra.mxu0 %vm5756_vm11, %v13848_v55  ;;  %7953 = vmatmul.msk.f32.gmra.mxu1 %vm5756_vm11, %v13848_v55 }
 0xb53   :  { %8000 = vmatmul.msk.f32.gmra.mxu2 %vm5756_vm11, %v15400_v19  ;;  %v13868_v10 = vpop.f32.mrf.mxu2 }
 0xb54   :  { %15402 = vst [vmem:[#allocation35_spill] sm:$0xff] %v13868_v10 }
 0xb58   :  { %v13876_v37 = vpop.f32.mrf.mxu0 }
 0xb59   :  { %v13882_v1 = vpop.f32.mrf.mxu1 }
 0xb5a   :  { %7882 = vmatmul.msk.f32.gmra.mxu0 %vm5756_vm11, %v12928_v23  ;;  %7954 = vmatmul.msk.f32.gmra.mxu1 %vm5756_vm11, %v11328_v26  ;;  %v15403_v23 = vld [vmem:[#allocation55_spill] sm:$0xff] }
 0xb5b   :  { %8001 = vmatmul.msk.f32.gmra.mxu2 %vm5756_vm11, %v15401_v47  ;;  %v13880_v15 = vpop.f32.mrf.mxu2  ;;  %v15407_v47 = vld [vmem:[#allocation73_spill] sm:$0xff] }
 0xb5c   :  { %15404 = vst [vmem:[#allocation71_spill] sm:$0xff] %v13880_v15 }
 0xb62   :  { %7883 = vmatmul.msk.f32.gmra.mxu0 %vm5756_vm11, %v12959_v9  ;;  %7955 = vmatmul.msk.f32.gmra.mxu1 %vm5756_vm11, %v11347_v2  ;;  %v13890_v9 = vpop.f32.mrf.mxu0 }
 0xb63   :  { %8002 = vmatmul.msk.f32.gmra.mxu2 %vm5756_vm11, %v15403_v23  ;;  %v13900_v23 = vpop.f32.mrf.mxu1 }
 0xb65   :  { %v13892_v19 = vpop.f32.mrf.mxu2 }
 0xb66   :  { %15406 = vst [vmem:[#allocation55_spill] sm:$0xff] %v13892_v19 }
 0xb6a   :  { %7884 = vmatmul.msk.f32.gmra.mxu0 %vm5756_vm11, %v12995_v42  ;;  %7956 = vmatmul.msk.f32.gmra.mxu1 %vm5756_vm11, %v12995_v42  ;;  %v13902_v15 = vpop.f32.mrf.mxu0 }
 0xb6b   :  { %8003 = vmatmul.msk.f32.gmra.mxu2 %vm5756_vm11, %v15405_v58  ;;  %v13912_v58 = vpop.f32.mrf.mxu1 }
 0xb6d   :  { %v13904_v42 = vpop.f32.mrf.mxu2 }
 0xb6e   :  { %15408 = vst [vmem:[#allocation70_spill] sm:$0xff] %v13904_v42 }
 0xb72   :  { %7885 = vmatmul.msk.f32.gmra.mxu0 %vm5756_vm11, %v13017_v43  ;;  %7957 = vmatmul.msk.f32.gmra.mxu1 %vm5756_vm11, %v13017_v43  ;;  %v13914_v43 = vpop.f32.mrf.mxu0 }
 0xb73   :  { %8004 = vmatmul.msk.f32.gmra.mxu2 %vm5756_vm11, %v15407_v47  ;;  %v13924_v42 = vpop.f32.mrf.mxu1 }
 0xb7a   :  { %7886 = vmatmul.msk.f32.gmra.mxu0 %vm5756_vm11, %v13069_v53  ;;  %7958 = vmatmul.msk.f32.gmra.mxu1 %vm5756_vm11, %v13069_v53  ;;  %v13926_v19 = vpop.f32.mrf.mxu0 }
 0xb7b   :  { %8005 = vmatmul.msk.f32.gmra.mxu2 %vm5756_vm11, %v12149_v59  ;;  %15410 = vst [vmem:[#allocation137_spill] sm:$0xff] %v13926_v19  ;;  %v13936_v10 = vpop.f32.mrf.mxu1 }
 0xb7d   :  { %v13916_v47 = vpop.f32.mrf.mxu2 }
 0xb7e   :  { %15409 = vst [vmem:[#allocation73_spill] sm:$0xff] %v13916_v47  ;;  %v15412_v47 = vld [vmem:[#allocation7_spill] sm:$0xff] }
 0xb7f   :  { %15413 = vst [vmem:[#allocation7_spill] sm:$0xff] %v13936_v10 }
 0xb82   :  { %7887 = vmatmul.msk.f32.gmra.mxu0 %vm5756_vm11, %v13103_v21  ;;  %7959 = vmatmul.msk.f32.gmra.mxu1 %vm5756_vm11, %v13103_v21 }
 0xb83   :  { %8006 = vmatmul.msk.f32.gmra.mxu2 %vm5756_vm11, %v12176_v31  ;;  %v13942_v31 = vpop.f32.mrf.mxu0  ;;  %v13956_v10 = vpop.f32.mrf.mxu1 }
 0xb85   :  { %v13932_v59 = vpop.f32.mrf.mxu2 }
 0xb86   :  { %15411 = vst [vmem:[#allocation138_spill] sm:$0xff] %v13932_v59  ;;  %v15417_v59 = vld [vmem:[#allocation62_spill] sm:$0xff] }
 0xb87   :  { %15418 = vst [vmem:[#allocation62_spill] sm:$0xff] %v13956_v10 }
 0xb8a   :  { %7888 = vmatmul.msk.f32.gmra.mxu0 %vm5756_vm11, %v13129_v34  ;;  %7960 = vmatmul.msk.f32.gmra.mxu1 %vm5756_vm11, %v13129_v34 }
 0xb8b   :  { %8007 = vmatmul.msk.f32.gmra.mxu2 %vm5756_vm11, %v15412_v47  ;;  %v13952_v47 = vpop.f32.mrf.mxu0 }
 0xb8c   :  { %15416 = vst [vmem:[#allocation139_spill] sm:$0xff] %v13952_v47 }
 0xb8d   :  { %v13946_v19 = vpop.f32.mrf.mxu2 }
 0xb8e   :  { %15415 = vst [vmem:[#allocation13_spill] sm:$0xff] %v13946_v19  ;;  %v13968_v19 = vpop.f32.mrf.mxu1 }
 0xb8f   :  { %15421 = vst [vmem:[#allocation142_spill] sm:$0xff] %v13968_v19 }
 0xb92   :  { %7889 = vmatmul.msk.f32.gmra.mxu0 %vm5756_vm11, %v13158_v4  ;;  %7961 = vmatmul.msk.f32.gmra.mxu1 %vm5756_vm11, %v13158_v4 }
 0xb93   :  { %8008 = vmatmul.msk.f32.gmra.mxu2 %vm5756_vm11, %v15414_v61  ;;  %v13966_v61 = vpop.f32.mrf.mxu0 }
 0xb94   :  { %15420 = vst [vmem:[#allocation141_spill] sm:$0xff] %v13966_v61 }
 0xb95   :  { %v13958_v4 = vpop.f32.mrf.mxu2 }
 0xb96   :  { %15419 = vst [vmem:[#allocation140_spill] sm:$0xff] %v13958_v4 }
 0xb9a   :  { %7890 = vmatmul.msk.f32.gmra.mxu0 %vm5756_vm11, %v13212_v54  ;;  %7962 = vmatmul.msk.f32.gmra.mxu1 %vm5756_vm11, %v13212_v54  ;;  %v15439_v54 = vld [vmem:[#allocation83_spill] sm:$0xff] }
 0xb9b   :  { %8009 = vmatmul.msk.f32.gmra.mxu2 %vm5756_vm11, %v15417_v59  ;;  %v15423_v59 = vld [vmem:[#allocation18_spill] sm:$0xff]  ;;  %v13978_v4 = vpop.f32.mrf.mxu0 }
 0xb9c   :  { %15424 = vst [vmem:[#allocation18_spill] sm:$0xff] %v13978_v4 }
 0xba2   :  { %7891 = vmatmul.msk.f32.gmra.mxu0 %vm5756_vm11, %v13237_v20  ;;  %7963 = vmatmul.msk.f32.gmra.mxu1 %vm5756_vm11, %v13237_v20 }
 0xba3   :  { %8010 = vmatmul.msk.f32.gmra.mxu2 %vm5756_vm11, %v12336_v8  ;;  %v13982_v8 = vpop.f32.mrf.mxu1 }
 0xba4   :  { %15426 = vst [vmem:[#allocation145_spill] sm:$0xff] %v13982_v8  ;;  %v15434_v8 = vld [vmem:[#allocation41_spill] sm:$0xff] }
 0xba5   :  { %v13970_v47 = vpop.f32.mrf.mxu2 }
 0xba6   :  { %15422 = vst [vmem:[#allocation143_spill] sm:$0xff] %v13970_v47  ;;  %v15427_v47 = vld [vmem:[#allocation72_spill] sm:$0xff] }
 0xbaa   :  { %7892 = vmatmul.msk.f32.gmra.mxu0 %vm5756_vm11, %v13285_v56  ;;  %7964 = vmatmul.msk.f32.gmra.mxu1 %vm5756_vm11, %v13285_v56  ;;  %v13992_v56 = vpop.f32.mrf.mxu0 }
 0xbab   :  { %8011 = vmatmul.msk.f32.gmra.mxu2 %vm5756_vm11, %v15423_v59  ;;  %15429 = vst [vmem:[#allocation146_spill] sm:$0xff] %v13992_v56  ;;  %v13994_v59 = vpop.f32.mrf.mxu1 }
 0xbac   :  { %15430 = vst [vmem:[#allocation147_spill] sm:$0xff] %v13994_v59 }
 0xbad   :  { %v13980_v20 = vpop.f32.mrf.mxu2 }
 0xbae   :  { %15425 = vst [vmem:[#allocation144_spill] sm:$0xff] %v13980_v20  ;;  %v15431_v20 = vld [vmem:[#allocation14_spill] sm:$0xff] }
 0xbb2   :  { %7893 = vmatmul.msk.f32.gmra.mxu0 %vm5756_vm11, %v13319_v35  ;;  %7965 = vmatmul.msk.f32.gmra.mxu1 %vm5756_vm11, %v13319_v35  ;;  %v15433_v35 = vld [vmem:[#allocation11_spill] sm:$0xff]  ;;  %v14006_v19 = vpop.f32.mrf.mxu0 }
 0xbb3   :  { %8012 = vmatmul.msk.f32.gmra.mxu2 %vm5756_vm11, %v15427_v47  ;;  %v6170_v47 = vadd.f32 %v15434_v8, %v15433_v35  ;;  %15435 = vst [vmem:[#allocation11_spill] sm:$0xff] %v14006_v19  ;;  %v14015_v59 = vpop.f32.mrf.mxu1  ;;  %v14021_v35 = vld [vmem:[%s14792_s10] ss:$0 sm:$0xff]  ;;  %v15438_v19 = vld [vmem:[#allocation49_spill] sm:$0xff] }
 0xbb5   :  { %v13990_v61 = vpop.f32.mrf.mxu2 }
 0xbb6   :  { %15428 = vst [vmem:[#allocation72_spill] sm:$0xff] %v13990_v61  ;;  %v15436_v61 = vld [vmem:[#allocation76_spill] sm:$0xff] }
 0xbba   :  { %7894 = vmatmul.msk.f32.gmra.mxu0 %vm5756_vm11, %v13347_v27  ;;  %7966 = vmatmul.msk.f32.gmra.mxu1 %vm5756_vm11, %v13347_v27  ;;  %v15437_v27 = vld [vmem:[#allocation43_spill] sm:$0xff] }
 0xbbb   :  { %8013 = vmatmul.msk.f32.gmra.mxu2 %vm5756_vm11, %v15431_v20  ;;  %v6593_v56 = vadd.f32 %v15437_v27, %v6170_v47 }
 0xbbd   :  { %v6877_v20 = vadd.f32 %v13337_v38, %v6593_v56  ;;  %v15440_v56 = vld [vmem:[#allocation39_spill] sm:$0xff]  ;;  %v15441_v38 = vld [vmem:[#allocation21_spill] sm:$0xff] }
 0xbbe   :  { %v14002_v4 = vpop.f32.mrf.mxu2 }
 0xbbf   :  { %15432 = vst [vmem:[#allocation14_spill] sm:$0xff] %v14002_v4 }
 0xbc2   :  { %7895 = vmatmul.msk.f32.gmra.mxu0 %vm5756_vm11, %v13377_v13  ;;  %7967 = vmatmul.msk.f32.gmra.mxu1 %vm5756_vm11, %v13377_v13  ;;  %v6173_v13 = vadd.f32 %v15439_v54, %v15438_v19 }
 0xbc3   :  { %8014 = vmatmul.msk.f32.gmra.mxu2 %vm5756_vm11, %v15436_v61  ;;  %v14033_v61 = vpop.f32.mrf.mxu0 }
 0xbc4   :  { %v6594_v27 = vadd.f32 %v15441_v38, %v6173_v13  ;;  %v15444_v13 = vld [vmem:[#allocation29_spill] sm:$0xff] }
 0xbc6   :  { %v6969_v8 = vpop.f32.mrf.mxu2  ;;  %v6878_v54 = vadd.f32 %v13370_v29, %v6594_v27 }
 0xbc7   :  { %v7161_v4 = vadd.f32 %v6969_v8, %v6877_v20  ;;  %v15442_v20 = vld [vmem:[#allocation12_spill] sm:$0xff]  ;;  %v15443_v8 = vld [vmem:[#allocation57_spill] sm:$0xff] }
 0xbc9   :  { %v7228_v10 = vadd.f32 %v14021_v35, %v7161_v4  ;;  %v14040_v4 = vpop.f32.mrf.mxu1 }
 0xbca   :  { %7896 = vmatmul.msk.f32.gmra.mxu0 %vm5756_vm11, %v13428_v17  ;;  %7968 = vmatmul.msk.f32.gmra.mxu1 %vm5756_vm11, %v13428_v17  ;;  %v6176_v17 = vadd.f32 %v15443_v8, %v15442_v20  ;;  %v15446_v20 = vld [vmem:[#allocation79_spill] sm:$0xff]  ;;  %v15447_v8 = vld [vmem:[#allocation33_spill] sm:$0xff] }
 0xbcb   :  { %8015 = vmatmul.msk.f32.gmra.mxu2 %vm5756_vm11, %v15440_v56  ;;  %7293 = vst.msk [vmem:[%s14793_s11] sm:$0xff] %vm7292_vm12, %v7228_v10  ;;  %v15445_v10 = vld [vmem:[#allocation60_spill] sm:$0xff]  ;;  %v14052_v38 = vpop.f32.mrf.mxu0 }
 0xbcc   :  { %v6595_v29 = vadd.f32 %v15445_v10, %v6176_v17  ;;  %v15448_v17 = vld [vmem:[#allocation26_spill] sm:$0xff] }
 0xbce   :  { %v6972_v19 = vpop.f32.mrf.mxu2  ;;  %v6879_v27 = vadd.f32 %v13399_v36, %v6595_v29 }
 0xbcf   :  { %v7162_v47 = vadd.f32 %v6972_v19, %v6878_v54 }
 0xbd1   :  { %v7229_v56 = vadd.f32 %v14021_v35, %v7162_v47  ;;  %v14059_v19 = vpop.f32.mrf.mxu1 }
 0xbd2   :  { %7897 = vmatmul.msk.f32.gmra.mxu0 %vm5756_vm11, %v13453_v3  ;;  %7969 = vmatmul.msk.f32.gmra.mxu1 %vm5756_vm11, %v13453_v3  ;;  %v6179_v3 = vadd.f32 %v15447_v8, %v15446_v20  ;;  %v15451_v20 = vld [vmem:[#allocation5_spill] sm:$0xff] }
 0xbd3   :  { %8016 = vmatmul.msk.f32.gmra.mxu2 %vm5756_vm11, %v15444_v13  ;;  %7294 = vst.msk [vmem:[%s14793_s11 + $0x8] sm:$0xff] %vm7292_vm12, %v7229_v56  ;;  %v15449_v56 = vld [vmem:[#allocation78_spill] sm:$0xff]  ;;  %v14076_v29 = vpop.f32.mrf.mxu0 }
 0xbd4   :  { %v6596_v36 = vadd.f32 %v15449_v56, %v6179_v3 }
 0xbd6   :  { %v6975_v54 = vpop.f32.mrf.mxu2  ;;  %v6880_v10 = vadd.f32 %v13433_v49, %v6596_v36  ;;  %v15452_v49 = vld [vmem:[#allocation38_spill] sm:$0xff] }
 0xbd7   :  { %v7163_v47 = vadd.f32 %v6975_v54, %v6879_v27 }
 0xbd9   :  { %v7230_v13 = vadd.f32 %v14021_v35, %v7163_v47  ;;  %v15450_v47 = vld [vmem:[#allocation15_spill] sm:$0xff] }
 0xbda   :  { %7898 = vmatmul.msk.f32.gmra.mxu0 %vm5756_vm11, %v13495_v16  ;;  %7970 = vmatmul.msk.f32.gmra.mxu1 %vm5756_vm11, %v13495_v16  ;;  %v6182_v8 = vadd.f32 %v15451_v20, %v15450_v47  ;;  %v14080_v16 = vpop.f32.mrf.mxu1 }
 0xbdb   :  { %8017 = vmatmul.msk.f32.gmra.mxu2 %vm5756_vm11, %v15448_v17  ;;  %7295 = vst.msk [vmem:[%s14793_s11 + $0x10] sm:$0xff] %vm7292_vm12, %v7230_v13  ;;  %v14095_v56 = vpop.f32.mrf.mxu0 }
 0xbdc   :  { %v6597_v3 = vadd.f32 %v15452_v49, %v6182_v8  ;;  %v15456_v8 = vld [vmem:[#allocation82_spill] sm:$0xff] }
 0xbde   :  { %v6978_v27 = vpop.f32.mrf.mxu2  ;;  %v6881_v13 = vadd.f32 %v13669_v46, %v6597_v3 }
 0xbdf   :  { %v7164_v54 = vadd.f32 %v6978_v27, %v6880_v10  ;;  %v15453_v27 = vld [vmem:[#allocation37_spill] sm:$0xff] }
 0xbe1   :  { %v7231_v17 = vadd.f32 %v14021_v35, %v7164_v54  ;;  %v15454_v54 = vld [vmem:[#allocation87_spill] sm:$0xff] }
 0xbe2   :  { %7899 = vmatmul.msk.f32.gmra.mxu0 %vm5756_vm11, %v13526_v40  ;;  %7971 = vmatmul.msk.f32.gmra.mxu1 %vm5756_vm11, %v13526_v40  ;;  %v6185_v47 = vadd.f32 %v15454_v54, %v15453_v27  ;;  %v15458_v27 = vld [vmem:[#allocation23_spill] sm:$0xff] }
 0xbe3   :  { %8018 = vmatmul.msk.f32.gmra.mxu2 %vm5756_vm11, %v12661_v14  ;;  %7296 = vst.msk [vmem:[%s14793_s11 + $0x18] sm:$0xff] %vm7292_vm12, %v7231_v17  ;;  %v15455_v14 = vld [vmem:[#allocation17_spill] sm:$0xff]  ;;  %v14107_v17 = vpop.f32.mrf.mxu1 }
 0xbe4   :  { %v6598_v46 = vadd.f32 %v15456_v8, %v6185_v47  ;;  %v15459_v47 = vld [vmem:[#allocation75_spill] sm:$0xff] }
 0xbe6   :  { %v6981_v36 = vpop.f32.mrf.mxu2  ;;  %v6882_v49 = vadd.f32 %v13686_v60, %v6598_v46 }
 0xbe7   :  { %v7165_v10 = vadd.f32 %v6981_v36, %v6881_v13  ;;  %v14114_v13 = vpop.f32.mrf.mxu0 }
 0xbe9   :  { %v7232_v20 = vadd.f32 %v14021_v35, %v7165_v10  ;;  %v15457_v10 = vld [vmem:[#allocation22_spill] sm:$0xff] }
 0xbea   :  { %7900 = vmatmul.msk.f32.gmra.mxu0 %vm5756_vm11, %v13547_v63  ;;  %7972 = vmatmul.msk.f32.gmra.mxu1 %vm5756_vm11, %v13547_v63  ;;  %v6188_v54 = vadd.f32 %v15458_v27, %v15457_v10  ;;  %v15461_v10 = vld [vmem:[#allocation24_spill] sm:$0xff] }
 0xbeb   :  { %8019 = vmatmul.msk.f32.gmra.mxu2 %vm5756_vm11, %v15455_v14  ;;  %7297 = vst.msk [vmem:[%s14793_s11 + $0x20] sm:$0xff] %vm7292_vm12, %v7232_v20  ;;  %v14126_v20 = vpop.f32.mrf.mxu1 }
 0xbec   :  { %v6599_v60 = vadd.f32 %v13701_v30, %v6188_v54  ;;  %v15462_v30 = vld [vmem:[#allocation16_spill] sm:$0xff] }
 0xbee   :  { %v6984_v3 = vpop.f32.mrf.mxu2  ;;  %v6883_v8 = vadd.f32 %v13706_v11, %v6599_v60 }
 0xbef   :  { %v7166_v36 = vadd.f32 %v6984_v3, %v6882_v49  ;;  %v14133_v49 = vpop.f32.mrf.mxu0 }
 0xbf1   :  { %v7233_v14 = vadd.f32 %v14021_v35, %v7166_v36  ;;  %v15460_v36 = vld [vmem:[#allocation30_spill] sm:$0xff] }
 0xbf2   :  { %7901 = vmatmul.msk.f32.gmra.mxu0 %vm5756_vm11, %v13573_v44  ;;  %7973 = vmatmul.msk.f32.gmra.mxu1 %vm5756_vm11, %v13573_v44  ;;  %v6191_v27 = vadd.f32 %v15461_v10, %v15460_v36 }
 0xbf3   :  { %8020 = vmatmul.msk.f32.gmra.mxu2 %vm5756_vm11, %v15459_v47  ;;  %7298 = vst.msk [vmem:[%s14793_s11 + $0x28] sm:$0xff] %vm7292_vm12, %v7233_v14  ;;  %v14150_v14 = vpop.f32.mrf.mxu1 }
 0xbf4   :  { %v6600_v11 = vadd.f32 %v13743_v41, %v6191_v27  ;;  %v15465_v41 = vld [vmem:[#allocation77_spill] sm:$0xff] }
 0xbf6   :  { %v6987_v46 = vpop.f32.mrf.mxu2  ;;  %v6884_v54 = vadd.f32 %v13749_v0, %v6600_v11 }
 0xbf7   :  { %v7167_v3 = vadd.f32 %v6987_v46, %v6883_v8  ;;  %v15463_v46 = vld [vmem:[#allocation25_spill] sm:$0xff]  ;;  %v14154_v10 = vpop.f32.mrf.mxu0 }
 0xbf9   :  { %v7234_v47 = vadd.f32 %v14021_v35, %v7167_v3  ;;  %v15464_v3 = vld [vmem:[#allocation45_spill] sm:$0xff] }
 0xbfa   :  { %7902 = vmatmul.msk.f32.gmra.mxu0 %vm5756_vm11, %v13607_v22  ;;  %7974 = vmatmul.msk.f32.gmra.mxu1 %vm5756_vm11, %v13607_v22  ;;  %v6194_v36 = vadd.f32 %v15464_v3, %v15463_v46 }
 0xbfb   :  { %8021 = vmatmul.msk.f32.gmra.mxu2 %vm5756_vm11, %v15462_v30  ;;  %7299 = vst.msk [vmem:[%s14793_s11 + $0x30] sm:$0xff] %vm7292_vm12, %v7234_v47  ;;  %v14169_v11 = vpop.f32.mrf.mxu1 }
 0xbfc   :  { %v6601_v0 = vadd.f32 %v13764_v57, %v6194_v36  ;;  %v15468_v57 = vld [vmem:[#allocation42_spill] sm:$0xff] }
 0xbfe   :  { %v6990_v60 = vpop.f32.mrf.mxu2  ;;  %v6885_v27 = vadd.f32 %v13776_v45, %v6601_v0 }
 0xbff   :  { %v7168_v8 = vadd.f32 %v6990_v60, %v6884_v54  ;;  %v15466_v60 = vld [vmem:[#allocation80_spill] sm:$0xff]  ;;  %v14181_v36 = vpop.f32.mrf.mxu0 }
 0xc01   :  { %v7235_v30 = vadd.f32 %v14021_v35, %v7168_v8  ;;  %v15467_v8 = vld [vmem:[#allocation36_spill] sm:$0xff] }
 0xc02   :  { %7903 = vmatmul.msk.f32.gmra.mxu0 %vm5756_vm11, %v13622_v12  ;;  %7975 = vmatmul.msk.f32.gmra.mxu1 %vm5756_vm11, %v13622_v12  ;;  %v6197_v46 = vadd.f32 %v15467_v8, %v15466_v60 }
 0xc03   :  { %8022 = vmatmul.msk.f32.gmra.mxu2 %vm5756_vm11, %v15465_v41  ;;  %7300 = vst.msk [vmem:[%s14793_s11 + $0x38] sm:$0xff] %vm7292_vm12, %v7235_v30  ;;  %v14190_v60 = vpop.f32.mrf.mxu1 }
 0xc04   :  { %v6602_v45 = vadd.f32 %v13790_v32, %v6197_v46 }
 0xc06   :  { %v6993_v47 = vpop.f32.mrf.mxu2  ;;  %v6886_v30 = vadd.f32 %v13796_v33, %v6602_v45  ;;  %v15471_v45 = vld [vmem:[#allocation27_spill] sm:$0xff] }
 0xc07   :  { %v7169_v54 = vadd.f32 %v6993_v47, %v6885_v27  ;;  %v15469_v27 = vld [vmem:[#allocation81_spill] sm:$0xff]  ;;  %v15470_v47 = vld [vmem:[#allocation40_spill] sm:$0xff]  ;;  %v14205_v46 = vpop.f32.mrf.mxu0 }
 0xc09   :  { %v7236_v3 = vadd.f32 %v14021_v35, %v7169_v54  ;;  %v6200_v54 = vadd.f32 %v15470_v47, %v15469_v27  ;;  %v15473_v27 = vld [vmem:[#allocation120_spill] sm:$0xff] }
 0xc0a   :  { %7904 = vmatmul.msk.f32.gmra.mxu0 %vm5756_vm11, %v13644_v52  ;;  %7976 = vmatmul.msk.f32.gmra.mxu1 %vm5756_vm11, %v13644_v52 }
 0xc0b   :  { %8023 = vmatmul.msk.f32.gmra.mxu2 %vm5756_vm11, %v15468_v57  ;;  %7301 = vst.msk [vmem:[%s14793_s11 + $0x40] sm:$0xff] %vm7292_vm12, %v7236_v3  ;;  %v6603_v32 = vadd.f32 %v13809_v28, %v6200_v54  ;;  %v14217_v28 = vpop.f32.mrf.mxu1 }
 0xc0d   :  { %v6887_v33 = vadd.f32 %v13815_v18, %v6603_v32  ;;  %v15474_v32 = vld [vmem:[#allocation19_spill] sm:$0xff] }
 0xc0e   :  { %v6996_v41 = vpop.f32.mrf.mxu2 }
 0xc0f   :  { %v7170_v0 = vadd.f32 %v6996_v41, %v6886_v30  ;;  %v15472_v30 = vld [vmem:[#allocation32_spill] sm:$0xff]  ;;  %v14224_v54 = vpop.f32.mrf.mxu0 }
 0xc10   :  { %v6203_v41 = vadd.f32 %v15472_v30, %v15471_v45 }
 0xc11   :  { %v7237_v8 = vadd.f32 %v14021_v35, %v7170_v0 }
 0xc12   :  { %7905 = vmatmul.msk.f32.gmra.mxu0 %vm5756_vm11, %v13661_v5  ;;  %7977 = vmatmul.msk.f32.gmra.mxu1 %vm5756_vm11, %v13661_v5 }
 0xc13   :  { %8024 = vmatmul.msk.f32.gmra.mxu2 %vm5756_vm11, %v13829_v50  ;;  %7302 = vst.msk [vmem:[%s14793_s11 + $0x48] sm:$0xff] %vm7292_vm12, %v7237_v8  ;;  %v6604_v50 = vadd.f32 %v13824_v51, %v6203_v41  ;;  %v14241_v45 = vpop.f32.mrf.mxu1 }
 0xc15   :  { %v6888_v18 = vadd.f32 %v13840_v25, %v6604_v50  ;;  %v15478_v50 = vld [vmem:[#allocation90_spill] sm:$0xff] }
 0xc16   :  { %v6999_v3 = vpop.f32.mrf.mxu2 }
 0xc17   :  { %v7171_v57 = vadd.f32 %v6999_v3, %v6887_v33  ;;  %v15475_v33 = vld [vmem:[#allocation46_spill] sm:$0xff] }
 0xc18   :  { %v6206_v3 = vadd.f32 %v15475_v33, %v15474_v32  ;;  %v15479_v32 = vld [vmem:[#allocation127_spill] sm:$0xff] }
 0xc19   :  { %v7238_v0 = vadd.f32 %v14021_v35, %v7171_v57  ;;  %v15476_v57 = vld [vmem:[#allocation123_spill] sm:$0xff] }
 0xc1a   :  { %7906 = vmatmul.msk.f32.gmra.mxu0 %vm5756_vm11, %v15473_v27  ;;  %7978 = vmatmul.msk.f32.gmra.mxu1 %vm5756_vm11, %v15473_v27  ;;  %v6605_v51 = vadd.f32 %v13845_v48, %v6206_v3 }
 0xc1b   :  { %8025 = vmatmul.msk.f32.gmra.mxu2 %vm5756_vm11, %v13848_v55  ;;  %7303 = vst.msk [vmem:[%s14793_s11 + $0x50] sm:$0xff] %vm7292_vm12, %v7238_v0  ;;  %v15477_v0 = vld [vmem:[#allocation31_spill] sm:$0xff]  ;;  %v14260_v3 = vpop.f32.mrf.mxu1 }
 0xc1c   :  { %v6889_v25 = vadd.f32 %v13858_v39, %v6605_v51  ;;  %v15480_v51 = vld [vmem:[#allocation74_spill] sm:$0xff] }
 0xc1e   :  { %v7002_v47 = vpop.f32.mrf.mxu2 }
 0xc1f   :  { %v7172_v8 = vadd.f32 %v7002_v47, %v6888_v18  ;;  %v6209_v18 = vadd.f32 %v15478_v50, %v15477_v0  ;;  %v14245_v47 = vpop.f32.mrf.mxu0  ;;  %v15482_v0 = vld [vmem:[#allocation129_spill] sm:$0xff] }
 0xc21   :  { %v7239_v55 = vadd.f32 %v14021_v35, %v7172_v8  ;;  %v6606_v48 = vadd.f32 %v13864_v62, %v6209_v18 }
 0xc22   :  { %7907 = vmatmul.msk.f32.gmra.mxu0 %vm5756_vm11, %v15476_v57  ;;  %7979 = vmatmul.msk.f32.gmra.mxu1 %vm5756_vm11, %v15476_v57 }
 0xc23   :  { %8026 = vmatmul.msk.f32.gmra.mxu2 %vm5756_vm11, %v11328_v26  ;;  %7304 = vst.msk [vmem:[%s14793_s11 + $0x58] sm:$0xff] %vm7292_vm12, %v7239_v55  ;;  %v6890_v39 = vadd.f32 %v13870_v24, %v6606_v48 }
 0xc26   :  { %v7005_v30 = vpop.f32.mrf.mxu2 }
 0xc27   :  { %v7173_v41 = vadd.f32 %v7005_v30, %v6889_v25  ;;  %v15481_v25 = vld [vmem:[#allocation66_spill] sm:$0xff]  ;;  %v14272_v24 = vpop.f32.mrf.mxu0 }
 0xc28   :  { %v6212_v30 = vadd.f32 %v15481_v25, %v15480_v51  ;;  %v14282_v25 = vpop.f32.mrf.mxu1 }
 0xc29   :  { %v7240_v8 = vadd.f32 %v14021_v35, %v7173_v41 }
 0xc2a   :  { %7908 = vmatmul.msk.f32.gmra.mxu0 %vm5756_vm11, %v15479_v32  ;;  %7980 = vmatmul.msk.f32.gmra.mxu1 %vm5756_vm11, %v15479_v32  ;;  %v6607_v62 = vadd.f32 %v13876_v37, %v6212_v30  ;;  %v4943_v30 = vpop.permute.xlu0 %4942 }
 0xc2b   :  { %8027 = vmatmul.msk.f32.gmra.mxu2 %vm5756_vm11, %v11347_v2  ;;  %7305 = vst.msk [vmem:[%s14793_s11 + $0x60] sm:$0xff] %vm7292_vm12, %v7240_v8  ;;  %v4749_v8 = vpop.permute.xlu2 %4748 }
 0xc2c   :  { %v6891_v50 = vadd.f32 %v13882_v1, %v6607_v62 }
 0xc2e   :  { %v7008_v33 = vpop.f32.mrf.mxu2 }
 0xc2f   :  { %v7174_v55 = vadd.f32 %v7008_v33, %v6890_v39  ;;  %v4000_v39 = vrot.slane %v13262_v6, 6  ;;  %v15483_v33 = vld [vmem:[#allocation28_spill] sm:$0xff]  ;;  %v14298_v62 = vpop.f32.mrf.mxu0 }
 0xc31   :  { %v7241_v41 = vadd.f32 %v14021_v35, %v7174_v55  ;;  %v15484_v55 = vld [vmem:[#allocation92_spill] sm:$0xff]  ;;  %v4101_v6 = vsel %vm3904_vm10, 0.0, %v4000_v39 }
 0xc32   :  { %7909 = vmatmul.msk.f32.gmra.mxu0 %vm5756_vm11, %v15482_v0  ;;  %7981 = vmatmul.msk.f32.gmra.mxu1 %vm5756_vm11, %v15482_v0  ;;  %v6215_v51 = vadd.f32 %v15484_v55, %v15483_v33  ;;  %v5535_v33 = vsel %vm1435_vm4, %v4101_v6, %v4749_v8 }
 0xc33   :  { %8028 = vmatmul.msk.f32.gmra.mxu2 %vm5756_vm11, %v11328_v26  ;;  %7306 = vst.msk [vmem:[%s14793_s11 + $0x68] sm:$0xff] %vm7292_vm12, %v7241_v41  ;;  %v5402_v55 = vpop.permute.xlu2 %5401 }
 0xc34   :  { %v6608_v1 = vadd.f32 %v13890_v9, %v6215_v51  ;;  %v15486_v9 = vld [vmem:[#allocation44_spill] sm:$0xff] }
 0xc35   :  { %v15487_v51 = vld [vmem:[#allocation4_spill] sm:$0xff] }
 0xc36   :  { %v7011_v18 = vpop.f32.mrf.mxu2  ;;  %v6892_v41 = vadd.f32 %v13900_v23, %v6608_v1  ;;  %v6218_v32 = vadd.f32 %v15487_v51, %v15486_v9  ;;  %v5601_v23 = vsel %vm1502_vm6, %v5535_v33, %v4943_v30  ;;  %v14313_v1 = vpop.f32.mrf.mxu1  ;;  %v15489_v9 = vld [vmem:[#allocation85_spill] sm:$0xff]  ;;  %v15490_v51 = vld [vmem:[#allocation51_spill] sm:$0xff] }
 0xc37   :  { %v7175_v48 = vadd.f32 %v7011_v18, %v6891_v50  ;;  %v5171_v50 = vpop.permute.xlu1 %5170 }
 0xc38   :  { %v6609_v8 = vadd.f32 %v13902_v15, %v6218_v32 }
 0xc39   :  { %v7242_v37 = vadd.f32 %v14021_v35, %v7175_v48 }
 0xc3a   :  { %7910 = vmatmul.msk.f32.gmra.mxu0 %vm5756_vm11, %v13783_v7  ;;  %7982 = vmatmul.msk.f32.gmra.mxu1 %vm5756_vm11, %v13783_v7  ;;  %v15485_v7 = vld [vmem:[#allocation91_spill] sm:$0xff] }
 0xc3b   :  { %8029 = vmatmul.msk.f32.gmra.mxu2 %vm5756_vm11, %v11347_v2  ;;  %7307 = vst.msk [vmem:[%s14793_s11 + $0x70] sm:$0xff] %vm7292_vm12, %v7242_v37  ;;  %v4001_v0 = vrot.slane %v15485_v7, 6  ;;  %v15488_v37 = vld [vmem:[#allocation134_spill] sm:$0xff]  ;;  %v4751_v7 = vpop.permute.xlu0 %4750 }
 0xc3d   :  { %v4002_v6 = vsel %vm3904_vm10, %v4000_v39, %v4001_v0  ;;  %v5173_v0 = vpop.permute.xlu2 %5172 }
 0xc3e   :  { %v7014_v18 = vpop.f32.mrf.mxu2  ;;  %v5536_v15 = vsel %vm1435_vm4, %v4002_v6, %v4751_v7 }
 0xc3f   :  { %v7176_v48 = vadd.f32 %v7014_v18, %v6892_v41  ;;  %v6893_v41 = vadd.f32 %v13912_v58, %v6609_v8  ;;  %v5667_v18 = vsel %vm1582_vm5, %v5601_v23, %v5171_v50  ;;  %v4945_v32 = vpop.permute.xlu1 %4944 }
 0xc40   :  { %v14326_v33 = vsel %vm3212_vm7, %v5667_v18, %v5402_v55  ;;  %v5602_v58 = vsel %vm1502_vm6, %v5536_v15, %v4945_v32  ;;  %v14344_v55 = vpop.f32.mrf.mxu1  ;;  %v15492_v18 = vld [vmem:[#allocation97_spill] sm:$0xff]  ;;  %v15494_v15 = vld [vmem:[#allocation7_spill] sm:$0xff] }
 0xc41   :  { %v7243_v57 = vadd.f32 %v14021_v35, %v7176_v48  ;;  %v14322_v48 = vpop.f32.mrf.mxu0  ;;  %v5668_v23 = vsel %vm1582_vm5, %v5602_v58, %v5173_v0  ;;  %v15495_v58 = vld [vmem:[#allocation48_spill] sm:$0xff] }
 0xc42   :  { %7911 = vmatmul.msk.f32.gmra.mxu0 %vm5756_vm11, %v15488_v37  ;;  %7983 = vmatmul.msk.f32.gmra.mxu1 %vm5756_vm11, %v15488_v37  ;;  %v15496_v0 = vld [vmem:[#allocation64_spill] sm:$0xff] }
 0xc43   :  { %8030 = vmatmul.msk.f32.gmra.mxu2 %vm5756_vm11, %v13069_v53  ;;  %7308 = vst.msk [vmem:[%s14793_s11 + $0x78] sm:$0xff] %vm7292_vm12, %v7243_v57  ;;  %v6221_v57 = vadd.f32 %v15490_v51, %v15489_v9  ;;  %v5404_v8 = vpop.permute.xlu0 %5403 }
 0xc45   :  { %v6610_v39 = vadd.f32 %v13914_v43, %v6221_v57 }
 0xc46   :  { %v7017_v30 = vpop.f32.mrf.mxu2 }
 0xc47   :  { %v7177_v53 = vadd.f32 %v7017_v30, %v6893_v41  ;;  %v6894_v50 = vadd.f32 %v13924_v42, %v6610_v39  ;;  %v15491_v41 = vld [vmem:[#allocation47_spill] sm:$0xff]  ;;  %v15493_v42 = vld [vmem:[#allocation137_spill] sm:$0xff]  ;;  %v6227_v39 = vadd.f32 %v15496_v0, %v15495_v58 }
 0xc48   :  { %v6224_v43 = vadd.f32 %v15492_v18, %v15491_v41  ;;  %v14367_v51 = vpop.f32.mrf.mxu1  ;;  %v15499_v18 = vld [vmem:[#allocation3_spill] sm:$0xff] }
 0xc49   :  { %v7244_v37 = vadd.f32 %v14021_v35, %v7177_v53  ;;  %v14352_v30 = vpop.f32.mrf.mxu0 }
 0xc4a   :  { %7912 = vmatmul.msk.f32.gmra.mxu0 %vm5756_vm11, %v14326_v33  ;;  %7984 = vmatmul.msk.f32.gmra.mxu1 %vm5756_vm11, %v14326_v33 }
 0xc4b   :  { %8031 = vmatmul.msk.f32.gmra.mxu2 %vm5756_vm11, %v13103_v21  ;;  %7309 = vst.msk [vmem:[%s14793_s11 + $0x80] sm:$0xff] %vm7292_vm12, %v7244_v37  ;;  %v14348_v21 = vsel %vm3212_vm7, %v5668_v23, %v5404_v8  ;;  %v6611_v37 = vadd.f32 %v15493_v42, %v6224_v43  ;;  %v6612_v23 = vadd.f32 %v13942_v31, %v6227_v39  ;;  %v15498_v8 = vld [vmem:[#allocation62_spill] sm:$0xff]  ;;  %v15500_v43 = vld [vmem:[#allocation52_spill] sm:$0xff] }
 0xc4c   :  { %v15501_v31 = vld [vmem:[#allocation86_spill] sm:$0xff] }
 0xc4d   :  { %v6895_v32 = vadd.f32 %v15494_v15, %v6611_v37  ;;  %v15502_v15 = vld [vmem:[#allocation139_spill] sm:$0xff]  ;;  %v15504_v39 = vld [vmem:[#allocation2_spill] sm:$0xff] }
 0xc4e   :  { %v7020_v7 = vpop.f32.mrf.mxu2 }
 0xc4f   :  { %v7178_v6 = vadd.f32 %v7020_v7, %v6894_v50  ;;  %v6896_v7 = vadd.f32 %v15498_v8, %v6612_v23  ;;  %v15506_v8 = vld [vmem:[#allocation61_spill] sm:$0xff] }
 0xc50   :  { %v14384_v42 = vpop.f32.mrf.mxu1 }
 0xc51   :  { %v7245_v53 = vadd.f32 %v14021_v35, %v7178_v6 }
 0xc52   :  { %7913 = vmatmul.msk.f32.gmra.mxu0 %vm5756_vm11, %v14348_v21  ;;  %7985 = vmatmul.msk.f32.gmra.mxu1 %vm5756_vm11, %v14348_v21 }
 0xc53   :  { %8032 = vmatmul.msk.f32.gmra.mxu2 %vm5756_vm11, %v13129_v34  ;;  %7310 = vst.msk [vmem:[%s14793_s11 + $0x88] sm:$0xff] %vm7292_vm12, %v7245_v53  ;;  %v15497_v34 = vld [vmem:[#allocation63_spill] sm:$0xff]  ;;  %v6230_v53 = vadd.f32 %v15500_v43, %v15499_v18 }
 0xc56   :  { %v7023_v9 = vpop.f32.mrf.mxu2 }
 0xc57   :  { %v7179_v57 = vadd.f32 %v7023_v9, %v6895_v32  ;;  %v6613_v32 = vadd.f32 %v15502_v15, %v6230_v53  ;;  %v15503_v9 = vld [vmem:[#allocation142_spill] sm:$0xff] }
 0xc59   :  { %v7246_v50 = vadd.f32 %v14021_v35, %v7179_v57  ;;  %v6897_v57 = vadd.f32 %v15503_v9, %v6613_v32  ;;  %v15511_v9 = vld [vmem:[#allocation58_spill] sm:$0xff] }
 0xc5a   :  { %7986 = vmatmul.msk.f32.gmra.mxu1 %vm5756_vm11, %v11328_v26 }
 0xc5b   :  { %8033 = vmatmul.msk.f32.gmra.mxu2 %vm5756_vm11, %v15497_v34  ;;  %7311 = vst.msk [vmem:[%s14793_s11 + $0x90] sm:$0xff] %vm7292_vm12, %v7246_v50  ;;  %v15505_v50 = vld [vmem:[#allocation65_spill] sm:$0xff] }
 0xc5c   :  { %v6233_v34 = vadd.f32 %v15505_v50, %v15504_v39 }
 0xc5e   :  { %v7026_v6 = vpop.f32.mrf.mxu2 }
 0xc5f   :  { %v7180_v41 = vadd.f32 %v7026_v6, %v6896_v7  ;;  %v15507_v7 = vld [vmem:[#allocation141_spill] sm:$0xff] }
 0xc60   :  { %v6614_v6 = vadd.f32 %v15507_v7, %v6233_v34 }
 0xc61   :  { %v7247_v37 = vadd.f32 %v14021_v35, %v7180_v41  ;;  %v15508_v41 = vld [vmem:[#allocation145_spill] sm:$0xff] }
 0xc62   :  { %7987 = vmatmul.msk.f32.gmra.mxu1 %vm5756_vm11, %v11347_v2  ;;  %v6898_v18 = vadd.f32 %v15508_v41, %v6614_v6  ;;  %v15516_v41 = vld [vmem:[#allocation67_spill] sm:$0xff] }
 0xc63   :  { %8034 = vmatmul.msk.f32.gmra.mxu2 %vm5756_vm11, %v15501_v31  ;;  %7312 = vst.msk [vmem:[%s14793_s11 + $0x98] sm:$0xff] %vm7292_vm12, %v7247_v37  ;;  %v15509_v37 = vld [vmem:[#allocation6_spill] sm:$0xff]  ;;  %v15510_v31 = vld [vmem:[#allocation89_spill] sm:$0xff] }
 0xc64   :  { %v6236_v15 = vadd.f32 %v15510_v31, %v15509_v37 }
 0xc66   :  { %v7029_v58 = vpop.f32.mrf.mxu2 }
 0xc67   :  { %v7181_v0 = vadd.f32 %v7029_v58, %v6897_v57  ;;  %v15512_v57 = vld [vmem:[#allocation18_spill] sm:$0xff] }
 0xc68   :  { %v6615_v58 = vadd.f32 %v15512_v57, %v6236_v15  ;;  %v15518_v15 = vld [vmem:[#allocation99_spill] sm:$0xff] }
 0xc69   :  { %v7248_v23 = vadd.f32 %v14021_v35, %v7181_v0  ;;  %v15513_v0 = vld [vmem:[#allocation147_spill] sm:$0xff] }
 0xc6a   :  { %v6899_v39 = vadd.f32 %v15513_v0, %v6615_v58  ;;  %v15520_v58 = vld [vmem:[#allocation96_spill] sm:$0xff]  ;;  %v15521_v0 = vld [vmem:[#allocation11_spill] sm:$0xff] }
 0xc6b   :  { %8035 = vmatmul.msk.f32.gmra.mxu2 %vm5756_vm11, %v15506_v8  ;;  %7313 = vst.msk [vmem:[%s14793_s11 + $0xa0] sm:$0xff] %vm7292_vm12, %v7248_v23  ;;  %v15514_v23 = vld [vmem:[#allocation10_spill] sm:$0xff]  ;;  %v15515_v8 = vld [vmem:[#allocation93_spill] sm:$0xff] }
 0xc6c   :  { %v6239_v7 = vadd.f32 %v15515_v8, %v15514_v23  ;;  %v15522_v23 = vld [vmem:[#allocation8_spill] sm:$0xff]  ;;  %v15523_v8 = vld [vmem:[#allocation34_spill] sm:$0xff] }
 0xc6e   :  { %v7032_v43 = vpop.f32.mrf.mxu2 }
 0xc6f   :  { %v7182_v53 = vadd.f32 %v7032_v43, %v6898_v18  ;;  %v15517_v18 = vld [vmem:[#allocation146_spill] sm:$0xff] }
 0xc70   :  { %v6616_v43 = vadd.f32 %v15517_v18, %v6239_v7  ;;  %v6245_v7 = vadd.f32 %v15523_v8, %v15522_v23 }
 0xc71   :  { %v7249_v32 = vadd.f32 %v14021_v35, %v7182_v53 }
 0xc72   :  { %v6900_v53 = vadd.f32 %v14015_v59, %v6616_v43  ;;  %v6618_v18 = vadd.f32 %v14033_v61, %v6245_v7  ;;  %v15531_v7 = vld [vmem:[#allocation56_spill] sm:$0xff] }
 0xc73   :  { %8036 = vmatmul.msk.f32.gmra.mxu2 %vm5756_vm11, %v15511_v9  ;;  %7314 = vst.msk [vmem:[%s14793_s11 + $0xa8] sm:$0xff] %vm7292_vm12, %v7249_v32  ;;  %v15519_v32 = vld [vmem:[#allocation95_spill] sm:$0xff] }
 0xc74   :  { %v6242_v9 = vadd.f32 %v15519_v32, %v15518_v15  ;;  %v6902_v43 = vadd.f32 %v14059_v19, %v6618_v18 }
 0xc76   :  { %v7035_v50 = vpop.f32.mrf.mxu2 }
 0xc77   :  { %v7183_v34 = vadd.f32 %v7035_v50, %v6899_v39  ;;  %v6617_v39 = vadd.f32 %v15521_v0, %v6242_v9  ;;  %v15527_v9 = vld [vmem:[#allocation68_spill] sm:$0xff]  ;;  %v15528_v0 = vld [vmem:[#allocation54_spill] sm:$0xff] }
 0xc79   :  { %v7250_v6 = vadd.f32 %v14021_v35, %v7183_v34  ;;  %v6901_v50 = vadd.f32 %v14040_v4, %v6617_v39  ;;  %v15529_v39 = vld [vmem:[#allocation101_spill] sm:$0xff] }
 0xc7b   :  { %8037 = vmatmul.msk.f32.gmra.mxu2 %vm5756_vm11, %v15516_v41  ;;  %7315 = vst.msk [vmem:[%s14793_s11 + $0xb0] sm:$0xff] %vm7292_vm12, %v7250_v6  ;;  %v15524_v41 = vld [vmem:[#allocation84_spill] sm:$0xff] }
 0xc7e   :  { %v7038_v37 = vpop.f32.mrf.mxu2 }
 0xc7f   :  { %v7184_v31 = vadd.f32 %v7038_v37, %v6900_v53  ;;  %v15525_v37 = vld [vmem:[#allocation59_spill] sm:$0xff] }
 0xc81   :  { %v7251_v57 = vadd.f32 %v14021_v35, %v7184_v31  ;;  %v15526_v31 = vld [vmem:[#allocation69_spill] sm:$0xff] }
 0xc82   :  { %v6248_v15 = vadd.f32 %v15526_v31, %v15525_v37  ;;  %v15534_v37 = vld [vmem:[#allocation94_spill] sm:$0xff] }
 0xc83   :  { %8038 = vmatmul.msk.f32.gmra.mxu2 %vm5756_vm11, %v15520_v58  ;;  %7316 = vst.msk [vmem:[%s14793_s11 + $0xb8] sm:$0xff] %vm7292_vm12, %v7251_v57  ;;  %v15535_v31 = vld [vmem:[#allocation106_spill] sm:$0xff] }
 0xc84   :  { %v6619_v57 = vadd.f32 %v14052_v38, %v6248_v15  ;;  %v6257_v15 = vadd.f32 %v15535_v31, %v15534_v37  ;;  %v15545_v37 = vld [vmem:[#allocation115_spill] sm:$0xff] }
 0xc86   :  { %v7041_v59 = vpop.f32.mrf.mxu2  ;;  %v6903_v61 = vadd.f32 %v14080_v16, %v6619_v57 }
 0xc87   :  { %v7185_v34 = vadd.f32 %v7041_v59, %v6901_v50  ;;  %v6251_v50 = vadd.f32 %v15529_v39, %v15528_v0 }
 0xc89   :  { %v7252_v6 = vadd.f32 %v14021_v35, %v7185_v34  ;;  %v15530_v34 = vld [vmem:[#allocation100_spill] sm:$0xff]  ;;  %v6620_v23 = vadd.f32 %v14076_v29, %v6251_v50  ;;  %v15538_v50 = vld [vmem:[#allocation9_spill] sm:$0xff] }
 0xc8b   :  { %8039 = vmatmul.msk.f32.gmra.mxu2 %vm5756_vm11, %v15524_v41  ;;  %7317 = vst.msk [vmem:[%s14793_s11 + $0xc0] sm:$0xff] %vm7292_vm12, %v7252_v6  ;;  %v6904_v38 = vadd.f32 %v14107_v17, %v6620_v23  ;;  %v15532_v6 = vld [vmem:[#allocation103_spill] sm:$0xff] }
 0xc8c   :  { %v6254_v41 = vadd.f32 %v15532_v6, %v15531_v7 }
 0xc8e   :  { %v7044_v4 = vpop.f32.mrf.mxu2 }
 0xc8f   :  { %v7186_v53 = vadd.f32 %v7044_v4, %v6902_v43  ;;  %v15533_v43 = vld [vmem:[#allocation104_spill] sm:$0xff]  ;;  %v6621_v4 = vadd.f32 %v14095_v56, %v6254_v41 }
 0xc91   :  { %v7253_v32 = vadd.f32 %v14021_v35, %v7186_v53  ;;  %v6905_v29 = vadd.f32 %v14126_v20, %v6621_v4 }
 0xc93   :  { %8040 = vmatmul.msk.f32.gmra.mxu2 %vm5756_vm11, %v15527_v9  ;;  %7318 = vst.msk [vmem:[%s14793_s11 + $0xc8] sm:$0xff] %vm7292_vm12, %v7253_v32  ;;  %v6622_v9 = vadd.f32 %v14114_v13, %v6257_v15 }
 0xc95   :  { %v6906_v56 = vadd.f32 %v14150_v14, %v6622_v9 }
 0xc96   :  { %v7047_v19 = vpop.f32.mrf.mxu2 }
 0xc97   :  { %v7187_v58 = vadd.f32 %v7047_v19, %v6903_v61  ;;  %v15536_v61 = vld [vmem:[#allocation98_spill] sm:$0xff]  ;;  %v15537_v19 = vld [vmem:[#allocation108_spill] sm:$0xff] }
 0xc99   :  { %v7254_v59 = vadd.f32 %v14021_v35, %v7187_v58  ;;  %v6260_v58 = vadd.f32 %v15537_v19, %v15536_v61 }
 0xc9b   :  { %8041 = vmatmul.msk.f32.gmra.mxu2 %vm5756_vm11, %v15530_v34  ;;  %7319 = vst.msk [vmem:[%s14793_s11 + $0xd0] sm:$0xff] %vm7292_vm12, %v7254_v59  ;;  %v15539_v59 = vld [vmem:[#allocation109_spill] sm:$0xff] }
 0xc9c   :  { %v6263_v34 = vadd.f32 %v15539_v59, %v15538_v50 }
 0xc9e   :  { %v7050_v16 = vpop.f32.mrf.mxu2 }
 0xc9f   :  { %v7188_v8 = vadd.f32 %v7050_v16, %v6904_v38  ;;  %v15540_v16 = vld [vmem:[#allocation88_spill] sm:$0xff] }
 0xca1   :  { %v7255_v18 = vadd.f32 %v14021_v35, %v7188_v8  ;;  %v15541_v8 = vld [vmem:[#allocation111_spill] sm:$0xff] }
 0xca2   :  { %v6266_v7 = vadd.f32 %v15541_v8, %v15540_v16 }
 0xca3   :  { %8042 = vmatmul.msk.f32.gmra.mxu2 %vm5756_vm11, %v15533_v43  ;;  %7320 = vst.msk [vmem:[%s14793_s11 + $0xd8] sm:$0xff] %vm7292_vm12, %v7255_v18  ;;  %v15542_v18 = vld [vmem:[#allocation50_spill] sm:$0xff]  ;;  %v15543_v43 = vld [vmem:[#allocation113_spill] sm:$0xff] }
 0xca4   :  { %v6269_v4 = vadd.f32 %v15543_v43, %v15542_v18 }
 0xca6   :  { %v7053_v17 = vpop.f32.mrf.mxu2 }
 0xca7   :  { %v7189_v53 = vadd.f32 %v7053_v17, %v6905_v29 }
 0xca9   :  { %v7256_v32 = vadd.f32 %v14021_v35, %v7189_v53  ;;  %v15544_v53 = vld [vmem:[#allocation102_spill] sm:$0xff] }
 0xcaa   :  { %v6272_v31 = vadd.f32 %v15545_v37, %v15544_v53 }
 0xcab   :  { %8043 = vmatmul.msk.f32.gmra.mxu2 %vm5756_vm11, %v13526_v40  ;;  %7321 = vst.msk [vmem:[%s14793_s11 + $0xe0] sm:$0xff] %vm7292_vm12, %v7256_v32  ;;  %v6623_v40 = vadd.f32 %v14133_v49, %v6260_v58  ;;  %v14543_v32 = vpop.f32.mrf.mxu0 }
 0xcad   :  { %v6907_v13 = vadd.f32 %v14169_v11, %v6623_v40  ;;  %v6289_v40 = vpop.f32.mrf.mxu3 }
 0xcae   :  { %v7056_v20 = vpop.f32.mrf.mxu2 }
 0xcaf   :  { %v7190_v57 = vadd.f32 %v7056_v20, %v6906_v56  ;;  %v15546_v20 = vld [vmem:[#allocation105_spill] sm:$0xff] }
 0xcb1   :  { %v7257_v0 = vadd.f32 %v14021_v35, %v7190_v57  ;;  %v15547_v57 = vld [vmem:[#allocation117_spill] sm:$0xff] }
 0xcb2   :  { %v6275_v61 = vadd.f32 %v15547_v57, %v15546_v20  ;;  %v15559_v20 = vld [vmem:[#allocation114_spill] sm:$0xff] }
 0xcb3   :  { %8044 = vmatmul.msk.f32.gmra.mxu2 %vm5756_vm11, %v13547_v63  ;;  %7322 = vst.msk [vmem:[%s14793_s11 + $0xe8] sm:$0xff] %vm7292_vm12, %v7257_v0  ;;  %v6624_v63 = vadd.f32 %v14154_v10, %v6263_v34  ;;  %v6290_v57 = vadd.f32 %v6289_v40, %v15559_v20  ;;  %v15561_v40 = vld [vmem:[#allocation116_spill] sm:$0xff] }
 0xcb5   :  { %v6908_v49 = vadd.f32 %v14190_v60, %v6624_v63  ;;  %v6292_v16 = vpop.f32.mrf.mxu3 }
 0xcb6   :  { %v7059_v14 = vpop.f32.mrf.mxu2 }
 0xcb7   :  { %v7191_v39 = vadd.f32 %v7059_v14, %v6907_v13  ;;  %v15548_v14 = vld [vmem:[#allocation107_spill] sm:$0xff] }
 0xcb9   :  { %v7258_v23 = vadd.f32 %v14021_v35, %v7191_v39  ;;  %v15549_v39 = vld [vmem:[#allocation119_spill] sm:$0xff] }
 0xcba   :  { %v6278_v50 = vadd.f32 %v15549_v39, %v15548_v14  ;;  %v6293_v39 = vadd.f32 %v6292_v16, %v15561_v40 }
 0xcbb   :  { %8045 = vmatmul.msk.f32.gmra.mxu2 %vm5756_vm11, %v13573_v44  ;;  %7323 = vst.msk [vmem:[%s14793_s11 + $0xf0] sm:$0xff] %vm7292_vm12, %v7258_v23  ;;  %v6625_v44 = vadd.f32 %v14181_v36, %v6266_v7 }
 0xcbd   :  { %v6909_v10 = vadd.f32 %v14217_v28, %v6625_v44 }
 0xcbe   :  { %v7062_v11 = vpop.f32.mrf.mxu2 }
 0xcbf   :  { %v7192_v38 = vadd.f32 %v7062_v11, %v6908_v49  ;;  %v15550_v49 = vld [vmem:[#allocation20_spill] sm:$0xff] }
 0xcc0   :  { %v15551_v11 = vld [vmem:[#allocation124_spill] sm:$0xff] }
 0xcc1   :  { %v7259_v6 = vadd.f32 %v14021_v35, %v7192_v38  ;;  %v6281_v38 = vadd.f32 %v15551_v11, %v15550_v49  ;;  %v15563_v11 = vld [vmem:[#allocation118_spill] sm:$0xff] }
 0xcc3   :  { %8046 = vmatmul.msk.f32.gmra.mxu2 %vm5756_vm11, %v13607_v22  ;;  %7324 = vst.msk [vmem:[%s14793_s11 + $0xf8] sm:$0xff] %vm7292_vm12, %v7259_v6  ;;  %v6626_v22 = vadd.f32 %v14205_v46, %v6269_v4  ;;  %v14552_v46 = vpop.f32.mrf.mxu1  ;;  %v15555_v4 = vld [vmem:[#allocation127_spill] sm:$0xff] }
 0xcc5   :  { %v6910_v36 = vadd.f32 %v14241_v45, %v6626_v22 }
 0xcc6   :  { %v7065_v60 = vpop.f32.mrf.mxu2 }
 0xcc7   :  { %v7193_v41 = vadd.f32 %v7065_v60, %v6909_v10  ;;  %v15553_v10 = vld [vmem:[#allocation110_spill] sm:$0xff] }
 0xcc8   :  { %v15554_v60 = vld [vmem:[#allocation126_spill] sm:$0xff] }
 0xcc9   :  { %v7260_v29 = vadd.f32 %v14021_v35, %v7193_v41  ;;  %v6284_v41 = vadd.f32 %v15554_v60, %v15553_v10 }
 0xccb   :  { %8047 = vmatmul.msk.f32.gmra.mxu2 %vm5756_vm11, %v13622_v12  ;;  %7325 = vst.msk [vmem:[%s14793_s11 + $0x100] sm:$0xff] %vm7292_vm12, %v7260_v29  ;;  %v6627_v12 = vadd.f32 %v14224_v54, %v6272_v31  ;;  %v6524_v54 = vpop.f32.mrf.mxu0  ;;  %v6808_v58 = vpop.f32.mrf.mxu1  ;;  %v6631_v29 = vadd.f32 %v14322_v48, %v6284_v41 }
 0xccd   :  { %v6911_v45 = vadd.f32 %v14260_v3, %v6627_v12 }
 0xcce   :  { %v7068_v28 = vpop.f32.mrf.mxu2 }
 0xccf   :  { %v7194_v17 = vadd.f32 %v7068_v28, %v6910_v36  ;;  %v15556_v28 = vld [vmem:[#allocation112_spill] sm:$0xff] }
 0xcd1   :  { %v7261_v15 = vadd.f32 %v14021_v35, %v7194_v17  ;;  %v15557_v17 = vld [vmem:[#allocation130_spill] sm:$0xff] }
 0xcd2   :  { %v6287_v53 = vadd.f32 %v15557_v17, %v15556_v28  ;;  %v15566_v28 = vld [vmem:[#allocation125_spill] sm:$0xff] }
 0xcd3   :  { %8048 = vmatmul.msk.f32.gmra.mxu2 %vm5756_vm11, %v13644_v52  ;;  %7326 = vst.msk [vmem:[%s14793_s11 + $0x108] sm:$0xff] %vm7292_vm12, %v7261_v15  ;;  %v6628_v52 = vadd.f32 %v14245_v47, %v6275_v61  ;;  %v6811_v63 = vpop.f32.mrf.mxu1  ;;  %v15558_v15 = vld [vmem:[#allocation129_spill] sm:$0xff] }
 0xcd4   :  { %v6632_v48 = vadd.f32 %v14352_v30, %v6287_v53  ;;  %v6633_v30 = vadd.f32 %v14543_v32, %v6290_v57  ;;  %v6634_v32 = vadd.f32 %v6524_v54, %v6293_v39 }
 0xcd5   :  { %v6912_v3 = vadd.f32 %v14282_v25, %v6628_v52  ;;  %v6527_v25 = vpop.f32.mrf.mxu0 }
 0xcd6   :  { %v7071_v9 = vpop.f32.mrf.mxu2 }
 0xcd7   :  { %v7195_v56 = vadd.f32 %v7071_v9, %v6911_v45  ;;  %v6916_v45 = vadd.f32 %v14384_v42, %v6632_v48  ;;  %v6917_v42 = vadd.f32 %v14552_v46, %v6633_v30 }
 0xcd9   :  { %v7262_v19 = vadd.f32 %v14021_v35, %v7195_v56 }
 0xcdb   :  { %8049 = vmatmul.msk.f32.gmra.mxu2 %vm5756_vm11, %v13661_v5  ;;  %7327 = vst.msk [vmem:[%s14793_s11 + $0x110] sm:$0xff] %vm7292_vm12, %v7262_v19  ;;  %v6629_v5 = vadd.f32 %v14272_v24, %v6278_v50  ;;  %v6630_v24 = vadd.f32 %v14298_v62, %v6281_v38  ;;  %v6814_v43 = vpop.f32.mrf.mxu1  ;;  %v6295_v62 = vpop.f32.mrf.mxu3  ;;  %v15560_v19 = vld [vmem:[#allocation132_spill] sm:$0xff] }
 0xcdc   :  { %v6296_v38 = vadd.f32 %v6295_v62, %v15563_v11 }
 0xcdd   :  { %v6913_v47 = vadd.f32 %v14313_v1, %v6629_v5  ;;  %v6914_v1 = vadd.f32 %v14344_v55, %v6630_v24  ;;  %v6530_v44 = vpop.f32.mrf.mxu0  ;;  %v6915_v55 = vadd.f32 %v14367_v51, %v6631_v29  ;;  %v6918_v5 = vadd.f32 %v6808_v58, %v6634_v32 }
 0xcde   :  { %v7074_v0 = vpop.f32.mrf.mxu2 }
 0xcdf   :  { %v7196_v13 = vadd.f32 %v7074_v0, %v6912_v3 }
 0xce1   :  { %v7263_v59 = vadd.f32 %v14021_v35, %v7196_v13 }
 0xce3   :  { %8050 = vmatmul.msk.f32.gmra.mxu2 %vm5756_vm11, %v15473_v27  ;;  %7328 = vst.msk [vmem:[%s14793_s11 + $0x118] sm:$0xff] %vm7292_vm12, %v7263_v59  ;;  %v15552_v27 = vld [vmem:[#allocation123_spill] sm:$0xff]  ;;  %v6817_v12 = vpop.f32.mrf.mxu1  ;;  %v6298_v51 = vpop.f32.mrf.mxu3  ;;  %v15562_v59 = vld [vmem:[#allocation134_spill] sm:$0xff] }
 0xce5   :  { %v6533_v31 = vpop.f32.mrf.mxu0 }
 0xce6   :  { %v7077_v34 = vpop.f32.mrf.mxu2 }
 0xce7   :  { %v7197_v23 = vadd.f32 %v7077_v34, %v6913_v47 }
 0xce9   :  { %v7264_v8 = vadd.f32 %v14021_v35, %v7197_v23 }
 0xceb   :  { %8051 = vmatmul.msk.f32.gmra.mxu2 %vm5756_vm11, %v15552_v27  ;;  %7329 = vst.msk [vmem:[%s14793_s11 + $0x120] sm:$0xff] %vm7292_vm12, %v7264_v8  ;;  %v6301_v3 = vpop.f32.mrf.mxu3  ;;  %v6820_v0 = vpop.f32.mrf.mxu1  ;;  %v6635_v8 = vadd.f32 %v6527_v25, %v6296_v38 }
 0xced   :  { %v6536_v52 = vpop.f32.mrf.mxu0  ;;  %v6919_v54 = vadd.f32 %v6811_v63, %v6635_v8 }
 0xcee   :  { %v7080_v7 = vpop.f32.mrf.mxu2 }
 0xcef   :  { %v7198_v6 = vadd.f32 %v7080_v7, %v6914_v1  ;;  %v15564_v7 = vld [vmem:[#allocation121_spill] sm:$0xff] }
 0xcf1   :  { %v7265_v18 = vadd.f32 %v14021_v35, %v7198_v6  ;;  %v6299_v6 = vadd.f32 %v6298_v51, %v15564_v7 }
 0xcf3   :  { %8052 = vmatmul.msk.f32.gmra.mxu2 %vm5756_vm11, %v15555_v4  ;;  %7330 = vst.msk [vmem:[%s14793_s11 + $0x128] sm:$0xff] %vm7292_vm12, %v7265_v18  ;;  %v6304_v46 = vpop.f32.mrf.mxu3  ;;  %v6823_v49 = vpop.f32.mrf.mxu1  ;;  %v15565_v18 = vld [vmem:[#allocation122_spill] sm:$0xff] }
 0xcf4   :  { %v6302_v4 = vadd.f32 %v6301_v3, %v15565_v18  ;;  %v6305_v17 = vadd.f32 %v6304_v46, %v15566_v28 }
 0xcf5   :  { %v6539_v47 = vpop.f32.mrf.mxu0 }
 0xcf6   :  { %v7083_v22 = vpop.f32.mrf.mxu2 }
 0xcf7   :  { %v7199_v36 = vadd.f32 %v7083_v22, %v6915_v55  ;;  %v6637_v22 = vadd.f32 %v6533_v31, %v6302_v4 }
 0xcf9   :  { %v7266_v37 = vadd.f32 %v14021_v35, %v7199_v36 }
 0xcfb   :  { %8053 = vmatmul.msk.f32.gmra.mxu2 %vm5756_vm11, %v15558_v15  ;;  %7331 = vst.msk [vmem:[%s14793_s11 + $0x130] sm:$0xff] %vm7292_vm12, %v7266_v37  ;;  %v6307_v27 = vpop.f32.mrf.mxu3  ;;  %v6826_v60 = vpop.f32.mrf.mxu1  ;;  %v6638_v15 = vadd.f32 %v6536_v52, %v6305_v17 }
 0xcfd   :  { %v6542_v1 = vpop.f32.mrf.mxu0  ;;  %v6922_v48 = vadd.f32 %v6820_v0, %v6638_v15  ;;  %v15568_v0 = vld [vmem:[#allocation131_spill] sm:$0xff] }
 0xcfe   :  { %v7086_v9 = vpop.f32.mrf.mxu2  ;;  %v15573_v15 = vld [vmem:[#allocation35_spill] sm:$0xff] }
 0xcff   :  { %v7200_v56 = vadd.f32 %v7086_v9, %v6916_v45  ;;  %v15567_v9 = vld [vmem:[#allocation128_spill] sm:$0xff] }
 0xd01   :  { %v7267_v61 = vadd.f32 %v14021_v35, %v7200_v56  ;;  %v6308_v56 = vadd.f32 %v6307_v27, %v15567_v9 }
 0xd03   :  { %8054 = vmatmul.msk.f32.gmra.mxu2 %vm5756_vm11, %v15560_v19  ;;  %7332 = vst.msk [vmem:[%s14793_s11 + $0x138] sm:$0xff] %vm7292_vm12, %v7267_v61  ;;  %v6310_v62 = vpop.f32.mrf.mxu3  ;;  %v6639_v57 = vadd.f32 %v6539_v47, %v6308_v56 }
 0xd05   :  { %v6545_v55 = vpop.f32.mrf.mxu0  ;;  %v6923_v19 = vadd.f32 %v6823_v49, %v6639_v57  ;;  %v15574_v57 = vld [vmem:[#allocation71_spill] sm:$0xff] }
 0xd06   :  { %v7089_v13 = vpop.f32.mrf.mxu2 }
 0xd07   :  { %v7201_v14 = vadd.f32 %v7089_v13, %v6917_v42  ;;  %v6311_v13 = vadd.f32 %v6310_v62, %v15568_v0 }
 0xd09   :  { %v7268_v50 = vadd.f32 %v14021_v35, %v7201_v14 }
 0xd0b   :  { %8055 = vmatmul.msk.f32.gmra.mxu2 %vm5756_vm11, %v15562_v59  ;;  %7333 = vst.msk [vmem:[%s14793_s11 + $0x140] sm:$0xff] %vm7292_vm12, %v7268_v50  ;;  %v6313_v37 = vpop.f32.mrf.mxu3 }
 0xd0d   :  { %v6548_v31 = vpop.f32.mrf.mxu0 }
 0xd0e   :  { %v7092_v34 = vpop.f32.mrf.mxu2 }
 0xd0f   :  { %v7202_v23 = vadd.f32 %v7092_v34, %v6918_v5  ;;  %v15569_v5 = vld [vmem:[#allocation133_spill] sm:$0xff] }
 0xd10   :  { %v6314_v47 = vadd.f32 %v6313_v37, %v15569_v5 }
 0xd11   :  { %v7269_v16 = vadd.f32 %v14021_v35, %v7202_v23 }
 0xd12   :  { %v6641_v23 = vadd.f32 %v6545_v55, %v6314_v47  ;;  %v15572_v55 = vld [vmem:[#allocation136_spill] sm:$0xff] }
 0xd13   :  { %8056 = vmatmul.msk.f32.gmra.mxu2 %vm5756_vm11, %v14326_v33  ;;  %7334 = vst.msk [vmem:[%s14793_s11 + $0x148] sm:$0xff] %vm7292_vm12, %v7269_v16  ;;  %v6636_v33 = vadd.f32 %v6530_v44, %v6299_v6  ;;  %v6921_v44 = vadd.f32 %v6817_v12, %v6637_v22  ;;  %v6316_v61 = vpop.f32.mrf.mxu3  ;;  %v15570_v16 = vld [vmem:[#allocation135_spill] sm:$0xff] }
 0xd14   :  { %v6317_v8 = vadd.f32 %v6316_v61, %v15570_v16 }
 0xd15   :  { %v6920_v25 = vadd.f32 %v6814_v43, %v6636_v33  ;;  %v6551_v30 = vpop.f32.mrf.mxu0 }
 0xd16   :  { %v7095_v58 = vpop.f32.mrf.mxu2  ;;  %v6642_v27 = vadd.f32 %v6548_v31, %v6317_v8 }
 0xd17   :  { %v7203_v24 = vadd.f32 %v7095_v58, %v6919_v54  ;;  %v14686_v54 = vld [vmem:[%s14792_s10] ss:$0 sm:$0xff] }
 0xd19   :  { %v7270_v10 = vadd.f32 %v14021_v35, %v7203_v24 }
 0xd1b   :  { %8057 = vmatmul.msk.f32.gmra.mxu2 %vm5756_vm11, %v14348_v21  ;;  %7335 = vst.msk [vmem:[%s14793_s11 + $0x150] sm:$0xff] %vm7292_vm12, %v7270_v10  ;;  %v6829_v21 = vpop.f32.mrf.mxu1  ;;  %v6319_v40 = vpop.f32.mrf.mxu3 }
 0xd1d   :  { %v6554_v32 = vpop.f32.mrf.mxu0 }
 0xd1e   :  { %v7098_v63 = vpop.f32.mrf.mxu2 }
 0xd1f   :  { %v7204_v41 = vadd.f32 %v7098_v63, %v6920_v25 }
 0xd21   :  { %v7271_v29 = vadd.f32 %v14021_v35, %v7204_v41 }
 0xd23   :  { %8058 = vmatmul.msk.f32.gmra.mxu2 %vm5756_vm11, %v11328_v26  ;;  %7336 = vst.msk [vmem:[%s14793_s11 + $0x158] sm:$0xff] %vm7292_vm12, %v7271_v29  ;;  %v6832_v51 = vpop.f32.mrf.mxu1  ;;  %v6322_v11 = vpop.f32.mrf.mxu3 }
 0xd24   :  { %v6323_v22 = vadd.f32 %v6322_v11, %v15572_v55 }
 0xd25   :  { %v6557_v58 = vpop.f32.mrf.mxu0 }
 0xd26   :  { %v7101_v43 = vpop.f32.mrf.mxu2 }
 0xd27   :  { %v7205_v36 = vadd.f32 %v7101_v43, %v6921_v44  ;;  %v6644_v43 = vadd.f32 %v6554_v32, %v6323_v22 }
 0xd29   :  { %v7272_v53 = vadd.f32 %v14021_v35, %v7205_v36 }
 0xd2b   :  { %8059 = vmatmul.msk.f32.gmra.mxu2 %vm5756_vm11, %v11347_v2  ;;  %7337 = vst.msk [vmem:[%s14793_s11 + $0x160] sm:$0xff] %vm7292_vm12, %v7272_v53  ;;  %v6835_v42 = vpop.f32.mrf.mxu1  ;;  %v6325_v6 = vpop.f32.mrf.mxu3 }
 0xd2c   :  { %v6326_v31 = vadd.f32 %v6325_v6, %v15573_v15 }
 0xd2d   :  { %v6560_v41 = vpop.f32.mrf.mxu0 }
 0xd2e   :  { %v7104_v12 = vpop.f32.mrf.mxu2 }
 0xd2f   :  { %v7206_v45 = vadd.f32 %v7104_v12, %v6922_v48  ;;  %v6645_v12 = vadd.f32 %v6557_v58, %v6326_v31 }
 0xd31   :  { %v7273_v20 = vadd.f32 %v14021_v35, %v7206_v45 }
 0xd33   :  { %8060 = vmatmul.msk.f32.gmra.mxu2 %vm5756_vm11, %v11328_v26  ;;  %7338 = vst.msk [vmem:[%s14793_s11 + $0x168] sm:$0xff] %vm7292_vm12, %v7273_v20  ;;  %v6640_v26 = vadd.f32 %v6542_v1, %v6311_v13  ;;  %v6838_v46 = vpop.f32.mrf.mxu1  ;;  %v6926_v1 = vadd.f32 %v6832_v51, %v6642_v27  ;;  %v15577_v27 = vld [vmem:[#allocation73_spill] sm:$0xff] }
 0xd34   :  { %v6928_v36 = vadd.f32 %v6838_v46, %v6644_v43  ;;  %v15576_v46 = vld [vmem:[#allocation70_spill] sm:$0xff] }
 0xd35   :  { %v6924_v39 = vadd.f32 %v6826_v60, %v6640_v26  ;;  %v15571_v60 = vld [vmem:[#allocation53_spill] sm:$0xff]  ;;  %v6563_v28 = vpop.f32.mrf.mxu0 }
 0xd36   :  { %v7107_v52 = vpop.f32.mrf.mxu2  ;;  %v6320_v33 = vadd.f32 %v6319_v40, %v15571_v60 }
 0xd37   :  { %v7207_v3 = vadd.f32 %v7107_v52, %v6923_v19 }
 0xd38   :  { %v6643_v63 = vadd.f32 %v6551_v30, %v6320_v33 }
 0xd39   :  { %v7274_v14 = vadd.f32 %v14021_v35, %v7207_v3 }
 0xd3a   :  { %v6927_v18 = vadd.f32 %v6835_v42, %v6643_v63 }
 0xd3b   :  { %8061 = vmatmul.msk.f32.gmra.mxu2 %vm5756_vm11, %v11347_v2  ;;  %7339 = vst.msk [vmem:[%s14793_s11 + $0x170] sm:$0xff] %vm7292_vm12, %v7274_v14  ;;  %v6925_v2 = vadd.f32 %v6829_v21, %v6641_v23  ;;  %v6841_v24 = vpop.f32.mrf.mxu1  ;;  %v6328_v21 = vpop.f32.mrf.mxu3  ;;  %v15575_v14 = vld [vmem:[#allocation55_spill] sm:$0xff] }
 0xd3c   :  { %v6929_v45 = vadd.f32 %v6841_v24, %v6645_v12  ;;  %v6329_v61 = vadd.f32 %v6328_v21, %v15574_v57 }
 0xd3d   :  { %v6566_v20 = vpop.f32.mrf.mxu0 }
 0xd3e   :  { %v7110_v50 = vpop.f32.mrf.mxu2  ;;  %v6646_v52 = vadd.f32 %v6560_v41, %v6329_v61  ;;  %v15578_v41 = vld [vmem:[#allocation138_spill] sm:$0xff] }
 0xd3f   :  { %v7208_v59 = vadd.f32 %v7110_v50, %v6924_v39 }
 0xd41   :  { %v7275_v34 = vadd.f32 %v14021_v35, %v7208_v59 }
 0xd43   :  { %7340 = vst.msk [vmem:[%s14793_s11 + $0x178] sm:$0xff] %vm7292_vm12, %v7275_v34  ;;  %v6844_v4 = vpop.f32.mrf.mxu1  ;;  %v6331_v51 = vpop.f32.mrf.mxu3 }
 0xd44   :  { %v6930_v42 = vadd.f32 %v6844_v4, %v6646_v52  ;;  %v6332_v26 = vadd.f32 %v6331_v51, %v15575_v14 }
 0xd45   :  { %v6569_v39 = vpop.f32.mrf.mxu0 }
 0xd46   :  { %v7113_v49 = vpop.f32.mrf.mxu2  ;;  %v6647_v50 = vadd.f32 %v6563_v28, %v6332_v26 }
 0xd47   :  { %v7209_v38 = vadd.f32 %v7113_v49, %v6925_v2 }
 0xd49   :  { %v7276_v35 = vadd.f32 %v14686_v54, %v7209_v38 }
 0xd4b   :  { %7341 = vst.msk [vmem:[%s14793_s11 + $0x180] sm:$0xff] %vm7292_vm12, %v7276_v35  ;;  %v6847_v37 = vpop.f32.mrf.mxu1  ;;  %v6334_v3 = vpop.f32.mrf.mxu3 }
 0xd4c   :  { %v6931_v5 = vadd.f32 %v6847_v37, %v6647_v50  ;;  %v6335_v23 = vadd.f32 %v6334_v3, %v15576_v46  ;;  %v15582_v50 = vld [vmem:[#allocation144_spill] sm:$0xff] }
 0xd4d   :  { %v6572_v11 = vpop.f32.mrf.mxu0 }
 0xd4e   :  { %v7116_v7 = vpop.f32.mrf.mxu2  ;;  %v6648_v49 = vadd.f32 %v6566_v20, %v6335_v23 }
 0xd4f   :  { %v7210_v10 = vadd.f32 %v7116_v7, %v6926_v1 }
 0xd51   :  { %v7277_v25 = vadd.f32 %v14686_v54, %v7210_v10 }
 0xd53   :  { %7342 = vst.msk [vmem:[%s14793_s11 + $0x188] sm:$0xff] %vm7292_vm12, %v7277_v25  ;;  %v6850_v30 = vpop.f32.mrf.mxu1  ;;  %v6337_v32 = vpop.f32.mrf.mxu3 }
 0xd54   :  { %v6932_v38 = vadd.f32 %v6850_v30, %v6648_v49  ;;  %v6338_v24 = vadd.f32 %v6337_v32, %v15577_v27  ;;  %v15581_v30 = vld [vmem:[#allocation143_spill] sm:$0xff] }
 0xd55   :  { %v6575_v10 = vpop.f32.mrf.mxu0 }
 0xd56   :  { %v7119_v62 = vpop.f32.mrf.mxu2  ;;  %v6649_v7 = vadd.f32 %v6569_v39, %v6338_v24 }
 0xd57   :  { %v7211_v29 = vadd.f32 %v7119_v62, %v6927_v18 }
 0xd59   :  { %v7278_v44 = vadd.f32 %v14686_v54, %v7211_v29 }
 0xd5b   :  { %7343 = vst.msk [vmem:[%s14793_s11 + $0x190] sm:$0xff] %vm7292_vm12, %v7278_v44  ;;  %v6853_v59 = vpop.f32.mrf.mxu1  ;;  %v6340_v35 = vpop.f32.mrf.mxu3  ;;  %v15579_v44 = vld [vmem:[#allocation13_spill] sm:$0xff] }
 0xd5c   :  { %v6933_v6 = vadd.f32 %v6853_v59, %v6649_v7  ;;  %v6341_v18 = vadd.f32 %v6340_v35, %v15578_v41  ;;  %v15584_v7 = vld [vmem:[#allocation14_spill] sm:$0xff] }
 0xd5d   :  { %v6578_v21 = vpop.f32.mrf.mxu0 }
 0xd5e   :  { %v7122_v17 = vpop.f32.mrf.mxu2  ;;  %v6650_v62 = vadd.f32 %v6572_v11, %v6341_v18  ;;  %v15583_v11 = vld [vmem:[#allocation72_spill] sm:$0xff] }
 0xd5f   :  { %v7212_v53 = vadd.f32 %v7122_v17, %v6928_v36 }
 0xd61   :  { %v7279_v48 = vadd.f32 %v14686_v54, %v7212_v53 }
 0xd63   :  { %7344 = vst.msk [vmem:[%s14793_s11 + $0x198] sm:$0xff] %vm7292_vm12, %v7279_v48  ;;  %v6856_v16 = vpop.f32.mrf.mxu1  ;;  %v6343_v33 = vpop.f32.mrf.mxu3  ;;  %v15580_v48 = vld [vmem:[#allocation140_spill] sm:$0xff] }
 0xd64   :  { %v6934_v29 = vadd.f32 %v6856_v16, %v6650_v62  ;;  %v6344_v43 = vadd.f32 %v6343_v33, %v15579_v44 }
 0xd66   :  { %v7125_v9 = vpop.f32.mrf.mxu2  ;;  %v6651_v53 = vadd.f32 %v6575_v10, %v6344_v43 }
 0xd67   :  { %v7213_v56 = vadd.f32 %v7125_v9, %v6929_v45  ;;  %v6581_v45 = vpop.f32.mrf.mxu0 }
 0xd69   :  { %v7280_v19 = vadd.f32 %v14686_v54, %v7213_v56 }
 0xd6b   :  { %7345 = vst.msk [vmem:[%s14793_s11 + $0x1a0] sm:$0xff] %vm7292_vm12, %v7280_v19  ;;  %v6859_v63 = vpop.f32.mrf.mxu1  ;;  %v6346_v36 = vpop.f32.mrf.mxu3 }
 0xd6c   :  { %v6935_v37 = vadd.f32 %v6859_v63, %v6651_v53  ;;  %v6347_v51 = vadd.f32 %v6346_v36, %v15580_v48 }
 0xd6e   :  { %v7128_v0 = vpop.f32.mrf.mxu2  ;;  %v6652_v56 = vadd.f32 %v6578_v21, %v6347_v51 }
 0xd6f   :  { %v7214_v13 = vadd.f32 %v7128_v0, %v6930_v42  ;;  %v6584_v0 = vpop.f32.mrf.mxu0 }
 0xd71   :  { %v7281_v40 = vadd.f32 %v14686_v54, %v7214_v13 }
 0xd73   :  { %7346 = vst.msk [vmem:[%s14793_s11 + $0x1a8] sm:$0xff] %vm7292_vm12, %v7281_v40  ;;  %v6862_v17 = vpop.f32.mrf.mxu1  ;;  %v6349_v9 = vpop.f32.mrf.mxu3 }
 0xd74   :  { %v6936_v57 = vadd.f32 %v6862_v17, %v6652_v56  ;;  %v6350_v52 = vadd.f32 %v6349_v9, %v15581_v30 }
 0xd76   :  { %v7131_v47 = vpop.f32.mrf.mxu2  ;;  %v6653_v42 = vadd.f32 %v6581_v45, %v6350_v52 }
 0xd77   :  { %v7215_v34 = vadd.f32 %v7131_v47, %v6931_v5  ;;  %v6587_v46 = vpop.f32.mrf.mxu0 }
 0xd79   :  { %v7282_v2 = vadd.f32 %v14686_v54, %v7215_v34 }
 0xd7b   :  { %7347 = vst.msk [vmem:[%s14793_s11 + $0x1b0] sm:$0xff] %vm7292_vm12, %v7282_v2  ;;  %v6865_v20 = vpop.f32.mrf.mxu1  ;;  %v6352_v13 = vpop.f32.mrf.mxu3 }
 0xd7c   :  { %v6937_v14 = vadd.f32 %v6865_v20, %v6653_v42  ;;  %v6353_v59 = vadd.f32 %v6352_v13, %v15582_v50 }
 0xd7e   :  { %v7134_v8 = vpop.f32.mrf.mxu2  ;;  %v6654_v5 = vadd.f32 %v6584_v0, %v6353_v59 }
 0xd7f   :  { %v7216_v58 = vadd.f32 %v7134_v8, %v6932_v38 }
 0xd81   :  { %v7283_v1 = vadd.f32 %v14686_v54, %v7216_v58 }
 0xd83   :  { %7348 = vst.msk [vmem:[%s14793_s11 + $0x1b8] sm:$0xff] %vm7292_vm12, %v7283_v1  ;;  %v6868_v26 = vpop.f32.mrf.mxu1  ;;  %v6355_v47 = vpop.f32.mrf.mxu3 }
 0xd84   :  { %v6938_v34 = vadd.f32 %v6868_v26, %v6654_v5  ;;  %v6356_v38 = vadd.f32 %v6355_v47, %v15583_v11  ;;  %v6590_v1 = vpop.f32.mrf.mxu0 }
 0xd86   :  { %v7137_v60 = vpop.f32.mrf.mxu2  ;;  %v6655_v8 = vadd.f32 %v6587_v46, %v6356_v38 }
 0xd87   :  { %v7217_v25 = vadd.f32 %v7137_v60, %v6933_v6 }
 0xd89   :  { %v7284_v4 = vadd.f32 %v14686_v54, %v7217_v25 }
 0xd8b   :  { %7349 = vst.msk [vmem:[%s14793_s11 + $0x1c0] sm:$0xff] %vm7292_vm12, %v7284_v4  ;;  %v6871_v49 = vpop.f32.mrf.mxu1  ;;  %v6358_v24 = vpop.f32.mrf.mxu3 }
 0xd8c   :  { %v6939_v35 = vadd.f32 %v6871_v49, %v6655_v8  ;;  %v6359_v6 = vadd.f32 %v6358_v24, %v15584_v7 }
 0xd8e   :  { %v7140_v55 = vpop.f32.mrf.mxu2  ;;  %v6656_v33 = vadd.f32 %v6590_v1, %v6359_v6 }
 0xd8f   :  { %v7218_v22 = vadd.f32 %v7140_v55, %v6934_v29 }
 0xd91   :  { %v7285_v28 = vadd.f32 %v14686_v54, %v7218_v22 }
 0xd93   :  { %7350 = vst.msk [vmem:[%s14793_s11 + $0x1c8] sm:$0xff] %vm7292_vm12, %v7285_v28  ;;  %v6874_v60 = vpop.f32.mrf.mxu1 }
 0xd94   :  { %v6940_v25 = vadd.f32 %v6874_v60, %v6656_v33 }
 0xd96   :  { %v7143_v15 = vpop.f32.mrf.mxu2 }
 0xd97   :  { %v7219_v31 = vadd.f32 %v7143_v15, %v6935_v37 }
 0xd99   :  { %v7286_v12 = vadd.f32 %v14686_v54, %v7219_v31 }
 0xd9b   :  { %7351 = vst.msk [vmem:[%s14793_s11 + $0x1d0] sm:$0xff] %vm7292_vm12, %v7286_v12 }
 0xd9e   :  { %v7146_v61 = vpop.f32.mrf.mxu2 }
 0xd9f   :  { %v7220_v19 = vadd.f32 %v7146_v61, %v6936_v57 }
 0xda1   :  { %v7287_v3 = vadd.f32 %v14686_v54, %v7220_v19 }
 0xda3   :  { %7352 = vst.msk [vmem:[%s14793_s11 + $0x1d8] sm:$0xff] %vm7292_vm12, %v7287_v3 }
 0xda6   :  { %v7149_v40 = vpop.f32.mrf.mxu2 }
 0xda7   :  { %v7221_v39 = vadd.f32 %v7149_v40, %v6937_v14 }
 0xda9   :  { %v7288_v32 = vadd.f32 %v14686_v54, %v7221_v39 }
 0xdab   :  { %7353 = vst.msk [vmem:[%s14793_s11 + $0x1e0] sm:$0xff] %vm7292_vm12, %v7288_v32 }
 0xdae   :  { %v7152_v23 = vpop.f32.mrf.mxu2 }
 0xdaf   :  { %v7222_v2 = vadd.f32 %v7152_v23, %v6938_v34 }
 0xdb1   :  { %v7289_v16 = vadd.f32 %v14686_v54, %v7222_v2 }
 0xdb3   :  { %7354 = vst.msk [vmem:[%s14793_s11 + $0x1e8] sm:$0xff] %vm7292_vm12, %v7289_v16 }
 0xdb6   :  { %v7155_v58 = vpop.f32.mrf.mxu2 }
 0xdb7   :  { %v7223_v27 = vadd.f32 %v7155_v58, %v6939_v35 }
 0xdb9   :  { %v7290_v10 = vadd.f32 %v14686_v54, %v7223_v27 }
 0xdbb   :  { %7355 = vst.msk [vmem:[%s14793_s11 + $0x1f0] sm:$0xff] %vm7292_vm12, %v7290_v10 }
 0xdbe   :  { %v7158_v63 = vpop.f32.mrf.mxu2 }
 0xdbf   :  { %v7224_v41 = vadd.f32 %v7158_v63, %v6940_v25 }
 0xdc1   :  { %v7291_v18 = vadd.f32 %v14686_v54, %v7224_v41 }
 0xdc3   :  { %7356 = vst.msk [vmem:[%s14793_s11 + $0x1f8] sm:$0xff] %vm7292_vm12, %v7291_v18 }

</bundles_post_ra>
